<compile_context>
chip_gen: v7x
topology: tpu7x:2x2x1
jax: 0.10.0
libtpu: 0.0.40
codegen_flags: <defaults>
</compile_context>

<pallas_src>
import jax
import jax.numpy as jnp
from jax.experimental import pallas as pl
from jax.experimental.pallas import tpu as pltpu

LATENT_DIM = 12
TILE_B = 32   # batch tile (multiple of 8 sublanes / 16 bf16 sublanes)
ROWS1 = 2     # conv1 pre-pool output rows per inner slice (must be even)
ROWS2 = 4     # conv2 pre-pool output rows per inner slice (must be even)


# ---------------------------------------------------------------------------
# Host-side weight transforms (pure re-indexing of the PyTorch weights).
# ---------------------------------------------------------------------------
def _make_band(w, w_in, stride, parity):
    """Band matrix for a valid conv along W (contracts C_in and kw).

    Row index  = ci * w_in + w_in_pos   (matches the fused (C,W) activation lanes)
    Col index  = co * w_q  + q, producing output columns j = stride*q + parity
    Returns (kh, C_in*w_in, C_out*w_q), f32."""
    c_out, c_in, kh, kw = w.shape
    w_out = w_in - kw + 1
    w_q = w_out // stride if stride > 1 else w_out
    wi = jnp.arange(w_in)[:, None]                     # (w_in, 1)
    col = stride * jnp.arange(w_q)[None, :] + parity   # (1, w_q)
    dw = wi - col
    valid = (dw >= 0) & (dw < kw)
    dwc = jnp.clip(dw, 0, kw - 1)
    band = w[:, :, :, dwc]                             # (c_out, c_in, kh, w_in, w_q)
    band = band * valid[None, None, None].astype(w.dtype)
    band = band.transpose(2, 1, 3, 0, 4)               # (kh, c_in, w_in, c_out, w_q)
    return band.reshape(kh, c_in * w_in, c_out * w_q)


# ---------------------------------------------------------------------------
# Fused encoder kernel (one batch tile of TILE_B samples per grid step).
#   x_ref  : (28, T, 28)   bf16   input tile (H, batch, W)
#   w1_ref : (5, 28, 512)  bf16   conv1 band, even cols @ [0,192), odd @ [256,448)
#   w2_ref : (5, 192, 256) bf16   conv2 band, even @ [0,128), odd @ [128,256)
#   w3_ref : (3, 128, 128) bf16   conv3 band
#   wl_ref : (2, 128, 12)  bf16   linear weight (NCHW flatten folded in)
#   p1_ref : (12, T, 192)  bf16   pooled conv1 activations (lanes = c*12 + w)
#   p2_ref : (4,  T, 128)  bf16   pooled conv2 activations (lanes = c*4 + w)
# ---------------------------------------------------------------------------
def _encoder_kernel(x_ref, w1_ref, b1_ref, w2_ref, b2_ref, w3_ref, b3_ref,
                    wl_ref, bl_ref, o_ref, p1_ref, p2_ref):
    f32 = jnp.float32
    bf16 = jnp.bfloat16
    T = x_ref.shape[1]

    # ---- conv1 (1->16, 5x5) + ReLU + 2x2 maxpool --------------------------
    # Even/odd output-column bands share one 512-lane rhs; their max is the
    # W pool (bias is parity-shared and ReLU/max commute, so one add+ReLU).
    for s in range(24 // ROWS1):                 # pre-pool rows [ROWS1*s, +ROWS1)
        r0 = ROWS1 * s
        lhs = x_ref[r0:r0 + ROWS1, :, :].reshape(ROWS1 * T, 28)
        acc = jnp.dot(lhs, w1_ref[0], preferred_element_type=f32)
        for dh in range(1, 5):
            lhs = x_ref[r0 + dh:r0 + dh + ROWS1, :, :].reshape(ROWS1 * T, 28)
            acc = acc + jnp.dot(lhs, w1_ref[dh], preferred_element_type=f32)
        a = jnp.maximum(acc[:, 0:192], acc[:, 256:448])          # W pool
        a = jnp.maximum(a + b1_ref[...], 0.0)                    # bias + ReLU
        a = a.reshape(ROWS1 // 2, 2, T, 192)
        p1_ref[s * (ROWS1 // 2):(s + 1) * (ROWS1 // 2), :, :] = (
            jnp.maximum(a[:, 0], a[:, 1]).astype(bf16))          # H pool

    # ---- conv2 (16->32, 5x5) + ReLU + 2x2 maxpool -------------------------
    for s in range(8 // ROWS2):
        r0 = ROWS2 * s
        lhs = p1_ref[r0:r0 + ROWS2, :, :].reshape(ROWS2 * T, 192)
        acc = jnp.dot(lhs, w2_ref[0], preferred_element_type=f32)
        for dh in range(1, 5):
            lhs = p1_ref[r0 + dh:r0 + dh + ROWS2, :, :].reshape(ROWS2 * T, 192)
            acc = acc + jnp.dot(lhs, w2_ref[dh], preferred_element_type=f32)
        a = jnp.maximum(acc[:, 0:128], acc[:, 128:256])          # W pool
        a = jnp.maximum(a + b2_ref[...], 0.0)                    # bias + ReLU
        a = a.reshape(ROWS2 // 2, 2, T, 128)
        p2_ref[s * (ROWS2 // 2):(s + 1) * (ROWS2 // 2), :, :] = (
            jnp.maximum(a[:, 0], a[:, 1]).astype(bf16))          # H pool

    # ---- conv3 (32->64, 3x3) + ReLU.  rows = (i, t), lanes = c*2 + j ------
    lhs = p2_ref[0:2, :, :].reshape(2 * T, 128)
    acc3 = jnp.dot(lhs, w3_ref[0], preferred_element_type=f32)
    for dh in range(1, 3):
        lhs = p2_ref[dh:dh + 2, :, :].reshape(2 * T, 128)
        acc3 = acc3 + jnp.dot(lhs, w3_ref[dh], preferred_element_type=f32)
    a3 = jnp.maximum(acc3 + b3_ref[...], 0.0).astype(bf16)

    # ---- flatten (NCHW order folded into wl_ref) + Linear(256->12) + ReLU --
    out = jnp.dot(a3[0:T, :], wl_ref[0], preferred_element_type=f32)
    out = out + jnp.dot(a3[T:2 * T, :], wl_ref[1], preferred_element_type=f32)
    o_ref[...] = jnp.maximum(out + bl_ref[...], 0.0)


# ---------------------------------------------------------------------------
# Wrapper.
# ---------------------------------------------------------------------------
def encoder_forward(params, x):
    """x: (B, 1, 28, 28) f32 -> (B, LATENT_DIM) f32."""
    B = x.shape[0]
    T = TILE_B
    nt = (B + T - 1) // T
    Bp = nt * T

    # Single fused prologue: drop channel dim, cast bf16, pad batch, re-lay
    # out as one contiguous (28, T, 28) slab per batch tile so each grid step
    # is one contiguous ~50 KiB DMA (no strided gathers).
    xs = x[:, 0, :, :].astype(jnp.bfloat16)
    if Bp != B:
        xs = jnp.pad(xs, ((0, Bp - B), (0, 0), (0, 0)))
    xs = xs.reshape(nt, T, 28, 28).transpose(0, 2, 1, 3).reshape(nt * 28, T, 28)

    w1, b1 = params["w1"], params["b1"]
    w2, b2 = params["w2"], params["b2"]
    w3, b3 = params["w3"], params["b3"]
    wl, bl = params["wl"], params["bl"]

    # conv1 band: even cols at lanes [0,192), odd at [256,448) (128-aligned).
    w1e = _make_band(w1, 28, 2, 0)                         # (5, 28, 192)
    w1o = _make_band(w1, 28, 2, 1)
    w1f = jnp.zeros((5, 28, 512), jnp.float32)
    w1f = w1f.at[:, :, 0:192].set(w1e).at[:, :, 256:448].set(w1o)
    w1f = w1f.astype(jnp.bfloat16)
    # conv2 band: even at [0,128), odd at [128,256).
    w2e = _make_band(w2, 12, 2, 0)                         # (5, 192, 128)
    w2o = _make_band(w2, 12, 2, 1)
    w2f = jnp.concatenate([w2e, w2o], axis=-1).astype(jnp.bfloat16)  # (5,192,256)
    w3b = _make_band(w3, 4, 1, 0).astype(jnp.bfloat16)     # (3, 128, 128)

    b1v = jnp.repeat(b1, 12).reshape(1, 192).astype(jnp.float32)
    b2v = jnp.repeat(b2, 4).reshape(1, 128).astype(jnp.float32)
    b3v = jnp.repeat(b3, 2).reshape(1, 128).astype(jnp.float32)
    # Linear weight re-indexed so a3's (c*2+j) lanes and its two H rows
    # reproduce PyTorch's NCHW flatten (k = c*4 + i*2 + j).
    wlr = (wl.reshape(LATENT_DIM, 64, 2, 2).transpose(2, 1, 3, 0)
             .reshape(2, 128, LATENT_DIM).astype(jnp.bfloat16))
    blv = bl.reshape(1, LATENT_DIM).astype(jnp.float32)

    out = pl.pallas_call(
        _encoder_kernel,
        out_shape=jax.ShapeDtypeStruct((Bp, LATENT_DIM), jnp.float32),
        grid=(nt,),
        in_specs=[
            pl.BlockSpec((28, T, 28), lambda b: (b, 0, 0)),           # x tile (contiguous)
            pl.BlockSpec((5, 28, 512), lambda b: (0, 0, 0)),          # conv1 band (fused e/o)
            pl.BlockSpec((1, 192), lambda b: (0, 0)),                 # b1
            pl.BlockSpec((5, 192, 256), lambda b: (0, 0, 0)),         # conv2 band (fused e/o)
            pl.BlockSpec((1, 128), lambda b: (0, 0)),                 # b2
            pl.BlockSpec((3, 128, 128), lambda b: (0, 0, 0)),         # conv3 band
            pl.BlockSpec((1, 128), lambda b: (0, 0)),                 # b3
            pl.BlockSpec((2, 128, LATENT_DIM), lambda b: (0, 0, 0)),  # linear W
            pl.BlockSpec((1, LATENT_DIM), lambda b: (0, 0)),          # linear b
        ],
        out_specs=pl.BlockSpec((T, LATENT_DIM), lambda b: (b, 0)),
        scratch_shapes=[pltpu.VMEM((12, T, 192), jnp.bfloat16),       # pooled conv1
                        pltpu.VMEM((4, T, 128), jnp.bfloat16)],       # pooled conv2
        compiler_params=pltpu.CompilerParams(
            dimension_semantics=("parallel",)),
    )(xs, w1f, b1v, w2f, b2v, w3b, b3v, wlr, blv)
    return out[:B]


# ---------------------------------------------------------------------------
# Params + pure-JAX reference (for a sanity check of the fused kernel).
# ---------------------------------------------------------------------------
def init_params(key):
    ks = jax.random.split(key, 8)

    def w_init(k, shape, fan_in):
        return (jax.random.normal(k, shape, jnp.float32) / jnp.sqrt(fan_in)).astype(jnp.float32)

    return {
        "w1": w_init(ks[0], (16, 1, 5, 5), 25),
        "b1": 0.01 * jax.random.normal(ks[1], (16,), jnp.float32),
        "w2": w_init(ks[2], (32, 16, 5, 5), 400),
        "b2": 0.01 * jax.random.normal(ks[3], (32,), jnp.float32),
        "w3": w_init(ks[4], (64, 32, 3, 3), 288),
        "b3": 0.01 * jax.random.normal(ks[5], (64,), jnp.float32),
        "wl": w_init(ks[6], (LATENT_DIM, 64 * 2 * 2), 256),
        "bl": 0.01 * jax.random.normal(ks[7], (LATENT_DIM,), jnp.float32),
    }


def _reference_forward(params, x):
    dn = ("NCHW", "OIHW", "NCHW")

    def conv(y, w, b):
        y = jax.lax.conv_general_dilated(y, w, (1, 1), "VALID", dimension_numbers=dn)
        return jax.nn.relu(y + b[None, :, None, None])

    def pool(y):
        return jax.lax.reduce_window(y, -jnp.inf, jax.lax.max,
                                     (1, 1, 2, 2), (1, 1, 2, 2), "VALID")

    y = pool(conv(x, params["w1"], params["b1"]))
    y = pool(conv(y, params["w2"], params["b2"]))
    y = conv(y, params["w3"], params["b3"])
    y = y.reshape(y.shape[0], -1)
    return jax.nn.relu(y @ params["wl"].T + params["bl"])


if __name__ == "__main__":
    key = jax.random.PRNGKey(0)
    pkey, xkey = jax.random.split(key)
    params = init_params(pkey)
    fwd = jax.jit(encoder_forward)

    # Encoder implies 28x28 single-channel input: 28->24->12->8->4->2.
    # B=2 exercises the padded single-tile path; B=40 exercises a 2-step grid.
    for batch in (2, 40):
        x = jax.random.normal(jax.random.fold_in(xkey, batch),
                              (batch, 1, 28, 28), jnp.float32)
        out = jax.block_until_ready(fwd(params, x))
        assert out.shape == (batch, LATENT_DIM), out.shape
        assert bool(jnp.all(jnp.isfinite(out)))
        ref = _reference_forward(params, x)
        err = float(jnp.max(jnp.abs(out - ref)))
        # bf16 MXU operands vs. f32 reference -> loosened tolerance (per review).
        assert bool(jnp.allclose(out, ref, atol=3e-2, rtol=3e-2)), err
    print("KERNEL_OK")
</pallas_src>

<mosaic_0001>
module attributes {stable_mosaic.version = 11 : i64} {
  func.func @_encoder_kernel(%arg0: i32, %arg1: memref<28x32x28xbf16, #tpu.memory_space<vmem>>, %arg2: memref<5x28x512xbf16, #tpu.memory_space<vmem>>, %arg3: memref<1x192xf32, #tpu.memory_space<vmem>>, %arg4: memref<5x192x256xbf16, #tpu.memory_space<vmem>>, %arg5: memref<1x128xf32, #tpu.memory_space<vmem>>, %arg6: memref<3x128x128xbf16, #tpu.memory_space<vmem>>, %arg7: memref<1x128xf32, #tpu.memory_space<vmem>>, %arg8: memref<2x128x12xbf16, #tpu.memory_space<vmem>>, %arg9: memref<1x12xf32, #tpu.memory_space<vmem>>, %arg10: memref<32x12xf32, #tpu.memory_space<vmem>>, %arg11: memref<12x32x192xbf16, #tpu.memory_space<vmem>>, %arg12: memref<4x32x128xbf16, #tpu.memory_space<vmem>>) attributes {dimension_semantics = [#tpu.dimension_semantics<parallel>], iteration_bounds = array<i64: 1>, scalar_prefetch = 0 : i64, scratch_operands = 2 : i64, tpu.core_type = #tpu.core_type<tc>, window_params = [{transform_indices = @transform_0, window_bounds = array<i64: 28, 32, 28>}, {pipeline_mode = #tpu.pipeline_mode<synchronous>, transform_indices = @transform_1, window_bounds = array<i64: 5, 28, 512>}, {pipeline_mode = #tpu.pipeline_mode<synchronous>, transform_indices = @transform_2, window_bounds = array<i64: 1, 192>}, {pipeline_mode = #tpu.pipeline_mode<synchronous>, transform_indices = @transform_3, window_bounds = array<i64: 5, 192, 256>}, {pipeline_mode = #tpu.pipeline_mode<synchronous>, transform_indices = @transform_4, window_bounds = array<i64: 1, 128>}, {pipeline_mode = #tpu.pipeline_mode<synchronous>, transform_indices = @transform_5, window_bounds = array<i64: 3, 128, 128>}, {pipeline_mode = #tpu.pipeline_mode<synchronous>, transform_indices = @transform_6, window_bounds = array<i64: 1, 128>}, {pipeline_mode = #tpu.pipeline_mode<synchronous>, transform_indices = @transform_7, window_bounds = array<i64: 2, 128, 12>}, {pipeline_mode = #tpu.pipeline_mode<synchronous>, transform_indices = @transform_8, window_bounds = array<i64: 1, 12>}, {transform_indices = @transform_9, window_bounds = array<i64: 32, 12>}]} {
    %c0 = arith.constant 0 : index
    %c0_0 = arith.constant 0 : index
    %c0_1 = arith.constant 0 : index
    %0 = vector.load %arg1[%c0, %c0_0, %c0_1] : memref<28x32x28xbf16, #tpu.memory_space<vmem>>, vector<2x32x28xbf16>
    %1 = vector.shape_cast %0 : vector<2x32x28xbf16> to vector<64x28xbf16>
    %c0_2 = arith.constant 0 : index
    %c0_3 = arith.constant 0 : index
    %c0_4 = arith.constant 0 : index
    %2 = vector.load %arg2[%c0_2, %c0_3, %c0_4] : memref<5x28x512xbf16, #tpu.memory_space<vmem>>, vector<1x28x512xbf16>
    %3 = vector.shape_cast %2 : vector<1x28x512xbf16> to vector<28x512xbf16>
    %cst = arith.constant dense<0.000000e+00> : vector<64x512xf32>
    %4 = tpu.matmul %1, %3, %cst {dimension_numbers = #tpu.dot_dimension_numbers<[1], [0], [0], [1], [0, 0, 1, 1], [], []>} : vector<64x28xbf16>, vector<28x512xbf16>, vector<64x512xf32> -> vector<64x512xf32>
    %c1 = arith.constant 1 : index
    %c0_5 = arith.constant 0 : index
    %c0_6 = arith.constant 0 : index
    %5 = vector.load %arg1[%c1, %c0_5, %c0_6] : memref<28x32x28xbf16, #tpu.memory_space<vmem>>, vector<2x32x28xbf16>
    %6 = vector.shape_cast %5 : vector<2x32x28xbf16> to vector<64x28xbf16>
    %c1_7 = arith.constant 1 : index
    %c0_8 = arith.constant 0 : index
    %c0_9 = arith.constant 0 : index
    %7 = vector.load %arg2[%c1_7, %c0_8, %c0_9] : memref<5x28x512xbf16, #tpu.memory_space<vmem>>, vector<1x28x512xbf16>
    %8 = vector.shape_cast %7 : vector<1x28x512xbf16> to vector<28x512xbf16>
    %cst_10 = arith.constant dense<0.000000e+00> : vector<64x512xf32>
    %9 = tpu.matmul %6, %8, %cst_10 {dimension_numbers = #tpu.dot_dimension_numbers<[1], [0], [0], [1], [0, 0, 1, 1], [], []>} : vector<64x28xbf16>, vector<28x512xbf16>, vector<64x512xf32> -> vector<64x512xf32>
    %10 = arith.addf %4, %9 : vector<64x512xf32>
    %c2 = arith.constant 2 : index
    %c0_11 = arith.constant 0 : index
    %c0_12 = arith.constant 0 : index
    %11 = vector.load %arg1[%c2, %c0_11, %c0_12] : memref<28x32x28xbf16, #tpu.memory_space<vmem>>, vector<2x32x28xbf16>
    %12 = vector.shape_cast %11 : vector<2x32x28xbf16> to vector<64x28xbf16>
    %c2_13 = arith.constant 2 : index
    %c0_14 = arith.constant 0 : index
    %c0_15 = arith.constant 0 : index
    %13 = vector.load %arg2[%c2_13, %c0_14, %c0_15] : memref<5x28x512xbf16, #tpu.memory_space<vmem>>, vector<1x28x512xbf16>
    %14 = vector.shape_cast %13 : vector<1x28x512xbf16> to vector<28x512xbf16>
    %cst_16 = arith.constant dense<0.000000e+00> : vector<64x512xf32>
    %15 = tpu.matmul %12, %14, %cst_16 {dimension_numbers = #tpu.dot_dimension_numbers<[1], [0], [0], [1], [0, 0, 1, 1], [], []>} : vector<64x28xbf16>, vector<28x512xbf16>, vector<64x512xf32> -> vector<64x512xf32>
    %16 = arith.addf %10, %15 : vector<64x512xf32>
    %c3 = arith.constant 3 : index
    %c0_17 = arith.constant 0 : index
    %c0_18 = arith.constant 0 : index
    %17 = vector.load %arg1[%c3, %c0_17, %c0_18] : memref<28x32x28xbf16, #tpu.memory_space<vmem>>, vector<2x32x28xbf16>
    %18 = vector.shape_cast %17 : vector<2x32x28xbf16> to vector<64x28xbf16>
    %c3_19 = arith.constant 3 : index
    %c0_20 = arith.constant 0 : index
    %c0_21 = arith.constant 0 : index
    %19 = vector.load %arg2[%c3_19, %c0_20, %c0_21] : memref<5x28x512xbf16, #tpu.memory_space<vmem>>, vector<1x28x512xbf16>
    %20 = vector.shape_cast %19 : vector<1x28x512xbf16> to vector<28x512xbf16>
    %cst_22 = arith.constant dense<0.000000e+00> : vector<64x512xf32>
    %21 = tpu.matmul %18, %20, %cst_22 {dimension_numbers = #tpu.dot_dimension_numbers<[1], [0], [0], [1], [0, 0, 1, 1], [], []>} : vector<64x28xbf16>, vector<28x512xbf16>, vector<64x512xf32> -> vector<64x512xf32>
    %22 = arith.addf %16, %21 : vector<64x512xf32>
    %c4 = arith.constant 4 : index
    %c0_23 = arith.constant 0 : index
    %c0_24 = arith.constant 0 : index
    %23 = vector.load %arg1[%c4, %c0_23, %c0_24] : memref<28x32x28xbf16, #tpu.memory_space<vmem>>, vector<2x32x28xbf16>
    %24 = vector.shape_cast %23 : vector<2x32x28xbf16> to vector<64x28xbf16>
    %c4_25 = arith.constant 4 : index
    %c0_26 = arith.constant 0 : index
    %c0_27 = arith.constant 0 : index
    %25 = vector.load %arg2[%c4_25, %c0_26, %c0_27] : memref<5x28x512xbf16, #tpu.memory_space<vmem>>, vector<1x28x512xbf16>
    %26 = vector.shape_cast %25 : vector<1x28x512xbf16> to vector<28x512xbf16>
    %cst_28 = arith.constant dense<0.000000e+00> : vector<64x512xf32>
    %27 = tpu.matmul %24, %26, %cst_28 {dimension_numbers = #tpu.dot_dimension_numbers<[1], [0], [0], [1], [0, 0, 1, 1], [], []>} : vector<64x28xbf16>, vector<28x512xbf16>, vector<64x512xf32> -> vector<64x512xf32>
    %28 = arith.addf %22, %27 : vector<64x512xf32>
    %29 = vector.extract_strided_slice %28 {offsets = [0, 0], sizes = [64, 192], strides = [1, 1]} : vector<64x512xf32> to vector<64x192xf32>
    %30 = vector.extract_strided_slice %28 {offsets = [0, 256], sizes = [64, 192], strides = [1, 1]} : vector<64x512xf32> to vector<64x192xf32>
    %31 = arith.maximumf %29, %30 : vector<64x192xf32>
    %c0_29 = arith.constant 0 : index
    %c0_30 = arith.constant 0 : index
    %32 = vector.load %arg3[%c0_29, %c0_30] : memref<1x192xf32, #tpu.memory_space<vmem>>, vector<1x192xf32>
    %33 = vector.broadcast %32 : vector<1x192xf32> to vector<64x192xf32>
    %34 = arith.addf %31, %33 : vector<64x192xf32>
    %cst_31 = arith.constant 0.000000e+00 : f32
    %35 = vector.broadcast %cst_31 : f32 to vector<64x192xf32>
    %36 = arith.maximumf %34, %35 : vector<64x192xf32>
    %37 = vector.shape_cast %36 : vector<64x192xf32> to vector<1x2x32x192xf32>
    %38 = vector.extract_strided_slice %37 {offsets = [0, 0, 0, 0], sizes = [1, 1, 32, 192], strides = [1, 1, 1, 1]} : vector<1x2x32x192xf32> to vector<1x1x32x192xf32>
    %39 = vector.shape_cast %38 : vector<1x1x32x192xf32> to vector<1x32x192xf32>
    %40 = vector.extract_strided_slice %37 {offsets = [0, 1, 0, 0], sizes = [1, 1, 32, 192], strides = [1, 1, 1, 1]} : vector<1x2x32x192xf32> to vector<1x1x32x192xf32>
    %41 = vector.shape_cast %40 : vector<1x1x32x192xf32> to vector<1x32x192xf32>
    %42 = arith.maximumf %39, %41 : vector<1x32x192xf32>
    %43 = arith.truncf %42 : vector<1x32x192xf32> to vector<1x32x192xbf16>
    %c0_32 = arith.constant 0 : index
    %c0_33 = arith.constant 0 : index
    %c0_34 = arith.constant 0 : index
    %44 = vector.load %arg11[%c0_32, %c0_33, %c0_34] : memref<12x32x192xbf16, #tpu.memory_space<vmem>>, vector<1x32x192xbf16>
    tpu.vector_store %arg11[%c0_32, %c0_33, %c0_34], %43 {strides = array<i32>} : memref<12x32x192xbf16, #tpu.memory_space<vmem>>, vector<1x32x192xbf16>,
    %c2_35 = arith.constant 2 : index
    %c0_36 = arith.constant 0 : index
    %c0_37 = arith.constant 0 : index
    %45 = vector.load %arg1[%c2_35, %c0_36, %c0_37] : memref<28x32x28xbf16, #tpu.memory_space<vmem>>, vector<2x32x28xbf16>
    %46 = vector.shape_cast %45 : vector<2x32x28xbf16> to vector<64x28xbf16>
    %c0_38 = arith.constant 0 : index
    %c0_39 = arith.constant 0 : index
    %c0_40 = arith.constant 0 : index
    %47 = vector.load %arg2[%c0_38, %c0_39, %c0_40] : memref<5x28x512xbf16, #tpu.memory_space<vmem>>, vector<1x28x512xbf16>
    %48 = vector.shape_cast %47 : vector<1x28x512xbf16> to vector<28x512xbf16>
    %cst_41 = arith.constant dense<0.000000e+00> : vector<64x512xf32>
    %49 = tpu.matmul %46, %48, %cst_41 {dimension_numbers = #tpu.dot_dimension_numbers<[1], [0], [0], [1], [0, 0, 1, 1], [], []>} : vector<64x28xbf16>, vector<28x512xbf16>, vector<64x512xf32> -> vector<64x512xf32>
    %c3_42 = arith.constant 3 : index
    %c0_43 = arith.constant 0 : index
    %c0_44 = arith.constant 0 : index
    %50 = vector.load %arg1[%c3_42, %c0_43, %c0_44] : memref<28x32x28xbf16, #tpu.memory_space<vmem>>, vector<2x32x28xbf16>
    %51 = vector.shape_cast %50 : vector<2x32x28xbf16> to vector<64x28xbf16>
    %c1_45 = arith.constant 1 : index
    %c0_46 = arith.constant 0 : index
    %c0_47 = arith.constant 0 : index
    %52 = vector.load %arg2[%c1_45, %c0_46, %c0_47] : memref<5x28x512xbf16, #tpu.memory_space<vmem>>, vector<1x28x512xbf16>
    %53 = vector.shape_cast %52 : vector<1x28x512xbf16> to vector<28x512xbf16>
    %cst_48 = arith.constant dense<0.000000e+00> : vector<64x512xf32>
    %54 = tpu.matmul %51, %53, %cst_48 {dimension_numbers = #tpu.dot_dimension_numbers<[1], [0], [0], [1], [0, 0, 1, 1], [], []>} : vector<64x28xbf16>, vector<28x512xbf16>, vector<64x512xf32> -> vector<64x512xf32>
    %55 = arith.addf %49, %54 : vector<64x512xf32>
    %c4_49 = arith.constant 4 : index
    %c0_50 = arith.constant 0 : index
    %c0_51 = arith.constant 0 : index
    %56 = vector.load %arg1[%c4_49, %c0_50, %c0_51] : memref<28x32x28xbf16, #tpu.memory_space<vmem>>, vector<2x32x28xbf16>
    %57 = vector.shape_cast %56 : vector<2x32x28xbf16> to vector<64x28xbf16>
    %c2_52 = arith.constant 2 : index
    %c0_53 = arith.constant 0 : index
    %c0_54 = arith.constant 0 : index
    %58 = vector.load %arg2[%c2_52, %c0_53, %c0_54] : memref<5x28x512xbf16, #tpu.memory_space<vmem>>, vector<1x28x512xbf16>
    %59 = vector.shape_cast %58 : vector<1x28x512xbf16> to vector<28x512xbf16>
    %cst_55 = arith.constant dense<0.000000e+00> : vector<64x512xf32>
    %60 = tpu.matmul %57, %59, %cst_55 {dimension_numbers = #tpu.dot_dimension_numbers<[1], [0], [0], [1], [0, 0, 1, 1], [], []>} : vector<64x28xbf16>, vector<28x512xbf16>, vector<64x512xf32> -> vector<64x512xf32>
    %61 = arith.addf %55, %60 : vector<64x512xf32>
    %c5 = arith.constant 5 : index
    %c0_56 = arith.constant 0 : index
    %c0_57 = arith.constant 0 : index
    %62 = vector.load %arg1[%c5, %c0_56, %c0_57] : memref<28x32x28xbf16, #tpu.memory_space<vmem>>, vector<2x32x28xbf16>
    %63 = vector.shape_cast %62 : vector<2x32x28xbf16> to vector<64x28xbf16>
    %c3_58 = arith.constant 3 : index
    %c0_59 = arith.constant 0 : index
    %c0_60 = arith.constant 0 : index
    %64 = vector.load %arg2[%c3_58, %c0_59, %c0_60] : memref<5x28x512xbf16, #tpu.memory_space<vmem>>, vector<1x28x512xbf16>
    %65 = vector.shape_cast %64 : vector<1x28x512xbf16> to vector<28x512xbf16>
    %cst_61 = arith.constant dense<0.000000e+00> : vector<64x512xf32>
    %66 = tpu.matmul %63, %65, %cst_61 {dimension_numbers = #tpu.dot_dimension_numbers<[1], [0], [0], [1], [0, 0, 1, 1], [], []>} : vector<64x28xbf16>, vector<28x512xbf16>, vector<64x512xf32> -> vector<64x512xf32>
    %67 = arith.addf %61, %66 : vector<64x512xf32>
    %c6 = arith.constant 6 : index
    %c0_62 = arith.constant 0 : index
    %c0_63 = arith.constant 0 : index
    %68 = vector.load %arg1[%c6, %c0_62, %c0_63] : memref<28x32x28xbf16, #tpu.memory_space<vmem>>, vector<2x32x28xbf16>
    %69 = vector.shape_cast %68 : vector<2x32x28xbf16> to vector<64x28xbf16>
    %c4_64 = arith.constant 4 : index
    %c0_65 = arith.constant 0 : index
    %c0_66 = arith.constant 0 : index
    %70 = vector.load %arg2[%c4_64, %c0_65, %c0_66] : memref<5x28x512xbf16, #tpu.memory_space<vmem>>, vector<1x28x512xbf16>
    %71 = vector.shape_cast %70 : vector<1x28x512xbf16> to vector<28x512xbf16>
    %cst_67 = arith.constant dense<0.000000e+00> : vector<64x512xf32>
    %72 = tpu.matmul %69, %71, %cst_67 {dimension_numbers = #tpu.dot_dimension_numbers<[1], [0], [0], [1], [0, 0, 1, 1], [], []>} : vector<64x28xbf16>, vector<28x512xbf16>, vector<64x512xf32> -> vector<64x512xf32>
    %73 = arith.addf %67, %72 : vector<64x512xf32>
    %74 = vector.extract_strided_slice %73 {offsets = [0, 0], sizes = [64, 192], strides = [1, 1]} : vector<64x512xf32> to vector<64x192xf32>
    %75 = vector.extract_strided_slice %73 {offsets = [0, 256], sizes = [64, 192], strides = [1, 1]} : vector<64x512xf32> to vector<64x192xf32>
    %76 = arith.maximumf %74, %75 : vector<64x192xf32>
    %c0_68 = arith.constant 0 : index
    %c0_69 = arith.constant 0 : index
    %77 = vector.load %arg3[%c0_68, %c0_69] : memref<1x192xf32, #tpu.memory_space<vmem>>, vector<1x192xf32>
    %78 = vector.broadcast %77 : vector<1x192xf32> to vector<64x192xf32>
    %79 = arith.addf %76, %78 : vector<64x192xf32>
    %cst_70 = arith.constant 0.000000e+00 : f32
    %80 = vector.broadcast %cst_70 : f32 to vector<64x192xf32>
    %81 = arith.maximumf %79, %80 : vector<64x192xf32>
    %82 = vector.shape_cast %81 : vector<64x192xf32> to vector<1x2x32x192xf32>
    %83 = vector.extract_strided_slice %82 {offsets = [0, 0, 0, 0], sizes = [1, 1, 32, 192], strides = [1, 1, 1, 1]} : vector<1x2x32x192xf32> to vector<1x1x32x192xf32>
    %84 = vector.shape_cast %83 : vector<1x1x32x192xf32> to vector<1x32x192xf32>
    %85 = vector.extract_strided_slice %82 {offsets = [0, 1, 0, 0], sizes = [1, 1, 32, 192], strides = [1, 1, 1, 1]} : vector<1x2x32x192xf32> to vector<1x1x32x192xf32>
    %86 = vector.shape_cast %85 : vector<1x1x32x192xf32> to vector<1x32x192xf32>
    %87 = arith.maximumf %84, %86 : vector<1x32x192xf32>
    %88 = arith.truncf %87 : vector<1x32x192xf32> to vector<1x32x192xbf16>
    %c1_71 = arith.constant 1 : index
    %c0_72 = arith.constant 0 : index
    %c0_73 = arith.constant 0 : index
    %89 = vector.load %arg11[%c1_71, %c0_72, %c0_73] : memref<12x32x192xbf16, #tpu.memory_space<vmem>>, vector<1x32x192xbf16>
    tpu.vector_store %arg11[%c1_71, %c0_72, %c0_73], %88 {strides = array<i32>} : memref<12x32x192xbf16, #tpu.memory_space<vmem>>, vector<1x32x192xbf16>,
    %c4_74 = arith.constant 4 : index
    %c0_75 = arith.constant 0 : index
    %c0_76 = arith.constant 0 : index
    %90 = vector.load %arg1[%c4_74, %c0_75, %c0_76] : memref<28x32x28xbf16, #tpu.memory_space<vmem>>, vector<2x32x28xbf16>
    %91 = vector.shape_cast %90 : vector<2x32x28xbf16> to vector<64x28xbf16>
    %c0_77 = arith.constant 0 : index
    %c0_78 = arith.constant 0 : index
    %c0_79 = arith.constant 0 : index
    %92 = vector.load %arg2[%c0_77, %c0_78, %c0_79] : memref<5x28x512xbf16, #tpu.memory_space<vmem>>, vector<1x28x512xbf16>
    %93 = vector.shape_cast %92 : vector<1x28x512xbf16> to vector<28x512xbf16>
    %cst_80 = arith.constant dense<0.000000e+00> : vector<64x512xf32>
    %94 = tpu.matmul %91, %93, %cst_80 {dimension_numbers = #tpu.dot_dimension_numbers<[1], [0], [0], [1], [0, 0, 1, 1], [], []>} : vector<64x28xbf16>, vector<28x512xbf16>, vector<64x512xf32> -> vector<64x512xf32>
    %c5_81 = arith.constant 5 : index
    %c0_82 = arith.constant 0 : index
    %c0_83 = arith.constant 0 : index
    %95 = vector.load %arg1[%c5_81, %c0_82, %c0_83] : memref<28x32x28xbf16, #tpu.memory_space<vmem>>, vector<2x32x28xbf16>
    %96 = vector.shape_cast %95 : vector<2x32x28xbf16> to vector<64x28xbf16>
    %c1_84 = arith.constant 1 : index
    %c0_85 = arith.constant 0 : index
    %c0_86 = arith.constant 0 : index
    %97 = vector.load %arg2[%c1_84, %c0_85, %c0_86] : memref<5x28x512xbf16, #tpu.memory_space<vmem>>, vector<1x28x512xbf16>
    %98 = vector.shape_cast %97 : vector<1x28x512xbf16> to vector<28x512xbf16>
    %cst_87 = arith.constant dense<0.000000e+00> : vector<64x512xf32>
    %99 = tpu.matmul %96, %98, %cst_87 {dimension_numbers = #tpu.dot_dimension_numbers<[1], [0], [0], [1], [0, 0, 1, 1], [], []>} : vector<64x28xbf16>, vector<28x512xbf16>, vector<64x512xf32> -> vector<64x512xf32>
    %100 = arith.addf %94, %99 : vector<64x512xf32>
    %c6_88 = arith.constant 6 : index
    %c0_89 = arith.constant 0 : index
    %c0_90 = arith.constant 0 : index
    %101 = vector.load %arg1[%c6_88, %c0_89, %c0_90] : memref<28x32x28xbf16, #tpu.memory_space<vmem>>, vector<2x32x28xbf16>
    %102 = vector.shape_cast %101 : vector<2x32x28xbf16> to vector<64x28xbf16>
    %c2_91 = arith.constant 2 : index
    %c0_92 = arith.constant 0 : index
    %c0_93 = arith.constant 0 : index
    %103 = vector.load %arg2[%c2_91, %c0_92, %c0_93] : memref<5x28x512xbf16, #tpu.memory_space<vmem>>, vector<1x28x512xbf16>
    %104 = vector.shape_cast %103 : vector<1x28x512xbf16> to vector<28x512xbf16>
    %cst_94 = arith.constant dense<0.000000e+00> : vector<64x512xf32>
    %105 = tpu.matmul %102, %104, %cst_94 {dimension_numbers = #tpu.dot_dimension_numbers<[1], [0], [0], [1], [0, 0, 1, 1], [], []>} : vector<64x28xbf16>, vector<28x512xbf16>, vector<64x512xf32> -> vector<64x512xf32>
    %106 = arith.addf %100, %105 : vector<64x512xf32>
    %c7 = arith.constant 7 : index
    %c0_95 = arith.constant 0 : index
    %c0_96 = arith.constant 0 : index
    %107 = vector.load %arg1[%c7, %c0_95, %c0_96] : memref<28x32x28xbf16, #tpu.memory_space<vmem>>, vector<2x32x28xbf16>
    %108 = vector.shape_cast %107 : vector<2x32x28xbf16> to vector<64x28xbf16>
    %c3_97 = arith.constant 3 : index
    %c0_98 = arith.constant 0 : index
    %c0_99 = arith.constant 0 : index
    %109 = vector.load %arg2[%c3_97, %c0_98, %c0_99] : memref<5x28x512xbf16, #tpu.memory_space<vmem>>, vector<1x28x512xbf16>
    %110 = vector.shape_cast %109 : vector<1x28x512xbf16> to vector<28x512xbf16>
    %cst_100 = arith.constant dense<0.000000e+00> : vector<64x512xf32>
    %111 = tpu.matmul %108, %110, %cst_100 {dimension_numbers = #tpu.dot_dimension_numbers<[1], [0], [0], [1], [0, 0, 1, 1], [], []>} : vector<64x28xbf16>, vector<28x512xbf16>, vector<64x512xf32> -> vector<64x512xf32>
    %112 = arith.addf %106, %111 : vector<64x512xf32>
    %c8 = arith.constant 8 : index
    %c0_101 = arith.constant 0 : index
    %c0_102 = arith.constant 0 : index
    %113 = vector.load %arg1[%c8, %c0_101, %c0_102] : memref<28x32x28xbf16, #tpu.memory_space<vmem>>, vector<2x32x28xbf16>
    %114 = vector.shape_cast %113 : vector<2x32x28xbf16> to vector<64x28xbf16>
    %c4_103 = arith.constant 4 : index
    %c0_104 = arith.constant 0 : index
    %c0_105 = arith.constant 0 : index
    %115 = vector.load %arg2[%c4_103, %c0_104, %c0_105] : memref<5x28x512xbf16, #tpu.memory_space<vmem>>, vector<1x28x512xbf16>
    %116 = vector.shape_cast %115 : vector<1x28x512xbf16> to vector<28x512xbf16>
    %cst_106 = arith.constant dense<0.000000e+00> : vector<64x512xf32>
    %117 = tpu.matmul %114, %116, %cst_106 {dimension_numbers = #tpu.dot_dimension_numbers<[1], [0], [0], [1], [0, 0, 1, 1], [], []>} : vector<64x28xbf16>, vector<28x512xbf16>, vector<64x512xf32> -> vector<64x512xf32>
    %118 = arith.addf %112, %117 : vector<64x512xf32>
    %119 = vector.extract_strided_slice %118 {offsets = [0, 0], sizes = [64, 192], strides = [1, 1]} : vector<64x512xf32> to vector<64x192xf32>
    %120 = vector.extract_strided_slice %118 {offsets = [0, 256], sizes = [64, 192], strides = [1, 1]} : vector<64x512xf32> to vector<64x192xf32>
    %121 = arith.maximumf %119, %120 : vector<64x192xf32>
    %c0_107 = arith.constant 0 : index
    %c0_108 = arith.constant 0 : index
    %122 = vector.load %arg3[%c0_107, %c0_108] : memref<1x192xf32, #tpu.memory_space<vmem>>, vector<1x192xf32>
    %123 = vector.broadcast %122 : vector<1x192xf32> to vector<64x192xf32>
    %124 = arith.addf %121, %123 : vector<64x192xf32>
    %cst_109 = arith.constant 0.000000e+00 : f32
    %125 = vector.broadcast %cst_109 : f32 to vector<64x192xf32>
    %126 = arith.maximumf %124, %125 : vector<64x192xf32>
    %127 = vector.shape_cast %126 : vector<64x192xf32> to vector<1x2x32x192xf32>
    %128 = vector.extract_strided_slice %127 {offsets = [0, 0, 0, 0], sizes = [1, 1, 32, 192], strides = [1, 1, 1, 1]} : vector<1x2x32x192xf32> to vector<1x1x32x192xf32>
    %129 = vector.shape_cast %128 : vector<1x1x32x192xf32> to vector<1x32x192xf32>
    %130 = vector.extract_strided_slice %127 {offsets = [0, 1, 0, 0], sizes = [1, 1, 32, 192], strides = [1, 1, 1, 1]} : vector<1x2x32x192xf32> to vector<1x1x32x192xf32>
    %131 = vector.shape_cast %130 : vector<1x1x32x192xf32> to vector<1x32x192xf32>
    %132 = arith.maximumf %129, %131 : vector<1x32x192xf32>
    %133 = arith.truncf %132 : vector<1x32x192xf32> to vector<1x32x192xbf16>
    %c2_110 = arith.constant 2 : index
    %c0_111 = arith.constant 0 : index
    %c0_112 = arith.constant 0 : index
    %134 = vector.load %arg11[%c2_110, %c0_111, %c0_112] : memref<12x32x192xbf16, #tpu.memory_space<vmem>>, vector<1x32x192xbf16>
    tpu.vector_store %arg11[%c2_110, %c0_111, %c0_112], %133 {strides = array<i32>} : memref<12x32x192xbf16, #tpu.memory_space<vmem>>, vector<1x32x192xbf16>,
    %c6_113 = arith.constant 6 : index
    %c0_114 = arith.constant 0 : index
    %c0_115 = arith.constant 0 : index
    %135 = vector.load %arg1[%c6_113, %c0_114, %c0_115] : memref<28x32x28xbf16, #tpu.memory_space<vmem>>, vector<2x32x28xbf16>
    %136 = vector.shape_cast %135 : vector<2x32x28xbf16> to vector<64x28xbf16>
    %c0_116 = arith.constant 0 : index
    %c0_117 = arith.constant 0 : index
    %c0_118 = arith.constant 0 : index
    %137 = vector.load %arg2[%c0_116, %c0_117, %c0_118] : memref<5x28x512xbf16, #tpu.memory_space<vmem>>, vector<1x28x512xbf16>
    %138 = vector.shape_cast %137 : vector<1x28x512xbf16> to vector<28x512xbf16>
    %cst_119 = arith.constant dense<0.000000e+00> : vector<64x512xf32>
    %139 = tpu.matmul %136, %138, %cst_119 {dimension_numbers = #tpu.dot_dimension_numbers<[1], [0], [0], [1], [0, 0, 1, 1], [], []>} : vector<64x28xbf16>, vector<28x512xbf16>, vector<64x512xf32> -> vector<64x512xf32>
    %c7_120 = arith.constant 7 : index
    %c0_121 = arith.constant 0 : index
    %c0_122 = arith.constant 0 : index
    %140 = vector.load %arg1[%c7_120, %c0_121, %c0_122] : memref<28x32x28xbf16, #tpu.memory_space<vmem>>, vector<2x32x28xbf16>
    %141 = vector.shape_cast %140 : vector<2x32x28xbf16> to vector<64x28xbf16>
    %c1_123 = arith.constant 1 : index
    %c0_124 = arith.constant 0 : index
    %c0_125 = arith.constant 0 : index
    %142 = vector.load %arg2[%c1_123, %c0_124, %c0_125] : memref<5x28x512xbf16, #tpu.memory_space<vmem>>, vector<1x28x512xbf16>
    %143 = vector.shape_cast %142 : vector<1x28x512xbf16> to vector<28x512xbf16>
    %cst_126 = arith.constant dense<0.000000e+00> : vector<64x512xf32>
    %144 = tpu.matmul %141, %143, %cst_126 {dimension_numbers = #tpu.dot_dimension_numbers<[1], [0], [0], [1], [0, 0, 1, 1], [], []>} : vector<64x28xbf16>, vector<28x512xbf16>, vector<64x512xf32> -> vector<64x512xf32>
    %145 = arith.addf %139, %144 : vector<64x512xf32>
    %c8_127 = arith.constant 8 : index
    %c0_128 = arith.constant 0 : index
    %c0_129 = arith.constant 0 : index
    %146 = vector.load %arg1[%c8_127, %c0_128, %c0_129] : memref<28x32x28xbf16, #tpu.memory_space<vmem>>, vector<2x32x28xbf16>
    %147 = vector.shape_cast %146 : vector<2x32x28xbf16> to vector<64x28xbf16>
    %c2_130 = arith.constant 2 : index
    %c0_131 = arith.constant 0 : index
    %c0_132 = arith.constant 0 : index
    %148 = vector.load %arg2[%c2_130, %c0_131, %c0_132] : memref<5x28x512xbf16, #tpu.memory_space<vmem>>, vector<1x28x512xbf16>
    %149 = vector.shape_cast %148 : vector<1x28x512xbf16> to vector<28x512xbf16>
    %cst_133 = arith.constant dense<0.000000e+00> : vector<64x512xf32>
    %150 = tpu.matmul %147, %149, %cst_133 {dimension_numbers = #tpu.dot_dimension_numbers<[1], [0], [0], [1], [0, 0, 1, 1], [], []>} : vector<64x28xbf16>, vector<28x512xbf16>, vector<64x512xf32> -> vector<64x512xf32>
    %151 = arith.addf %145, %150 : vector<64x512xf32>
    %c9 = arith.constant 9 : index
    %c0_134 = arith.constant 0 : index
    %c0_135 = arith.constant 0 : index
    %152 = vector.load %arg1[%c9, %c0_134, %c0_135] : memref<28x32x28xbf16, #tpu.memory_space<vmem>>, vector<2x32x28xbf16>
    %153 = vector.shape_cast %152 : vector<2x32x28xbf16> to vector<64x28xbf16>
    %c3_136 = arith.constant 3 : index
    %c0_137 = arith.constant 0 : index
    %c0_138 = arith.constant 0 : index
    %154 = vector.load %arg2[%c3_136, %c0_137, %c0_138] : memref<5x28x512xbf16, #tpu.memory_space<vmem>>, vector<1x28x512xbf16>
    %155 = vector.shape_cast %154 : vector<1x28x512xbf16> to vector<28x512xbf16>
    %cst_139 = arith.constant dense<0.000000e+00> : vector<64x512xf32>
    %156 = tpu.matmul %153, %155, %cst_139 {dimension_numbers = #tpu.dot_dimension_numbers<[1], [0], [0], [1], [0, 0, 1, 1], [], []>} : vector<64x28xbf16>, vector<28x512xbf16>, vector<64x512xf32> -> vector<64x512xf32>
    %157 = arith.addf %151, %156 : vector<64x512xf32>
    %c10 = arith.constant 10 : index
    %c0_140 = arith.constant 0 : index
    %c0_141 = arith.constant 0 : index
    %158 = vector.load %arg1[%c10, %c0_140, %c0_141] : memref<28x32x28xbf16, #tpu.memory_space<vmem>>, vector<2x32x28xbf16>
    %159 = vector.shape_cast %158 : vector<2x32x28xbf16> to vector<64x28xbf16>
    %c4_142 = arith.constant 4 : index
    %c0_143 = arith.constant 0 : index
    %c0_144 = arith.constant 0 : index
    %160 = vector.load %arg2[%c4_142, %c0_143, %c0_144] : memref<5x28x512xbf16, #tpu.memory_space<vmem>>, vector<1x28x512xbf16>
    %161 = vector.shape_cast %160 : vector<1x28x512xbf16> to vector<28x512xbf16>
    %cst_145 = arith.constant dense<0.000000e+00> : vector<64x512xf32>
    %162 = tpu.matmul %159, %161, %cst_145 {dimension_numbers = #tpu.dot_dimension_numbers<[1], [0], [0], [1], [0, 0, 1, 1], [], []>} : vector<64x28xbf16>, vector<28x512xbf16>, vector<64x512xf32> -> vector<64x512xf32>
    %163 = arith.addf %157, %162 : vector<64x512xf32>
    %164 = vector.extract_strided_slice %163 {offsets = [0, 0], sizes = [64, 192], strides = [1, 1]} : vector<64x512xf32> to vector<64x192xf32>
    %165 = vector.extract_strided_slice %163 {offsets = [0, 256], sizes = [64, 192], strides = [1, 1]} : vector<64x512xf32> to vector<64x192xf32>
    %166 = arith.maximumf %164, %165 : vector<64x192xf32>
    %c0_146 = arith.constant 0 : index
    %c0_147 = arith.constant 0 : index
    %167 = vector.load %arg3[%c0_146, %c0_147] : memref<1x192xf32, #tpu.memory_space<vmem>>, vector<1x192xf32>
    %168 = vector.broadcast %167 : vector<1x192xf32> to vector<64x192xf32>
    %169 = arith.addf %166, %168 : vector<64x192xf32>
    %cst_148 = arith.constant 0.000000e+00 : f32
    %170 = vector.broadcast %cst_148 : f32 to vector<64x192xf32>
    %171 = arith.maximumf %169, %170 : vector<64x192xf32>
    %172 = vector.shape_cast %171 : vector<64x192xf32> to vector<1x2x32x192xf32>
    %173 = vector.extract_strided_slice %172 {offsets = [0, 0, 0, 0], sizes = [1, 1, 32, 192], strides = [1, 1, 1, 1]} : vector<1x2x32x192xf32> to vector<1x1x32x192xf32>
    %174 = vector.shape_cast %173 : vector<1x1x32x192xf32> to vector<1x32x192xf32>
    %175 = vector.extract_strided_slice %172 {offsets = [0, 1, 0, 0], sizes = [1, 1, 32, 192], strides = [1, 1, 1, 1]} : vector<1x2x32x192xf32> to vector<1x1x32x192xf32>
    %176 = vector.shape_cast %175 : vector<1x1x32x192xf32> to vector<1x32x192xf32>
    %177 = arith.maximumf %174, %176 : vector<1x32x192xf32>
    %178 = arith.truncf %177 : vector<1x32x192xf32> to vector<1x32x192xbf16>
    %c3_149 = arith.constant 3 : index
    %c0_150 = arith.constant 0 : index
    %c0_151 = arith.constant 0 : index
    %179 = vector.load %arg11[%c3_149, %c0_150, %c0_151] : memref<12x32x192xbf16, #tpu.memory_space<vmem>>, vector<1x32x192xbf16>
    tpu.vector_store %arg11[%c3_149, %c0_150, %c0_151], %178 {strides = array<i32>} : memref<12x32x192xbf16, #tpu.memory_space<vmem>>, vector<1x32x192xbf16>,
    %c8_152 = arith.constant 8 : index
    %c0_153 = arith.constant 0 : index
    %c0_154 = arith.constant 0 : index
    %180 = vector.load %arg1[%c8_152, %c0_153, %c0_154] : memref<28x32x28xbf16, #tpu.memory_space<vmem>>, vector<2x32x28xbf16>
    %181 = vector.shape_cast %180 : vector<2x32x28xbf16> to vector<64x28xbf16>
    %c0_155 = arith.constant 0 : index
    %c0_156 = arith.constant 0 : index
    %c0_157 = arith.constant 0 : index
    %182 = vector.load %arg2[%c0_155, %c0_156, %c0_157] : memref<5x28x512xbf16, #tpu.memory_space<vmem>>, vector<1x28x512xbf16>
    %183 = vector.shape_cast %182 : vector<1x28x512xbf16> to vector<28x512xbf16>
    %cst_158 = arith.constant dense<0.000000e+00> : vector<64x512xf32>
    %184 = tpu.matmul %181, %183, %cst_158 {dimension_numbers = #tpu.dot_dimension_numbers<[1], [0], [0], [1], [0, 0, 1, 1], [], []>} : vector<64x28xbf16>, vector<28x512xbf16>, vector<64x512xf32> -> vector<64x512xf32>
    %c9_159 = arith.constant 9 : index
    %c0_160 = arith.constant 0 : index
    %c0_161 = arith.constant 0 : index
    %185 = vector.load %arg1[%c9_159, %c0_160, %c0_161] : memref<28x32x28xbf16, #tpu.memory_space<vmem>>, vector<2x32x28xbf16>
    %186 = vector.shape_cast %185 : vector<2x32x28xbf16> to vector<64x28xbf16>
    %c1_162 = arith.constant 1 : index
    %c0_163 = arith.constant 0 : index
    %c0_164 = arith.constant 0 : index
    %187 = vector.load %arg2[%c1_162, %c0_163, %c0_164] : memref<5x28x512xbf16, #tpu.memory_space<vmem>>, vector<1x28x512xbf16>
    %188 = vector.shape_cast %187 : vector<1x28x512xbf16> to vector<28x512xbf16>
    %cst_165 = arith.constant dense<0.000000e+00> : vector<64x512xf32>
    %189 = tpu.matmul %186, %188, %cst_165 {dimension_numbers = #tpu.dot_dimension_numbers<[1], [0], [0], [1], [0, 0, 1, 1], [], []>} : vector<64x28xbf16>, vector<28x512xbf16>, vector<64x512xf32> -> vector<64x512xf32>
    %190 = arith.addf %184, %189 : vector<64x512xf32>
    %c10_166 = arith.constant 10 : index
    %c0_167 = arith.constant 0 : index
    %c0_168 = arith.constant 0 : index
    %191 = vector.load %arg1[%c10_166, %c0_167, %c0_168] : memref<28x32x28xbf16, #tpu.memory_space<vmem>>, vector<2x32x28xbf16>
    %192 = vector.shape_cast %191 : vector<2x32x28xbf16> to vector<64x28xbf16>
    %c2_169 = arith.constant 2 : index
    %c0_170 = arith.constant 0 : index
    %c0_171 = arith.constant 0 : index
    %193 = vector.load %arg2[%c2_169, %c0_170, %c0_171] : memref<5x28x512xbf16, #tpu.memory_space<vmem>>, vector<1x28x512xbf16>
    %194 = vector.shape_cast %193 : vector<1x28x512xbf16> to vector<28x512xbf16>
    %cst_172 = arith.constant dense<0.000000e+00> : vector<64x512xf32>
    %195 = tpu.matmul %192, %194, %cst_172 {dimension_numbers = #tpu.dot_dimension_numbers<[1], [0], [0], [1], [0, 0, 1, 1], [], []>} : vector<64x28xbf16>, vector<28x512xbf16>, vector<64x512xf32> -> vector<64x512xf32>
    %196 = arith.addf %190, %195 : vector<64x512xf32>
    %c11 = arith.constant 11 : index
    %c0_173 = arith.constant 0 : index
    %c0_174 = arith.constant 0 : index
    %197 = vector.load %arg1[%c11, %c0_173, %c0_174] : memref<28x32x28xbf16, #tpu.memory_space<vmem>>, vector<2x32x28xbf16>
    %198 = vector.shape_cast %197 : vector<2x32x28xbf16> to vector<64x28xbf16>
    %c3_175 = arith.constant 3 : index
    %c0_176 = arith.constant 0 : index
    %c0_177 = arith.constant 0 : index
    %199 = vector.load %arg2[%c3_175, %c0_176, %c0_177] : memref<5x28x512xbf16, #tpu.memory_space<vmem>>, vector<1x28x512xbf16>
    %200 = vector.shape_cast %199 : vector<1x28x512xbf16> to vector<28x512xbf16>
    %cst_178 = arith.constant dense<0.000000e+00> : vector<64x512xf32>
    %201 = tpu.matmul %198, %200, %cst_178 {dimension_numbers = #tpu.dot_dimension_numbers<[1], [0], [0], [1], [0, 0, 1, 1], [], []>} : vector<64x28xbf16>, vector<28x512xbf16>, vector<64x512xf32> -> vector<64x512xf32>
    %202 = arith.addf %196, %201 : vector<64x512xf32>
    %c12 = arith.constant 12 : index
    %c0_179 = arith.constant 0 : index
    %c0_180 = arith.constant 0 : index
    %203 = vector.load %arg1[%c12, %c0_179, %c0_180] : memref<28x32x28xbf16, #tpu.memory_space<vmem>>, vector<2x32x28xbf16>
    %204 = vector.shape_cast %203 : vector<2x32x28xbf16> to vector<64x28xbf16>
    %c4_181 = arith.constant 4 : index
    %c0_182 = arith.constant 0 : index
    %c0_183 = arith.constant 0 : index
    %205 = vector.load %arg2[%c4_181, %c0_182, %c0_183] : memref<5x28x512xbf16, #tpu.memory_space<vmem>>, vector<1x28x512xbf16>
    %206 = vector.shape_cast %205 : vector<1x28x512xbf16> to vector<28x512xbf16>
    %cst_184 = arith.constant dense<0.000000e+00> : vector<64x512xf32>
    %207 = tpu.matmul %204, %206, %cst_184 {dimension_numbers = #tpu.dot_dimension_numbers<[1], [0], [0], [1], [0, 0, 1, 1], [], []>} : vector<64x28xbf16>, vector<28x512xbf16>, vector<64x512xf32> -> vector<64x512xf32>
    %208 = arith.addf %202, %207 : vector<64x512xf32>
    %209 = vector.extract_strided_slice %208 {offsets = [0, 0], sizes = [64, 192], strides = [1, 1]} : vector<64x512xf32> to vector<64x192xf32>
    %210 = vector.extract_strided_slice %208 {offsets = [0, 256], sizes = [64, 192], strides = [1, 1]} : vector<64x512xf32> to vector<64x192xf32>
    %211 = arith.maximumf %209, %210 : vector<64x192xf32>
    %c0_185 = arith.constant 0 : index
    %c0_186 = arith.constant 0 : index
    %212 = vector.load %arg3[%c0_185, %c0_186] : memref<1x192xf32, #tpu.memory_space<vmem>>, vector<1x192xf32>
    %213 = vector.broadcast %212 : vector<1x192xf32> to vector<64x192xf32>
    %214 = arith.addf %211, %213 : vector<64x192xf32>
    %cst_187 = arith.constant 0.000000e+00 : f32
    %215 = vector.broadcast %cst_187 : f32 to vector<64x192xf32>
    %216 = arith.maximumf %214, %215 : vector<64x192xf32>
    %217 = vector.shape_cast %216 : vector<64x192xf32> to vector<1x2x32x192xf32>
    %218 = vector.extract_strided_slice %217 {offsets = [0, 0, 0, 0], sizes = [1, 1, 32, 192], strides = [1, 1, 1, 1]} : vector<1x2x32x192xf32> to vector<1x1x32x192xf32>
    %219 = vector.shape_cast %218 : vector<1x1x32x192xf32> to vector<1x32x192xf32>
    %220 = vector.extract_strided_slice %217 {offsets = [0, 1, 0, 0], sizes = [1, 1, 32, 192], strides = [1, 1, 1, 1]} : vector<1x2x32x192xf32> to vector<1x1x32x192xf32>
    %221 = vector.shape_cast %220 : vector<1x1x32x192xf32> to vector<1x32x192xf32>
    %222 = arith.maximumf %219, %221 : vector<1x32x192xf32>
    %223 = arith.truncf %222 : vector<1x32x192xf32> to vector<1x32x192xbf16>
    %c4_188 = arith.constant 4 : index
    %c0_189 = arith.constant 0 : index
    %c0_190 = arith.constant 0 : index
    %224 = vector.load %arg11[%c4_188, %c0_189, %c0_190] : memref<12x32x192xbf16, #tpu.memory_space<vmem>>, vector<1x32x192xbf16>
    tpu.vector_store %arg11[%c4_188, %c0_189, %c0_190], %223 {strides = array<i32>} : memref<12x32x192xbf16, #tpu.memory_space<vmem>>, vector<1x32x192xbf16>,
    %c10_191 = arith.constant 10 : index
    %c0_192 = arith.constant 0 : index
    %c0_193 = arith.constant 0 : index
    %225 = vector.load %arg1[%c10_191, %c0_192, %c0_193] : memref<28x32x28xbf16, #tpu.memory_space<vmem>>, vector<2x32x28xbf16>
    %226 = vector.shape_cast %225 : vector<2x32x28xbf16> to vector<64x28xbf16>
    %c0_194 = arith.constant 0 : index
    %c0_195 = arith.constant 0 : index
    %c0_196 = arith.constant 0 : index
    %227 = vector.load %arg2[%c0_194, %c0_195, %c0_196] : memref<5x28x512xbf16, #tpu.memory_space<vmem>>, vector<1x28x512xbf16>
    %228 = vector.shape_cast %227 : vector<1x28x512xbf16> to vector<28x512xbf16>
    %cst_197 = arith.constant dense<0.000000e+00> : vector<64x512xf32>
    %229 = tpu.matmul %226, %228, %cst_197 {dimension_numbers = #tpu.dot_dimension_numbers<[1], [0], [0], [1], [0, 0, 1, 1], [], []>} : vector<64x28xbf16>, vector<28x512xbf16>, vector<64x512xf32> -> vector<64x512xf32>
    %c11_198 = arith.constant 11 : index
    %c0_199 = arith.constant 0 : index
    %c0_200 = arith.constant 0 : index
    %230 = vector.load %arg1[%c11_198, %c0_199, %c0_200] : memref<28x32x28xbf16, #tpu.memory_space<vmem>>, vector<2x32x28xbf16>
    %231 = vector.shape_cast %230 : vector<2x32x28xbf16> to vector<64x28xbf16>
    %c1_201 = arith.constant 1 : index
    %c0_202 = arith.constant 0 : index
    %c0_203 = arith.constant 0 : index
    %232 = vector.load %arg2[%c1_201, %c0_202, %c0_203] : memref<5x28x512xbf16, #tpu.memory_space<vmem>>, vector<1x28x512xbf16>
    %233 = vector.shape_cast %232 : vector<1x28x512xbf16> to vector<28x512xbf16>
    %cst_204 = arith.constant dense<0.000000e+00> : vector<64x512xf32>
    %234 = tpu.matmul %231, %233, %cst_204 {dimension_numbers = #tpu.dot_dimension_numbers<[1], [0], [0], [1], [0, 0, 1, 1], [], []>} : vector<64x28xbf16>, vector<28x512xbf16>, vector<64x512xf32> -> vector<64x512xf32>
    %235 = arith.addf %229, %234 : vector<64x512xf32>
    %c12_205 = arith.constant 12 : index
    %c0_206 = arith.constant 0 : index
    %c0_207 = arith.constant 0 : index
    %236 = vector.load %arg1[%c12_205, %c0_206, %c0_207] : memref<28x32x28xbf16, #tpu.memory_space<vmem>>, vector<2x32x28xbf16>
    %237 = vector.shape_cast %236 : vector<2x32x28xbf16> to vector<64x28xbf16>
    %c2_208 = arith.constant 2 : index
    %c0_209 = arith.constant 0 : index
    %c0_210 = arith.constant 0 : index
    %238 = vector.load %arg2[%c2_208, %c0_209, %c0_210] : memref<5x28x512xbf16, #tpu.memory_space<vmem>>, vector<1x28x512xbf16>
    %239 = vector.shape_cast %238 : vector<1x28x512xbf16> to vector<28x512xbf16>
    %cst_211 = arith.constant dense<0.000000e+00> : vector<64x512xf32>
    %240 = tpu.matmul %237, %239, %cst_211 {dimension_numbers = #tpu.dot_dimension_numbers<[1], [0], [0], [1], [0, 0, 1, 1], [], []>} : vector<64x28xbf16>, vector<28x512xbf16>, vector<64x512xf32> -> vector<64x512xf32>
    %241 = arith.addf %235, %240 : vector<64x512xf32>
    %c13 = arith.constant 13 : index
    %c0_212 = arith.constant 0 : index
    %c0_213 = arith.constant 0 : index
    %242 = vector.load %arg1[%c13, %c0_212, %c0_213] : memref<28x32x28xbf16, #tpu.memory_space<vmem>>, vector<2x32x28xbf16>
    %243 = vector.shape_cast %242 : vector<2x32x28xbf16> to vector<64x28xbf16>
    %c3_214 = arith.constant 3 : index
    %c0_215 = arith.constant 0 : index
    %c0_216 = arith.constant 0 : index
    %244 = vector.load %arg2[%c3_214, %c0_215, %c0_216] : memref<5x28x512xbf16, #tpu.memory_space<vmem>>, vector<1x28x512xbf16>
    %245 = vector.shape_cast %244 : vector<1x28x512xbf16> to vector<28x512xbf16>
    %cst_217 = arith.constant dense<0.000000e+00> : vector<64x512xf32>
    %246 = tpu.matmul %243, %245, %cst_217 {dimension_numbers = #tpu.dot_dimension_numbers<[1], [0], [0], [1], [0, 0, 1, 1], [], []>} : vector<64x28xbf16>, vector<28x512xbf16>, vector<64x512xf32> -> vector<64x512xf32>
    %247 = arith.addf %241, %246 : vector<64x512xf32>
    %c14 = arith.constant 14 : index
    %c0_218 = arith.constant 0 : index
    %c0_219 = arith.constant 0 : index
    %248 = vector.load %arg1[%c14, %c0_218, %c0_219] : memref<28x32x28xbf16, #tpu.memory_space<vmem>>, vector<2x32x28xbf16>
    %249 = vector.shape_cast %248 : vector<2x32x28xbf16> to vector<64x28xbf16>
    %c4_220 = arith.constant 4 : index
    %c0_221 = arith.constant 0 : index
    %c0_222 = arith.constant 0 : index
    %250 = vector.load %arg2[%c4_220, %c0_221, %c0_222] : memref<5x28x512xbf16, #tpu.memory_space<vmem>>, vector<1x28x512xbf16>
    %251 = vector.shape_cast %250 : vector<1x28x512xbf16> to vector<28x512xbf16>
    %cst_223 = arith.constant dense<0.000000e+00> : vector<64x512xf32>
    %252 = tpu.matmul %249, %251, %cst_223 {dimension_numbers = #tpu.dot_dimension_numbers<[1], [0], [0], [1], [0, 0, 1, 1], [], []>} : vector<64x28xbf16>, vector<28x512xbf16>, vector<64x512xf32> -> vector<64x512xf32>
    %253 = arith.addf %247, %252 : vector<64x512xf32>
    %254 = vector.extract_strided_slice %253 {offsets = [0, 0], sizes = [64, 192], strides = [1, 1]} : vector<64x512xf32> to vector<64x192xf32>
    %255 = vector.extract_strided_slice %253 {offsets = [0, 256], sizes = [64, 192], strides = [1, 1]} : vector<64x512xf32> to vector<64x192xf32>
    %256 = arith.maximumf %254, %255 : vector<64x192xf32>
    %c0_224 = arith.constant 0 : index
    %c0_225 = arith.constant 0 : index
    %257 = vector.load %arg3[%c0_224, %c0_225] : memref<1x192xf32, #tpu.memory_space<vmem>>, vector<1x192xf32>
    %258 = vector.broadcast %257 : vector<1x192xf32> to vector<64x192xf32>
    %259 = arith.addf %256, %258 : vector<64x192xf32>
    %cst_226 = arith.constant 0.000000e+00 : f32
    %260 = vector.broadcast %cst_226 : f32 to vector<64x192xf32>
    %261 = arith.maximumf %259, %260 : vector<64x192xf32>
    %262 = vector.shape_cast %261 : vector<64x192xf32> to vector<1x2x32x192xf32>
    %263 = vector.extract_strided_slice %262 {offsets = [0, 0, 0, 0], sizes = [1, 1, 32, 192], strides = [1, 1, 1, 1]} : vector<1x2x32x192xf32> to vector<1x1x32x192xf32>
    %264 = vector.shape_cast %263 : vector<1x1x32x192xf32> to vector<1x32x192xf32>
    %265 = vector.extract_strided_slice %262 {offsets = [0, 1, 0, 0], sizes = [1, 1, 32, 192], strides = [1, 1, 1, 1]} : vector<1x2x32x192xf32> to vector<1x1x32x192xf32>
    %266 = vector.shape_cast %265 : vector<1x1x32x192xf32> to vector<1x32x192xf32>
    %267 = arith.maximumf %264, %266 : vector<1x32x192xf32>
    %268 = arith.truncf %267 : vector<1x32x192xf32> to vector<1x32x192xbf16>
    %c5_227 = arith.constant 5 : index
    %c0_228 = arith.constant 0 : index
    %c0_229 = arith.constant 0 : index
    %269 = vector.load %arg11[%c5_227, %c0_228, %c0_229] : memref<12x32x192xbf16, #tpu.memory_space<vmem>>, vector<1x32x192xbf16>
    tpu.vector_store %arg11[%c5_227, %c0_228, %c0_229], %268 {strides = array<i32>} : memref<12x32x192xbf16, #tpu.memory_space<vmem>>, vector<1x32x192xbf16>,
    %c12_230 = arith.constant 12 : index
    %c0_231 = arith.constant 0 : index
    %c0_232 = arith.constant 0 : index
    %270 = vector.load %arg1[%c12_230, %c0_231, %c0_232] : memref<28x32x28xbf16, #tpu.memory_space<vmem>>, vector<2x32x28xbf16>
    %271 = vector.shape_cast %270 : vector<2x32x28xbf16> to vector<64x28xbf16>
    %c0_233 = arith.constant 0 : index
    %c0_234 = arith.constant 0 : index
    %c0_235 = arith.constant 0 : index
    %272 = vector.load %arg2[%c0_233, %c0_234, %c0_235] : memref<5x28x512xbf16, #tpu.memory_space<vmem>>, vector<1x28x512xbf16>
    %273 = vector.shape_cast %272 : vector<1x28x512xbf16> to vector<28x512xbf16>
    %cst_236 = arith.constant dense<0.000000e+00> : vector<64x512xf32>
    %274 = tpu.matmul %271, %273, %cst_236 {dimension_numbers = #tpu.dot_dimension_numbers<[1], [0], [0], [1], [0, 0, 1, 1], [], []>} : vector<64x28xbf16>, vector<28x512xbf16>, vector<64x512xf32> -> vector<64x512xf32>
    %c13_237 = arith.constant 13 : index
    %c0_238 = arith.constant 0 : index
    %c0_239 = arith.constant 0 : index
    %275 = vector.load %arg1[%c13_237, %c0_238, %c0_239] : memref<28x32x28xbf16, #tpu.memory_space<vmem>>, vector<2x32x28xbf16>
    %276 = vector.shape_cast %275 : vector<2x32x28xbf16> to vector<64x28xbf16>
    %c1_240 = arith.constant 1 : index
    %c0_241 = arith.constant 0 : index
    %c0_242 = arith.constant 0 : index
    %277 = vector.load %arg2[%c1_240, %c0_241, %c0_242] : memref<5x28x512xbf16, #tpu.memory_space<vmem>>, vector<1x28x512xbf16>
    %278 = vector.shape_cast %277 : vector<1x28x512xbf16> to vector<28x512xbf16>
    %cst_243 = arith.constant dense<0.000000e+00> : vector<64x512xf32>
    %279 = tpu.matmul %276, %278, %cst_243 {dimension_numbers = #tpu.dot_dimension_numbers<[1], [0], [0], [1], [0, 0, 1, 1], [], []>} : vector<64x28xbf16>, vector<28x512xbf16>, vector<64x512xf32> -> vector<64x512xf32>
    %280 = arith.addf %274, %279 : vector<64x512xf32>
    %c14_244 = arith.constant 14 : index
    %c0_245 = arith.constant 0 : index
    %c0_246 = arith.constant 0 : index
    %281 = vector.load %arg1[%c14_244, %c0_245, %c0_246] : memref<28x32x28xbf16, #tpu.memory_space<vmem>>, vector<2x32x28xbf16>
    %282 = vector.shape_cast %281 : vector<2x32x28xbf16> to vector<64x28xbf16>
    %c2_247 = arith.constant 2 : index
    %c0_248 = arith.constant 0 : index
    %c0_249 = arith.constant 0 : index
    %283 = vector.load %arg2[%c2_247, %c0_248, %c0_249] : memref<5x28x512xbf16, #tpu.memory_space<vmem>>, vector<1x28x512xbf16>
    %284 = vector.shape_cast %283 : vector<1x28x512xbf16> to vector<28x512xbf16>
    %cst_250 = arith.constant dense<0.000000e+00> : vector<64x512xf32>
    %285 = tpu.matmul %282, %284, %cst_250 {dimension_numbers = #tpu.dot_dimension_numbers<[1], [0], [0], [1], [0, 0, 1, 1], [], []>} : vector<64x28xbf16>, vector<28x512xbf16>, vector<64x512xf32> -> vector<64x512xf32>
    %286 = arith.addf %280, %285 : vector<64x512xf32>
    %c15 = arith.constant 15 : index
    %c0_251 = arith.constant 0 : index
    %c0_252 = arith.constant 0 : index
    %287 = vector.load %arg1[%c15, %c0_251, %c0_252] : memref<28x32x28xbf16, #tpu.memory_space<vmem>>, vector<2x32x28xbf16>
    %288 = vector.shape_cast %287 : vector<2x32x28xbf16> to vector<64x28xbf16>
    %c3_253 = arith.constant 3 : index
    %c0_254 = arith.constant 0 : index
    %c0_255 = arith.constant 0 : index
    %289 = vector.load %arg2[%c3_253, %c0_254, %c0_255] : memref<5x28x512xbf16, #tpu.memory_space<vmem>>, vector<1x28x512xbf16>
    %290 = vector.shape_cast %289 : vector<1x28x512xbf16> to vector<28x512xbf16>
    %cst_256 = arith.constant dense<0.000000e+00> : vector<64x512xf32>
    %291 = tpu.matmul %288, %290, %cst_256 {dimension_numbers = #tpu.dot_dimension_numbers<[1], [0], [0], [1], [0, 0, 1, 1], [], []>} : vector<64x28xbf16>, vector<28x512xbf16>, vector<64x512xf32> -> vector<64x512xf32>
    %292 = arith.addf %286, %291 : vector<64x512xf32>
    %c16 = arith.constant 16 : index
    %c0_257 = arith.constant 0 : index
    %c0_258 = arith.constant 0 : index
    %293 = vector.load %arg1[%c16, %c0_257, %c0_258] : memref<28x32x28xbf16, #tpu.memory_space<vmem>>, vector<2x32x28xbf16>
    %294 = vector.shape_cast %293 : vector<2x32x28xbf16> to vector<64x28xbf16>
    %c4_259 = arith.constant 4 : index
    %c0_260 = arith.constant 0 : index
    %c0_261 = arith.constant 0 : index
    %295 = vector.load %arg2[%c4_259, %c0_260, %c0_261] : memref<5x28x512xbf16, #tpu.memory_space<vmem>>, vector<1x28x512xbf16>
    %296 = vector.shape_cast %295 : vector<1x28x512xbf16> to vector<28x512xbf16>
    %cst_262 = arith.constant dense<0.000000e+00> : vector<64x512xf32>
    %297 = tpu.matmul %294, %296, %cst_262 {dimension_numbers = #tpu.dot_dimension_numbers<[1], [0], [0], [1], [0, 0, 1, 1], [], []>} : vector<64x28xbf16>, vector<28x512xbf16>, vector<64x512xf32> -> vector<64x512xf32>
    %298 = arith.addf %292, %297 : vector<64x512xf32>
    %299 = vector.extract_strided_slice %298 {offsets = [0, 0], sizes = [64, 192], strides = [1, 1]} : vector<64x512xf32> to vector<64x192xf32>
    %300 = vector.extract_strided_slice %298 {offsets = [0, 256], sizes = [64, 192], strides = [1, 1]} : vector<64x512xf32> to vector<64x192xf32>
    %301 = arith.maximumf %299, %300 : vector<64x192xf32>
    %c0_263 = arith.constant 0 : index
    %c0_264 = arith.constant 0 : index
    %302 = vector.load %arg3[%c0_263, %c0_264] : memref<1x192xf32, #tpu.memory_space<vmem>>, vector<1x192xf32>
    %303 = vector.broadcast %302 : vector<1x192xf32> to vector<64x192xf32>
    %304 = arith.addf %301, %303 : vector<64x192xf32>
    %cst_265 = arith.constant 0.000000e+00 : f32
    %305 = vector.broadcast %cst_265 : f32 to vector<64x192xf32>
    %306 = arith.maximumf %304, %305 : vector<64x192xf32>
    %307 = vector.shape_cast %306 : vector<64x192xf32> to vector<1x2x32x192xf32>
    %308 = vector.extract_strided_slice %307 {offsets = [0, 0, 0, 0], sizes = [1, 1, 32, 192], strides = [1, 1, 1, 1]} : vector<1x2x32x192xf32> to vector<1x1x32x192xf32>
    %309 = vector.shape_cast %308 : vector<1x1x32x192xf32> to vector<1x32x192xf32>
    %310 = vector.extract_strided_slice %307 {offsets = [0, 1, 0, 0], sizes = [1, 1, 32, 192], strides = [1, 1, 1, 1]} : vector<1x2x32x192xf32> to vector<1x1x32x192xf32>
    %311 = vector.shape_cast %310 : vector<1x1x32x192xf32> to vector<1x32x192xf32>
    %312 = arith.maximumf %309, %311 : vector<1x32x192xf32>
    %313 = arith.truncf %312 : vector<1x32x192xf32> to vector<1x32x192xbf16>
    %c6_266 = arith.constant 6 : index
    %c0_267 = arith.constant 0 : index
    %c0_268 = arith.constant 0 : index
    %314 = vector.load %arg11[%c6_266, %c0_267, %c0_268] : memref<12x32x192xbf16, #tpu.memory_space<vmem>>, vector<1x32x192xbf16>
    tpu.vector_store %arg11[%c6_266, %c0_267, %c0_268], %313 {strides = array<i32>} : memref<12x32x192xbf16, #tpu.memory_space<vmem>>, vector<1x32x192xbf16>,
    %c14_269 = arith.constant 14 : index
    %c0_270 = arith.constant 0 : index
    %c0_271 = arith.constant 0 : index
    %315 = vector.load %arg1[%c14_269, %c0_270, %c0_271] : memref<28x32x28xbf16, #tpu.memory_space<vmem>>, vector<2x32x28xbf16>
    %316 = vector.shape_cast %315 : vector<2x32x28xbf16> to vector<64x28xbf16>
    %c0_272 = arith.constant 0 : index
    %c0_273 = arith.constant 0 : index
    %c0_274 = arith.constant 0 : index
    %317 = vector.load %arg2[%c0_272, %c0_273, %c0_274] : memref<5x28x512xbf16, #tpu.memory_space<vmem>>, vector<1x28x512xbf16>
    %318 = vector.shape_cast %317 : vector<1x28x512xbf16> to vector<28x512xbf16>
    %cst_275 = arith.constant dense<0.000000e+00> : vector<64x512xf32>
    %319 = tpu.matmul %316, %318, %cst_275 {dimension_numbers = #tpu.dot_dimension_numbers<[1], [0], [0], [1], [0, 0, 1, 1], [], []>} : vector<64x28xbf16>, vector<28x512xbf16>, vector<64x512xf32> -> vector<64x512xf32>
    %c15_276 = arith.constant 15 : index
    %c0_277 = arith.constant 0 : index
    %c0_278 = arith.constant 0 : index
    %320 = vector.load %arg1[%c15_276, %c0_277, %c0_278] : memref<28x32x28xbf16, #tpu.memory_space<vmem>>, vector<2x32x28xbf16>
    %321 = vector.shape_cast %320 : vector<2x32x28xbf16> to vector<64x28xbf16>
    %c1_279 = arith.constant 1 : index
    %c0_280 = arith.constant 0 : index
    %c0_281 = arith.constant 0 : index
    %322 = vector.load %arg2[%c1_279, %c0_280, %c0_281] : memref<5x28x512xbf16, #tpu.memory_space<vmem>>, vector<1x28x512xbf16>
    %323 = vector.shape_cast %322 : vector<1x28x512xbf16> to vector<28x512xbf16>
    %cst_282 = arith.constant dense<0.000000e+00> : vector<64x512xf32>
    %324 = tpu.matmul %321, %323, %cst_282 {dimension_numbers = #tpu.dot_dimension_numbers<[1], [0], [0], [1], [0, 0, 1, 1], [], []>} : vector<64x28xbf16>, vector<28x512xbf16>, vector<64x512xf32> -> vector<64x512xf32>
    %325 = arith.addf %319, %324 : vector<64x512xf32>
    %c16_283 = arith.constant 16 : index
    %c0_284 = arith.constant 0 : index
    %c0_285 = arith.constant 0 : index
    %326 = vector.load %arg1[%c16_283, %c0_284, %c0_285] : memref<28x32x28xbf16, #tpu.memory_space<vmem>>, vector<2x32x28xbf16>
    %327 = vector.shape_cast %326 : vector<2x32x28xbf16> to vector<64x28xbf16>
    %c2_286 = arith.constant 2 : index
    %c0_287 = arith.constant 0 : index
    %c0_288 = arith.constant 0 : index
    %328 = vector.load %arg2[%c2_286, %c0_287, %c0_288] : memref<5x28x512xbf16, #tpu.memory_space<vmem>>, vector<1x28x512xbf16>
    %329 = vector.shape_cast %328 : vector<1x28x512xbf16> to vector<28x512xbf16>
    %cst_289 = arith.constant dense<0.000000e+00> : vector<64x512xf32>
    %330 = tpu.matmul %327, %329, %cst_289 {dimension_numbers = #tpu.dot_dimension_numbers<[1], [0], [0], [1], [0, 0, 1, 1], [], []>} : vector<64x28xbf16>, vector<28x512xbf16>, vector<64x512xf32> -> vector<64x512xf32>
    %331 = arith.addf %325, %330 : vector<64x512xf32>
    %c17 = arith.constant 17 : index
    %c0_290 = arith.constant 0 : index
    %c0_291 = arith.constant 0 : index
    %332 = vector.load %arg1[%c17, %c0_290, %c0_291] : memref<28x32x28xbf16, #tpu.memory_space<vmem>>, vector<2x32x28xbf16>
    %333 = vector.shape_cast %332 : vector<2x32x28xbf16> to vector<64x28xbf16>
    %c3_292 = arith.constant 3 : index
    %c0_293 = arith.constant 0 : index
    %c0_294 = arith.constant 0 : index
    %334 = vector.load %arg2[%c3_292, %c0_293, %c0_294] : memref<5x28x512xbf16, #tpu.memory_space<vmem>>, vector<1x28x512xbf16>
    %335 = vector.shape_cast %334 : vector<1x28x512xbf16> to vector<28x512xbf16>
    %cst_295 = arith.constant dense<0.000000e+00> : vector<64x512xf32>
    %336 = tpu.matmul %333, %335, %cst_295 {dimension_numbers = #tpu.dot_dimension_numbers<[1], [0], [0], [1], [0, 0, 1, 1], [], []>} : vector<64x28xbf16>, vector<28x512xbf16>, vector<64x512xf32> -> vector<64x512xf32>
    %337 = arith.addf %331, %336 : vector<64x512xf32>
    %c18 = arith.constant 18 : index
    %c0_296 = arith.constant 0 : index
    %c0_297 = arith.constant 0 : index
    %338 = vector.load %arg1[%c18, %c0_296, %c0_297] : memref<28x32x28xbf16, #tpu.memory_space<vmem>>, vector<2x32x28xbf16>
    %339 = vector.shape_cast %338 : vector<2x32x28xbf16> to vector<64x28xbf16>
    %c4_298 = arith.constant 4 : index
    %c0_299 = arith.constant 0 : index
    %c0_300 = arith.constant 0 : index
    %340 = vector.load %arg2[%c4_298, %c0_299, %c0_300] : memref<5x28x512xbf16, #tpu.memory_space<vmem>>, vector<1x28x512xbf16>
    %341 = vector.shape_cast %340 : vector<1x28x512xbf16> to vector<28x512xbf16>
    %cst_301 = arith.constant dense<0.000000e+00> : vector<64x512xf32>
    %342 = tpu.matmul %339, %341, %cst_301 {dimension_numbers = #tpu.dot_dimension_numbers<[1], [0], [0], [1], [0, 0, 1, 1], [], []>} : vector<64x28xbf16>, vector<28x512xbf16>, vector<64x512xf32> -> vector<64x512xf32>
    %343 = arith.addf %337, %342 : vector<64x512xf32>
    %344 = vector.extract_strided_slice %343 {offsets = [0, 0], sizes = [64, 192], strides = [1, 1]} : vector<64x512xf32> to vector<64x192xf32>
    %345 = vector.extract_strided_slice %343 {offsets = [0, 256], sizes = [64, 192], strides = [1, 1]} : vector<64x512xf32> to vector<64x192xf32>
    %346 = arith.maximumf %344, %345 : vector<64x192xf32>
    %c0_302 = arith.constant 0 : index
    %c0_303 = arith.constant 0 : index
    %347 = vector.load %arg3[%c0_302, %c0_303] : memref<1x192xf32, #tpu.memory_space<vmem>>, vector<1x192xf32>
    %348 = vector.broadcast %347 : vector<1x192xf32> to vector<64x192xf32>
    %349 = arith.addf %346, %348 : vector<64x192xf32>
    %cst_304 = arith.constant 0.000000e+00 : f32
    %350 = vector.broadcast %cst_304 : f32 to vector<64x192xf32>
    %351 = arith.maximumf %349, %350 : vector<64x192xf32>
    %352 = vector.shape_cast %351 : vector<64x192xf32> to vector<1x2x32x192xf32>
    %353 = vector.extract_strided_slice %352 {offsets = [0, 0, 0, 0], sizes = [1, 1, 32, 192], strides = [1, 1, 1, 1]} : vector<1x2x32x192xf32> to vector<1x1x32x192xf32>
    %354 = vector.shape_cast %353 : vector<1x1x32x192xf32> to vector<1x32x192xf32>
    %355 = vector.extract_strided_slice %352 {offsets = [0, 1, 0, 0], sizes = [1, 1, 32, 192], strides = [1, 1, 1, 1]} : vector<1x2x32x192xf32> to vector<1x1x32x192xf32>
    %356 = vector.shape_cast %355 : vector<1x1x32x192xf32> to vector<1x32x192xf32>
    %357 = arith.maximumf %354, %356 : vector<1x32x192xf32>
    %358 = arith.truncf %357 : vector<1x32x192xf32> to vector<1x32x192xbf16>
    %c7_305 = arith.constant 7 : index
    %c0_306 = arith.constant 0 : index
    %c0_307 = arith.constant 0 : index
    %359 = vector.load %arg11[%c7_305, %c0_306, %c0_307] : memref<12x32x192xbf16, #tpu.memory_space<vmem>>, vector<1x32x192xbf16>
    tpu.vector_store %arg11[%c7_305, %c0_306, %c0_307], %358 {strides = array<i32>} : memref<12x32x192xbf16, #tpu.memory_space<vmem>>, vector<1x32x192xbf16>,
    %c16_308 = arith.constant 16 : index
    %c0_309 = arith.constant 0 : index
    %c0_310 = arith.constant 0 : index
    %360 = vector.load %arg1[%c16_308, %c0_309, %c0_310] : memref<28x32x28xbf16, #tpu.memory_space<vmem>>, vector<2x32x28xbf16>
    %361 = vector.shape_cast %360 : vector<2x32x28xbf16> to vector<64x28xbf16>
    %c0_311 = arith.constant 0 : index
    %c0_312 = arith.constant 0 : index
    %c0_313 = arith.constant 0 : index
    %362 = vector.load %arg2[%c0_311, %c0_312, %c0_313] : memref<5x28x512xbf16, #tpu.memory_space<vmem>>, vector<1x28x512xbf16>
    %363 = vector.shape_cast %362 : vector<1x28x512xbf16> to vector<28x512xbf16>
    %cst_314 = arith.constant dense<0.000000e+00> : vector<64x512xf32>
    %364 = tpu.matmul %361, %363, %cst_314 {dimension_numbers = #tpu.dot_dimension_numbers<[1], [0], [0], [1], [0, 0, 1, 1], [], []>} : vector<64x28xbf16>, vector<28x512xbf16>, vector<64x512xf32> -> vector<64x512xf32>
    %c17_315 = arith.constant 17 : index
    %c0_316 = arith.constant 0 : index
    %c0_317 = arith.constant 0 : index
    %365 = vector.load %arg1[%c17_315, %c0_316, %c0_317] : memref<28x32x28xbf16, #tpu.memory_space<vmem>>, vector<2x32x28xbf16>
    %366 = vector.shape_cast %365 : vector<2x32x28xbf16> to vector<64x28xbf16>
    %c1_318 = arith.constant 1 : index
    %c0_319 = arith.constant 0 : index
    %c0_320 = arith.constant 0 : index
    %367 = vector.load %arg2[%c1_318, %c0_319, %c0_320] : memref<5x28x512xbf16, #tpu.memory_space<vmem>>, vector<1x28x512xbf16>
    %368 = vector.shape_cast %367 : vector<1x28x512xbf16> to vector<28x512xbf16>
    %cst_321 = arith.constant dense<0.000000e+00> : vector<64x512xf32>
    %369 = tpu.matmul %366, %368, %cst_321 {dimension_numbers = #tpu.dot_dimension_numbers<[1], [0], [0], [1], [0, 0, 1, 1], [], []>} : vector<64x28xbf16>, vector<28x512xbf16>, vector<64x512xf32> -> vector<64x512xf32>
    %370 = arith.addf %364, %369 : vector<64x512xf32>
    %c18_322 = arith.constant 18 : index
    %c0_323 = arith.constant 0 : index
    %c0_324 = arith.constant 0 : index
    %371 = vector.load %arg1[%c18_322, %c0_323, %c0_324] : memref<28x32x28xbf16, #tpu.memory_space<vmem>>, vector<2x32x28xbf16>
    %372 = vector.shape_cast %371 : vector<2x32x28xbf16> to vector<64x28xbf16>
    %c2_325 = arith.constant 2 : index
    %c0_326 = arith.constant 0 : index
    %c0_327 = arith.constant 0 : index
    %373 = vector.load %arg2[%c2_325, %c0_326, %c0_327] : memref<5x28x512xbf16, #tpu.memory_space<vmem>>, vector<1x28x512xbf16>
    %374 = vector.shape_cast %373 : vector<1x28x512xbf16> to vector<28x512xbf16>
    %cst_328 = arith.constant dense<0.000000e+00> : vector<64x512xf32>
    %375 = tpu.matmul %372, %374, %cst_328 {dimension_numbers = #tpu.dot_dimension_numbers<[1], [0], [0], [1], [0, 0, 1, 1], [], []>} : vector<64x28xbf16>, vector<28x512xbf16>, vector<64x512xf32> -> vector<64x512xf32>
    %376 = arith.addf %370, %375 : vector<64x512xf32>
    %c19 = arith.constant 19 : index
    %c0_329 = arith.constant 0 : index
    %c0_330 = arith.constant 0 : index
    %377 = vector.load %arg1[%c19, %c0_329, %c0_330] : memref<28x32x28xbf16, #tpu.memory_space<vmem>>, vector<2x32x28xbf16>
    %378 = vector.shape_cast %377 : vector<2x32x28xbf16> to vector<64x28xbf16>
    %c3_331 = arith.constant 3 : index
    %c0_332 = arith.constant 0 : index
    %c0_333 = arith.constant 0 : index
    %379 = vector.load %arg2[%c3_331, %c0_332, %c0_333] : memref<5x28x512xbf16, #tpu.memory_space<vmem>>, vector<1x28x512xbf16>
    %380 = vector.shape_cast %379 : vector<1x28x512xbf16> to vector<28x512xbf16>
    %cst_334 = arith.constant dense<0.000000e+00> : vector<64x512xf32>
    %381 = tpu.matmul %378, %380, %cst_334 {dimension_numbers = #tpu.dot_dimension_numbers<[1], [0], [0], [1], [0, 0, 1, 1], [], []>} : vector<64x28xbf16>, vector<28x512xbf16>, vector<64x512xf32> -> vector<64x512xf32>
    %382 = arith.addf %376, %381 : vector<64x512xf32>
    %c20 = arith.constant 20 : index
    %c0_335 = arith.constant 0 : index
    %c0_336 = arith.constant 0 : index
    %383 = vector.load %arg1[%c20, %c0_335, %c0_336] : memref<28x32x28xbf16, #tpu.memory_space<vmem>>, vector<2x32x28xbf16>
    %384 = vector.shape_cast %383 : vector<2x32x28xbf16> to vector<64x28xbf16>
    %c4_337 = arith.constant 4 : index
    %c0_338 = arith.constant 0 : index
    %c0_339 = arith.constant 0 : index
    %385 = vector.load %arg2[%c4_337, %c0_338, %c0_339] : memref<5x28x512xbf16, #tpu.memory_space<vmem>>, vector<1x28x512xbf16>
    %386 = vector.shape_cast %385 : vector<1x28x512xbf16> to vector<28x512xbf16>
    %cst_340 = arith.constant dense<0.000000e+00> : vector<64x512xf32>
    %387 = tpu.matmul %384, %386, %cst_340 {dimension_numbers = #tpu.dot_dimension_numbers<[1], [0], [0], [1], [0, 0, 1, 1], [], []>} : vector<64x28xbf16>, vector<28x512xbf16>, vector<64x512xf32> -> vector<64x512xf32>
    %388 = arith.addf %382, %387 : vector<64x512xf32>
    %389 = vector.extract_strided_slice %388 {offsets = [0, 0], sizes = [64, 192], strides = [1, 1]} : vector<64x512xf32> to vector<64x192xf32>
    %390 = vector.extract_strided_slice %388 {offsets = [0, 256], sizes = [64, 192], strides = [1, 1]} : vector<64x512xf32> to vector<64x192xf32>
    %391 = arith.maximumf %389, %390 : vector<64x192xf32>
    %c0_341 = arith.constant 0 : index
    %c0_342 = arith.constant 0 : index
    %392 = vector.load %arg3[%c0_341, %c0_342] : memref<1x192xf32, #tpu.memory_space<vmem>>, vector<1x192xf32>
    %393 = vector.broadcast %392 : vector<1x192xf32> to vector<64x192xf32>
    %394 = arith.addf %391, %393 : vector<64x192xf32>
    %cst_343 = arith.constant 0.000000e+00 : f32
    %395 = vector.broadcast %cst_343 : f32 to vector<64x192xf32>
    %396 = arith.maximumf %394, %395 : vector<64x192xf32>
    %397 = vector.shape_cast %396 : vector<64x192xf32> to vector<1x2x32x192xf32>
    %398 = vector.extract_strided_slice %397 {offsets = [0, 0, 0, 0], sizes = [1, 1, 32, 192], strides = [1, 1, 1, 1]} : vector<1x2x32x192xf32> to vector<1x1x32x192xf32>
    %399 = vector.shape_cast %398 : vector<1x1x32x192xf32> to vector<1x32x192xf32>
    %400 = vector.extract_strided_slice %397 {offsets = [0, 1, 0, 0], sizes = [1, 1, 32, 192], strides = [1, 1, 1, 1]} : vector<1x2x32x192xf32> to vector<1x1x32x192xf32>
    %401 = vector.shape_cast %400 : vector<1x1x32x192xf32> to vector<1x32x192xf32>
    %402 = arith.maximumf %399, %401 : vector<1x32x192xf32>
    %403 = arith.truncf %402 : vector<1x32x192xf32> to vector<1x32x192xbf16>
    %c8_344 = arith.constant 8 : index
    %c0_345 = arith.constant 0 : index
    %c0_346 = arith.constant 0 : index
    %404 = vector.load %arg11[%c8_344, %c0_345, %c0_346] : memref<12x32x192xbf16, #tpu.memory_space<vmem>>, vector<1x32x192xbf16>
    tpu.vector_store %arg11[%c8_344, %c0_345, %c0_346], %403 {strides = array<i32>} : memref<12x32x192xbf16, #tpu.memory_space<vmem>>, vector<1x32x192xbf16>,
    %c18_347 = arith.constant 18 : index
    %c0_348 = arith.constant 0 : index
    %c0_349 = arith.constant 0 : index
    %405 = vector.load %arg1[%c18_347, %c0_348, %c0_349] : memref<28x32x28xbf16, #tpu.memory_space<vmem>>, vector<2x32x28xbf16>
    %406 = vector.shape_cast %405 : vector<2x32x28xbf16> to vector<64x28xbf16>
    %c0_350 = arith.constant 0 : index
    %c0_351 = arith.constant 0 : index
    %c0_352 = arith.constant 0 : index
    %407 = vector.load %arg2[%c0_350, %c0_351, %c0_352] : memref<5x28x512xbf16, #tpu.memory_space<vmem>>, vector<1x28x512xbf16>
    %408 = vector.shape_cast %407 : vector<1x28x512xbf16> to vector<28x512xbf16>
    %cst_353 = arith.constant dense<0.000000e+00> : vector<64x512xf32>
    %409 = tpu.matmul %406, %408, %cst_353 {dimension_numbers = #tpu.dot_dimension_numbers<[1], [0], [0], [1], [0, 0, 1, 1], [], []>} : vector<64x28xbf16>, vector<28x512xbf16>, vector<64x512xf32> -> vector<64x512xf32>
    %c19_354 = arith.constant 19 : index
    %c0_355 = arith.constant 0 : index
    %c0_356 = arith.constant 0 : index
    %410 = vector.load %arg1[%c19_354, %c0_355, %c0_356] : memref<28x32x28xbf16, #tpu.memory_space<vmem>>, vector<2x32x28xbf16>
    %411 = vector.shape_cast %410 : vector<2x32x28xbf16> to vector<64x28xbf16>
    %c1_357 = arith.constant 1 : index
    %c0_358 = arith.constant 0 : index
    %c0_359 = arith.constant 0 : index
    %412 = vector.load %arg2[%c1_357, %c0_358, %c0_359] : memref<5x28x512xbf16, #tpu.memory_space<vmem>>, vector<1x28x512xbf16>
    %413 = vector.shape_cast %412 : vector<1x28x512xbf16> to vector<28x512xbf16>
    %cst_360 = arith.constant dense<0.000000e+00> : vector<64x512xf32>
    %414 = tpu.matmul %411, %413, %cst_360 {dimension_numbers = #tpu.dot_dimension_numbers<[1], [0], [0], [1], [0, 0, 1, 1], [], []>} : vector<64x28xbf16>, vector<28x512xbf16>, vector<64x512xf32> -> vector<64x512xf32>
    %415 = arith.addf %409, %414 : vector<64x512xf32>
    %c20_361 = arith.constant 20 : index
    %c0_362 = arith.constant 0 : index
    %c0_363 = arith.constant 0 : index
    %416 = vector.load %arg1[%c20_361, %c0_362, %c0_363] : memref<28x32x28xbf16, #tpu.memory_space<vmem>>, vector<2x32x28xbf16>
    %417 = vector.shape_cast %416 : vector<2x32x28xbf16> to vector<64x28xbf16>
    %c2_364 = arith.constant 2 : index
    %c0_365 = arith.constant 0 : index
    %c0_366 = arith.constant 0 : index
    %418 = vector.load %arg2[%c2_364, %c0_365, %c0_366] : memref<5x28x512xbf16, #tpu.memory_space<vmem>>, vector<1x28x512xbf16>
    %419 = vector.shape_cast %418 : vector<1x28x512xbf16> to vector<28x512xbf16>
    %cst_367 = arith.constant dense<0.000000e+00> : vector<64x512xf32>
    %420 = tpu.matmul %417, %419, %cst_367 {dimension_numbers = #tpu.dot_dimension_numbers<[1], [0], [0], [1], [0, 0, 1, 1], [], []>} : vector<64x28xbf16>, vector<28x512xbf16>, vector<64x512xf32> -> vector<64x512xf32>
    %421 = arith.addf %415, %420 : vector<64x512xf32>
    %c21 = arith.constant 21 : index
    %c0_368 = arith.constant 0 : index
    %c0_369 = arith.constant 0 : index
    %422 = vector.load %arg1[%c21, %c0_368, %c0_369] : memref<28x32x28xbf16, #tpu.memory_space<vmem>>, vector<2x32x28xbf16>
    %423 = vector.shape_cast %422 : vector<2x32x28xbf16> to vector<64x28xbf16>
    %c3_370 = arith.constant 3 : index
    %c0_371 = arith.constant 0 : index
    %c0_372 = arith.constant 0 : index
    %424 = vector.load %arg2[%c3_370, %c0_371, %c0_372] : memref<5x28x512xbf16, #tpu.memory_space<vmem>>, vector<1x28x512xbf16>
    %425 = vector.shape_cast %424 : vector<1x28x512xbf16> to vector<28x512xbf16>
    %cst_373 = arith.constant dense<0.000000e+00> : vector<64x512xf32>
    %426 = tpu.matmul %423, %425, %cst_373 {dimension_numbers = #tpu.dot_dimension_numbers<[1], [0], [0], [1], [0, 0, 1, 1], [], []>} : vector<64x28xbf16>, vector<28x512xbf16>, vector<64x512xf32> -> vector<64x512xf32>
    %427 = arith.addf %421, %426 : vector<64x512xf32>
    %c22 = arith.constant 22 : index
    %c0_374 = arith.constant 0 : index
    %c0_375 = arith.constant 0 : index
    %428 = vector.load %arg1[%c22, %c0_374, %c0_375] : memref<28x32x28xbf16, #tpu.memory_space<vmem>>, vector<2x32x28xbf16>
    %429 = vector.shape_cast %428 : vector<2x32x28xbf16> to vector<64x28xbf16>
    %c4_376 = arith.constant 4 : index
    %c0_377 = arith.constant 0 : index
    %c0_378 = arith.constant 0 : index
    %430 = vector.load %arg2[%c4_376, %c0_377, %c0_378] : memref<5x28x512xbf16, #tpu.memory_space<vmem>>, vector<1x28x512xbf16>
    %431 = vector.shape_cast %430 : vector<1x28x512xbf16> to vector<28x512xbf16>
    %cst_379 = arith.constant dense<0.000000e+00> : vector<64x512xf32>
    %432 = tpu.matmul %429, %431, %cst_379 {dimension_numbers = #tpu.dot_dimension_numbers<[1], [0], [0], [1], [0, 0, 1, 1], [], []>} : vector<64x28xbf16>, vector<28x512xbf16>, vector<64x512xf32> -> vector<64x512xf32>
    %433 = arith.addf %427, %432 : vector<64x512xf32>
    %434 = vector.extract_strided_slice %433 {offsets = [0, 0], sizes = [64, 192], strides = [1, 1]} : vector<64x512xf32> to vector<64x192xf32>
    %435 = vector.extract_strided_slice %433 {offsets = [0, 256], sizes = [64, 192], strides = [1, 1]} : vector<64x512xf32> to vector<64x192xf32>
    %436 = arith.maximumf %434, %435 : vector<64x192xf32>
    %c0_380 = arith.constant 0 : index
    %c0_381 = arith.constant 0 : index
    %437 = vector.load %arg3[%c0_380, %c0_381] : memref<1x192xf32, #tpu.memory_space<vmem>>, vector<1x192xf32>
    %438 = vector.broadcast %437 : vector<1x192xf32> to vector<64x192xf32>
    %439 = arith.addf %436, %438 : vector<64x192xf32>
    %cst_382 = arith.constant 0.000000e+00 : f32
    %440 = vector.broadcast %cst_382 : f32 to vector<64x192xf32>
    %441 = arith.maximumf %439, %440 : vector<64x192xf32>
    %442 = vector.shape_cast %441 : vector<64x192xf32> to vector<1x2x32x192xf32>
    %443 = vector.extract_strided_slice %442 {offsets = [0, 0, 0, 0], sizes = [1, 1, 32, 192], strides = [1, 1, 1, 1]} : vector<1x2x32x192xf32> to vector<1x1x32x192xf32>
    %444 = vector.shape_cast %443 : vector<1x1x32x192xf32> to vector<1x32x192xf32>
    %445 = vector.extract_strided_slice %442 {offsets = [0, 1, 0, 0], sizes = [1, 1, 32, 192], strides = [1, 1, 1, 1]} : vector<1x2x32x192xf32> to vector<1x1x32x192xf32>
    %446 = vector.shape_cast %445 : vector<1x1x32x192xf32> to vector<1x32x192xf32>
    %447 = arith.maximumf %444, %446 : vector<1x32x192xf32>
    %448 = arith.truncf %447 : vector<1x32x192xf32> to vector<1x32x192xbf16>
    %c9_383 = arith.constant 9 : index
    %c0_384 = arith.constant 0 : index
    %c0_385 = arith.constant 0 : index
    %449 = vector.load %arg11[%c9_383, %c0_384, %c0_385] : memref<12x32x192xbf16, #tpu.memory_space<vmem>>, vector<1x32x192xbf16>
    tpu.vector_store %arg11[%c9_383, %c0_384, %c0_385], %448 {strides = array<i32>} : memref<12x32x192xbf16, #tpu.memory_space<vmem>>, vector<1x32x192xbf16>,
    %c20_386 = arith.constant 20 : index
    %c0_387 = arith.constant 0 : index
    %c0_388 = arith.constant 0 : index
    %450 = vector.load %arg1[%c20_386, %c0_387, %c0_388] : memref<28x32x28xbf16, #tpu.memory_space<vmem>>, vector<2x32x28xbf16>
    %451 = vector.shape_cast %450 : vector<2x32x28xbf16> to vector<64x28xbf16>
    %c0_389 = arith.constant 0 : index
    %c0_390 = arith.constant 0 : index
    %c0_391 = arith.constant 0 : index
    %452 = vector.load %arg2[%c0_389, %c0_390, %c0_391] : memref<5x28x512xbf16, #tpu.memory_space<vmem>>, vector<1x28x512xbf16>
    %453 = vector.shape_cast %452 : vector<1x28x512xbf16> to vector<28x512xbf16>
    %cst_392 = arith.constant dense<0.000000e+00> : vector<64x512xf32>
    %454 = tpu.matmul %451, %453, %cst_392 {dimension_numbers = #tpu.dot_dimension_numbers<[1], [0], [0], [1], [0, 0, 1, 1], [], []>} : vector<64x28xbf16>, vector<28x512xbf16>, vector<64x512xf32> -> vector<64x512xf32>
    %c21_393 = arith.constant 21 : index
    %c0_394 = arith.constant 0 : index
    %c0_395 = arith.constant 0 : index
    %455 = vector.load %arg1[%c21_393, %c0_394, %c0_395] : memref<28x32x28xbf16, #tpu.memory_space<vmem>>, vector<2x32x28xbf16>
    %456 = vector.shape_cast %455 : vector<2x32x28xbf16> to vector<64x28xbf16>
    %c1_396 = arith.constant 1 : index
    %c0_397 = arith.constant 0 : index
    %c0_398 = arith.constant 0 : index
    %457 = vector.load %arg2[%c1_396, %c0_397, %c0_398] : memref<5x28x512xbf16, #tpu.memory_space<vmem>>, vector<1x28x512xbf16>
    %458 = vector.shape_cast %457 : vector<1x28x512xbf16> to vector<28x512xbf16>
    %cst_399 = arith.constant dense<0.000000e+00> : vector<64x512xf32>
    %459 = tpu.matmul %456, %458, %cst_399 {dimension_numbers = #tpu.dot_dimension_numbers<[1], [0], [0], [1], [0, 0, 1, 1], [], []>} : vector<64x28xbf16>, vector<28x512xbf16>, vector<64x512xf32> -> vector<64x512xf32>
    %460 = arith.addf %454, %459 : vector<64x512xf32>
    %c22_400 = arith.constant 22 : index
    %c0_401 = arith.constant 0 : index
    %c0_402 = arith.constant 0 : index
    %461 = vector.load %arg1[%c22_400, %c0_401, %c0_402] : memref<28x32x28xbf16, #tpu.memory_space<vmem>>, vector<2x32x28xbf16>
    %462 = vector.shape_cast %461 : vector<2x32x28xbf16> to vector<64x28xbf16>
    %c2_403 = arith.constant 2 : index
    %c0_404 = arith.constant 0 : index
    %c0_405 = arith.constant 0 : index
    %463 = vector.load %arg2[%c2_403, %c0_404, %c0_405] : memref<5x28x512xbf16, #tpu.memory_space<vmem>>, vector<1x28x512xbf16>
    %464 = vector.shape_cast %463 : vector<1x28x512xbf16> to vector<28x512xbf16>
    %cst_406 = arith.constant dense<0.000000e+00> : vector<64x512xf32>
    %465 = tpu.matmul %462, %464, %cst_406 {dimension_numbers = #tpu.dot_dimension_numbers<[1], [0], [0], [1], [0, 0, 1, 1], [], []>} : vector<64x28xbf16>, vector<28x512xbf16>, vector<64x512xf32> -> vector<64x512xf32>
    %466 = arith.addf %460, %465 : vector<64x512xf32>
    %c23 = arith.constant 23 : index
    %c0_407 = arith.constant 0 : index
    %c0_408 = arith.constant 0 : index
    %467 = vector.load %arg1[%c23, %c0_407, %c0_408] : memref<28x32x28xbf16, #tpu.memory_space<vmem>>, vector<2x32x28xbf16>
    %468 = vector.shape_cast %467 : vector<2x32x28xbf16> to vector<64x28xbf16>
    %c3_409 = arith.constant 3 : index
    %c0_410 = arith.constant 0 : index
    %c0_411 = arith.constant 0 : index
    %469 = vector.load %arg2[%c3_409, %c0_410, %c0_411] : memref<5x28x512xbf16, #tpu.memory_space<vmem>>, vector<1x28x512xbf16>
    %470 = vector.shape_cast %469 : vector<1x28x512xbf16> to vector<28x512xbf16>
    %cst_412 = arith.constant dense<0.000000e+00> : vector<64x512xf32>
    %471 = tpu.matmul %468, %470, %cst_412 {dimension_numbers = #tpu.dot_dimension_numbers<[1], [0], [0], [1], [0, 0, 1, 1], [], []>} : vector<64x28xbf16>, vector<28x512xbf16>, vector<64x512xf32> -> vector<64x512xf32>
    %472 = arith.addf %466, %471 : vector<64x512xf32>
    %c24 = arith.constant 24 : index
    %c0_413 = arith.constant 0 : index
    %c0_414 = arith.constant 0 : index
    %473 = vector.load %arg1[%c24, %c0_413, %c0_414] : memref<28x32x28xbf16, #tpu.memory_space<vmem>>, vector<2x32x28xbf16>
    %474 = vector.shape_cast %473 : vector<2x32x28xbf16> to vector<64x28xbf16>
    %c4_415 = arith.constant 4 : index
    %c0_416 = arith.constant 0 : index
    %c0_417 = arith.constant 0 : index
    %475 = vector.load %arg2[%c4_415, %c0_416, %c0_417] : memref<5x28x512xbf16, #tpu.memory_space<vmem>>, vector<1x28x512xbf16>
    %476 = vector.shape_cast %475 : vector<1x28x512xbf16> to vector<28x512xbf16>
    %cst_418 = arith.constant dense<0.000000e+00> : vector<64x512xf32>
    %477 = tpu.matmul %474, %476, %cst_418 {dimension_numbers = #tpu.dot_dimension_numbers<[1], [0], [0], [1], [0, 0, 1, 1], [], []>} : vector<64x28xbf16>, vector<28x512xbf16>, vector<64x512xf32> -> vector<64x512xf32>
    %478 = arith.addf %472, %477 : vector<64x512xf32>
    %479 = vector.extract_strided_slice %478 {offsets = [0, 0], sizes = [64, 192], strides = [1, 1]} : vector<64x512xf32> to vector<64x192xf32>
    %480 = vector.extract_strided_slice %478 {offsets = [0, 256], sizes = [64, 192], strides = [1, 1]} : vector<64x512xf32> to vector<64x192xf32>
    %481 = arith.maximumf %479, %480 : vector<64x192xf32>
    %c0_419 = arith.constant 0 : index
    %c0_420 = arith.constant 0 : index
    %482 = vector.load %arg3[%c0_419, %c0_420] : memref<1x192xf32, #tpu.memory_space<vmem>>, vector<1x192xf32>
    %483 = vector.broadcast %482 : vector<1x192xf32> to vector<64x192xf32>
    %484 = arith.addf %481, %483 : vector<64x192xf32>
    %cst_421 = arith.constant 0.000000e+00 : f32
    %485 = vector.broadcast %cst_421 : f32 to vector<64x192xf32>
    %486 = arith.maximumf %484, %485 : vector<64x192xf32>
    %487 = vector.shape_cast %486 : vector<64x192xf32> to vector<1x2x32x192xf32>
    %488 = vector.extract_strided_slice %487 {offsets = [0, 0, 0, 0], sizes = [1, 1, 32, 192], strides = [1, 1, 1, 1]} : vector<1x2x32x192xf32> to vector<1x1x32x192xf32>
    %489 = vector.shape_cast %488 : vector<1x1x32x192xf32> to vector<1x32x192xf32>
    %490 = vector.extract_strided_slice %487 {offsets = [0, 1, 0, 0], sizes = [1, 1, 32, 192], strides = [1, 1, 1, 1]} : vector<1x2x32x192xf32> to vector<1x1x32x192xf32>
    %491 = vector.shape_cast %490 : vector<1x1x32x192xf32> to vector<1x32x192xf32>
    %492 = arith.maximumf %489, %491 : vector<1x32x192xf32>
    %493 = arith.truncf %492 : vector<1x32x192xf32> to vector<1x32x192xbf16>
    %c10_422 = arith.constant 10 : index
    %c0_423 = arith.constant 0 : index
    %c0_424 = arith.constant 0 : index
    %494 = vector.load %arg11[%c10_422, %c0_423, %c0_424] : memref<12x32x192xbf16, #tpu.memory_space<vmem>>, vector<1x32x192xbf16>
    tpu.vector_store %arg11[%c10_422, %c0_423, %c0_424], %493 {strides = array<i32>} : memref<12x32x192xbf16, #tpu.memory_space<vmem>>, vector<1x32x192xbf16>,
    %c22_425 = arith.constant 22 : index
    %c0_426 = arith.constant 0 : index
    %c0_427 = arith.constant 0 : index
    %495 = vector.load %arg1[%c22_425, %c0_426, %c0_427] : memref<28x32x28xbf16, #tpu.memory_space<vmem>>, vector<2x32x28xbf16>
    %496 = vector.shape_cast %495 : vector<2x32x28xbf16> to vector<64x28xbf16>
    %c0_428 = arith.constant 0 : index
    %c0_429 = arith.constant 0 : index
    %c0_430 = arith.constant 0 : index
    %497 = vector.load %arg2[%c0_428, %c0_429, %c0_430] : memref<5x28x512xbf16, #tpu.memory_space<vmem>>, vector<1x28x512xbf16>
    %498 = vector.shape_cast %497 : vector<1x28x512xbf16> to vector<28x512xbf16>
    %cst_431 = arith.constant dense<0.000000e+00> : vector<64x512xf32>
    %499 = tpu.matmul %496, %498, %cst_431 {dimension_numbers = #tpu.dot_dimension_numbers<[1], [0], [0], [1], [0, 0, 1, 1], [], []>} : vector<64x28xbf16>, vector<28x512xbf16>, vector<64x512xf32> -> vector<64x512xf32>
    %c23_432 = arith.constant 23 : index
    %c0_433 = arith.constant 0 : index
    %c0_434 = arith.constant 0 : index
    %500 = vector.load %arg1[%c23_432, %c0_433, %c0_434] : memref<28x32x28xbf16, #tpu.memory_space<vmem>>, vector<2x32x28xbf16>
    %501 = vector.shape_cast %500 : vector<2x32x28xbf16> to vector<64x28xbf16>
    %c1_435 = arith.constant 1 : index
    %c0_436 = arith.constant 0 : index
    %c0_437 = arith.constant 0 : index
    %502 = vector.load %arg2[%c1_435, %c0_436, %c0_437] : memref<5x28x512xbf16, #tpu.memory_space<vmem>>, vector<1x28x512xbf16>
    %503 = vector.shape_cast %502 : vector<1x28x512xbf16> to vector<28x512xbf16>
    %cst_438 = arith.constant dense<0.000000e+00> : vector<64x512xf32>
    %504 = tpu.matmul %501, %503, %cst_438 {dimension_numbers = #tpu.dot_dimension_numbers<[1], [0], [0], [1], [0, 0, 1, 1], [], []>} : vector<64x28xbf16>, vector<28x512xbf16>, vector<64x512xf32> -> vector<64x512xf32>
    %505 = arith.addf %499, %504 : vector<64x512xf32>
    %c24_439 = arith.constant 24 : index
    %c0_440 = arith.constant 0 : index
    %c0_441 = arith.constant 0 : index
    %506 = vector.load %arg1[%c24_439, %c0_440, %c0_441] : memref<28x32x28xbf16, #tpu.memory_space<vmem>>, vector<2x32x28xbf16>
    %507 = vector.shape_cast %506 : vector<2x32x28xbf16> to vector<64x28xbf16>
    %c2_442 = arith.constant 2 : index
    %c0_443 = arith.constant 0 : index
    %c0_444 = arith.constant 0 : index
    %508 = vector.load %arg2[%c2_442, %c0_443, %c0_444] : memref<5x28x512xbf16, #tpu.memory_space<vmem>>, vector<1x28x512xbf16>
    %509 = vector.shape_cast %508 : vector<1x28x512xbf16> to vector<28x512xbf16>
    %cst_445 = arith.constant dense<0.000000e+00> : vector<64x512xf32>
    %510 = tpu.matmul %507, %509, %cst_445 {dimension_numbers = #tpu.dot_dimension_numbers<[1], [0], [0], [1], [0, 0, 1, 1], [], []>} : vector<64x28xbf16>, vector<28x512xbf16>, vector<64x512xf32> -> vector<64x512xf32>
    %511 = arith.addf %505, %510 : vector<64x512xf32>
    %c25 = arith.constant 25 : index
    %c0_446 = arith.constant 0 : index
    %c0_447 = arith.constant 0 : index
    %512 = vector.load %arg1[%c25, %c0_446, %c0_447] : memref<28x32x28xbf16, #tpu.memory_space<vmem>>, vector<2x32x28xbf16>
    %513 = vector.shape_cast %512 : vector<2x32x28xbf16> to vector<64x28xbf16>
    %c3_448 = arith.constant 3 : index
    %c0_449 = arith.constant 0 : index
    %c0_450 = arith.constant 0 : index
    %514 = vector.load %arg2[%c3_448, %c0_449, %c0_450] : memref<5x28x512xbf16, #tpu.memory_space<vmem>>, vector<1x28x512xbf16>
    %515 = vector.shape_cast %514 : vector<1x28x512xbf16> to vector<28x512xbf16>
    %cst_451 = arith.constant dense<0.000000e+00> : vector<64x512xf32>
    %516 = tpu.matmul %513, %515, %cst_451 {dimension_numbers = #tpu.dot_dimension_numbers<[1], [0], [0], [1], [0, 0, 1, 1], [], []>} : vector<64x28xbf16>, vector<28x512xbf16>, vector<64x512xf32> -> vector<64x512xf32>
    %517 = arith.addf %511, %516 : vector<64x512xf32>
    %c26 = arith.constant 26 : index
    %c0_452 = arith.constant 0 : index
    %c0_453 = arith.constant 0 : index
    %518 = vector.load %arg1[%c26, %c0_452, %c0_453] : memref<28x32x28xbf16, #tpu.memory_space<vmem>>, vector<2x32x28xbf16>
    %519 = vector.shape_cast %518 : vector<2x32x28xbf16> to vector<64x28xbf16>
    %c4_454 = arith.constant 4 : index
    %c0_455 = arith.constant 0 : index
    %c0_456 = arith.constant 0 : index
    %520 = vector.load %arg2[%c4_454, %c0_455, %c0_456] : memref<5x28x512xbf16, #tpu.memory_space<vmem>>, vector<1x28x512xbf16>
    %521 = vector.shape_cast %520 : vector<1x28x512xbf16> to vector<28x512xbf16>
    %cst_457 = arith.constant dense<0.000000e+00> : vector<64x512xf32>
    %522 = tpu.matmul %519, %521, %cst_457 {dimension_numbers = #tpu.dot_dimension_numbers<[1], [0], [0], [1], [0, 0, 1, 1], [], []>} : vector<64x28xbf16>, vector<28x512xbf16>, vector<64x512xf32> -> vector<64x512xf32>
    %523 = arith.addf %517, %522 : vector<64x512xf32>
    %524 = vector.extract_strided_slice %523 {offsets = [0, 0], sizes = [64, 192], strides = [1, 1]} : vector<64x512xf32> to vector<64x192xf32>
    %525 = vector.extract_strided_slice %523 {offsets = [0, 256], sizes = [64, 192], strides = [1, 1]} : vector<64x512xf32> to vector<64x192xf32>
    %526 = arith.maximumf %524, %525 : vector<64x192xf32>
    %c0_458 = arith.constant 0 : index
    %c0_459 = arith.constant 0 : index
    %527 = vector.load %arg3[%c0_458, %c0_459] : memref<1x192xf32, #tpu.memory_space<vmem>>, vector<1x192xf32>
    %528 = vector.broadcast %527 : vector<1x192xf32> to vector<64x192xf32>
    %529 = arith.addf %526, %528 : vector<64x192xf32>
    %cst_460 = arith.constant 0.000000e+00 : f32
    %530 = vector.broadcast %cst_460 : f32 to vector<64x192xf32>
    %531 = arith.maximumf %529, %530 : vector<64x192xf32>
    %532 = vector.shape_cast %531 : vector<64x192xf32> to vector<1x2x32x192xf32>
    %533 = vector.extract_strided_slice %532 {offsets = [0, 0, 0, 0], sizes = [1, 1, 32, 192], strides = [1, 1, 1, 1]} : vector<1x2x32x192xf32> to vector<1x1x32x192xf32>
    %534 = vector.shape_cast %533 : vector<1x1x32x192xf32> to vector<1x32x192xf32>
    %535 = vector.extract_strided_slice %532 {offsets = [0, 1, 0, 0], sizes = [1, 1, 32, 192], strides = [1, 1, 1, 1]} : vector<1x2x32x192xf32> to vector<1x1x32x192xf32>
    %536 = vector.shape_cast %535 : vector<1x1x32x192xf32> to vector<1x32x192xf32>
    %537 = arith.maximumf %534, %536 : vector<1x32x192xf32>
    %538 = arith.truncf %537 : vector<1x32x192xf32> to vector<1x32x192xbf16>
    %c11_461 = arith.constant 11 : index
    %c0_462 = arith.constant 0 : index
    %c0_463 = arith.constant 0 : index
    %539 = vector.load %arg11[%c11_461, %c0_462, %c0_463] : memref<12x32x192xbf16, #tpu.memory_space<vmem>>, vector<1x32x192xbf16>
    tpu.vector_store %arg11[%c11_461, %c0_462, %c0_463], %538 {strides = array<i32>} : memref<12x32x192xbf16, #tpu.memory_space<vmem>>, vector<1x32x192xbf16>,
    %c0_464 = arith.constant 0 : index
    %c0_465 = arith.constant 0 : index
    %c0_466 = arith.constant 0 : index
    %540 = vector.load %arg11[%c0_464, %c0_465, %c0_466] : memref<12x32x192xbf16, #tpu.memory_space<vmem>>, vector<4x32x192xbf16>
    %541 = vector.shape_cast %540 : vector<4x32x192xbf16> to vector<128x192xbf16>
    %c0_467 = arith.constant 0 : index
    %c0_468 = arith.constant 0 : index
    %c0_469 = arith.constant 0 : index
    %542 = vector.load %arg4[%c0_467, %c0_468, %c0_469] : memref<5x192x256xbf16, #tpu.memory_space<vmem>>, vector<1x192x256xbf16>
    %543 = vector.shape_cast %542 : vector<1x192x256xbf16> to vector<192x256xbf16>
    %cst_470 = arith.constant dense<0.000000e+00> : vector<128x256xf32>
    %544 = tpu.matmul %541, %543, %cst_470 {dimension_numbers = #tpu.dot_dimension_numbers<[1], [0], [0], [1], [0, 0, 1, 1], [], []>} : vector<128x192xbf16>, vector<192x256xbf16>, vector<128x256xf32> -> vector<128x256xf32>
    %c1_471 = arith.constant 1 : index
    %c0_472 = arith.constant 0 : index
    %c0_473 = arith.constant 0 : index
    %545 = vector.load %arg11[%c1_471, %c0_472, %c0_473] : memref<12x32x192xbf16, #tpu.memory_space<vmem>>, vector<4x32x192xbf16>
    %546 = vector.shape_cast %545 : vector<4x32x192xbf16> to vector<128x192xbf16>
    %c1_474 = arith.constant 1 : index
    %c0_475 = arith.constant 0 : index
    %c0_476 = arith.constant 0 : index
    %547 = vector.load %arg4[%c1_474, %c0_475, %c0_476] : memref<5x192x256xbf16, #tpu.memory_space<vmem>>, vector<1x192x256xbf16>
    %548 = vector.shape_cast %547 : vector<1x192x256xbf16> to vector<192x256xbf16>
    %cst_477 = arith.constant dense<0.000000e+00> : vector<128x256xf32>
    %549 = tpu.matmul %546, %548, %cst_477 {dimension_numbers = #tpu.dot_dimension_numbers<[1], [0], [0], [1], [0, 0, 1, 1], [], []>} : vector<128x192xbf16>, vector<192x256xbf16>, vector<128x256xf32> -> vector<128x256xf32>
    %550 = arith.addf %544, %549 : vector<128x256xf32>
    %c2_478 = arith.constant 2 : index
    %c0_479 = arith.constant 0 : index
    %c0_480 = arith.constant 0 : index
    %551 = vector.load %arg11[%c2_478, %c0_479, %c0_480] : memref<12x32x192xbf16, #tpu.memory_space<vmem>>, vector<4x32x192xbf16>
    %552 = vector.shape_cast %551 : vector<4x32x192xbf16> to vector<128x192xbf16>
    %c2_481 = arith.constant 2 : index
    %c0_482 = arith.constant 0 : index
    %c0_483 = arith.constant 0 : index
    %553 = vector.load %arg4[%c2_481, %c0_482, %c0_483] : memref<5x192x256xbf16, #tpu.memory_space<vmem>>, vector<1x192x256xbf16>
    %554 = vector.shape_cast %553 : vector<1x192x256xbf16> to vector<192x256xbf16>
    %cst_484 = arith.constant dense<0.000000e+00> : vector<128x256xf32>
    %555 = tpu.matmul %552, %554, %cst_484 {dimension_numbers = #tpu.dot_dimension_numbers<[1], [0], [0], [1], [0, 0, 1, 1], [], []>} : vector<128x192xbf16>, vector<192x256xbf16>, vector<128x256xf32> -> vector<128x256xf32>
    %556 = arith.addf %550, %555 : vector<128x256xf32>
    %c3_485 = arith.constant 3 : index
    %c0_486 = arith.constant 0 : index
    %c0_487 = arith.constant 0 : index
    %557 = vector.load %arg11[%c3_485, %c0_486, %c0_487] : memref<12x32x192xbf16, #tpu.memory_space<vmem>>, vector<4x32x192xbf16>
    %558 = vector.shape_cast %557 : vector<4x32x192xbf16> to vector<128x192xbf16>
    %c3_488 = arith.constant 3 : index
    %c0_489 = arith.constant 0 : index
    %c0_490 = arith.constant 0 : index
    %559 = vector.load %arg4[%c3_488, %c0_489, %c0_490] : memref<5x192x256xbf16, #tpu.memory_space<vmem>>, vector<1x192x256xbf16>
    %560 = vector.shape_cast %559 : vector<1x192x256xbf16> to vector<192x256xbf16>
    %cst_491 = arith.constant dense<0.000000e+00> : vector<128x256xf32>
    %561 = tpu.matmul %558, %560, %cst_491 {dimension_numbers = #tpu.dot_dimension_numbers<[1], [0], [0], [1], [0, 0, 1, 1], [], []>} : vector<128x192xbf16>, vector<192x256xbf16>, vector<128x256xf32> -> vector<128x256xf32>
    %562 = arith.addf %556, %561 : vector<128x256xf32>
    %c4_492 = arith.constant 4 : index
    %c0_493 = arith.constant 0 : index
    %c0_494 = arith.constant 0 : index
    %563 = vector.load %arg11[%c4_492, %c0_493, %c0_494] : memref<12x32x192xbf16, #tpu.memory_space<vmem>>, vector<4x32x192xbf16>
    %564 = vector.shape_cast %563 : vector<4x32x192xbf16> to vector<128x192xbf16>
    %c4_495 = arith.constant 4 : index
    %c0_496 = arith.constant 0 : index
    %c0_497 = arith.constant 0 : index
    %565 = vector.load %arg4[%c4_495, %c0_496, %c0_497] : memref<5x192x256xbf16, #tpu.memory_space<vmem>>, vector<1x192x256xbf16>
    %566 = vector.shape_cast %565 : vector<1x192x256xbf16> to vector<192x256xbf16>
    %cst_498 = arith.constant dense<0.000000e+00> : vector<128x256xf32>
    %567 = tpu.matmul %564, %566, %cst_498 {dimension_numbers = #tpu.dot_dimension_numbers<[1], [0], [0], [1], [0, 0, 1, 1], [], []>} : vector<128x192xbf16>, vector<192x256xbf16>, vector<128x256xf32> -> vector<128x256xf32>
    %568 = arith.addf %562, %567 : vector<128x256xf32>
    %569 = vector.extract_strided_slice %568 {offsets = [0, 0], sizes = [128, 128], strides = [1, 1]} : vector<128x256xf32> to vector<128x128xf32>
    %570 = vector.extract_strided_slice %568 {offsets = [0, 128], sizes = [128, 128], strides = [1, 1]} : vector<128x256xf32> to vector<128x128xf32>
    %571 = arith.maximumf %569, %570 : vector<128x128xf32>
    %c0_499 = arith.constant 0 : index
    %c0_500 = arith.constant 0 : index
    %572 = vector.load %arg5[%c0_499, %c0_500] : memref<1x128xf32, #tpu.memory_space<vmem>>, vector<1x128xf32>
    %573 = vector.broadcast %572 : vector<1x128xf32> to vector<128x128xf32>
    %574 = arith.addf %571, %573 : vector<128x128xf32>
    %cst_501 = arith.constant 0.000000e+00 : f32
    %575 = vector.broadcast %cst_501 : f32 to vector<128x128xf32>
    %576 = arith.maximumf %574, %575 : vector<128x128xf32>
    %577 = vector.shape_cast %576 : vector<128x128xf32> to vector<2x2x32x128xf32>
    %578 = vector.extract_strided_slice %577 {offsets = [0, 0, 0, 0], sizes = [2, 1, 32, 128], strides = [1, 1, 1, 1]} : vector<2x2x32x128xf32> to vector<2x1x32x128xf32>
    %579 = vector.shape_cast %578 : vector<2x1x32x128xf32> to vector<2x32x128xf32>
    %580 = vector.extract_strided_slice %577 {offsets = [0, 1, 0, 0], sizes = [2, 1, 32, 128], strides = [1, 1, 1, 1]} : vector<2x2x32x128xf32> to vector<2x1x32x128xf32>
    %581 = vector.shape_cast %580 : vector<2x1x32x128xf32> to vector<2x32x128xf32>
    %582 = arith.maximumf %579, %581 : vector<2x32x128xf32>
    %583 = arith.truncf %582 : vector<2x32x128xf32> to vector<2x32x128xbf16>
    %c0_502 = arith.constant 0 : index
    %c0_503 = arith.constant 0 : index
    %c0_504 = arith.constant 0 : index
    %584 = vector.load %arg12[%c0_502, %c0_503, %c0_504] : memref<4x32x128xbf16, #tpu.memory_space<vmem>>, vector<2x32x128xbf16>
    tpu.vector_store %arg12[%c0_502, %c0_503, %c0_504], %583 {strides = array<i32>} : memref<4x32x128xbf16, #tpu.memory_space<vmem>>, vector<2x32x128xbf16>,
    %c4_505 = arith.constant 4 : index
    %c0_506 = arith.constant 0 : index
    %c0_507 = arith.constant 0 : index
    %585 = vector.load %arg11[%c4_505, %c0_506, %c0_507] : memref<12x32x192xbf16, #tpu.memory_space<vmem>>, vector<4x32x192xbf16>
    %586 = vector.shape_cast %585 : vector<4x32x192xbf16> to vector<128x192xbf16>
    %c0_508 = arith.constant 0 : index
    %c0_509 = arith.constant 0 : index
    %c0_510 = arith.constant 0 : index
    %587 = vector.load %arg4[%c0_508, %c0_509, %c0_510] : memref<5x192x256xbf16, #tpu.memory_space<vmem>>, vector<1x192x256xbf16>
    %588 = vector.shape_cast %587 : vector<1x192x256xbf16> to vector<192x256xbf16>
    %cst_511 = arith.constant dense<0.000000e+00> : vector<128x256xf32>
    %589 = tpu.matmul %586, %588, %cst_511 {dimension_numbers = #tpu.dot_dimension_numbers<[1], [0], [0], [1], [0, 0, 1, 1], [], []>} : vector<128x192xbf16>, vector<192x256xbf16>, vector<128x256xf32> -> vector<128x256xf32>
    %c5_512 = arith.constant 5 : index
    %c0_513 = arith.constant 0 : index
    %c0_514 = arith.constant 0 : index
    %590 = vector.load %arg11[%c5_512, %c0_513, %c0_514] : memref<12x32x192xbf16, #tpu.memory_space<vmem>>, vector<4x32x192xbf16>
    %591 = vector.shape_cast %590 : vector<4x32x192xbf16> to vector<128x192xbf16>
    %c1_515 = arith.constant 1 : index
    %c0_516 = arith.constant 0 : index
    %c0_517 = arith.constant 0 : index
    %592 = vector.load %arg4[%c1_515, %c0_516, %c0_517] : memref<5x192x256xbf16, #tpu.memory_space<vmem>>, vector<1x192x256xbf16>
    %593 = vector.shape_cast %592 : vector<1x192x256xbf16> to vector<192x256xbf16>
    %cst_518 = arith.constant dense<0.000000e+00> : vector<128x256xf32>
    %594 = tpu.matmul %591, %593, %cst_518 {dimension_numbers = #tpu.dot_dimension_numbers<[1], [0], [0], [1], [0, 0, 1, 1], [], []>} : vector<128x192xbf16>, vector<192x256xbf16>, vector<128x256xf32> -> vector<128x256xf32>
    %595 = arith.addf %589, %594 : vector<128x256xf32>
    %c6_519 = arith.constant 6 : index
    %c0_520 = arith.constant 0 : index
    %c0_521 = arith.constant 0 : index
    %596 = vector.load %arg11[%c6_519, %c0_520, %c0_521] : memref<12x32x192xbf16, #tpu.memory_space<vmem>>, vector<4x32x192xbf16>
    %597 = vector.shape_cast %596 : vector<4x32x192xbf16> to vector<128x192xbf16>
    %c2_522 = arith.constant 2 : index
    %c0_523 = arith.constant 0 : index
    %c0_524 = arith.constant 0 : index
    %598 = vector.load %arg4[%c2_522, %c0_523, %c0_524] : memref<5x192x256xbf16, #tpu.memory_space<vmem>>, vector<1x192x256xbf16>
    %599 = vector.shape_cast %598 : vector<1x192x256xbf16> to vector<192x256xbf16>
    %cst_525 = arith.constant dense<0.000000e+00> : vector<128x256xf32>
    %600 = tpu.matmul %597, %599, %cst_525 {dimension_numbers = #tpu.dot_dimension_numbers<[1], [0], [0], [1], [0, 0, 1, 1], [], []>} : vector<128x192xbf16>, vector<192x256xbf16>, vector<128x256xf32> -> vector<128x256xf32>
    %601 = arith.addf %595, %600 : vector<128x256xf32>
    %c7_526 = arith.constant 7 : index
    %c0_527 = arith.constant 0 : index
    %c0_528 = arith.constant 0 : index
    %602 = vector.load %arg11[%c7_526, %c0_527, %c0_528] : memref<12x32x192xbf16, #tpu.memory_space<vmem>>, vector<4x32x192xbf16>
    %603 = vector.shape_cast %602 : vector<4x32x192xbf16> to vector<128x192xbf16>
    %c3_529 = arith.constant 3 : index
    %c0_530 = arith.constant 0 : index
    %c0_531 = arith.constant 0 : index
    %604 = vector.load %arg4[%c3_529, %c0_530, %c0_531] : memref<5x192x256xbf16, #tpu.memory_space<vmem>>, vector<1x192x256xbf16>
    %605 = vector.shape_cast %604 : vector<1x192x256xbf16> to vector<192x256xbf16>
    %cst_532 = arith.constant dense<0.000000e+00> : vector<128x256xf32>
    %606 = tpu.matmul %603, %605, %cst_532 {dimension_numbers = #tpu.dot_dimension_numbers<[1], [0], [0], [1], [0, 0, 1, 1], [], []>} : vector<128x192xbf16>, vector<192x256xbf16>, vector<128x256xf32> -> vector<128x256xf32>
    %607 = arith.addf %601, %606 : vector<128x256xf32>
    %c8_533 = arith.constant 8 : index
    %c0_534 = arith.constant 0 : index
    %c0_535 = arith.constant 0 : index
    %608 = vector.load %arg11[%c8_533, %c0_534, %c0_535] : memref<12x32x192xbf16, #tpu.memory_space<vmem>>, vector<4x32x192xbf16>
    %609 = vector.shape_cast %608 : vector<4x32x192xbf16> to vector<128x192xbf16>
    %c4_536 = arith.constant 4 : index
    %c0_537 = arith.constant 0 : index
    %c0_538 = arith.constant 0 : index
    %610 = vector.load %arg4[%c4_536, %c0_537, %c0_538] : memref<5x192x256xbf16, #tpu.memory_space<vmem>>, vector<1x192x256xbf16>
    %611 = vector.shape_cast %610 : vector<1x192x256xbf16> to vector<192x256xbf16>
    %cst_539 = arith.constant dense<0.000000e+00> : vector<128x256xf32>
    %612 = tpu.matmul %609, %611, %cst_539 {dimension_numbers = #tpu.dot_dimension_numbers<[1], [0], [0], [1], [0, 0, 1, 1], [], []>} : vector<128x192xbf16>, vector<192x256xbf16>, vector<128x256xf32> -> vector<128x256xf32>
    %613 = arith.addf %607, %612 : vector<128x256xf32>
    %614 = vector.extract_strided_slice %613 {offsets = [0, 0], sizes = [128, 128], strides = [1, 1]} : vector<128x256xf32> to vector<128x128xf32>
    %615 = vector.extract_strided_slice %613 {offsets = [0, 128], sizes = [128, 128], strides = [1, 1]} : vector<128x256xf32> to vector<128x128xf32>
    %616 = arith.maximumf %614, %615 : vector<128x128xf32>
    %c0_540 = arith.constant 0 : index
    %c0_541 = arith.constant 0 : index
    %617 = vector.load %arg5[%c0_540, %c0_541] : memref<1x128xf32, #tpu.memory_space<vmem>>, vector<1x128xf32>
    %618 = vector.broadcast %617 : vector<1x128xf32> to vector<128x128xf32>
    %619 = arith.addf %616, %618 : vector<128x128xf32>
    %cst_542 = arith.constant 0.000000e+00 : f32
    %620 = vector.broadcast %cst_542 : f32 to vector<128x128xf32>
    %621 = arith.maximumf %619, %620 : vector<128x128xf32>
    %622 = vector.shape_cast %621 : vector<128x128xf32> to vector<2x2x32x128xf32>
    %623 = vector.extract_strided_slice %622 {offsets = [0, 0, 0, 0], sizes = [2, 1, 32, 128], strides = [1, 1, 1, 1]} : vector<2x2x32x128xf32> to vector<2x1x32x128xf32>
    %624 = vector.shape_cast %623 : vector<2x1x32x128xf32> to vector<2x32x128xf32>
    %625 = vector.extract_strided_slice %622 {offsets = [0, 1, 0, 0], sizes = [2, 1, 32, 128], strides = [1, 1, 1, 1]} : vector<2x2x32x128xf32> to vector<2x1x32x128xf32>
    %626 = vector.shape_cast %625 : vector<2x1x32x128xf32> to vector<2x32x128xf32>
    %627 = arith.maximumf %624, %626 : vector<2x32x128xf32>
    %628 = arith.truncf %627 : vector<2x32x128xf32> to vector<2x32x128xbf16>
    %c2_543 = arith.constant 2 : index
    %c0_544 = arith.constant 0 : index
    %c0_545 = arith.constant 0 : index
    %629 = vector.load %arg12[%c2_543, %c0_544, %c0_545] : memref<4x32x128xbf16, #tpu.memory_space<vmem>>, vector<2x32x128xbf16>
    tpu.vector_store %arg12[%c2_543, %c0_544, %c0_545], %628 {strides = array<i32>} : memref<4x32x128xbf16, #tpu.memory_space<vmem>>, vector<2x32x128xbf16>,
    %c0_546 = arith.constant 0 : index
    %c0_547 = arith.constant 0 : index
    %c0_548 = arith.constant 0 : index
    %630 = vector.load %arg12[%c0_546, %c0_547, %c0_548] : memref<4x32x128xbf16, #tpu.memory_space<vmem>>, vector<2x32x128xbf16>
    %631 = vector.shape_cast %630 : vector<2x32x128xbf16> to vector<64x128xbf16>
    %c0_549 = arith.constant 0 : index
    %c0_550 = arith.constant 0 : index
    %c0_551 = arith.constant 0 : index
    %632 = vector.load %arg6[%c0_549, %c0_550, %c0_551] : memref<3x128x128xbf16, #tpu.memory_space<vmem>>, vector<1x128x128xbf16>
    %633 = vector.shape_cast %632 : vector<1x128x128xbf16> to vector<128x128xbf16>
    %cst_552 = arith.constant dense<0.000000e+00> : vector<64x128xf32>
    %634 = tpu.matmul %631, %633, %cst_552 {dimension_numbers = #tpu.dot_dimension_numbers<[1], [0], [0], [1], [0, 0, 1, 1], [], []>} : vector<64x128xbf16>, vector<128x128xbf16>, vector<64x128xf32> -> vector<64x128xf32>
    %c1_553 = arith.constant 1 : index
    %c0_554 = arith.constant 0 : index
    %c0_555 = arith.constant 0 : index
    %635 = vector.load %arg12[%c1_553, %c0_554, %c0_555] : memref<4x32x128xbf16, #tpu.memory_space<vmem>>, vector<2x32x128xbf16>
    %636 = vector.shape_cast %635 : vector<2x32x128xbf16> to vector<64x128xbf16>
    %c1_556 = arith.constant 1 : index
    %c0_557 = arith.constant 0 : index
    %c0_558 = arith.constant 0 : index
    %637 = vector.load %arg6[%c1_556, %c0_557, %c0_558] : memref<3x128x128xbf16, #tpu.memory_space<vmem>>, vector<1x128x128xbf16>
    %638 = vector.shape_cast %637 : vector<1x128x128xbf16> to vector<128x128xbf16>
    %cst_559 = arith.constant dense<0.000000e+00> : vector<64x128xf32>
    %639 = tpu.matmul %636, %638, %cst_559 {dimension_numbers = #tpu.dot_dimension_numbers<[1], [0], [0], [1], [0, 0, 1, 1], [], []>} : vector<64x128xbf16>, vector<128x128xbf16>, vector<64x128xf32> -> vector<64x128xf32>
    %640 = arith.addf %634, %639 : vector<64x128xf32>
    %c2_560 = arith.constant 2 : index
    %c0_561 = arith.constant 0 : index
    %c0_562 = arith.constant 0 : index
    %641 = vector.load %arg12[%c2_560, %c0_561, %c0_562] : memref<4x32x128xbf16, #tpu.memory_space<vmem>>, vector<2x32x128xbf16>
    %642 = vector.shape_cast %641 : vector<2x32x128xbf16> to vector<64x128xbf16>
    %c2_563 = arith.constant 2 : index
    %c0_564 = arith.constant 0 : index
    %c0_565 = arith.constant 0 : index
    %643 = vector.load %arg6[%c2_563, %c0_564, %c0_565] : memref<3x128x128xbf16, #tpu.memory_space<vmem>>, vector<1x128x128xbf16>
    %644 = vector.shape_cast %643 : vector<1x128x128xbf16> to vector<128x128xbf16>
    %cst_566 = arith.constant dense<0.000000e+00> : vector<64x128xf32>
    %645 = tpu.matmul %642, %644, %cst_566 {dimension_numbers = #tpu.dot_dimension_numbers<[1], [0], [0], [1], [0, 0, 1, 1], [], []>} : vector<64x128xbf16>, vector<128x128xbf16>, vector<64x128xf32> -> vector<64x128xf32>
    %646 = arith.addf %640, %645 : vector<64x128xf32>
    %c0_567 = arith.constant 0 : index
    %c0_568 = arith.constant 0 : index
    %647 = vector.load %arg7[%c0_567, %c0_568] : memref<1x128xf32, #tpu.memory_space<vmem>>, vector<1x128xf32>
    %648 = vector.broadcast %647 : vector<1x128xf32> to vector<64x128xf32>
    %649 = arith.addf %646, %648 : vector<64x128xf32>
    %cst_569 = arith.constant 0.000000e+00 : f32
    %650 = vector.broadcast %cst_569 : f32 to vector<64x128xf32>
    %651 = arith.maximumf %649, %650 : vector<64x128xf32>
    %652 = arith.truncf %651 : vector<64x128xf32> to vector<64x128xbf16>
    %653 = vector.extract_strided_slice %652 {offsets = [0, 0], sizes = [32, 128], strides = [1, 1]} : vector<64x128xbf16> to vector<32x128xbf16>
    %c0_570 = arith.constant 0 : index
    %c0_571 = arith.constant 0 : index
    %c0_572 = arith.constant 0 : index
    %654 = vector.load %arg8[%c0_570, %c0_571, %c0_572] : memref<2x128x12xbf16, #tpu.memory_space<vmem>>, vector<1x128x12xbf16>
    %655 = vector.shape_cast %654 : vector<1x128x12xbf16> to vector<128x12xbf16>
    %cst_573 = arith.constant dense<0.000000e+00> : vector<32x12xf32>
    %656 = tpu.matmul %653, %655, %cst_573 {dimension_numbers = #tpu.dot_dimension_numbers<[1], [0], [0], [1], [0, 0, 1, 1], [], []>} : vector<32x128xbf16>, vector<128x12xbf16>, vector<32x12xf32> -> vector<32x12xf32>
    %657 = vector.extract_strided_slice %652 {offsets = [32, 0], sizes = [32, 128], strides = [1, 1]} : vector<64x128xbf16> to vector<32x128xbf16>
    %c1_574 = arith.constant 1 : index
    %c0_575 = arith.constant 0 : index
    %c0_576 = arith.constant 0 : index
    %658 = vector.load %arg8[%c1_574, %c0_575, %c0_576] : memref<2x128x12xbf16, #tpu.memory_space<vmem>>, vector<1x128x12xbf16>
    %659 = vector.shape_cast %658 : vector<1x128x12xbf16> to vector<128x12xbf16>
    %cst_577 = arith.constant dense<0.000000e+00> : vector<32x12xf32>
    %660 = tpu.matmul %657, %659, %cst_577 {dimension_numbers = #tpu.dot_dimension_numbers<[1], [0], [0], [1], [0, 0, 1, 1], [], []>} : vector<32x128xbf16>, vector<128x12xbf16>, vector<32x12xf32> -> vector<32x12xf32>
    %661 = arith.addf %656, %660 : vector<32x12xf32>
    %c0_578 = arith.constant 0 : index
    %c0_579 = arith.constant 0 : index
    %662 = vector.load %arg9[%c0_578, %c0_579] : memref<1x12xf32, #tpu.memory_space<vmem>>, vector<1x12xf32>
    %663 = vector.broadcast %662 : vector<1x12xf32> to vector<32x12xf32>
    %664 = arith.addf %661, %663 : vector<32x12xf32>
    %cst_580 = arith.constant 0.000000e+00 : f32
    %665 = vector.broadcast %cst_580 : f32 to vector<32x12xf32>
    %666 = arith.maximumf %664, %665 : vector<32x12xf32>
    %c0_581 = arith.constant 0 : index
    %c0_582 = arith.constant 0 : index
    %667 = vector.load %arg10[%c0_581, %c0_582] : memref<32x12xf32, #tpu.memory_space<vmem>>, vector<32x12xf32>
    tpu.vector_store %arg10[%c0_581, %c0_582], %666 {strides = array<i32>} : memref<32x12xf32, #tpu.memory_space<vmem>>, vector<32x12xf32>,
    return
  }
  func.func @transform_0(%arg0: i32) -> (i32, i32, i32) {
    %c0_i32 = arith.constant 0 : i32
    %c0_i32_0 = arith.constant 0 : i32
    %c0_i32_1 = arith.constant 0 : i32
    return %arg0, %c0_i32, %c0_i32_0 : i32, i32, i32
  }
  func.func @transform_1(%arg0: i32) -> (i32, i32, i32) {
    %c0_i32 = arith.constant 0 : i32
    %c0_i32_0 = arith.constant 0 : i32
    %c0_i32_1 = arith.constant 0 : i32
    %c0_i32_2 = arith.constant 0 : i32
    return %c0_i32, %c0_i32_0, %c0_i32_1 : i32, i32, i32
  }
  func.func @transform_2(%arg0: i32) -> (i32, i32) {
    %c0_i32 = arith.constant 0 : i32
    %c0_i32_0 = arith.constant 0 : i32
    %c0_i32_1 = arith.constant 0 : i32
    return %c0_i32, %c0_i32_0 : i32, i32
  }
  func.func @transform_3(%arg0: i32) -> (i32, i32, i32) {
    %c0_i32 = arith.constant 0 : i32
    %c0_i32_0 = arith.constant 0 : i32
    %c0_i32_1 = arith.constant 0 : i32
    %c0_i32_2 = arith.constant 0 : i32
    return %c0_i32, %c0_i32_0, %c0_i32_1 : i32, i32, i32
  }
  func.func @transform_4(%arg0: i32) -> (i32, i32) {
    %c0_i32 = arith.constant 0 : i32
    %c0_i32_0 = arith.constant 0 : i32
    %c0_i32_1 = arith.constant 0 : i32
    return %c0_i32, %c0_i32_0 : i32, i32
  }
  func.func @transform_5(%arg0: i32) -> (i32, i32, i32) {
    %c0_i32 = arith.constant 0 : i32
    %c0_i32_0 = arith.constant 0 : i32
    %c0_i32_1 = arith.constant 0 : i32
    %c0_i32_2 = arith.constant 0 : i32
    return %c0_i32, %c0_i32_0, %c0_i32_1 : i32, i32, i32
  }
  func.func @transform_6(%arg0: i32) -> (i32, i32) {
    %c0_i32 = arith.constant 0 : i32
    %c0_i32_0 = arith.constant 0 : i32
    %c0_i32_1 = arith.constant 0 : i32
    return %c0_i32, %c0_i32_0 : i32, i32
  }
  func.func @transform_7(%arg0: i32) -> (i32, i32, i32) {
    %c0_i32 = arith.constant 0 : i32
    %c0_i32_0 = arith.constant 0 : i32
    %c0_i32_1 = arith.constant 0 : i32
    %c0_i32_2 = arith.constant 0 : i32
    return %c0_i32, %c0_i32_0, %c0_i32_1 : i32, i32, i32
  }
  func.func @transform_8(%arg0: i32) -> (i32, i32) {
    %c0_i32 = arith.constant 0 : i32
    %c0_i32_0 = arith.constant 0 : i32
    %c0_i32_1 = arith.constant 0 : i32
    return %c0_i32, %c0_i32_0 : i32, i32
  }
  func.func @transform_9(%arg0: i32) -> (i32, i32) {
    %c0_i32 = arith.constant 0 : i32
    %c0_i32_0 = arith.constant 0 : i32
    return %arg0, %c0_i32 : i32, i32
  }
}

</mosaic_0001>

<bundles_post_ra>
// kernel: encoder_forward.1
= control target key start
LH: loop header
LB: loop body
LE: loop exit
PB: predicated region body
PF: predicated region fallthrough
CT: control target
= control target key end

     0   :  { %v26229_v1 = vmov 0   ;;  %vm136_vm0 = vcmask 1045504   ;;  %vm123_vm1 = vcmask 228352   ;;  %vm1422_vm2 = vcmask 523264   ;;  %s32987_s1 = inlined_call_operand.vmem [shape: bf16[5,28,512], index: 1, kind: input, shape index: {}]   ;;  %s32988_s0 = inlined_call_operand.vmem [shape: bf16[28,32,28], index: 0, kind: input, shape index: {}]   ;;  %s32989_s2 = inlined_call_operand.vmem [shape: f32[1,192], index: 2, kind: input, shape index: {}]   ;;  %s32990_s3 = inlined_call_operand.vmem [shape: bf16[5,192,256], index: 3, kind: input, shape index: {}]   ;;  %s32991_s5 = inlined_call_operand.vmem [shape: bf16[3,128,128], index: 5, kind: input, shape index: {}]   ;;  %s32992_s4 = inlined_call_operand.vmem [shape: f32[1,128], index: 4, kind: input, shape index: {}]   ;;  %s32993_s7 = inlined_call_operand.vmem [shape: bf16[2,128,12], index: 7, kind: input, shape index: {}]   ;;  %s32994_s6 = inlined_call_operand.vmem [shape: f32[1,128], index: 6, kind: input, shape index: {}]   ;;  %s32995_s8 = inlined_call_operand.vmem [shape: f32[1,12], index: 8, kind: input, shape index: {}]   ;;  %s32996_s9 = inlined_call_operand.vmem [shape: f32[32,12], index: 9, kind: output, shape index: {}]  }
   0x1   :  { %v26283_v0 = vld [vmem:[%s32987_s1 + $0x44] ss:$16 sps:$4 sm:$0xff]   ;;  %181 = vmatprep.mubr.bf16.mxu0 %v26229_v1  ;;  %191 = vmatprep.mubr.bf16.mxu1 %v26229_v1  ;;  %v26290_v2 = vld [vmem:[%s32987_s1 + $0x40] ss:$16 sps:$4 sm:$0xff]   ;;  %v26328_v12 = vld [vmem:[%s32988_s0 + $0x18] sm:$0xff]   ;;  %vm20649_vm3 = vcmask 97280  }
   0x2   :  { %v26295_v3 = vld [vmem:[%s32987_s1 + $0x60] sm:$0xff]  ;;  %v20672_v4 = vld [vmem:[%s32987_s1 + $0x70] sm:$0x33]  ;;  %149 = vmatprep.subr.bf16.mxu0 %v26283_v0  ;;  %23606 = vmatprep.subr.bf16.mxu1 %v26283_v0  ;;  %v26337_v16 = vld [vmem:[%s32987_s1 + $0x4c] ss:$16 sps:$4 sm:$0xff]  }
   0x3   :  { %v20683_v5 = vcombine.high %v26295_v3, %v20672_v4  ;;  %v20682_v6 = vcombine.low %v26295_v3, %v20672_v4  ;;  %150 = vmatpush1.bf16.msra.mxu0 %v26290_v2  ;;  %23608 = vmatpush1.bf16.msra.mxu1 %v26290_v2  ;;  %v26312_v8 = vld [vmem:[%s32988_s0 + $0x10] sm:$0xff]   ;;  %v45_v10 = vld [vmem:[%s32987_s1 + $0x20] sm:$0xff]  ;;  %v25436_v17 = vld [vmem:[%s32987_s1 + $0x48] ss:$16 sps:$4 sm:$0xff]  }
   0x4   :  { %v26317_v9 = vld [vmem:[%s32987_s1 + $0x4] ss:$16 sps:$4 sm:$0xff]   ;;  %v25430_v13 = vld [vmem:[%s32987_s1] ss:$16 sps:$4 sm:$0xff]   ;;  %v20671_v20 = vld [vmem:[%s32987_s1 + $0x68] sm:$0xff] }
   0x5   :  { %20686 = vmatprep.subr.msk.bf16.mxu0 %vm136_vm0, %v20683_v5  ;;  %23607 = vmatprep.subr.msk.bf16.mxu1 %vm136_vm0, %v20683_v5  ;;  %v138_v7 = vsel %vm136_vm0, %v20682_v6, 0  ;;  %v47_v11 = vld [vmem:[%s32987_s1 + $0x30] sm:$0x33]  ;;  %v20673_v21 = vld [vmem:[%s32987_s1 + $0x78] sm:$0x33]  ;;  %v25435_v24 = vld [vmem:[%s32988_s0 + $0x20] sm:$0xff]  }
   0x6   :  { %v20704_v14 = vcombine.low %v45_v10, %v47_v11  ;;  %v20705_v15 = vcombine.high %v45_v10, %v47_v11  ;;  %v25442_v19 = vld [vmem:[%s32987_s1 + $0x84] ss:$16 sps:$4 sm:$0xff]   ;;  %v20685_v22 = vcombine.high %v20671_v20, %v20673_v21  ;;  %v20684_v23 = vcombine.low %v20671_v20, %v20673_v21  ;;  %v25453_v29 = vld [vmem:[%s32987_s1 + $0xc] ss:$16 sps:$4 sm:$0xff]   ;;  %v25440_v30 = vld [vmem:[%s32987_s1 + $0x80] ss:$16 sps:$4 sm:$0xff]  }
   0x7   :  { %152 = vmatpush1.bf16.msra.mxu0 %v138_v7  ;;  %23609 = vmatpush1.bf16.msra.mxu1 %v138_v7  ;;  %v26367_v25 = vld [vmem:[%s32988_s0] sm:$0xff]   ;;  %v20732_v28 = vld [vmem:[%s32987_s1 + $0xb0] sm:$0x33]  ;;  %v25443_v33 = vld [vmem:[%s32988_s0 + $0x28] sm:$0xff]  }
   0x8   :  { %375 = vmatprep.subr.bf16.mxu0 %v26317_v9  ;;  %v364_v18 = vsel %vm136_vm0, %v20704_v14, 0  ;;  %222 = vmatprep.subr.bf16.mxu1 %v26337_v16  ;;  %v144_v26 = vsel %vm136_vm0, %v20684_v23, 0  ;;  %v20730_v27 = vld [vmem:[%s32987_s1 + $0xa0] sm:$0xff]  ;;  %v26398_v36 = vld [vmem:[%s32988_s0 + $0x8] sm:$0xff]   ;;  %v48_v38 = vld [vmem:[%s32987_s1 + $0x38] sm:$0x33] }
   0x9   :  { %v20743_v31 = vcombine.high %v20730_v27, %v20732_v28  ;;  %v20742_v32 = vcombine.low %v20730_v27, %v20732_v28  ;;  %v25457_v35 = vld [vmem:[%s32987_s1 + $0xc4] ss:$16 sps:$4 sm:$0xff]   ;;  %v46_v37 = vld [vmem:[%s32987_s1 + $0x28] sm:$0xff]  ;;  %v25450_v45 = vld [vmem:[%s32988_s0 + $0x18] sm:$0xff]  }
   0xa   :  { %20687 = vmatmul.mubr.msk.bf16.vlgmr.msra.gmra.mrb[0].mxu0 %vm123_vm1, %v26312_v8  ;;  %20688 = vmatmul.mubr.msk.bf16.vlgmr.msra.gmra.mrb[0].mxu1 %vm123_vm1, %v26328_v12  ;;  %v25451_v39 = vld [vmem:[%s32987_s1 + $0x8] ss:$16 sps:$4 sm:$0xff]   ;;  %v20706_v40 = vcombine.low %v46_v37, %v48_v38  ;;  %v20707_v41 = vcombine.high %v46_v37, %v48_v38  ;;  %v25447_v42 = vld [vmem:[%s32988_s0 + $0x10] sm:$0xff]   ;;  %v25467_v44 = vld [vmem:[%s32987_s1 + $0x8c] ss:$16 sps:$4 sm:$0xff]  }
   0xb   :  { %376 = vmatpush1.bf16.msra.mxu0 %v25430_v13  ;;  %201 = vmatprep.mubr.bf16.mxu1 %v26229_v1  ;;  %v608_v34 = vsel %vm136_vm0, %v20742_v32, 0  ;;  %v20768_v46 = vld [vmem:[%s32987_s1 + $0xe0] sm:$0xff]  ;;  %v20770_v47 = vld [vmem:[%s32987_s1 + $0xf0] sm:$0x33]  ;;  %v26463_v54 = vld [vmem:[%s32988_s0 + $0x28] sm:$0xff]  }
   0xc   :  { %20708 = vmatprep.subr.msk.bf16.mxu0 %vm136_vm0, %v20705_v15  ;;  %407 = vmatprep.mubr.bf16.mxu0 %v26229_v1  ;;  %v370_v43 = vsel %vm136_vm0, %v20706_v40, 0  ;;  %v26444_v48 = vld [vmem:[%s32988_s0 + $0x20] sm:$0xff]   ;;  %v20781_v50 = vcombine.high %v20768_v46, %v20770_v47  ;;  %v20780_v51 = vcombine.low %v20768_v46, %v20770_v47  ;;  %v20731_v55 = vld [vmem:[%s32987_s1 + $0xa8] sm:$0xff]  ;;  %v20733_v56 = vld [vmem:[%s32987_s1 + $0xb8] sm:$0x33] }
   0xd   :  { %223 = vmatpush1.bf16.msra.mxu1 %v25436_v17  ;;  %v25455_v49 = vld [vmem:[%s32987_s1 + $0xc0] ss:$16 sps:$4 sm:$0xff]   ;;  %v25471_v52 = vld [vmem:[%s32987_s1 + $0x104] ss:$16 sps:$4 sm:$0xff]   ;;  %v25465_v57 = vld [vmem:[%s32987_s1 + $0x88] ss:$16 sps:$4 sm:$0xff]   ;;  %v20745_v59 = vcombine.high %v20731_v55, %v20733_v56  ;;  %v20744_v60 = vcombine.low %v20731_v55, %v20733_v56 }
   0xe   :  { %20691 = vmatprep.subr.msk.bf16.mxu1 %vm136_vm0, %v20685_v22  ;;  %v884_v53 = vsel %vm136_vm0, %v20780_v51, 0  ;;  %v25461_v58 = vld [vmem:[%s32988_s0 + $0x30] sm:$0xff]   ;;  %v25481_v61 = vld [vmem:[%s32987_s1 + $0xcc] ss:$16 sps:$4 sm:$0xff]   ;;  %v20806_v4 = vld [vmem:[%s32987_s1 + $0x120] sm:$0xff] }
   0xf   :  { %378 = vmatpush1.bf16.msra.mxu0 %v364_v18  ;;  %v614_v62 = vsel %vm136_vm0, %v20744_v60, 0  ;;  %v25464_v63 = vld [vmem:[%s32988_s0 + $0x38] sm:$0xff]   ;;  %v20808_v5 = vld [vmem:[%s32987_s1 + $0x130] sm:$0x33]  ;;  %v20769_v13 = vld [vmem:[%s32987_s1 + $0xe8] sm:$0xff] }
  0x10   :  { %619 = vmatprep.subr.bf16.mxu0 %v25442_v19  ;;  %v20818_v6 = vcombine.low %v20806_v4, %v20808_v5  ;;  %v25469_v7 = vld [vmem:[%s32987_s1 + $0x100] ss:$16 sps:$4 sm:$0xff]   ;;  %v20819_v11 = vcombine.high %v20806_v4, %v20808_v5  ;;  %v20771_v14 = vld [vmem:[%s32987_s1 + $0xf8] sm:$0x33]  ;;  %v25478_v21 = vld [vmem:[%s32988_s0 + $0x48] sm:$0xff]  }
  0x11   :  { %225 = vmatpush1.bf16.msra.mxu1 %v144_v26  ;;  %v25479_v15 = vld [vmem:[%s32987_s1 + $0xc8] ss:$16 sps:$4 sm:$0xff]   ;;  %v25475_v17 = vld [vmem:[%s32988_s0 + $0x40] sm:$0xff]   ;;  %v20783_v18 = vcombine.high %v20769_v13, %v20771_v14  ;;  %v20782_v19 = vcombine.low %v20769_v13, %v20771_v14  ;;  %v20854_v22 = vld [vmem:[%s32987_s1 + $0x70] sm:$0x33] }
  0x12   :  { %20689 = vmatmul.mubr.msk.bf16.gmra.mrb[4].mxu1 %vm123_vm1, %v25435_v24  ;;  %448 = vmatprep.subr.bf16.mxu1 %v25453_v29  ;;  %v1160_v10 = vsel %vm136_vm0, %v20818_v6, 0  ;;  %v20864_v23 = vcombine.low %v26295_v3, %v20854_v22  ;;  %v20865_v26 = vcombine.high %v26295_v3, %v20854_v22  ;;  %v26574_v27 = vld [vmem:[%s32988_s0 + $0x48] sm:$0xff]   ;;  %v25489_v32 = vld [vmem:[%s32988_s0 + $0x58] sm:$0xff]   ;;  %v26204_v38 = vld [vmem:[%s32987_s1] ss:$16 sps:$4 sm:$0xff]  }
  0x13   :  { %211 = vmatprep.mubr.bf16.mxu1 %v26229_v1  ;;  %v890_v20 = vsel %vm136_vm0, %v20782_v19, 0  ;;  %v20807_v3 = vld [vmem:[%s32987_s1 + $0x128] sm:$0xff]  ;;  %v20855_v40 = vld [vmem:[%s32987_s1 + $0x78] sm:$0x33]  ;;  %v26680_v51 = vld [vmem:[%s32988_s0 + $0x20] sm:$0xff]  }
  0x14   :  { %v26587_v28 = vld [vmem:[%s32987_s1 + $0x108] ss:$16 sps:$4 sm:$0xff]   ;;  %v26210_v55 = vld [vmem:[%s32987_s1 + $0x80] ss:$16 sps:$4 sm:$0xff]  }
  0x15   :  { %v26207_v46 = vld [vmem:[%s32987_s1 + $0x48] ss:$16 sps:$4 sm:$0xff]   ;;  %v26789_v22 = vld [vmem:[%s32988_s0 + $0x50] sm:$0xff]  }
  0x16   :  { %20709 = vmatmul.mubr.msk.bf16.vlgmr.msra.gmra.mrb[0].mxu0 %vm123_vm1, %v26367_v25  ;;  %v26212_v60 = vld [vmem:[%s32987_s1 + $0x28] sm:$0xff]  ;;  %v26732_v6 = vld [vmem:[%s32988_s0 + $0x38] sm:$0xff]  }
  0x17   :  { %620 = vmatpush1.bf16.msra.mxu0 %v25440_v30  ;;  %417 = vmatprep.mubr.bf16.mxu0 %v26229_v1  ;;  %v26213_v5 = vld [vmem:[%s32987_s1 + $0x8] ss:$16 sps:$4 sm:$0xff]  }
  0x18   :  { %20746 = vmatprep.subr.msk.bf16.mxu0 %vm136_vm0, %v20743_v31  ;;  %v25486_v31 = vld [vmem:[%s32988_s0 + $0x50] sm:$0xff]   ;;  %v20915_v19 = vld [vmem:[%s32987_s1 + $0xb8] sm:$0x33] }
  0x1a   :  { %20690 = vmatmul.mubr.msk.bf16.gmra.mrb[8].mxu1 %vm123_vm1, %v25443_v33 }
  0x1b   :  { %254 = vmatprep.mubr.bf16.mxu1 %v26229_v1  ;;  %622 = vmatpush1.bf16.msra.mxu0 %v608_v34 }
  0x1c   :  { %895 = vmatprep.subr.bf16.mxu0 %v25457_v35  ;;  %v26620_v35 = vld [vmem:[%s32988_s0 + $0x30] sm:$0xff]  }
  0x1e   :  { %20710 = vmatmul.mubr.msk.bf16.gmra.mrb[4].mxu0 %vm123_vm1, %v26398_v36 }
  0x1f   :  { %427 = vmatprep.mubr.bf16.mxu0 %v26229_v1 }
  0x22   :  { %20692 = vmatmul.mubr.msk.bf16.vlgmr.msra.gmra.mrb[12].mxu1 %vm123_vm1, %v26312_v8  ;;  %v25468_v8 = vld [vmem:[%s32988_s0 + $0x30] sm:$0xff]  }
  0x23   :  { %264 = vmatprep.mubr.bf16.mxu1 %v26229_v1  ;;  %449 = vmatpush1.bf16.msra.mxu1 %v25451_v39  ;;  %v26635_v39 = vld [vmem:[%s32988_s0 + $0x38] sm:$0xff]  }
  0x24   :  { %20713 = vmatprep.subr.msk.bf16.mxu1 %vm136_vm0, %v20707_v41  ;;  %v26205_v41 = vld [vmem:[%s32987_s1 + $0x84] ss:$16 sps:$4 sm:$0xff]  }
  0x26   :  { %20711 = vmatmul.mubr.msk.bf16.gmra.mrb[8].mxu0 %vm123_vm1, %v25447_v42 }
  0x27   :  { %437 = vmatprep.mubr.bf16.mxu0 %v26229_v1  ;;  %451 = vmatpush1.bf16.msra.mxu1 %v370_v43 }
  0x28   :  { %692 = vmatprep.subr.bf16.mxu1 %v25467_v44 }
  0x2a   :  { %20693 = vmatmul.mubr.msk.bf16.gmra.mrb[16].mxu1 %vm123_vm1, %v26328_v12  ;;  %v25473_v12 = vld [vmem:[%s32988_s0 + $0x38] sm:$0xff]  }
  0x2b   :  { %274 = vmatprep.mubr.bf16.mxu1 %v26229_v1 }
  0x2e   :  { %20712 = vmatmul.mubr.msk.bf16.gmra.mrb[12].mxu0 %vm123_vm1, %v25450_v45 }
  0x2f   :  { %651 = vmatprep.mubr.bf16.mxu0 %v26229_v1 }
  0x32   :  { %20694 = vmatmul.mubr.msk.bf16.gmra.mrb[20].mxu1 %vm123_vm1, %v25435_v24  ;;  %v25482_v24 = vld [vmem:[%s32988_s0 + $0x40] sm:$0xff]  }
  0x33   :  { %284 = vmatprep.mubr.bf16.mxu1 %v26229_v1 }
  0x36   :  { %20747 = vmatmul.mubr.msk.bf16.vlgmr.msra.gmra.mrb[0].mxu0 %vm123_vm1, %v26444_v48 }
  0x37   :  { %896 = vmatpush1.bf16.msra.mxu0 %v25455_v49  ;;  %661 = vmatprep.mubr.bf16.mxu0 %v26229_v1  ;;  %v25500_v49 = vld [vmem:[%s32988_s0 + $0x48] sm:$0xff]  }
  0x38   :  { %20784 = vmatprep.subr.msk.bf16.mxu0 %vm136_vm0, %v20781_v50  ;;  %v20914_v50 = vld [vmem:[%s32987_s1 + $0xb0] sm:$0x33] }
  0x3a   :  { %20695 = vmatmul.mubr.msk.bf16.gmra.mrb[24].mxu1 %vm123_vm1, %v25443_v33  ;;  %v1440_v33 = vld [vmem:[%s32987_s1 + $0x30] sm:$0x33] }
  0x3b   :  { %480 = vmatprep.mubr.bf16.mxu1 %v26229_v1  ;;  %898 = vmatpush1.bf16.msra.mxu0 %v884_v53 }
  0x3c   :  { %1171 = vmatprep.subr.bf16.mxu0 %v25471_v52  ;;  %v26209_v52 = vld [vmem:[%s32987_s1 + $0xa0] sm:$0xff] }
  0x3d   :  { %v20925_v53 = vcombine.high %v26209_v52, %v20914_v50 }
  0x3e   :  { %20748 = vmatmul.mubr.msk.bf16.gmra.mrb[4].mxu0 %vm123_vm1, %v26463_v54 }
  0x3f   :  { %671 = vmatprep.mubr.bf16.mxu0 %v26229_v1 }
  0x42   :  { %20714 = vmatmul.mubr.msk.bf16.vlgmr.msra.gmra.mrb[12].mxu1 %vm123_vm1, %v26367_v25  ;;  %v1527_v25 = vsel %vm136_vm0, %v20864_v23, 0 }
  0x43   :  { %490 = vmatprep.mubr.bf16.mxu1 %v26229_v1  ;;  %693 = vmatpush1.bf16.msra.mxu1 %v25465_v57  ;;  %v26698_v57 = vld [vmem:[%s32988_s0 + $0x28] sm:$0xff]  }
  0x44   :  { %20751 = vmatprep.subr.msk.bf16.mxu1 %vm136_vm0, %v20745_v59  ;;  %v26211_v59 = vld [vmem:[%s32987_s1 + $0xc4] ss:$16 sps:$4 sm:$0xff]  }
  0x46   :  { %20749 = vmatmul.mubr.msk.bf16.gmra.mrb[8].mxu0 %vm123_vm1, %v25461_v58 }
  0x47   :  { %681 = vmatprep.mubr.bf16.mxu0 %v26229_v1  ;;  %695 = vmatpush1.bf16.msra.mxu1 %v614_v62 }
  0x48   :  { %968 = vmatprep.subr.bf16.mxu1 %v25481_v61 }
  0x4a   :  { %20715 = vmatmul.mubr.msk.bf16.gmra.mrb[16].mxu1 %vm123_vm1, %v26398_v36 }
  0x4b   :  { %500 = vmatprep.mubr.bf16.mxu1 %v26229_v1 }
  0x4e   :  { %20750 = vmatmul.mubr.msk.bf16.gmra.mrb[12].mxu0 %vm123_vm1, %v25464_v63 }
  0x4f   :  { %927 = vmatprep.mubr.bf16.mxu0 %v26229_v1 }
  0x52   :  { %20716 = vmatmul.mubr.msk.bf16.gmra.mrb[20].mxu1 %vm123_vm1, %v25447_v42  ;;  %v26206_v42 = vld [vmem:[%s32987_s1 + $0x68] sm:$0xff] }
  0x53   :  { %510 = vmatprep.mubr.bf16.mxu1 %v26229_v1  ;;  %v20866_v43 = vcombine.low %v26206_v42, %v20855_v40  ;;  %v20867_v44 = vcombine.high %v26206_v42, %v20855_v40 }
  0x55   :  { %v1533_v47 = vsel %vm136_vm0, %v20866_v43, 0  ;;  %v26864_v43 = vld [vmem:[%s32988_s0 + $0x58] sm:$0xff]  }
  0x56   :  { %20785 = vmatmul.mubr.msk.bf16.vlgmr.msra.gmra.mrb[0].mxu0 %vm123_vm1, %v25468_v8 }
  0x57   :  { %1172 = vmatpush1.bf16.msra.mxu0 %v25469_v7  ;;  %937 = vmatprep.mubr.bf16.mxu0 %v26229_v1  ;;  %v26214_v7 = vld [vmem:[%s32987_s1 + $0x8c] ss:$16 sps:$4 sm:$0xff]  }
  0x58   :  { %20822 = vmatprep.subr.msk.bf16.mxu0 %vm136_vm0, %v20819_v11  ;;  %v26215_v11 = vld [vmem:[%s32987_s1 + $0xe0] sm:$0xff] }
  0x5a   :  { %20717 = vmatmul.mubr.msk.bf16.gmra.mrb[24].mxu1 %vm123_vm1, %v25450_v45  ;;  %v25497_v45 = vld [vmem:[%s32988_s0 + $0x40] sm:$0xff]  }
  0x5b   :  { %724 = vmatprep.mubr.bf16.mxu1 %v26229_v1  ;;  %1174 = vmatpush1.bf16.msra.mxu0 %v1160_v10  ;;  %v26749_v10 = vld [vmem:[%s32988_s0 + $0x40] sm:$0xff]  }
  0x5c   :  { %1538 = vmatprep.subr.bf16.mxu0 %v26283_v0  ;;  %v25492_v0 = vld [vmem:[%s32987_s1 + $0x10c] ss:$16 sps:$4 sm:$0xff]  }
  0x5e   :  { %20786 = vmatmul.mubr.msk.bf16.gmra.mrb[4].mxu0 %vm123_vm1, %v25473_v12 }
  0x5f   :  { %947 = vmatprep.mubr.bf16.mxu0 %v26229_v1 }
  0x62   :  { %20752 = vmatmul.mubr.msk.bf16.vlgmr.msra.gmra.mrb[12].mxu1 %vm123_vm1, %v26444_v48  ;;  %v26208_v48 = vld [vmem:[%s32987_s1 + $0xc] ss:$16 sps:$4 sm:$0xff]  }
  0x63   :  { %734 = vmatprep.mubr.bf16.mxu1 %v26229_v1  ;;  %969 = vmatpush1.bf16.msra.mxu1 %v25479_v15  ;;  %v26216_v15 = vld [vmem:[%s32987_s1 + $0xc0] ss:$16 sps:$4 sm:$0xff]  }
  0x64   :  { %20789 = vmatprep.subr.msk.bf16.mxu1 %vm136_vm0, %v20783_v18  ;;  %v26217_v18 = vld [vmem:[%s32987_s1 + $0x104] ss:$16 sps:$4 sm:$0xff]  }
  0x66   :  { %20787 = vmatmul.mubr.msk.bf16.gmra.mrb[8].mxu0 %vm123_vm1, %v25475_v17 }
  0x67   :  { %957 = vmatprep.mubr.bf16.mxu0 %v26229_v1  ;;  %971 = vmatpush1.bf16.msra.mxu1 %v890_v20 }
  0x68   :  { %1244 = vmatprep.subr.bf16.mxu1 %v25492_v0 }
  0x6a   :  { %20753 = vmatmul.mubr.msk.bf16.gmra.mrb[16].mxu1 %vm123_vm1, %v26463_v54  ;;  %v20924_v54 = vcombine.low %v26209_v52, %v20914_v50  ;;  %v26225_v50 = vld [vmem:[%s32987_s1 + $0xc8] ss:$16 sps:$4 sm:$0xff]   ;;  %v26226_v52 = vld [vmem:[%s32987_s1 + $0x10c] ss:$16 sps:$4 sm:$0xff]  }
  0x6b   :  { %744 = vmatprep.mubr.bf16.mxu1 %v26229_v1 }
  0x6c   :  { %v1995_v56 = vsel %vm136_vm0, %v20924_v54, 0  ;;  %v26906_v54 = vld [vmem:[%s32987_s1 + $0x60] sm:$0xff] }
  0x6e   :  { %20788 = vmatmul.mubr.msk.bf16.gmra.mrb[12].mxu0 %vm123_vm1, %v25478_v21 }
  0x6f   :  { %1203 = vmatprep.mubr.bf16.mxu0 %v26229_v1 }
  0x72   :  { %20754 = vmatmul.mubr.msk.bf16.gmra.mrb[20].mxu1 %vm123_vm1, %v25461_v58  ;;  %v1441_v58 = vld [vmem:[%s32987_s1 + $0x38] sm:$0x33] }
  0x73   :  { %754 = vmatprep.mubr.bf16.mxu1 %v26229_v1  ;;  %v20888_v61 = vcombine.low %v26212_v60, %v1441_v58  ;;  %v20889_v62 = vcombine.high %v26212_v60, %v1441_v58 }
  0x75   :  { %v1759_v4 = vsel %vm136_vm0, %v20888_v61, 0  ;;  %v26932_v61 = vld [vmem:[%s32987_s1 + $0x4] ss:$16 sps:$4 sm:$0xff]  }
  0x76   :  { %20823 = vmatmul.mubr.msk.bf16.vlgmr.msra.gmra.mrb[0].mxu0 %vm123_vm1, %v25482_v24 }
  0x77   :  { %1539 = vmatpush1.bf16.msra.mxu0 %v26290_v2  ;;  %1213 = vmatprep.mubr.bf16.mxu0 %v26229_v1  ;;  %v20809_v2 = vld [vmem:[%s32987_s1 + $0x138] sm:$0x33] }
  0x78   :  { %20868 = vmatprep.subr.msk.bf16.mxu0 %vm136_vm0, %v20865_v26  ;;  %v20821_v29 = vcombine.high %v20807_v3, %v20809_v2  ;;  %v20820_v30 = vcombine.low %v20807_v3, %v20809_v2 }
  0x7a   :  { %20755 = vmatmul.mubr.msk.bf16.gmra.mrb[24].mxu1 %vm123_vm1, %v25464_v63  ;;  %v26718_v63 = vld [vmem:[%s32988_s0 + $0x30] sm:$0xff]  }
  0x7b   :  { %1000 = vmatprep.mubr.bf16.mxu1 %v26229_v1  ;;  %1541 = vmatpush1.bf16.msra.mxu0 %v1527_v25 }
  0x7c   :  { %1764 = vmatprep.subr.bf16.mxu0 %v26317_v9  ;;  %v1166_v9 = vsel %vm136_vm0, %v20820_v30, 0 }
  0x7e   :  { %20824 = vmatmul.mubr.msk.bf16.gmra.mrb[4].mxu0 %vm123_vm1, %v26574_v27 }
  0x7f   :  { %1223 = vmatprep.mubr.bf16.mxu0 %v26229_v1 }
  0x82   :  { %20790 = vmatmul.mubr.msk.bf16.vlgmr.msra.gmra.mrb[12].mxu1 %vm123_vm1, %v25468_v8  ;;  %v20952_v8 = vld [vmem:[%s32987_s1 + $0xf0] sm:$0x33] }
  0x83   :  { %1010 = vmatprep.mubr.bf16.mxu1 %v26229_v1  ;;  %1245 = vmatpush1.bf16.msra.mxu1 %v26587_v28  ;;  %v20963_v13 = vcombine.high %v26215_v11, %v20952_v8 }
  0x84   :  { %20827 = vmatprep.subr.msk.bf16.mxu1 %vm136_vm0, %v20821_v29 }
  0x86   :  { %20825 = vmatmul.mubr.msk.bf16.gmra.mrb[8].mxu0 %vm123_vm1, %v25486_v31 }
  0x87   :  { %1233 = vmatprep.mubr.bf16.mxu0 %v26229_v1  ;;  %1247 = vmatpush1.bf16.msra.mxu1 %v1166_v9  ;;  %v26220_v9 = vld [vmem:[%s32987_s1 + $0xcc] ss:$16 sps:$4 sm:$0xff]  }
  0x88   :  { %1611 = vmatprep.subr.bf16.mxu1 %v26337_v16  ;;  %v26203_v16 = vld [vmem:[%s32987_s1 + $0x20] sm:$0xff] }
  0x89   :  { %v20886_v34 = vcombine.low %v26203_v16, %v1440_v33  ;;  %v20887_v36 = vcombine.high %v26203_v16, %v1440_v33 }
  0x8a   :  { %20791 = vmatmul.mubr.msk.bf16.gmra.mrb[16].mxu1 %vm123_vm1, %v25473_v12  ;;  %v20962_v12 = vcombine.low %v26215_v11, %v20952_v8  ;;  %v26986_v11 = vld [vmem:[%s32987_s1 + $0x20] sm:$0xff] }
  0x8b   :  { %1020 = vmatprep.mubr.bf16.mxu1 %v26229_v1  ;;  %v1753_v37 = vsel %vm136_vm0, %v20886_v34, 0 }
  0x8c   :  { %v2270_v14 = vsel %vm136_vm0, %v20962_v12, 0  ;;  %v2825_v12 = vld [vmem:[%s32987_s1 + $0x30] sm:$0x33] }
  0x8e   :  { %20826 = vmatmul.mubr.msk.bf16.gmra.mrb[12].mxu0 %vm123_vm1, %v25489_v32 }
  0x8f   :  { %1570 = vmatprep.mubr.bf16.mxu0 %v26229_v1 }
  0x92   :  { %20792 = vmatmul.mubr.msk.bf16.gmra.mrb[20].mxu1 %vm123_vm1, %v25475_v17  ;;  %v26766_v17 = vld [vmem:[%s32988_s0 + $0x48] sm:$0xff]  }
  0x93   :  { %1030 = vmatprep.mubr.bf16.mxu1 %v26229_v1 }
  0x96   :  { %20869 = vmatmul.mubr.msk.bf16.vlgmr.msra.gmra.mrb[16].mxu0 %vm123_vm1, %v26620_v35 }
  0x97   :  { %1765 = vmatpush1.bf16.msra.mxu0 %v26204_v38  ;;  %1580 = vmatprep.mubr.bf16.mxu0 %v26229_v1  ;;  %v26221_v38 = vld [vmem:[%s32987_s1 + $0x120] sm:$0xff] }
  0x98   :  { %20890 = vmatprep.subr.msk.bf16.mxu0 %vm136_vm0, %v20887_v36  ;;  %v20990_v36 = vld [vmem:[%s32987_s1 + $0x130] sm:$0x33] }
  0x99   :  { %v21000_v40 = vcombine.low %v26221_v38, %v20990_v36 }
  0x9a   :  { %20793 = vmatmul.mubr.msk.bf16.gmra.mrb[24].mxu1 %vm123_vm1, %v25478_v21 }
  0x9b   :  { %1276 = vmatprep.mubr.bf16.mxu1 %v26229_v1  ;;  %1767 = vmatpush1.bf16.msra.mxu0 %v1753_v37  ;;  %v26845_v37 = vld [vmem:[%s32988_s0 + $0x50] sm:$0xff]   ;;  %v2545_v42 = vsel %vm136_vm0, %v21000_v40, 0 }
  0x9c   :  { %2006 = vmatprep.subr.bf16.mxu0 %v26205_v41  ;;  %v26222_v41 = vld [vmem:[%s32987_s1 + $0x100] ss:$16 sps:$4 sm:$0xff]  }
  0x9e   :  { %20870 = vmatmul.mubr.msk.bf16.gmra.mrb[20].mxu0 %vm123_vm1, %v26635_v39 }
  0x9f   :  { %1590 = vmatprep.mubr.bf16.mxu0 %v26229_v1 }
  0xa2   :  { %20828 = vmatmul.mubr.msk.bf16.vlgmr.msra.gmra.mrb[12].mxu1 %vm123_vm1, %v25482_v24  ;;  %v26218_v24 = vld [vmem:[%s32987_s1 + $0xa8] sm:$0xff] }
  0xa3   :  { %1286 = vmatprep.mubr.bf16.mxu1 %v26229_v1  ;;  %1612 = vmatpush1.bf16.msra.mxu1 %v26207_v46  ;;  %v20927_v25 = vcombine.high %v26218_v24, %v20915_v19  ;;  %v20926_v26 = vcombine.low %v26218_v24, %v20915_v19  ;;  %v26224_v46 = vld [vmem:[%s32987_s1 + $0xe8] sm:$0xff]  ;;  %v27014_v19 = vld [vmem:[%s32987_s1 + $0x84] ss:$16 sps:$4 sm:$0xff]  }
  0xa4   :  { %20873 = vmatprep.subr.msk.bf16.mxu1 %vm136_vm0, %v20867_v44  ;;  %v26223_v44 = vld [vmem:[%s32987_s1 + $0x44] ss:$16 sps:$4 sm:$0xff]   ;;  %v27027_v24 = vld [vmem:[%s32987_s1 + $0x68] sm:$0xff] }
  0xa5   :  { %v2001_v3 = vsel %vm136_vm0, %v20926_v26, 0  ;;  %v27038_v26 = vld [vmem:[%s32987_s1 + $0x48] ss:$16 sps:$4 sm:$0xff]  }
  0xa6   :  { %20871 = vmatmul.mubr.msk.bf16.gmra.mrb[24].mxu0 %vm123_vm1, %v25497_v45 }
  0xa7   :  { %1600 = vmatprep.mubr.bf16.mxu0 %v26229_v1  ;;  %1614 = vmatpush1.bf16.msra.mxu1 %v1533_v47 }
  0xa8   :  { %1837 = vmatprep.subr.bf16.mxu1 %v26208_v48 }
  0xaa   :  { %20829 = vmatmul.mubr.msk.bf16.gmra.mrb[16].mxu1 %vm123_vm1, %v26574_v27  ;;  %v26219_v27 = vld [vmem:[%s32987_s1 + $0x88] ss:$16 sps:$4 sm:$0xff]  }
  0xab   :  { %1296 = vmatprep.mubr.bf16.mxu1 %v26229_v1 }
  0xae   :  { %20872 = vmatmul.mubr.msk.bf16.gmra.mrb[28].mxu0 %vm123_vm1, %v25500_v49 }
  0xaf   :  { %1796 = vmatprep.mubr.bf16.mxu0 %v26229_v1 }
  0xb2   :  { %20830 = vmatmul.mubr.msk.bf16.gmra.mrb[20].mxu1 %vm123_vm1, %v25486_v31 }
  0xb3   :  { %1306 = vmatprep.mubr.bf16.mxu1 %v26229_v1 }
  0xb6   :  { %20891 = vmatmul.mubr.msk.bf16.vlgmr.msra.gmra.mrb[16].mxu0 %vm123_vm1, %v26680_v51 }
  0xb7   :  { %2007 = vmatpush1.bf16.msra.mxu0 %v26210_v55  ;;  %1806 = vmatprep.mubr.bf16.mxu0 %v26229_v1  ;;  %v21036_v55 = vld [vmem:[%s32987_s1 + $0x70] sm:$0x33] }
  0xb8   :  { %20928 = vmatprep.subr.msk.bf16.mxu0 %vm136_vm0, %v20925_v53  ;;  %v25524_v53 = vld [vmem:[%s32988_s0 + $0x68] sm:$0xff]   ;;  %v21046_v58 = vcombine.low %v26906_v54, %v21036_v55 }
  0xba   :  { %20831 = vmatmul.mubr.msk.bf16.gmra.mrb[24].mxu1 %vm123_vm1, %v25489_v32  ;;  %v26823_v32 = vld [vmem:[%s32988_s0 + $0x58] sm:$0xff]   ;;  %v2912_v60 = vsel %vm136_vm0, %v21046_v58, 0  ;;  %v27135_v58 = vld [vmem:[%s32988_s0 + $0x48] sm:$0xff]  }
  0xbb   :  { %1643 = vmatprep.mubr.bf16.mxu1 %v26229_v1  ;;  %2009 = vmatpush1.bf16.msra.mxu0 %v1995_v56  ;;  %v26916_v56 = vld [vmem:[%s32988_s0 + $0x60] sm:$0xff]  }
  0xbc   :  { %2281 = vmatprep.subr.bf16.mxu0 %v26211_v59  ;;  %v26227_v59 = vld [vmem:[%s32987_s1 + $0x40] ss:$16 sps:$4 sm:$0xff]  }
  0xbe   :  { %20892 = vmatmul.mubr.msk.bf16.gmra.mrb[20].mxu0 %vm123_vm1, %v26698_v57 }
  0xbf   :  { %1816 = vmatprep.mubr.bf16.mxu0 %v26229_v1 }
  0xc2   :  { %20874 = vmatmul.mubr.msk.bf16.vlgmr.msra.gmra.mrb[28].mxu1 %vm123_vm1, %v26620_v35 }
  0xc3   :  { %1653 = vmatprep.mubr.bf16.mxu1 %v26229_v1  ;;  %1838 = vmatpush1.bf16.msra.mxu1 %v26213_v5 }
  0xc4   :  { %20895 = vmatprep.subr.msk.bf16.mxu1 %vm136_vm0, %v20889_v62  ;;  %v26939_v62 = vld [vmem:[%s32988_s0 + $0x68] sm:$0xff]  }
  0xc6   :  { %20893 = vmatmul.mubr.msk.bf16.gmra.mrb[24].mxu0 %vm123_vm1, %v26718_v63 }
  0xc7   :  { %1826 = vmatprep.mubr.bf16.mxu0 %v26229_v1  ;;  %1840 = vmatpush1.bf16.msra.mxu1 %v1759_v4  ;;  %v26228_v4 = vld [vmem:[%s32987_s1 + $0x128] sm:$0xff] }
  0xc8   :  { %2079 = vmatprep.subr.bf16.mxu1 %v26214_v7  ;;  %v26957_v7 = vld [vmem:[%s32988_s0 + $0x70] sm:$0xff]  }
  0xca   :  { %20875 = vmatmul.mubr.msk.bf16.gmra.mrb[32].mxu1 %vm123_vm1, %v26635_v39  ;;  %v21001_v39 = vcombine.high %v26221_v38, %v20990_v36  ;;  %v27056_v36 = vld [vmem:[%s32987_s1 + $0xc] ss:$16 sps:$4 sm:$0xff]  }
  0xcb   :  { %1663 = vmatprep.mubr.bf16.mxu1 %v26229_v1 }
  0xce   :  { %20894 = vmatmul.mubr.msk.bf16.gmra.mrb[28].mxu0 %vm123_vm1, %v26732_v6 }
  0xcf   :  { %2038 = vmatprep.mubr.bf16.mxu0 %v26229_v1 }
  0xd2   :  { %20876 = vmatmul.mubr.msk.bf16.gmra.mrb[36].mxu1 %vm123_vm1, %v25497_v45  ;;  %v20953_v45 = vld [vmem:[%s32987_s1 + $0xf8] sm:$0x33] }
  0xd3   :  { %1673 = vmatprep.mubr.bf16.mxu1 %v26229_v1  ;;  %v20965_v47 = vcombine.high %v26224_v46, %v20953_v45  ;;  %v20964_v48 = vcombine.low %v26224_v46, %v20953_v45 }
  0xd6   :  { %20929 = vmatmul.mubr.msk.bf16.vlgmr.msra.gmra.mrb[16].mxu0 %vm123_vm1, %v26749_v10 }
  0xd7   :  { %2282 = vmatpush1.bf16.msra.mxu0 %v26216_v15  ;;  %2048 = vmatprep.mubr.bf16.mxu0 %v26229_v1  ;;  %v21069_v15 = vcombine.high %v26986_v11, %v2825_v12 }
  0xd8   :  { %20966 = vmatprep.subr.msk.bf16.mxu0 %vm136_vm0, %v20963_v13  ;;  %v26995_v13 = vld [vmem:[%s32988_s0 + $0x50] sm:$0xff]  }
  0xda   :  { %20877 = vmatmul.mubr.msk.bf16.gmra.mrb[40].mxu1 %vm123_vm1, %v25500_v49  ;;  %v25521_v49 = vld [vmem:[%s32988_s0 + $0x60] sm:$0xff]  }
  0xdb   :  { %1869 = vmatprep.mubr.bf16.mxu1 %v26229_v1  ;;  %2284 = vmatpush1.bf16.msra.mxu0 %v2270_v14  ;;  %v27000_v14 = vld [vmem:[%s32987_s1] ss:$16 sps:$4 sm:$0xff]  }
  0xdc   :  { %2556 = vmatprep.subr.bf16.mxu0 %v26217_v18 }
  0xdd   :  { %v26777_v0 = vpop.f32.mrb[0].mxu1 }
  0xde   :  { %20930 = vmatmul.mubr.msk.bf16.gmra.mrb[20].mxu0 %vm123_vm1, %v26766_v17  ;;  %v26781_v20 = vpop.f32.mrb[1].mxu1 }
  0xdf   :  { %2058 = vmatprep.mubr.bf16.mxu0 %v26229_v1  ;;  %v26784_v21 = vpop.f32.mrb[2].mxu1 }
  0xe0   :  { %v26791_v23 = vpop.f32.mrb[3].mxu1 }
  0xe2   :  { %20896 = vmatmul.mubr.msk.bf16.vlgmr.msra.gmra.mrb[28].mxu1 %vm123_vm1, %v26680_v51  ;;  %v2276_v51 = vsel %vm136_vm0, %v20964_v48, 0 }
  0xe3   :  { %1879 = vmatprep.mubr.bf16.mxu1 %v26229_v1  ;;  %2080 = vmatpush1.bf16.msra.mxu1 %v26219_v27 }
  0xe4   :  { %20933 = vmatprep.subr.msk.bf16.mxu1 %vm136_vm0, %v20927_v25  ;;  %v21037_v25 = vld [vmem:[%s32987_s1 + $0x78] sm:$0x33] }
  0xe5   :  { %v26804_v2 = vpop.f32.mrb[4].mxu1  ;;  %v21049_v27 = vcombine.high %v27027_v24, %v21037_v25 }
  0xe6   :  { %20931 = vmatmul.mubr.msk.bf16.gmra.mrb[24].mxu0 %vm123_vm1, %v26789_v22  ;;  %v26808_v29 = vpop.f32.mrb[5].mxu1 }
  0xe7   :  { %2068 = vmatprep.mubr.bf16.mxu0 %v26229_v1  ;;  %v26811_v30 = vpop.f32.mrb[6].mxu1  ;;  %2082 = vmatpush1.bf16.msra.mxu1 %v2001_v3  ;;  %v21048_v3 = vcombine.low %v27027_v24, %v21037_v25  ;;  %v27222_v25 = vld [vmem:[%s32988_s0 + $0x60] sm:$0xff]  }
  0xe8   :  { %v26813_v31 = vpop.f32.mrb[7].mxu1  ;;  %2354 = vmatprep.subr.bf16.mxu1 %v26220_v9  ;;  %v27047_v9 = vld [vmem:[%s32988_s0 + $0x60] sm:$0xff]  }
  0xea   :  { %20897 = vmatmul.mubr.msk.bf16.gmra.mrb[32].mxu1 %vm123_vm1, %v26698_v57  ;;  %v21047_v57 = vcombine.high %v26906_v54, %v21036_v55 }
  0xeb   :  { %1889 = vmatprep.mubr.bf16.mxu1 %v26229_v1 }
  0xed   :  { %v26826_v33 = vpop.f32.mrb[8].mxu1 }
  0xee   :  { %20932 = vmatmul.mubr.msk.bf16.gmra.mrb[28].mxu0 %vm123_vm1, %v26823_v32  ;;  %v26830_v16 = vpop.f32.mrb[9].mxu1 }
  0xef   :  { %2313 = vmatprep.mubr.bf16.mxu0 %v26229_v1  ;;  %v26833_v34 = vpop.f32.mrb[10].mxu1 }
  0xf0   :  { %v26835_v35 = vpop.f32.mrb[11].mxu1 }
  0xf2   :  { %20898 = vmatmul.mubr.msk.bf16.gmra.mrb[36].mxu1 %vm123_vm1, %v26718_v63  ;;  %v20991_v63 = vld [vmem:[%s32987_s1 + $0x138] sm:$0x33] }
  0xf3   :  { %1899 = vmatprep.mubr.bf16.mxu1 %v26229_v1  ;;  %v21003_v5 = vcombine.high %v26228_v4, %v20991_v63 }
  0xf6   :  { %20967 = vmatmul.mubr.msk.bf16.vlgmr.msra.gmra.mrb[16].mxu0 %vm123_vm1, %v26845_v37 }
  0xf7   :  { %2557 = vmatpush1.bf16.msra.mxu0 %v26222_v41  ;;  %2323 = vmatprep.mubr.bf16.mxu0 %v26229_v1 }
  0xf8   :  { %21004 = vmatprep.subr.msk.bf16.mxu0 %vm136_vm0, %v21001_v39  ;;  %v27071_v39 = vld [vmem:[%s32988_s0 + $0x68] sm:$0xff]  }
  0xfa   :  { %20899 = vmatmul.mubr.msk.bf16.gmra.mrb[40].mxu1 %vm123_vm1, %v26732_v6  ;;  %v21002_v6 = vcombine.low %v26228_v4, %v20991_v63  ;;  %v27151_v4 = vld [vmem:[%s32987_s1 + $0x28] sm:$0xff] }
  0xfb   :  { %2111 = vmatprep.mubr.bf16.mxu1 %v26229_v1  ;;  %2559 = vmatpush1.bf16.msra.mxu0 %v2545_v42 }
  0xfc   :  { %2923 = vmatprep.subr.bf16.mxu0 %v26223_v44  ;;  %v2551_v8 = vsel %vm136_vm0, %v21002_v6, 0  ;;  %v21096_v44 = vld [vmem:[%s32987_s1 + $0xb0] sm:$0x33] }
  0xfe   :  { %20968 = vmatmul.mubr.msk.bf16.gmra.mrb[20].mxu0 %vm123_vm1, %v26864_v43 }
  0xff   :  { %2333 = vmatprep.mubr.bf16.mxu0 %v26229_v1 }
 0x102   :  { %20934 = vmatmul.mubr.msk.bf16.vlgmr.msra.gmra.mrb[28].mxu1 %vm123_vm1, %v26749_v10  ;;  %v26966_v10 = vld [vmem:[%s32987_s1 + $0x4c] ss:$16 sps:$4 sm:$0xff]  }
 0x103   :  { %2121 = vmatprep.mubr.bf16.mxu1 %v26229_v1  ;;  %2355 = vmatpush1.bf16.msra.mxu1 %v26225_v50  ;;  %v27105_v50 = vld [vmem:[%s32987_s1 + $0x80] ss:$16 sps:$4 sm:$0xff]  }
 0x104   :  { %20971 = vmatprep.subr.msk.bf16.mxu1 %vm136_vm0, %v20965_v47  ;;  %v27097_v47 = vld [vmem:[%s32988_s0 + $0x40] sm:$0xff]  }
 0x106   :  { %20969 = vmatmul.mubr.msk.bf16.gmra.mrb[24].mxu0 %vm123_vm1, %v25521_v49 }
 0x107   :  { %2343 = vmatprep.mubr.bf16.mxu0 %v26229_v1  ;;  %2357 = vmatpush1.bf16.msra.mxu1 %v2276_v51 }
 0x108   :  { %2629 = vmatprep.subr.bf16.mxu1 %v26226_v52 }
 0x10a   :  { %20935 = vmatmul.mubr.msk.bf16.gmra.mrb[32].mxu1 %vm123_vm1, %v26766_v17  ;;  %v21068_v17 = vcombine.low %v26986_v11, %v2825_v12 }
 0x10b   :  { %2131 = vmatprep.mubr.bf16.mxu1 %v26229_v1 }
 0x10c   :  { %v3138_v18 = vsel %vm136_vm0, %v21068_v17, 0 }
 0x10e   :  { %20970 = vmatmul.mubr.msk.bf16.gmra.mrb[28].mxu0 %vm123_vm1, %v25524_v53 }
 0x10f   :  { %2588 = vmatprep.mubr.bf16.mxu0 %v26229_v1 }
 0x112   :  { %20936 = vmatmul.mubr.msk.bf16.gmra.mrb[36].mxu1 %vm123_vm1, %v26789_v22  ;;  %v27020_v22 = vld [vmem:[%s32988_s0 + $0x58] sm:$0xff]  }
 0x113   :  { %2141 = vmatprep.mubr.bf16.mxu1 %v26229_v1 }
 0x116   :  { %21005 = vmatmul.mubr.msk.bf16.vlgmr.msra.gmra.mrb[16].mxu0 %vm123_vm1, %v26916_v56 }
 0x117   :  { %2924 = vmatpush1.bf16.msra.mxu0 %v26227_v59  ;;  %2598 = vmatprep.mubr.bf16.mxu0 %v26229_v1 }
 0x118   :  { %21050 = vmatprep.subr.msk.bf16.mxu0 %vm136_vm0, %v21047_v57 }
 0x11a   :  { %20937 = vmatmul.mubr.msk.bf16.gmra.mrb[40].mxu1 %vm123_vm1, %v26823_v32  ;;  %v2918_v32 = vsel %vm136_vm0, %v21048_v3, 0 }
 0x11b   :  { %2386 = vmatprep.mubr.bf16.mxu1 %v26229_v1  ;;  %2926 = vmatpush1.bf16.msra.mxu0 %v2912_v60 }
 0x11c   :  { %3149 = vmatprep.subr.bf16.mxu0 %v26932_v61 }
 0x11e   :  { %21006 = vmatmul.mubr.msk.bf16.gmra.mrb[20].mxu0 %vm123_vm1, %v26939_v62 }
 0x11f   :  { %2608 = vmatprep.mubr.bf16.mxu0 %v26229_v1 }
 0x122   :  { %20972 = vmatmul.mubr.msk.bf16.vlgmr.msra.gmra.mrb[28].mxu1 %vm123_vm1, %v26845_v37 }
 0x123   :  { %2396 = vmatprep.mubr.bf16.mxu1 %v26229_v1  ;;  %2630 = vmatpush1.bf16.msra.mxu1 %v26587_v28  ;;  %v26977_v28 = vld [vmem:[%s32988_s0 + $0x78] sm:$0xff]  }
 0x124   :  { %21009 = vmatprep.subr.msk.bf16.mxu1 %vm136_vm0, %v21003_v5 }
 0x126   :  { %21007 = vmatmul.mubr.msk.bf16.gmra.mrb[24].mxu0 %vm123_vm1, %v26957_v7 }
 0x127   :  { %2618 = vmatprep.mubr.bf16.mxu0 %v26229_v1  ;;  %2632 = vmatpush1.bf16.msra.mxu1 %v2551_v8 }
 0x128   :  { %2996 = vmatprep.subr.bf16.mxu1 %v26966_v10 }
 0x12a   :  { %20973 = vmatmul.mubr.msk.bf16.gmra.mrb[32].mxu1 %vm123_vm1, %v26864_v43  ;;  %v27084_v43 = vld [vmem:[%s32987_s1 + $0xa0] sm:$0xff] }
 0x12b   :  { %2406 = vmatprep.mubr.bf16.mxu1 %v26229_v1  ;;  %v21107_v52 = vcombine.high %v27084_v43, %v21096_v44 }
 0x12e   :  { %21008 = vmatmul.mubr.msk.bf16.gmra.mrb[28].mxu0 %vm123_vm1, %v26977_v28 }
 0x12f   :  { %2955 = vmatprep.mubr.bf16.mxu0 %v26229_v1 }
 0x132   :  { %20974 = vmatmul.mubr.msk.bf16.gmra.mrb[36].mxu1 %vm123_vm1, %v25521_v49 }
 0x133   :  { %2416 = vmatprep.mubr.bf16.mxu1 %v26229_v1 }
 0x136   :  { %21051 = vmatmul.mubr.msk.bf16.vlgmr.msra.gmra.mrb[32].mxu0 %vm123_vm1, %v26995_v13 }
 0x137   :  { %3150 = vmatpush1.bf16.msra.mxu0 %v27000_v14  ;;  %2965 = vmatprep.mubr.bf16.mxu0 %v26229_v1 }
 0x138   :  { %21072 = vmatprep.subr.msk.bf16.mxu0 %vm136_vm0, %v21069_v15 }
 0x13a   :  { %20975 = vmatmul.mubr.msk.bf16.gmra.mrb[40].mxu1 %vm123_vm1, %v25524_v53  ;;  %v21106_v53 = vcombine.low %v27084_v43, %v21096_v44 }
 0x13b   :  { %2661 = vmatprep.mubr.bf16.mxu1 %v26229_v1  ;;  %3152 = vmatpush1.bf16.msra.mxu0 %v3138_v18  ;;  %v27189_v18 = vld [vmem:[%s32987_s1 + $0x8c] ss:$16 sps:$4 sm:$0xff]  }
 0x13c   :  { %3391 = vmatprep.subr.bf16.mxu0 %v27014_v19 }
 0x13e   :  { %21052 = vmatmul.mubr.msk.bf16.gmra.mrb[36].mxu0 %vm123_vm1, %v27020_v22 }
 0x13f   :  { %2975 = vmatprep.mubr.bf16.mxu0 %v26229_v1 }
 0x142   :  { %21010 = vmatmul.mubr.msk.bf16.vlgmr.msra.gmra.mrb[28].mxu1 %vm123_vm1, %v26916_v56 }
 0x143   :  { %2671 = vmatprep.mubr.bf16.mxu1 %v26229_v1  ;;  %2997 = vmatpush1.bf16.msra.mxu1 %v27038_v26 }
 0x144   :  { %21055 = vmatprep.subr.msk.bf16.mxu1 %vm136_vm0, %v21049_v27  ;;  %v27227_v27 = vld [vmem:[%s32987_s1 + $0xc0] ss:$16 sps:$4 sm:$0xff]  }
 0x146   :  { %21053 = vmatmul.mubr.msk.bf16.gmra.mrb[40].mxu0 %vm123_vm1, %v27047_v9 }
 0x147   :  { %2985 = vmatprep.mubr.bf16.mxu0 %v26229_v1  ;;  %2999 = vmatpush1.bf16.msra.mxu1 %v2918_v32 }
 0x148   :  { %3222 = vmatprep.subr.bf16.mxu1 %v27056_v36 }
 0x149   :  { %v27062_v37 = vpop.f32.mrb[0].mxu0 }
 0x14a   :  { %v27064_v38 = vpop.f32.mrb[1].mxu0  ;;  %21011 = vmatmul.mubr.msk.bf16.gmra.mrb[32].mxu1 %vm123_vm1, %v26939_v62 }
 0x14b   :  { %v27073_v40 = vpop.f32.mrb[2].mxu0  ;;  %2681 = vmatprep.mubr.bf16.mxu1 %v26229_v1 }
 0x14c   :  { %v27076_v41 = vpop.f32.mrb[3].mxu0 }
 0x14e   :  { %21054 = vmatmul.mubr.msk.bf16.gmra.mrb[44].mxu0 %vm123_vm1, %v27071_v39 }
 0x14f   :  { %3181 = vmatprep.mubr.bf16.mxu0 %v26229_v1 }
 0x151   :  { %v1215_v42 = vpop.f32.mrb[4].mxu0 }
 0x152   :  { %v27090_v45 = vadd.f32 %v1215_v42, %v26777_v0  ;;  %v1217_v46 = vpop.f32.mrb[5].mxu0  ;;  %21012 = vmatmul.mubr.msk.bf16.gmra.mrb[36].mxu1 %vm123_vm1, %v26957_v7 }
 0x153   :  { %v27100_v48 = vadd.f32 %v1217_v46, %v26781_v20  ;;  %v1219_v49 = vpop.f32.mrb[6].mxu0  ;;  %2691 = vmatprep.mubr.bf16.mxu1 %v26229_v1  ;;  %v3380_v20 = vsel %vm136_vm0, %v21106_v53, 0 }
 0x154   :  { %v27109_v0 = vadd.f32 %v1219_v49, %v26784_v21  ;;  %v1221_v51 = vpop.f32.mrb[7].mxu0  ;;  %v27125_v21 = vld [vmem:[%s32987_s1 + $0xc4] ss:$16 sps:$4 sm:$0xff]  }
 0x155   :  { %v27114_v55 = vadd.f32 %v1221_v51, %v26791_v23 }
 0x156   :  { %21073 = vmatmul.mubr.msk.bf16.vlgmr.msra.gmra.mrb[32].mxu0 %vm123_vm1, %v27097_v47 }
 0x157   :  { %3392 = vmatpush1.bf16.msra.mxu0 %v27105_v50  ;;  %3191 = vmatprep.mubr.bf16.mxu0 %v26229_v1 }
 0x158   :  { %21110 = vmatprep.subr.msk.bf16.mxu0 %vm136_vm0, %v21107_v52 }
 0x159   :  { %v1225_v56 = vpop.f32.mrb[8].mxu0 }
 0x15a   :  { %v27128_v23 = vadd.f32 %v1225_v56, %v26804_v2  ;;  %v1227_v57 = vpop.f32.mrb[9].mxu0  ;;  %21013 = vmatmul.mubr.msk.bf16.gmra.mrb[40].mxu1 %vm123_vm1, %v26977_v28  ;;  %v27174_v28 = vld [vmem:[%s32988_s0 + $0x50] sm:$0xff]  }
 0x15b   :  { %v27138_v59 = vadd.f32 %v1227_v57, %v26808_v29  ;;  %v1229_v60 = vpop.f32.mrb[10].mxu0  ;;  %3028 = vmatprep.mubr.bf16.mxu1 %v26229_v1  ;;  %3394 = vmatpush1.bf16.msra.mxu0 %v3380_v20  ;;  %v2826_v29 = vld [vmem:[%s32987_s1 + $0x38] sm:$0x33] }
 0x15c   :  { %v27142_v62 = vadd.f32 %v1229_v60, %v26811_v30  ;;  %v1231_v2 = vpop.f32.mrb[11].mxu0  ;;  %3666 = vmatprep.subr.bf16.mxu0 %v27125_v21  ;;  %v27162_v30 = vld [vmem:[%s32987_s1 + $0x8] ss:$16 sps:$4 sm:$0xff]   ;;  %v21070_v5 = vcombine.low %v27151_v4, %v2826_v29 }
 0x15d   :  { %v27146_v63 = vadd.f32 %v1231_v2, %v26813_v31  ;;  %v21071_v31 = vcombine.high %v27151_v4, %v2826_v29  ;;  %v27259_v60 = vld [vmem:[%s32987_s1 + $0xa8] sm:$0xff] }
 0x15e   :  { %21074 = vmatmul.mubr.msk.bf16.gmra.mrb[36].mxu0 %vm123_vm1, %v27135_v58 }
 0x15f   :  { %3201 = vmatprep.mubr.bf16.mxu0 %v26229_v1 }
 0x161   :  { %v1235_v6 = vpop.f32.mrb[12].mxu0 }
 0x162   :  { %v27167_v7 = vadd.f32 %v1235_v6, %v26826_v33  ;;  %v1237_v8 = vpop.f32.mrb[13].mxu0  ;;  %21056 = vmatmul.mubr.msk.bf16.vlgmr.msra.gmra.mrb[44].mxu1 %vm123_vm1, %v26995_v13  ;;  %v3144_v13 = vsel %vm136_vm0, %v21070_v5, 0 }
 0x163   :  { %v27177_v12 = vadd.f32 %v1237_v8, %v26830_v16  ;;  %v1239_v15 = vpop.f32.mrb[14].mxu0  ;;  %3038 = vmatprep.mubr.bf16.mxu1 %v26229_v1  ;;  %3223 = vmatpush1.bf16.msra.mxu1 %v27162_v30 }
 0x164   :  { %v27182_v33 = vadd.f32 %v1239_v15, %v26833_v34  ;;  %v1241_v17 = vpop.f32.mrb[15].mxu0  ;;  %21077 = vmatprep.subr.msk.bf16.mxu1 %vm136_vm0, %v21071_v31  ;;  %v27203_v34 = vld [vmem:[%s32988_s0 + $0x58] sm:$0xff]   ;;  %v1365_v31 = vld [vmem:[%s32989_s2] sm:$0x3] }
 0x165   :  { %v27192_v16 = vadd.f32 %v1241_v17, %v26835_v35  ;;  %v27212_v35 = vld [vmem:[%s32987_s1 + $0xe0] sm:$0xff] }
 0x166   :  { %21075 = vmatmul.mubr.msk.bf16.gmra.mrb[40].mxu0 %vm123_vm1, %v27174_v28 }
 0x167   :  { %3211 = vmatprep.mubr.bf16.mxu0 %v26229_v1  ;;  %3225 = vmatpush1.bf16.msra.mxu1 %v3144_v13 }
 0x168   :  { %3464 = vmatprep.subr.bf16.mxu1 %v27189_v18 }
 0x16a   :  { %21057 = vmatmul.mubr.msk.bf16.gmra.mrb[48].mxu1 %vm123_vm1, %v27020_v22  ;;  %v21134_v22 = vld [vmem:[%s32987_s1 + $0xf0] sm:$0x33] }
 0x16b   :  { %3048 = vmatprep.mubr.bf16.mxu1 %v26229_v1  ;;  %v21145_v3 = vcombine.high %v27212_v35, %v21134_v22  ;;  %v21144_v32 = vcombine.low %v27212_v35, %v21134_v22 }
 0x16d   :  { %v3655_v20 = vsel %vm136_vm0, %v21144_v32, 0  ;;  %v27299_v32 = vld [vmem:[%s32988_s0 + $0x70] sm:$0xff]  }
 0x16e   :  { %21076 = vmatmul.mubr.msk.bf16.gmra.mrb[44].mxu0 %vm123_vm1, %v27203_v34 }
 0x16f   :  { %3423 = vmatprep.mubr.bf16.mxu0 %v26229_v1 }
 0x172   :  { %21058 = vmatmul.mubr.msk.bf16.gmra.mrb[52].mxu1 %vm123_vm1, %v27047_v9  ;;  %v1367_v9 = vlaneseq }
 0x173   :  { %3058 = vmatprep.mubr.bf16.mxu1 %v26229_v1 }
 0x175   :  { %v1278_v42 = vpop.f32.mrb[12].mxu1 }
 0x176   :  { %v1349_v44 = vmax.f32 %v27062_v37, %v1278_v42  ;;  %v1280_v46 = vpop.f32.mrb[13].mxu1  ;;  %21111 = vmatmul.mubr.msk.bf16.vlgmr.msra.gmra.mrb[32].mxu0 %vm123_vm1, %v27222_v25  ;;  %v27244_v37 = vld [vmem:[%s32987_s1 + $0x104] ss:$16 sps:$4 sm:$0xff]  }
 0x177   :  { %v1350_v49 = vmax.f32 %v27064_v38, %v1280_v46  ;;  %v1282_v51 = vpop.f32.mrb[14].mxu1  ;;  %3667 = vmatpush1.bf16.msra.mxu0 %v27227_v27  ;;  %3433 = vmatprep.mubr.bf16.mxu0 %v26229_v1  ;;  %v1368_v38 = vshrl.u32 %v1367_v9, 7 }
 0x178   :  { %v1351_v52 = vmax.f32 %v27073_v40, %v1282_v51  ;;  %v1284_v53 = vpop.f32.mrb[15].mxu1  ;;  %21148 = vmatprep.subr.msk.bf16.mxu0 %vm136_vm0, %v21145_v3  ;;  %v27252_v40 = vld [vmem:[%s32988_s0 + $0x68] sm:$0xff]  }
 0x179   :  { %v1352_v56 = vmax.f32 %v27076_v41, %v1284_v53  ;;  %v27264_v41 = vsub.s32 0, %v1368_v38  ;;  %v27272_v5 = vsub.s32 1, %v1368_v38 }
 0x17a   :  { %21059 = vmatmul.mubr.msk.bf16.gmra.mrb[56].mxu1 %vm123_vm1, %v27071_v39  ;;  %v21097_v39 = vld [vmem:[%s32987_s1 + $0xb8] sm:$0x33] }
 0x17b   :  { %3254 = vmatprep.mubr.bf16.mxu1 %v26229_v1  ;;  %3669 = vmatpush1.bf16.msra.mxu0 %v3655_v20  ;;  %33020 = vst [vmem:[#allocation4_spill] sm:$0xff] %v27264_v41  ;;  %33021 = vst [vmem:[#allocation5_spill] sm:$0xff] %v27272_v5  ;;  %v21109_v13 = vcombine.high %v27259_v60, %v21097_v39  ;;  %v21108_v22 = vcombine.low %v27259_v60, %v21097_v39 }
 0x17c   :  { %3941 = vmatprep.subr.bf16.mxu0 %v27244_v37  ;;  %v27292_v3 = vrot.slane %v1365_v31, %v27264_v41 }
 0x17d   :  { %v1288_v57 = vpop.f32.mrb[16].mxu1 }
 0x17e   :  { %v1353_v2 = vmax.f32 %v27090_v45, %v1288_v57  ;;  %v1290_v29 = vpop.f32.mrb[17].mxu1  ;;  %21112 = vmatmul.mubr.msk.bf16.gmra.mrb[36].mxu0 %vm123_vm1, %v27252_v40  ;;  %v27281_v45 = vld [vmem:[%s32987_s1 + $0x88] ss:$16 sps:$4 sm:$0xff]   ;;  %v1377_v9 = vadd.f32 %v27292_v3, %v1349_v44  ;;  %v1379_v57 = vadd.f32 %v27292_v3, %v1351_v52 }
 0x17f   :  { %v1354_v6 = vmax.f32 %v27100_v48, %v1290_v29  ;;  %v27275_v8 = vpop.f32.mrb[18].mxu1  ;;  %3443 = vmatprep.mubr.bf16.mxu0 %v26229_v1 }
 0x180   :  { %v1355_v15 = vmax.f32 %v27109_v0, %v27275_v8  ;;  %v27285_v17 = vpop.f32.mrb[19].mxu1  ;;  %v27302_v0 = vrot.slane %v1365_v31, %v27272_v5 }
 0x181   :  { %v1356_v48 = vmax.f32 %v27114_v55, %v27285_v17  ;;  %v3386_v55 = vsel %vm136_vm0, %v21108_v22, 0  ;;  %v1395_v22 = vmax.f32 %v1379_v57, 0.0 }
 0x182   :  { %21078 = vmatmul.mubr.msk.bf16.vlgmr.msra.gmra.mrb[44].mxu1 %vm123_vm1, %v27097_v47  ;;  %v27311_v47 = vld [vmem:[%s32987_s1 + $0xcc] ss:$16 sps:$4 sm:$0xff]   ;;  %v1378_v53 = vadd.f32 %v27302_v0, %v1350_v49 }
 0x183   :  { %3264 = vmatprep.mubr.bf16.mxu1 %v26229_v1  ;;  %3465 = vmatpush1.bf16.msra.mxu1 %v27281_v45 }
 0x184   :  { %21115 = vmatprep.subr.msk.bf16.mxu1 %vm136_vm0, %v21109_v13  ;;  %v1394_v52 = vmax.f32 %v1378_v53, 0.0  ;;  %v1382_v53 = vadd.f32 %v27302_v0, %v1354_v6  ;;  %v1384_v6 = vadd.f32 %v27302_v0, %v1356_v48 }
 0x185   :  { %v1298_v42 = vpop.f32.mrb[20].mxu1 }
 0x186   :  { %v1357_v46 = vmax.f32 %v27128_v23, %v1298_v42  ;;  %v1300_v51 = vpop.f32.mrb[21].mxu1  ;;  %21113 = vmatmul.mubr.msk.bf16.gmra.mrb[40].mxu0 %vm123_vm1, %v27299_v32  ;;  %v1380_v23 = vadd.f32 %v27302_v0, %v1352_v56 }
 0x187   :  { %v1358_v20 = vmax.f32 %v27138_v59, %v1300_v51  ;;  %v1302_v38 = vpop.f32.mrb[22].mxu1  ;;  %3453 = vmatprep.mubr.bf16.mxu0 %v26229_v1  ;;  %3467 = vmatpush1.bf16.msra.mxu1 %v3386_v55  ;;  %v1393_v59 = vmax.f32 %v1377_v9, 0.0 }
 0x188   :  { %v1385_v39 = vadd.f32 %v27292_v3, %v1357_v46  ;;  %v1359_v44 = vmax.f32 %v27142_v62, %v1302_v38  ;;  %v1304_v29 = vpop.f32.mrb[23].mxu1  ;;  %3739 = vmatprep.subr.bf16.mxu1 %v27311_v47  ;;  %v27333_v62 = vld [vmem:[%s32988_s0 + $0x78] sm:$0xff]   ;;  %v1396_v42 = vmax.f32 %v1380_v23, 0.0  ;;  %v1383_v23 = vadd.f32 %v27292_v3, %v1355_v15 }
 0x189   :  { %v1386_v31 = vadd.f32 %v27302_v0, %v1358_v20  ;;  %v1360_v49 = vmax.f32 %v27146_v63, %v1304_v29 }
 0x18a   :  { %v1401_v8 = vmax.f32 %v1385_v39, 0.0  ;;  %v1387_v17 = vadd.f32 %v27292_v3, %v1359_v44  ;;  %21079 = vmatmul.mubr.msk.bf16.gmra.mrb[48].mxu1 %vm123_vm1, %v27135_v58  ;;  %v1381_v58 = vadd.f32 %v27292_v3, %v1353_v2 }
 0x18b   :  { %v1402_v13 = vmax.f32 %v1386_v31, 0.0  ;;  %v1388_v56 = vadd.f32 %v27302_v0, %v1360_v49  ;;  %3274 = vmatprep.mubr.bf16.mxu1 %v26229_v1 }
 0x18c   :  { %v1409_v63 = vmax.f32 %v1393_v59, %v1401_v8  ;;  %v1403_v55 = vmax.f32 %v1387_v17, 0.0  ;;  %v27350_v59 = vld [vmem:[%s32987_s1 + $0x120] sm:$0xff] }
 0x18d   :  { %v1410_v9 = vmax.f32 %v1394_v52, %v1402_v13  ;;  %v1404_v46 = vmax.f32 %v1388_v56, 0.0  ;;  %v1308_v51 = vpop.f32.mrb[24].mxu1  ;;  %v1397_v52 = vmax.f32 %v1381_v58, 0.0  ;;  %v27364_v56 = vld [vmem:[%s32988_s0 + $0x70] sm:$0xff]  }
 0x18e   :  { %v1411_v20 = vmax.f32 %v1395_v22, %v1403_v55  ;;  %v1361_v38 = vmax.f32 %v27167_v7, %v1308_v51  ;;  %v1310_v39 = vpop.f32.mrb[25].mxu1  ;;  %21114 = vmatmul.mubr.msk.bf16.gmra.mrb[44].mxu0 %vm123_vm1, %v27333_v62  ;;  %v1398_v22 = vmax.f32 %v1382_v53, 0.0  ;;  %v27385_v53 = vld [vmem:[%s32987_s1 + $0x44] ss:$16 sps:$4 sm:$0xff]  }
 0x18f   :  { %v1412_v44 = vmax.f32 %v1396_v42, %v1404_v46  ;;  %v1362_v57 = vmax.f32 %v27177_v12, %v1310_v39  ;;  %v1312_v29 = vpop.f32.mrb[26].mxu1  ;;  %3698 = vmatprep.mubr.bf16.mxu0 %v26229_v1  ;;  %v21172_v12 = vld [vmem:[%s32987_s1 + $0x130] sm:$0x33]  ;;  %v1400_v46 = vmax.f32 %v1384_v6, 0.0 }
 0x190   :  { %v1417_v31 = vpack.c.bf16 %v1411_v20, %v1409_v63  ;;  %v1389_v2 = vadd.f32 %v27292_v3, %v1361_v38  ;;  %v1363_v7 = vmax.f32 %v27182_v33, %v1312_v29  ;;  %v1314_v49 = vpop.f32.mrb[27].mxu1  ;;  %v27398_v29 = vld [vmem:[%s32987_s1 + $0xe8] sm:$0xff]  ;;  %v21218_v6 = vld [vmem:[%s32987_s1 + $0x70] sm:$0x33] }
 0x191   :  { %v1418_v8 = vpack.c.bf16 %v1412_v44, %v1410_v9  ;;  %v1390_v15 = vadd.f32 %v27302_v0, %v1362_v57  ;;  %v1364_v17 = vmax.f32 %v27192_v16, %v1314_v49  ;;  %v27371_v16 = vld [vmem:[%s32987_s1 + $0x100] ss:$16 sps:$4 sm:$0xff]   ;;  %v21182_v9 = vcombine.low %v27350_v59, %v21172_v12  ;;  %v25580_v57 = vld [vmem:[%s32988_s0 + $0x78] sm:$0xff]  }
 0x192   :  { %1421 = vst [vmem:[#allocation2] sm:$0xff] %v1417_v31  ;;  %v1405_v33 = vmax.f32 %v1389_v2, 0.0  ;;  %v1391_v13 = vadd.f32 %v27292_v3, %v1363_v7  ;;  %21080 = vmatmul.mubr.msk.bf16.gmra.mrb[52].mxu1 %vm123_vm1, %v27174_v28  ;;  %v21183_v28 = vcombine.high %v27350_v59, %v21172_v12  ;;  %v1399_v3 = vmax.f32 %v1383_v23, 0.0  ;;  %v27408_v23 = vld [vmem:[%s32987_s1 + $0xc8] ss:$16 sps:$4 sm:$0xff]   ;;  %v25582_v7 = vld [vmem:[%s32988_s0 + $0x80] sm:$0xff]  }
 0x193   :  { %1423 = vst.msk [vmem:[#allocation2 + $0x8] sm:$0xff] %vm1422_vm2, %v1418_v8  ;;  %v1406_v48 = vmax.f32 %v1390_v15, 0.0  ;;  %v1392_v63 = vadd.f32 %v27302_v0, %v1364_v17  ;;  %3284 = vmatprep.mubr.bf16.mxu1 %v26229_v1  ;;  %v3930_v39 = vsel %vm136_vm0, %v21182_v9, 0  ;;  %v27424_v12 = vld [vmem:[%s32987_s1 + $0x10c] ss:$16 sps:$4 sm:$0xff]   ;;  %v21229_v15 = vcombine.high %v26906_v54, %v21218_v6 }
 0x194   :  { %v1413_v55 = vmax.f32 %v1397_v52, %v1405_v33  ;;  %v1407_v42 = vmax.f32 %v1391_v13, 0.0  ;;  %v27448_v8 = vld [vmem:[%s32987_s1 + $0x40] ss:$16 sps:$4 sm:$0xff]   ;;  %v21228_v17 = vcombine.low %v26906_v54, %v21218_v6  ;;  %v25594_v52 = vld [vmem:[%s32988_s0 + $0x88] sm:$0xff]   ;;  %v21173_v33 = vld [vmem:[%s32987_s1 + $0x138] sm:$0x33] }
 0x195   :  { %v1414_v51 = vmax.f32 %v1398_v22, %v1406_v48  ;;  %v1408_v58 = vmax.f32 %v1392_v63, 0.0  ;;  %v27468_v54 = vld [vmem:[%s32987_s1 + $0x128] sm:$0xff]  ;;  %v25596_v22 = vld [vmem:[%s32988_s0 + $0x90] sm:$0xff]   ;;  %v4211_v6 = vld [vmem:[%s32987_s1 + $0x38] sm:$0x33] }
 0x196   :  { %v1415_v20 = vmax.f32 %v1399_v3, %v1407_v42  ;;  %21149 = vmatmul.mubr.msk.bf16.vlgmr.msra.gmra.mrb[32].mxu0 %vm123_vm1, %v27364_v56  ;;  %v21184_v13 = vcombine.low %v27468_v54, %v21173_v33  ;;  %v4210_v63 = vld [vmem:[%s32987_s1 + $0x30] sm:$0x33]  ;;  %v27523_v42 = vld [vmem:[%s32988_s0 + $0x78] sm:$0xff]  }
 0x197   :  { %v1416_v0 = vmax.f32 %v1400_v46, %v1408_v58  ;;  %3942 = vmatpush1.bf16.msra.mxu0 %v27371_v16  ;;  %3708 = vmatprep.mubr.bf16.mxu0 %v26229_v1  ;;  %v21250_v3 = vcombine.low %v26986_v11, %v4210_v63  ;;  %v27539_v46 = vld [vmem:[%s32988_s0 + $0x80] sm:$0xff]  }
 0x198   :  { %v1419_v38 = vpack.c.bf16 %v1415_v20, %v1413_v55  ;;  %21186 = vmatprep.subr.msk.bf16.mxu0 %vm136_vm0, %v21183_v28  ;;  %v3936_v48 = vsel %vm136_vm0, %v21184_v13, 0  ;;  %v21251_v28 = vcombine.high %v26986_v11, %v4210_v63  ;;  %v21219_v11 = vld [vmem:[%s32987_s1 + $0x78] sm:$0x33] }
 0x199   :  { %v1420_v44 = vpack.c.bf16 %v1416_v0, %v1414_v51  ;;  %v4523_v55 = vsel %vm136_vm0, %v21250_v3, 0  ;;  %v21230_v9 = vcombine.low %v27027_v24, %v21219_v11  ;;  %v21278_v0 = vld [vmem:[%s32987_s1 + $0xb0] sm:$0x33] }
 0x19a   :  { %1424 = vst [vmem:[#allocation2 + $0x10] sm:$0xff] %v1419_v38  ;;  %21081 = vmatmul.mubr.msk.bf16.gmra.mrb[56].mxu1 %vm123_vm1, %v27203_v34  ;;  %v21135_v34 = vld [vmem:[%s32987_s1 + $0xf8] sm:$0x33] }
 0x19b   :  { %1425 = vst.msk [vmem:[#allocation2 + $0x18] sm:$0xff] %vm1422_vm2, %v1420_v44  ;;  %3496 = vmatprep.mubr.bf16.mxu1 %v26229_v1  ;;  %3944 = vmatpush1.bf16.msra.mxu0 %v3930_v39  ;;  %v21147_v31 = vcombine.high %v27398_v29, %v21135_v34  ;;  %v21146_v2 = vcombine.low %v27398_v29, %v21135_v34  ;;  %v27578_v39 = vld [vmem:[%s32988_s0 + $0x60] sm:$0xff]  }
 0x19c   :  { %4308 = vmatprep.subr.bf16.mxu0 %v27385_v53  ;;  %v21289_v34 = vcombine.high %v27084_v43, %v21278_v0 }
 0x19d   :  { %v3661_v49 = vsel %vm136_vm0, %v21146_v2, 0 }
 0x19e   :  { %21150 = vmatmul.mubr.msk.bf16.gmra.mrb[36].mxu0 %vm123_vm1, %v25580_v57 }
 0x19f   :  { %3718 = vmatprep.mubr.bf16.mxu0 %v26229_v1 }
 0x1a2   :  { %21116 = vmatmul.mubr.msk.bf16.vlgmr.msra.gmra.mrb[44].mxu1 %vm123_vm1, %v27222_v25  ;;  %v25585_v25 = vld [vmem:[%s32988_s0 + $0x88] sm:$0xff]  }
 0x1a3   :  { %3506 = vmatprep.mubr.bf16.mxu1 %v26229_v1  ;;  %3740 = vmatpush1.bf16.msra.mxu1 %v27408_v23 }
 0x1a4   :  { %21153 = vmatprep.subr.msk.bf16.mxu1 %vm136_vm0, %v21147_v31  ;;  %v21288_v31 = vcombine.low %v27084_v43, %v21278_v0  ;;  %v27601_v43 = vld [vmem:[%s32988_s0 + $0x68] sm:$0xff]  }
 0x1a6   :  { %21151 = vmatmul.mubr.msk.bf16.gmra.mrb[40].mxu0 %vm123_vm1, %v25582_v7  ;;  %v4765_v2 = vsel %vm136_vm0, %v21288_v31, 0 }
 0x1a7   :  { %3728 = vmatprep.mubr.bf16.mxu0 %v26229_v1  ;;  %3742 = vmatpush1.bf16.msra.mxu1 %v3661_v49 }
 0x1a8   :  { %4014 = vmatprep.subr.bf16.mxu1 %v27424_v12 }
 0x1aa   :  { %21117 = vmatmul.mubr.msk.bf16.gmra.mrb[48].mxu1 %vm123_vm1, %v27252_v40  ;;  %v25589_v40 = vld [vmem:[%s32988_s0 + $0x80] sm:$0xff]  }
 0x1ab   :  { %3516 = vmatprep.mubr.bf16.mxu1 %v26229_v1 }
 0x1ae   :  { %21152 = vmatmul.mubr.msk.bf16.gmra.mrb[44].mxu0 %vm123_vm1, %v25585_v25 }
 0x1af   :  { %3973 = vmatprep.mubr.bf16.mxu0 %v26229_v1 }
 0x1b2   :  { %21118 = vmatmul.mubr.msk.bf16.gmra.mrb[52].mxu1 %vm123_vm1, %v27299_v32  ;;  %v4297_v32 = vsel %vm136_vm0, %v21228_v17, 0 }
 0x1b3   :  { %3526 = vmatprep.mubr.bf16.mxu1 %v26229_v1 }
 0x1b6   :  { %21187 = vmatmul.mubr.msk.bf16.vlgmr.msra.gmra.mrb[32].mxu0 %vm123_vm1, %v25589_v40 }
 0x1b7   :  { %4309 = vmatpush1.bf16.msra.mxu0 %v27448_v8  ;;  %3983 = vmatprep.mubr.bf16.mxu0 %v26229_v1 }
 0x1b8   :  { %21232 = vmatprep.subr.msk.bf16.mxu0 %vm136_vm0, %v21229_v15  ;;  %v21252_v15 = vcombine.low %v27151_v4, %v4211_v6 }
 0x1ba   :  { %21119 = vmatmul.mubr.msk.bf16.gmra.mrb[56].mxu1 %vm123_vm1, %v27333_v62  ;;  %v27478_v62 = vld [vmem:[%s32987_s1 + $0x108] ss:$16 sps:$4 sm:$0xff]  }
 0x1bb   :  { %3771 = vmatprep.mubr.bf16.mxu1 %v26229_v1  ;;  %4311 = vmatpush1.bf16.msra.mxu0 %v4297_v32 }
 0x1bc   :  { %4534 = vmatprep.subr.bf16.mxu0 %v26932_v61  ;;  %v21185_v61 = vcombine.high %v27468_v54, %v21173_v33 }
 0x1be   :  { %21188 = vmatmul.mubr.msk.bf16.gmra.mrb[36].mxu0 %vm123_vm1, %v25594_v52 }
 0x1bf   :  { %3993 = vmatprep.mubr.bf16.mxu0 %v26229_v1 }
 0x1c2   :  { %21154 = vmatmul.mubr.msk.bf16.vlgmr.msra.gmra.mrb[44].mxu1 %vm123_vm1, %v27364_v56  ;;  %v25597_v56 = vld [vmem:[%s32988_s0 + $0x98] sm:$0xff]  }
 0x1c3   :  { %3781 = vmatprep.mubr.bf16.mxu1 %v26229_v1  ;;  %4015 = vmatpush1.bf16.msra.mxu1 %v27478_v62 }
 0x1c4   :  { %21191 = vmatprep.subr.msk.bf16.mxu1 %vm136_vm0, %v21185_v61  ;;  %v21316_v61 = vld [vmem:[%s32987_s1 + $0xf0] sm:$0x33] }
 0x1c5   :  { %v21327_v13 = vcombine.high %v27212_v35, %v21316_v61 }
 0x1c6   :  { %21189 = vmatmul.mubr.msk.bf16.gmra.mrb[40].mxu0 %vm123_vm1, %v25596_v22 }
 0x1c7   :  { %4003 = vmatprep.mubr.bf16.mxu0 %v26229_v1  ;;  %4017 = vmatpush1.bf16.msra.mxu1 %v3936_v48 }
 0x1c8   :  { %4381 = vmatprep.subr.bf16.mxu1 %v26966_v10  ;;  %v27508_v10 = vld [vmem:[%s32988_s0 + $0x70] sm:$0xff]  }
 0x1ca   :  { %21155 = vmatmul.mubr.msk.bf16.gmra.mrb[48].mxu1 %vm123_vm1, %v25580_v57 }
 0x1cb   :  { %3791 = vmatprep.mubr.bf16.mxu1 %v26229_v1 }
 0x1ce   :  { %21190 = vmatmul.mubr.msk.bf16.gmra.mrb[44].mxu0 %vm123_vm1, %v25597_v56 }
 0x1cf   :  { %4340 = vmatprep.mubr.bf16.mxu0 %v26229_v1 }
 0x1d2   :  { %21156 = vmatmul.mubr.msk.bf16.gmra.mrb[52].mxu1 %vm123_vm1, %v25582_v7 }
 0x1d3   :  { %3801 = vmatprep.mubr.bf16.mxu1 %v26229_v1 }
 0x1d6   :  { %21233 = vmatmul.mubr.msk.bf16.vlgmr.msra.gmra.mrb[48].mxu0 %vm123_vm1, %v27508_v10 }
 0x1d7   :  { %4535 = vmatpush1.bf16.msra.mxu0 %v27000_v14  ;;  %4350 = vmatprep.mubr.bf16.mxu0 %v26229_v1  ;;  %v21231_v14 = vcombine.high %v27027_v24, %v21219_v11  ;;  %v27679_v11 = vld [vmem:[%s32988_s0 + $0x88] sm:$0xff]  }
 0x1d8   :  { %21254 = vmatprep.subr.msk.bf16.mxu0 %vm136_vm0, %v21251_v28 }
 0x1da   :  { %21157 = vmatmul.mubr.msk.bf16.gmra.mrb[56].mxu1 %vm123_vm1, %v25585_v25 }
 0x1db   :  { %4046 = vmatprep.mubr.bf16.mxu1 %v26229_v1  ;;  %4537 = vmatpush1.bf16.msra.mxu0 %v4523_v55 }
 0x1dc   :  { %4776 = vmatprep.subr.bf16.mxu0 %v27014_v19  ;;  %v4303_v19 = vsel %vm136_vm0, %v21230_v9, 0 }
 0x1de   :  { %21234 = vmatmul.mubr.msk.bf16.gmra.mrb[52].mxu0 %vm123_vm1, %v27523_v42 }
 0x1df   :  { %4360 = vmatprep.mubr.bf16.mxu0 %v26229_v1 }
 0x1e2   :  { %21192 = vmatmul.mubr.msk.bf16.vlgmr.msra.gmra.mrb[44].mxu1 %vm123_vm1, %v25589_v40  ;;  %v21253_v40 = vcombine.high %v27151_v4, %v4211_v6  ;;  %v4529_v4 = vsel %vm136_vm0, %v21252_v15, 0 }
 0x1e3   :  { %4056 = vmatprep.mubr.bf16.mxu1 %v26229_v1  ;;  %4382 = vmatpush1.bf16.msra.mxu1 %v27038_v26  ;;  %v27557_v26 = vld [vmem:[%s32988_s0 + $0x88] sm:$0xff]  }
 0x1e4   :  { %21237 = vmatprep.subr.msk.bf16.mxu1 %vm136_vm0, %v21231_v14  ;;  %v21279_v14 = vld [vmem:[%s32987_s1 + $0xb8] sm:$0x33] }
 0x1e6   :  { %21235 = vmatmul.mubr.msk.bf16.gmra.mrb[56].mxu0 %vm123_vm1, %v27539_v46 }
 0x1e7   :  { %4370 = vmatprep.mubr.bf16.mxu0 %v26229_v1  ;;  %4384 = vmatpush1.bf16.msra.mxu1 %v4303_v19  ;;  %v2750_v19 = vld [vmem:[%s32989_s2] sm:$0x3] }
 0x1e8   :  { %4607 = vmatprep.subr.bf16.mxu1 %v27056_v36  ;;  %v27702_v0 = vrot.slane %v2750_v19, %v27264_v41 }
 0x1e9   :  { %v27549_v24 = vpop.f32.mrb[16].mxu0 }
 0x1ea   :  { %v27551_v51 = vpop.f32.mrb[17].mxu0  ;;  %21193 = vmatmul.mubr.msk.bf16.gmra.mrb[48].mxu1 %vm123_vm1, %v25594_v52 }
 0x1eb   :  { %v27559_v58 = vpop.f32.mrb[18].mxu0  ;;  %4066 = vmatprep.mubr.bf16.mxu1 %v26229_v1 }
 0x1ec   :  { %v27562_v20 = vpop.f32.mrb[19].mxu0 }
 0x1ee   :  { %21236 = vmatmul.mubr.msk.bf16.gmra.mrb[60].mxu0 %vm123_vm1, %v27557_v26 }
 0x1ef   :  { %4566 = vmatprep.mubr.bf16.mxu0 %v26229_v1 }
 0x1f1   :  { %v27567_v36 = vpop.f32.mrb[20].mxu0 }
 0x1f2   :  { %v27572_v38 = vpop.f32.mrb[21].mxu0  ;;  %21194 = vmatmul.mubr.msk.bf16.gmra.mrb[52].mxu1 %vm123_vm1, %v25596_v22  ;;  %v21326_v22 = vcombine.low %v27212_v35, %v21316_v61 }
 0x1f3   :  { %v27580_v44 = vpop.f32.mrb[22].mxu0  ;;  %4076 = vmatprep.mubr.bf16.mxu1 %v26229_v1 }
 0x1f4   :  { %v27583_v57 = vpop.f32.mrb[23].mxu0  ;;  %v5040_v35 = vsel %vm136_vm0, %v21326_v22, 0 }
 0x1f6   :  { %21255 = vmatmul.mubr.msk.bf16.vlgmr.msra.gmra.mrb[48].mxu0 %vm123_vm1, %v27578_v39 }
 0x1f7   :  { %4777 = vmatpush1.bf16.msra.mxu0 %v27105_v50  ;;  %4576 = vmatprep.mubr.bf16.mxu0 %v26229_v1 }
 0x1f8   :  { %21292 = vmatprep.subr.msk.bf16.mxu0 %vm136_vm0, %v21289_v34 }
 0x1f9   :  { %v27593_v7 = vpop.f32.mrb[24].mxu0 }
 0x1fa   :  { %v27595_v49 = vpop.f32.mrb[25].mxu0  ;;  %21195 = vmatmul.mubr.msk.bf16.gmra.mrb[56].mxu1 %vm123_vm1, %v25597_v56 }
 0x1fb   :  { %v27603_v25 = vpop.f32.mrb[26].mxu0  ;;  %4413 = vmatprep.mubr.bf16.mxu1 %v26229_v1  ;;  %4779 = vmatpush1.bf16.msra.mxu0 %v4765_v2 }
 0x1fc   :  { %v27606_v50 = vpop.f32.mrb[27].mxu0  ;;  %5051 = vmatprep.subr.bf16.mxu0 %v27125_v21  ;;  %v27626_v21 = vld [vmem:[%s32988_s0 + $0x70] sm:$0xff]  }
 0x1fe   :  { %21256 = vmatmul.mubr.msk.bf16.gmra.mrb[52].mxu0 %vm123_vm1, %v27601_v43 }
 0x1ff   :  { %4586 = vmatprep.mubr.bf16.mxu0 %v26229_v1 }
 0x201   :  { %v27617_v17 = vpop.f32.mrb[28].mxu0 }
 0x202   :  { %v27619_v32 = vpop.f32.mrb[29].mxu0  ;;  %21238 = vmatmul.mubr.msk.bf16.vlgmr.msra.gmra.mrb[60].mxu1 %vm123_vm1, %v27508_v10 }
 0x203   :  { %v27628_v52 = vpop.f32.mrb[30].mxu0  ;;  %4423 = vmatprep.mubr.bf16.mxu1 %v26229_v1  ;;  %4608 = vmatpush1.bf16.msra.mxu1 %v27162_v30  ;;  %v27645_v30 = vld [vmem:[%s32988_s0 + $0x78] sm:$0xff]  }
 0x204   :  { %v27632_v33 = vpop.f32.mrb[31].mxu0  ;;  %21259 = vmatprep.subr.msk.bf16.mxu1 %vm136_vm0, %v21253_v40 }
 0x206   :  { %21257 = vmatmul.mubr.msk.bf16.gmra.mrb[56].mxu0 %vm123_vm1, %v27626_v21 }
 0x207   :  { %4596 = vmatprep.mubr.bf16.mxu0 %v26229_v1  ;;  %4610 = vmatpush1.bf16.msra.mxu1 %v4529_v4 }
 0x208   :  { %4849 = vmatprep.subr.bf16.mxu1 %v27189_v18  ;;  %v27659_v18 = vld [vmem:[%s32988_s0 + $0x80] sm:$0xff]  }
 0x20a   :  { %21239 = vmatmul.mubr.msk.bf16.gmra.mrb[64].mxu1 %vm123_vm1, %v27523_v42 }
 0x20b   :  { %4433 = vmatprep.mubr.bf16.mxu1 %v26229_v1 }
 0x20e   :  { %21258 = vmatmul.mubr.msk.bf16.gmra.mrb[60].mxu0 %vm123_vm1, %v27645_v30 }
 0x20f   :  { %4808 = vmatprep.mubr.bf16.mxu0 %v26229_v1 }
 0x212   :  { %21240 = vmatmul.mubr.msk.bf16.gmra.mrb[68].mxu1 %vm123_vm1, %v27539_v46 }
 0x213   :  { %4443 = vmatprep.mubr.bf16.mxu1 %v26229_v1 }
 0x215   :  { %v2663_v48 = vpop.f32.mrb[28].mxu1 }
 0x216   :  { %v2734_v56 = vmax.f32 %v27549_v24, %v2663_v48  ;;  %v2665_v63 = vpop.f32.mrb[29].mxu1  ;;  %21293 = vmatmul.mubr.msk.bf16.vlgmr.msra.gmra.mrb[48].mxu0 %vm123_vm1, %v27659_v18 }
 0x217   :  { %v2735_v10 = vmax.f32 %v27551_v51, %v2665_v63  ;;  %v2667_v28 = vpop.f32.mrb[30].mxu1  ;;  %5052 = vmatpush1.bf16.msra.mxu0 %v27227_v27  ;;  %4818 = vmatprep.mubr.bf16.mxu0 %v26229_v1 }
 0x218   :  { %v2736_v3 = vmax.f32 %v27559_v58, %v2667_v28  ;;  %v2669_v55 = vpop.f32.mrb[31].mxu1  ;;  %21330 = vmatprep.subr.msk.bf16.mxu0 %vm136_vm0, %v21327_v13  ;;  %v21291_v58 = vcombine.high %v27259_v60, %v21279_v14  ;;  %v2762_v34 = vadd.f32 %v27702_v0, %v2734_v56 }
 0x219   :  { %v2737_v42 = vmax.f32 %v27562_v20, %v2669_v55  ;;  %v21290_v20 = vcombine.low %v27259_v60, %v21279_v14 }
 0x21a   :  { %21241 = vmatmul.mubr.msk.bf16.gmra.mrb[72].mxu1 %vm123_vm1, %v27557_v26 }
 0x21b   :  { %4639 = vmatprep.mubr.bf16.mxu1 %v26229_v1  ;;  %5054 = vmatpush1.bf16.msra.mxu0 %v5040_v35  ;;  %v4771_v60 = vsel %vm136_vm0, %v21290_v20, 0 }
 0x21c   :  { %5326 = vmatprep.subr.bf16.mxu0 %v27244_v37 }
 0x21d   :  { %v2673_v27 = vpop.f32.mrb[32].mxu1 }
 0x21e   :  { %v2738_v9 = vmax.f32 %v27567_v36, %v2673_v27  ;;  %v2675_v46 = vpop.f32.mrb[33].mxu1  ;;  %21294 = vmatmul.mubr.msk.bf16.gmra.mrb[52].mxu0 %vm123_vm1, %v27679_v11 }
 0x21f   :  { %v2739_v24 = vmax.f32 %v27572_v38, %v2675_v46  ;;  %v2677_v51 = vpop.f32.mrb[34].mxu1  ;;  %4828 = vmatprep.mubr.bf16.mxu0 %v26229_v1  ;;  %v27709_v38 = vld [vmem:[%s32988_s0 + $0x90] sm:$0xff]  }
 0x220   :  { %v2740_v37 = vmax.f32 %v27580_v44, %v2677_v51  ;;  %v27695_v26 = vpop.f32.mrb[35].mxu1  ;;  %v27712_v44 = vrot.slane %v2750_v19, %v27272_v5 }
 0x221   :  { %v2741_v36 = vmax.f32 %v27583_v57, %v27695_v26 }
 0x222   :  { %21260 = vmatmul.mubr.msk.bf16.vlgmr.msra.gmra.mrb[60].mxu1 %vm123_vm1, %v27578_v39  ;;  %v2763_v2 = vadd.f32 %v27712_v44, %v2735_v10  ;;  %v2767_v51 = vadd.f32 %v27712_v44, %v2739_v24 }
 0x223   :  { %4649 = vmatprep.mubr.bf16.mxu1 %v26229_v1  ;;  %4850 = vmatpush1.bf16.msra.mxu1 %v27281_v45  ;;  %v2764_v45 = vadd.f32 %v27702_v0, %v2736_v3  ;;  %v2769_v24 = vadd.f32 %v27712_v44, %v2741_v36 }
 0x224   :  { %21297 = vmatprep.subr.msk.bf16.mxu1 %vm136_vm0, %v21291_v58  ;;  %v2779_v63 = vmax.f32 %v2763_v2, 0.0 }
 0x225   :  { %v2683_v57 = vpop.f32.mrb[36].mxu1  ;;  %v2780_v28 = vmax.f32 %v2764_v45, 0.0  ;;  %v2783_v45 = vmax.f32 %v2767_v51, 0.0 }
 0x226   :  { %v2742_v39 = vmax.f32 %v27593_v7, %v2683_v57  ;;  %v2685_v31 = vpop.f32.mrb[37].mxu1  ;;  %21295 = vmatmul.mubr.msk.bf16.gmra.mrb[56].mxu0 %vm123_vm1, %v27709_v38  ;;  %v2765_v7 = vadd.f32 %v27712_v44, %v2737_v42 }
 0x227   :  { %v2743_v6 = vmax.f32 %v27595_v49, %v2685_v31  ;;  %v2687_v40 = vpop.f32.mrb[38].mxu1  ;;  %4838 = vmatprep.mubr.bf16.mxu0 %v26229_v1  ;;  %4852 = vmatpush1.bf16.msra.mxu1 %v4771_v60  ;;  %v2778_v49 = vmax.f32 %v2762_v34, 0.0  ;;  %v2768_v60 = vadd.f32 %v27702_v0, %v2740_v37 }
 0x228   :  { %v2770_v15 = vadd.f32 %v27702_v0, %v2742_v39  ;;  %v2744_v4 = vmax.f32 %v27603_v25, %v2687_v40  ;;  %v2689_v61 = vpop.f32.mrb[39].mxu1  ;;  %5124 = vmatprep.subr.bf16.mxu1 %v27311_v47  ;;  %v27738_v25 = vld [vmem:[%s32988_s0 + $0x98] sm:$0xff]   ;;  %v2781_v55 = vmax.f32 %v2765_v7, 0.0  ;;  %v21354_v39 = vld [vmem:[%s32987_s1 + $0x130] sm:$0x33]  ;;  %v2785_v7 = vmax.f32 %v2769_v24, 0.0 }
 0x229   :  { %v2771_v13 = vadd.f32 %v27712_v44, %v2743_v6  ;;  %v2745_v22 = vmax.f32 %v27606_v50, %v2689_v61 }
 0x22a   :  { %v2786_v48 = vmax.f32 %v2770_v15, 0.0  ;;  %v2772_v56 = vadd.f32 %v27702_v0, %v2744_v4  ;;  %21261 = vmatmul.mubr.msk.bf16.gmra.mrb[64].mxu1 %vm123_vm1, %v27601_v43  ;;  %v2766_v43 = vadd.f32 %v27702_v0, %v2738_v9  ;;  %v2784_v4 = vmax.f32 %v2768_v60, 0.0  ;;  %v27929_v60 = vld [vmem:[%s32987_s1 + $0x68] sm:$0xff] }
 0x22b   :  { %v2787_v47 = vmax.f32 %v2771_v13, 0.0  ;;  %v2773_v10 = vadd.f32 %v27712_v44, %v2745_v22  ;;  %4659 = vmatprep.mubr.bf16.mxu1 %v26229_v1 }
 0x22c   :  { %v2794_v50 = vmax.f32 %v2778_v49, %v2786_v48  ;;  %v2788_v3 = vmax.f32 %v2772_v56, 0.0  ;;  %v2782_v6 = vmax.f32 %v2766_v43, 0.0  ;;  %v5595_v43 = vld [vmem:[%s32987_s1 + $0x30] sm:$0x33] }
 0x22d   :  { %v2795_v35 = vmax.f32 %v2779_v63, %v2787_v47  ;;  %v2789_v42 = vmax.f32 %v2773_v10, 0.0  ;;  %v2693_v27 = vpop.f32.mrb[40].mxu1  ;;  %v25617_v10 = vld [vmem:[%s32988_s0 + $0xa0] sm:$0xff]  }
 0x22e   :  { %v2796_v14 = vmax.f32 %v2780_v28, %v2788_v3  ;;  %v2746_v46 = vmax.f32 %v27617_v17, %v2693_v27  ;;  %v2695_v19 = vpop.f32.mrb[41].mxu1  ;;  %21296 = vmatmul.mubr.msk.bf16.gmra.mrb[60].mxu0 %vm123_vm1, %v27738_v25  ;;  %v27843_v3 = vld [vmem:[%s32988_s0 + $0xa8] sm:$0xff]   ;;  %v27888_v27 = vld [vmem:[%s32987_s1 + $0x20] sm:$0xff] }
 0x22f   :  { %v2797_v26 = vmax.f32 %v2781_v55, %v2789_v42  ;;  %v2747_v58 = vmax.f32 %v27619_v32, %v2695_v19  ;;  %v2697_v20 = vpop.f32.mrb[42].mxu1  ;;  %5083 = vmatprep.mubr.bf16.mxu0 %v26229_v1  ;;  %v21433_v19 = vcombine.high %v27888_v27, %v5595_v43  ;;  %v21432_v51 = vcombine.low %v27888_v27, %v5595_v43 }
 0x230   :  { %v2802_v57 = vpack.c.bf16 %v2796_v14, %v2794_v50  ;;  %v2774_v9 = vadd.f32 %v27702_v0, %v2746_v46  ;;  %v2748_v34 = vmax.f32 %v27628_v52, %v2697_v20  ;;  %v2699_v17 = vpop.f32.mrb[43].mxu1  ;;  %v27764_v52 = vld [vmem:[%s32988_s0 + $0x90] sm:$0xff]   ;;  %v27922_v20 = vld [vmem:[%s32988_s0 + $0x98] sm:$0xff]  }
 0x231   :  { %v2803_v31 = vpack.c.bf16 %v2797_v26, %v2795_v35  ;;  %v2775_v32 = vadd.f32 %v27712_v44, %v2747_v58  ;;  %v2749_v2 = vmax.f32 %v27632_v33, %v2699_v17  ;;  %v21365_v33 = vcombine.high %v27350_v59, %v21354_v39  ;;  %v27836_v50 = vld [vmem:[%s32987_s1 + $0x4] ss:$16 sps:$4 sm:$0xff]   ;;  %v27902_v46 = vld [vmem:[%s32987_s1] ss:$16 sps:$4 sm:$0xff]  }
 0x232   :  { %2807 = vst [vmem:[#allocation2 + $0x20] sm:$0xff] %v2802_v57  ;;  %v2790_v37 = vmax.f32 %v2774_v9, 0.0  ;;  %v2776_v40 = vadd.f32 %v27702_v0, %v2748_v34  ;;  %21262 = vmatmul.mubr.msk.bf16.gmra.mrb[68].mxu1 %vm123_vm1, %v27626_v21  ;;  %v21364_v21 = vcombine.low %v27350_v59, %v21354_v39  ;;  %v25616_v59 = vld [vmem:[%s32988_s0 + $0x98] sm:$0xff]   ;;  %v27860_v35 = vld [vmem:[%s32988_s0 + $0xb0] sm:$0xff]   ;;  %v5908_v26 = vsel %vm136_vm0, %v21432_v51, 0  ;;  %v27948_v39 = vld [vmem:[%s32988_s0 + $0xa0] sm:$0xff]  }
 0x233   :  { %2808 = vst.msk [vmem:[#allocation2 + $0x28] sm:$0xff] %vm1422_vm2, %v2803_v31  ;;  %v2791_v36 = vmax.f32 %v2775_v32, 0.0  ;;  %v2777_v15 = vadd.f32 %v27712_v44, %v2749_v2  ;;  %4669 = vmatprep.mubr.bf16.mxu1 %v26229_v1  ;;  %v27897_v14 = vld [vmem:[%s32988_s0 + $0x90] sm:$0xff]   ;;  %v21401_v57 = vld [vmem:[%s32987_s1 + $0x78] sm:$0x33] }
 0x234   :  { %v2798_v0 = vmax.f32 %v2782_v6, %v2790_v37  ;;  %v2792_v61 = vmax.f32 %v2776_v40, 0.0  ;;  %v5315_v56 = vsel %vm136_vm0, %v21364_v21, 0  ;;  %v27916_v58 = vld [vmem:[%s32987_s1 + $0x84] ss:$16 sps:$4 sm:$0xff]   ;;  %v27940_v9 = vld [vmem:[%s32987_s1 + $0x48] ss:$16 sps:$4 sm:$0xff]   ;;  %v21413_v34 = vcombine.high %v27929_v60, %v21401_v57 }
 0x235   :  { %v2799_v13 = vmax.f32 %v2783_v45, %v2791_v36  ;;  %v2793_v22 = vmax.f32 %v2777_v15, 0.0  ;;  %v21412_v17 = vcombine.low %v27929_v60, %v21401_v57  ;;  %v27957_v31 = vld [vmem:[%s32987_s1 + $0xc] ss:$16 sps:$4 sm:$0xff]   ;;  %v27987_v45 = vld [vmem:[%s32987_s1 + $0xa0] sm:$0xff]  ;;  %v21460_v36 = vld [vmem:[%s32987_s1 + $0xb0] sm:$0x33] }
 0x236   :  { %v2800_v49 = vmax.f32 %v2784_v4, %v2792_v61  ;;  %21331 = vmatmul.mubr.msk.bf16.vlgmr.msra.gmra.mrb[48].mxu0 %vm123_vm1, %v27764_v52  ;;  %v27972_v6 = vld [vmem:[%s32988_s0 + $0xa8] sm:$0xff]   ;;  %v21471_v21 = vcombine.high %v27987_v45, %v21460_v36 }
 0x237   :  { %v2801_v48 = vmax.f32 %v2785_v7, %v2793_v22  ;;  %5327 = vmatpush1.bf16.msra.mxu0 %v27371_v16  ;;  %5093 = vmatprep.mubr.bf16.mxu0 %v26229_v1  ;;  %v21317_v16 = vld [vmem:[%s32987_s1 + $0xf8] sm:$0x33]  ;;  %v5688_v24 = vsel %vm136_vm0, %v21412_v17, 0  ;;  %v21470_v7 = vcombine.low %v27987_v45, %v21460_v36  ;;  %v28022_v22 = vld [vmem:[%s32987_s1 + $0xc4] ss:$16 sps:$4 sm:$0xff]  }
 0x238   :  { %v2804_v44 = vpack.c.bf16 %v2800_v49, %v2798_v0  ;;  %21368 = vmatprep.subr.msk.bf16.mxu0 %vm136_vm0, %v21365_v33  ;;  %v21328_v47 = vcombine.low %v27398_v29, %v21317_v16  ;;  %v27999_v33 = vld [vmem:[%s32988_s0 + $0x80] sm:$0xff]  }
 0x239   :  { %v2805_v63 = vpack.c.bf16 %v2801_v48, %v2799_v13  ;;  %v28006_v0 = vld [vmem:[%s32987_s1 + $0x80] ss:$16 sps:$4 sm:$0xff]   ;;  %v6150_v13 = vsel %vm136_vm0, %v21470_v7, 0  ;;  %v28133_v17 = vld [vmem:[%s32987_s1 + $0x104] ss:$16 sps:$4 sm:$0xff]  }
 0x23a   :  { %2809 = vst [vmem:[#allocation2 + $0x30] sm:$0xff] %v2804_v44  ;;  %21263 = vmatmul.mubr.msk.bf16.gmra.mrb[72].mxu1 %vm123_vm1, %v27645_v30  ;;  %v21329_v30 = vcombine.high %v27398_v29, %v21317_v16  ;;  %v25618_v29 = vld [vmem:[%s32988_s0 + $0xa8] sm:$0xff]   ;;  %v5596_v16 = vld [vmem:[%s32987_s1 + $0x38] sm:$0x33]  ;;  %v4135_v36 = vld [vmem:[%s32989_s2] sm:$0x3] }
 0x23b   :  { %2810 = vst.msk [vmem:[#allocation2 + $0x38] sm:$0xff] %vm1422_vm2, %v2805_v63  ;;  %4881 = vmatprep.mubr.bf16.mxu1 %v26229_v1  ;;  %5329 = vmatpush1.bf16.msra.mxu0 %v5315_v56  ;;  %v28033_v44 = vld [vmem:[%s32988_s0 + $0x88] sm:$0xff]  }
 0x23c   :  { %5693 = vmatprep.subr.bf16.mxu0 %v27385_v53  ;;  %v5046_v53 = vsel %vm136_vm0, %v21328_v47, 0 }
 0x23e   :  { %21332 = vmatmul.mubr.msk.bf16.gmra.mrb[52].mxu0 %vm123_vm1, %v25616_v59 }
 0x23f   :  { %5103 = vmatprep.mubr.bf16.mxu0 %v26229_v1 }
 0x242   :  { %21298 = vmatmul.mubr.msk.bf16.vlgmr.msra.gmra.mrb[60].mxu1 %vm123_vm1, %v27659_v18  ;;  %v25619_v18 = vld [vmem:[%s32988_s0 + $0xa0] sm:$0xff]  }
 0x243   :  { %4891 = vmatprep.mubr.bf16.mxu1 %v26229_v1  ;;  %5125 = vmatpush1.bf16.msra.mxu1 %v27408_v23  ;;  %v27815_v23 = vld [vmem:[%s32987_s1 + $0x60] sm:$0xff] }
 0x244   :  { %21335 = vmatprep.subr.msk.bf16.mxu1 %vm136_vm0, %v21329_v30  ;;  %v28055_v30 = vld [vmem:[%s32987_s1 + $0x8] ss:$16 sps:$4 sm:$0xff]  }
 0x246   :  { %21333 = vmatmul.mubr.msk.bf16.gmra.mrb[56].mxu0 %vm123_vm1, %v25617_v10 }
 0x247   :  { %5113 = vmatprep.mubr.bf16.mxu0 %v26229_v1  ;;  %5127 = vmatpush1.bf16.msra.mxu1 %v5046_v53 }
 0x248   :  { %5399 = vmatprep.subr.bf16.mxu1 %v27424_v12  ;;  %v21400_v12 = vld [vmem:[%s32987_s1 + $0x70] sm:$0x33] }
 0x249   :  { %v21410_v28 = vcombine.low %v27815_v23, %v21400_v12 }
 0x24a   :  { %21299 = vmatmul.mubr.msk.bf16.gmra.mrb[64].mxu1 %vm123_vm1, %v27679_v11  ;;  %v21411_v11 = vcombine.high %v27815_v23, %v21400_v12  ;;  %v28068_v12 = vld [vmem:[%s32988_s0 + $0x90] sm:$0xff]  }
 0x24b   :  { %4901 = vmatprep.mubr.bf16.mxu1 %v26229_v1 }
 0x24e   :  { %21334 = vmatmul.mubr.msk.bf16.gmra.mrb[60].mxu0 %vm123_vm1, %v25618_v29 }
 0x24f   :  { %5358 = vmatprep.mubr.bf16.mxu0 %v26229_v1 }
 0x252   :  { %21300 = vmatmul.mubr.msk.bf16.gmra.mrb[68].mxu1 %vm123_vm1, %v27709_v38  ;;  %v5682_v38 = vsel %vm136_vm0, %v21410_v28, 0 }
 0x253   :  { %4911 = vmatprep.mubr.bf16.mxu1 %v26229_v1 }
 0x256   :  { %21369 = vmatmul.mubr.msk.bf16.vlgmr.msra.gmra.mrb[48].mxu0 %vm123_vm1, %v25619_v18 }
 0x257   :  { %5694 = vmatpush1.bf16.msra.mxu0 %v27448_v8  ;;  %5368 = vmatprep.mubr.bf16.mxu0 %v26229_v1  ;;  %v21355_v8 = vld [vmem:[%s32987_s1 + $0x138] sm:$0x33] }
 0x258   :  { %21414 = vmatprep.subr.msk.bf16.mxu0 %vm136_vm0, %v21411_v11  ;;  %v21366_v55 = vcombine.low %v27468_v54, %v21355_v8 }
 0x25a   :  { %21301 = vmatmul.mubr.msk.bf16.gmra.mrb[72].mxu1 %vm123_vm1, %v27738_v25  ;;  %v21367_v25 = vcombine.high %v27468_v54, %v21355_v8  ;;  %v5321_v42 = vsel %vm136_vm0, %v21366_v55, 0  ;;  %v27869_v54 = vld [vmem:[%s32987_s1 + $0x4c] ss:$16 sps:$4 sm:$0xff]   ;;  %v28101_v8 = vld [vmem:[%s32987_s1 + $0xe0] sm:$0xff] }
 0x25b   :  { %5156 = vmatprep.mubr.bf16.mxu1 %v26229_v1  ;;  %5696 = vmatpush1.bf16.msra.mxu0 %v5682_v38  ;;  %v28081_v38 = vld [vmem:[%s32987_s1 + $0x8c] ss:$16 sps:$4 sm:$0xff]   ;;  %v28111_v55 = vld [vmem:[%s32988_s0 + $0xa0] sm:$0xff]  }
 0x25c   :  { %5919 = vmatprep.subr.bf16.mxu0 %v27836_v50 }
 0x25e   :  { %21370 = vmatmul.mubr.msk.bf16.gmra.mrb[52].mxu0 %vm123_vm1, %v27843_v3 }
 0x25f   :  { %5378 = vmatprep.mubr.bf16.mxu0 %v26229_v1 }
 0x262   :  { %21336 = vmatmul.mubr.msk.bf16.vlgmr.msra.gmra.mrb[60].mxu1 %vm123_vm1, %v27764_v52 }
 0x263   :  { %5166 = vmatprep.mubr.bf16.mxu1 %v26229_v1  ;;  %5400 = vmatpush1.bf16.msra.mxu1 %v27478_v62  ;;  %v27879_v62 = vld [vmem:[%s32988_s0 + $0xb8] sm:$0xff]  }
 0x264   :  { %21373 = vmatprep.subr.msk.bf16.mxu1 %vm136_vm0, %v21367_v25  ;;  %v21498_v25 = vld [vmem:[%s32987_s1 + $0xf0] sm:$0x33] }
 0x266   :  { %21371 = vmatmul.mubr.msk.bf16.gmra.mrb[56].mxu0 %vm123_vm1, %v27860_v35 }
 0x267   :  { %5388 = vmatprep.mubr.bf16.mxu0 %v26229_v1  ;;  %5402 = vmatpush1.bf16.msra.mxu1 %v5321_v42  ;;  %v21509_v42 = vcombine.high %v28101_v8, %v21498_v25 }
 0x268   :  { %5766 = vmatprep.subr.bf16.mxu1 %v27869_v54 }
 0x26a   :  { %21337 = vmatmul.mubr.msk.bf16.gmra.mrb[64].mxu1 %vm123_vm1, %v25616_v59  ;;  %v28044_v59 = vld [vmem:[%s32987_s1 + $0x28] sm:$0xff] }
 0x26b   :  { %5176 = vmatprep.mubr.bf16.mxu1 %v26229_v1  ;;  %v21435_v47 = vcombine.high %v28044_v59, %v5596_v16 }
 0x26e   :  { %21372 = vmatmul.mubr.msk.bf16.gmra.mrb[60].mxu0 %vm123_vm1, %v27879_v62 }
 0x26f   :  { %5725 = vmatprep.mubr.bf16.mxu0 %v26229_v1 }
 0x272   :  { %21338 = vmatmul.mubr.msk.bf16.gmra.mrb[68].mxu1 %vm123_vm1, %v25617_v10  ;;  %v21434_v10 = vcombine.low %v28044_v59, %v5596_v16 }
 0x273   :  { %5186 = vmatprep.mubr.bf16.mxu1 %v26229_v1 }
 0x274   :  { %v5914_v28 = vsel %vm136_vm0, %v21434_v10, 0 }
 0x276   :  { %21415 = vmatmul.mubr.msk.bf16.vlgmr.msra.gmra.mrb[64].mxu0 %vm123_vm1, %v27897_v14 }
 0x277   :  { %5920 = vmatpush1.bf16.msra.mxu0 %v27902_v46  ;;  %5735 = vmatprep.mubr.bf16.mxu0 %v26229_v1 }
 0x278   :  { %21436 = vmatprep.subr.msk.bf16.mxu0 %vm136_vm0, %v21433_v19 }
 0x27a   :  { %21339 = vmatmul.mubr.msk.bf16.gmra.mrb[72].mxu1 %vm123_vm1, %v25618_v29 }
 0x27b   :  { %5431 = vmatprep.mubr.bf16.mxu1 %v26229_v1  ;;  %5922 = vmatpush1.bf16.msra.mxu0 %v5908_v26 }
 0x27c   :  { %6161 = vmatprep.subr.bf16.mxu0 %v27916_v58 }
 0x27e   :  { %21416 = vmatmul.mubr.msk.bf16.gmra.mrb[68].mxu0 %vm123_vm1, %v27922_v20 }
 0x27f   :  { %5745 = vmatprep.mubr.bf16.mxu0 %v26229_v1 }
 0x282   :  { %21374 = vmatmul.mubr.msk.bf16.vlgmr.msra.gmra.mrb[60].mxu1 %vm123_vm1, %v25619_v18 }
 0x283   :  { %5441 = vmatprep.mubr.bf16.mxu1 %v26229_v1  ;;  %5767 = vmatpush1.bf16.msra.mxu1 %v27940_v9 }
 0x284   :  { %21419 = vmatprep.subr.msk.bf16.mxu1 %vm136_vm0, %v21413_v34 }
 0x286   :  { %21417 = vmatmul.mubr.msk.bf16.gmra.mrb[72].mxu0 %vm123_vm1, %v27948_v39 }
 0x287   :  { %5755 = vmatprep.mubr.bf16.mxu0 %v26229_v1  ;;  %5769 = vmatpush1.bf16.msra.mxu1 %v5688_v24  ;;  %v28141_v24 = vld [vmem:[%s32988_s0 + $0xa8] sm:$0xff]  }
 0x288   :  { %5992 = vmatprep.subr.bf16.mxu1 %v27957_v31 }
 0x289   :  { %v27963_v32 = vpop.f32.mrb[32].mxu0 }
 0x28a   :  { %v27965_v2 = vpop.f32.mrb[33].mxu0  ;;  %21375 = vmatmul.mubr.msk.bf16.gmra.mrb[64].mxu1 %vm123_vm1, %v27843_v3  ;;  %v28092_v3 = vld [vmem:[%s32988_s0 + $0x98] sm:$0xff]  }
 0x28b   :  { %v27974_v37 = vpop.f32.mrb[34].mxu0  ;;  %5451 = vmatprep.mubr.bf16.mxu1 %v26229_v1 }
 0x28c   :  { %v27977_v40 = vpop.f32.mrb[35].mxu0 }
 0x28e   :  { %21418 = vmatmul.mubr.msk.bf16.gmra.mrb[76].mxu0 %vm123_vm1, %v27972_v6 }
 0x28f   :  { %5951 = vmatprep.mubr.bf16.mxu0 %v26229_v1 }
 0x291   :  { %v27982_v52 = vpop.f32.mrb[36].mxu0 }
 0x292   :  { %v27992_v15 = vpop.f32.mrb[37].mxu0  ;;  %21376 = vmatmul.mubr.msk.bf16.gmra.mrb[68].mxu1 %vm123_vm1, %v27860_v35  ;;  %v28116_v35 = vld [vmem:[%s32987_s1 + $0xc0] ss:$16 sps:$4 sm:$0xff]  }
 0x293   :  { %v28001_v4 = vpop.f32.mrb[38].mxu0  ;;  %5461 = vmatprep.mubr.bf16.mxu1 %v26229_v1 }
 0x294   :  { %v28009_v61 = vpop.f32.mrb[39].mxu0 }
 0x296   :  { %21437 = vmatmul.mubr.msk.bf16.vlgmr.msra.gmra.mrb[64].mxu0 %vm123_vm1, %v27999_v33 }
 0x297   :  { %6162 = vmatpush1.bf16.msra.mxu0 %v28006_v0  ;;  %5961 = vmatprep.mubr.bf16.mxu0 %v26229_v1 }
 0x298   :  { %21474 = vmatprep.subr.msk.bf16.mxu0 %vm136_vm0, %v21471_v21 }
 0x299   :  { %v28024_v49 = vpop.f32.mrb[40].mxu0 }
 0x29a   :  { %v28026_v48 = vpop.f32.mrb[41].mxu0  ;;  %21377 = vmatmul.mubr.msk.bf16.gmra.mrb[72].mxu1 %vm123_vm1, %v27879_v62  ;;  %v21508_v62 = vcombine.low %v28101_v8, %v21498_v25  ;;  %v28181_v25 = vld [vmem:[%s32988_s0 + $0xb0] sm:$0xff]  }
 0x29b   :  { %v28035_v56 = vpop.f32.mrb[42].mxu0  ;;  %5798 = vmatprep.mubr.bf16.mxu1 %v26229_v1  ;;  %6164 = vmatpush1.bf16.msra.mxu0 %v6150_v13  ;;  %v28164_v13 = vld [vmem:[%s32987_s1 + $0x88] ss:$16 sps:$4 sm:$0xff]  }
 0x29c   :  { %v28038_v63 = vpop.f32.mrb[43].mxu0  ;;  %6436 = vmatprep.subr.bf16.mxu0 %v28022_v22  ;;  %v6425_v34 = vsel %vm136_vm0, %v21508_v62, 0 }
 0x29e   :  { %21438 = vmatmul.mubr.msk.bf16.gmra.mrb[68].mxu0 %vm123_vm1, %v28033_v44 }
 0x29f   :  { %5971 = vmatprep.mubr.bf16.mxu0 %v26229_v1 }
 0x2a1   :  { %v28059_v53 = vpop.f32.mrb[44].mxu0 }
 0x2a2   :  { %v28061_v29 = vpop.f32.mrb[45].mxu0  ;;  %21420 = vmatmul.mubr.msk.bf16.vlgmr.msra.gmra.mrb[76].mxu1 %vm123_vm1, %v27897_v14 }
 0x2a3   :  { %v28070_v18 = vpop.f32.mrb[46].mxu0  ;;  %5808 = vmatprep.mubr.bf16.mxu1 %v26229_v1  ;;  %5993 = vmatpush1.bf16.msra.mxu1 %v28055_v30 }
 0x2a4   :  { %v28074_v11 = vpop.f32.mrb[47].mxu0  ;;  %21441 = vmatprep.subr.msk.bf16.mxu1 %vm136_vm0, %v21435_v47 }
 0x2a6   :  { %21439 = vmatmul.mubr.msk.bf16.gmra.mrb[72].mxu0 %vm123_vm1, %v28068_v12 }
 0x2a7   :  { %5981 = vmatprep.mubr.bf16.mxu0 %v26229_v1  ;;  %5995 = vmatpush1.bf16.msra.mxu1 %v5914_v28 }
 0x2a8   :  { %6234 = vmatprep.subr.bf16.mxu1 %v28081_v38 }
 0x2aa   :  { %21421 = vmatmul.mubr.msk.bf16.gmra.mrb[80].mxu1 %vm123_vm1, %v27922_v20 }
 0x2ab   :  { %5818 = vmatprep.mubr.bf16.mxu1 %v26229_v1 }
 0x2ae   :  { %21440 = vmatmul.mubr.msk.bf16.gmra.mrb[76].mxu0 %vm123_vm1, %v28092_v3 }
 0x2af   :  { %6193 = vmatprep.mubr.bf16.mxu0 %v26229_v1 }
 0x2b2   :  { %21422 = vmatmul.mubr.msk.bf16.gmra.mrb[84].mxu1 %vm123_vm1, %v27948_v39 }
 0x2b3   :  { %5828 = vmatprep.mubr.bf16.mxu1 %v26229_v1 }
 0x2b5   :  { %v4048_v43 = vpop.f32.mrb[44].mxu1 }
 0x2b6   :  { %v4119_v14 = vmax.f32 %v27963_v32, %v4048_v43  ;;  %v4050_v19 = vpop.f32.mrb[45].mxu1  ;;  %21475 = vmatmul.mubr.msk.bf16.vlgmr.msra.gmra.mrb[64].mxu0 %vm123_vm1, %v28111_v55 }
 0x2b7   :  { %v4120_v51 = vmax.f32 %v27965_v2, %v4050_v19  ;;  %v4052_v26 = vpop.f32.mrb[46].mxu1  ;;  %6437 = vmatpush1.bf16.msra.mxu0 %v28116_v35  ;;  %6203 = vmatprep.mubr.bf16.mxu0 %v26229_v1  ;;  %v28148_v2 = vld [vmem:[%s32987_s1 + $0xa8] sm:$0xff] }
 0x2b8   :  { %v4121_v20 = vmax.f32 %v27974_v37, %v4052_v26  ;;  %v4054_v57 = vpop.f32.mrb[47].mxu1  ;;  %21512 = vmatprep.subr.msk.bf16.mxu0 %vm136_vm0, %v21509_v42 }
 0x2b9   :  { %v4122_v39 = vmax.f32 %v27977_v40, %v4054_v57 }
 0x2ba   :  { %21423 = vmatmul.mubr.msk.bf16.gmra.mrb[88].mxu1 %vm123_vm1, %v27972_v6  ;;  %v21461_v6 = vld [vmem:[%s32987_s1 + $0xb8] sm:$0x33] }
 0x2bb   :  { %6024 = vmatprep.mubr.bf16.mxu1 %v26229_v1  ;;  %6439 = vmatpush1.bf16.msra.mxu0 %v6425_v34  ;;  %v21473_v47 = vcombine.high %v28148_v2, %v21461_v6  ;;  %v21472_v10 = vcombine.low %v28148_v2, %v21461_v6 }
 0x2bc   :  { %6711 = vmatprep.subr.bf16.mxu0 %v28133_v17 }
 0x2bd   :  { %v4058_v32 = vpop.f32.mrb[48].mxu1 }
 0x2be   :  { %v4123_v37 = vmax.f32 %v27982_v52, %v4058_v32  ;;  %v4060_v40 = vpop.f32.mrb[49].mxu1  ;;  %21476 = vmatmul.mubr.msk.bf16.gmra.mrb[68].mxu0 %vm123_vm1, %v28141_v24 }
 0x2bf   :  { %v4124_v21 = vmax.f32 %v27992_v15, %v4060_v40  ;;  %v4062_v7 = vpop.f32.mrb[50].mxu1  ;;  %6213 = vmatprep.mubr.bf16.mxu0 %v26229_v1  ;;  %v28174_v15 = vrot.slane %v4135_v36, %v27264_v41 }
 0x2c0   :  { %v4125_v52 = vmax.f32 %v28001_v4, %v4062_v7  ;;  %v28167_v16 = vpop.f32.mrb[51].mxu1  ;;  %v28184_v4 = vrot.slane %v4135_v36, %v27272_v5 }
 0x2c1   :  { %v4126_v28 = vmax.f32 %v28009_v61, %v28167_v16  ;;  %v6156_v61 = vsel %vm136_vm0, %v21472_v10, 0  ;;  %v4147_v62 = vadd.f32 %v28174_v15, %v4119_v14  ;;  %v4149_v32 = vadd.f32 %v28174_v15, %v4121_v20 }
 0x2c2   :  { %21442 = vmatmul.mubr.msk.bf16.vlgmr.msra.gmra.mrb[76].mxu1 %vm123_vm1, %v27999_v33  ;;  %v28193_v33 = vld [vmem:[%s32987_s1 + $0xcc] ss:$16 sps:$4 sm:$0xff]   ;;  %v4148_v26 = vadd.f32 %v28184_v4, %v4120_v51 }
 0x2c3   :  { %6034 = vmatprep.mubr.bf16.mxu1 %v26229_v1  ;;  %6235 = vmatpush1.bf16.msra.mxu1 %v28164_v13  ;;  %v4165_v10 = vmax.f32 %v4149_v32, 0.0 }
 0x2c4   :  { %21479 = vmatprep.subr.msk.bf16.mxu1 %vm136_vm0, %v21473_v47  ;;  %v4164_v20 = vmax.f32 %v4148_v26, 0.0  ;;  %v4152_v26 = vadd.f32 %v28184_v4, %v4124_v21  ;;  %v4154_v21 = vadd.f32 %v28184_v4, %v4126_v28 }
 0x2c5   :  { %v4068_v42 = vpop.f32.mrb[52].mxu1 }
 0x2c6   :  { %v4127_v43 = vmax.f32 %v28024_v49, %v4068_v42  ;;  %v4070_v19 = vpop.f32.mrb[53].mxu1  ;;  %21477 = vmatmul.mubr.msk.bf16.gmra.mrb[72].mxu0 %vm123_vm1, %v28181_v25  ;;  %v4150_v49 = vadd.f32 %v28184_v4, %v4122_v39 }
 0x2c7   :  { %v4128_v57 = vmax.f32 %v28026_v48, %v4070_v19  ;;  %v4072_v34 = vpop.f32.mrb[54].mxu1  ;;  %6223 = vmatprep.mubr.bf16.mxu0 %v26229_v1  ;;  %6237 = vmatpush1.bf16.msra.mxu1 %v6156_v61  ;;  %v4163_v48 = vmax.f32 %v4147_v62, 0.0 }
 0x2c8   :  { %v4155_v6 = vadd.f32 %v28174_v15, %v4127_v43  ;;  %v4129_v14 = vmax.f32 %v28035_v56, %v4072_v34  ;;  %v4074_v40 = vpop.f32.mrb[55].mxu1  ;;  %6509 = vmatprep.subr.bf16.mxu1 %v28193_v33  ;;  %v28215_v56 = vld [vmem:[%s32988_s0 + $0xb8] sm:$0xff]   ;;  %v4166_v42 = vmax.f32 %v4150_v49, 0.0  ;;  %v4153_v49 = vadd.f32 %v28174_v15, %v4125_v52 }
 0x2c9   :  { %v4156_v36 = vadd.f32 %v28184_v4, %v4128_v57  ;;  %v4130_v51 = vmax.f32 %v28038_v63, %v4074_v40 }
 0x2ca   :  { %v4171_v7 = vmax.f32 %v4155_v6, 0.0  ;;  %v4157_v16 = vadd.f32 %v28174_v15, %v4129_v14  ;;  %21443 = vmatmul.mubr.msk.bf16.gmra.mrb[80].mxu1 %vm123_vm1, %v28033_v44  ;;  %v4151_v44 = vadd.f32 %v28174_v15, %v4123_v37 }
 0x2cb   :  { %v4172_v47 = vmax.f32 %v4156_v36, 0.0  ;;  %v4158_v39 = vadd.f32 %v28184_v4, %v4130_v51  ;;  %6044 = vmatprep.mubr.bf16.mxu1 %v26229_v1 }
 0x2cc   :  { %v4179_v63 = vmax.f32 %v4163_v48, %v4171_v7  ;;  %v4173_v61 = vmax.f32 %v4157_v16, 0.0  ;;  %v28232_v48 = vld [vmem:[%s32987_s1 + $0x120] sm:$0xff] }
 0x2cd   :  { %v4180_v62 = vmax.f32 %v4164_v20, %v4172_v47  ;;  %v4174_v43 = vmax.f32 %v4158_v39, 0.0  ;;  %v4078_v19 = vpop.f32.mrb[56].mxu1  ;;  %v4167_v20 = vmax.f32 %v4151_v44, 0.0  ;;  %v28246_v39 = vld [vmem:[%s32988_s0 + $0xb0] sm:$0xff]  }
 0x2ce   :  { %v4181_v57 = vmax.f32 %v4165_v10, %v4173_v61  ;;  %v4131_v34 = vmax.f32 %v28059_v53, %v4078_v19  ;;  %v4080_v6 = vpop.f32.mrb[57].mxu1  ;;  %21478 = vmatmul.mubr.msk.bf16.gmra.mrb[76].mxu0 %vm123_vm1, %v28215_v56  ;;  %v4168_v10 = vmax.f32 %v4152_v26, 0.0  ;;  %v28267_v26 = vld [vmem:[%s32987_s1 + $0x44] ss:$16 sps:$4 sm:$0xff]  }
 0x2cf   :  { %v4182_v14 = vmax.f32 %v4166_v42, %v4174_v43  ;;  %v4132_v32 = vmax.f32 %v28061_v29, %v4080_v6  ;;  %v4082_v40 = vpop.f32.mrb[58].mxu1  ;;  %6468 = vmatprep.mubr.bf16.mxu0 %v26229_v1  ;;  %v21536_v29 = vld [vmem:[%s32987_s1 + $0x130] sm:$0x33]  ;;  %v4170_v43 = vmax.f32 %v4154_v21, 0.0 }
 0x2d0   :  { %v4187_v36 = vpack.c.bf16 %v4181_v57, %v4179_v63  ;;  %v4159_v37 = vadd.f32 %v28174_v15, %v4131_v34  ;;  %v4133_v51 = vmax.f32 %v28070_v18, %v4082_v40  ;;  %v4084_v53 = vpop.f32.mrb[59].mxu1  ;;  %v28280_v40 = vld [vmem:[%s32987_s1 + $0xe8] sm:$0xff]  ;;  %v21582_v21 = vld [vmem:[%s32987_s1 + $0x70] sm:$0x33] }
 0x2d1   :  { %v4188_v7 = vpack.c.bf16 %v4182_v14, %v4180_v62  ;;  %v4160_v52 = vadd.f32 %v28184_v4, %v4132_v32  ;;  %v4134_v16 = vmax.f32 %v28074_v11, %v4084_v53  ;;  %v28253_v11 = vld [vmem:[%s32987_s1 + $0x100] ss:$16 sps:$4 sm:$0xff]   ;;  %v21546_v62 = vcombine.low %v28232_v48, %v21536_v29  ;;  %v25670_v32 = vld [vmem:[%s32988_s0 + $0xb8] sm:$0xff]  }
 0x2d2   :  { %4192 = vst [vmem:[#allocation2 + $0x40] sm:$0xff] %v4187_v36  ;;  %v4175_v18 = vmax.f32 %v4159_v37, 0.0  ;;  %v4161_v47 = vadd.f32 %v28174_v15, %v4133_v51  ;;  %21444 = vmatmul.mubr.msk.bf16.gmra.mrb[84].mxu1 %vm123_vm1, %v28068_v12  ;;  %v21547_v12 = vcombine.high %v28232_v48, %v21536_v29  ;;  %v4169_v15 = vmax.f32 %v4153_v49, 0.0  ;;  %v28290_v49 = vld [vmem:[%s32987_s1 + $0xc8] ss:$16 sps:$4 sm:$0xff]   ;;  %v25672_v51 = vld [vmem:[%s32988_s0 + $0xc0] sm:$0xff]  }
 0x2d3   :  { %4193 = vst.msk [vmem:[#allocation2 + $0x48] sm:$0xff] %vm1422_vm2, %v4188_v7  ;;  %v4176_v28 = vmax.f32 %v4160_v52, 0.0  ;;  %v4162_v63 = vadd.f32 %v28184_v4, %v4134_v16  ;;  %6054 = vmatprep.mubr.bf16.mxu1 %v26229_v1  ;;  %v6700_v6 = vsel %vm136_vm0, %v21546_v62, 0  ;;  %v28306_v29 = vld [vmem:[%s32987_s1 + $0x10c] ss:$16 sps:$4 sm:$0xff]   ;;  %v21593_v52 = vcombine.high %v27815_v23, %v21582_v21 }
 0x2d4   :  { %v4183_v61 = vmax.f32 %v4167_v20, %v4175_v18  ;;  %v4177_v42 = vmax.f32 %v4161_v47, 0.0  ;;  %v28330_v7 = vld [vmem:[%s32987_s1 + $0x40] ss:$16 sps:$4 sm:$0xff]   ;;  %v21592_v16 = vcombine.low %v27815_v23, %v21582_v21  ;;  %v25684_v20 = vld [vmem:[%s32988_s0 + $0xc8] sm:$0xff]   ;;  %v21537_v18 = vld [vmem:[%s32987_s1 + $0x138] sm:$0x33] }
 0x2d5   :  { %v4184_v19 = vmax.f32 %v4168_v10, %v4176_v28  ;;  %v4178_v44 = vmax.f32 %v4162_v63, 0.0  ;;  %v28350_v23 = vld [vmem:[%s32987_s1 + $0x128] sm:$0xff]  ;;  %v25686_v10 = vld [vmem:[%s32988_s0 + $0xd0] sm:$0xff]   ;;  %v6981_v21 = vld [vmem:[%s32987_s1 + $0x38] sm:$0x33] }
 0x2d6   :  { %v4185_v57 = vmax.f32 %v4169_v15, %v4177_v42  ;;  %21513 = vmatmul.mubr.msk.bf16.vlgmr.msra.gmra.mrb[64].mxu0 %vm123_vm1, %v28246_v39  ;;  %v21548_v47 = vcombine.low %v28350_v23, %v21537_v18  ;;  %v6980_v63 = vld [vmem:[%s32987_s1 + $0x30] sm:$0x33]  ;;  %v28405_v42 = vld [vmem:[%s32988_s0 + $0xb8] sm:$0xff]  }
 0x2d7   :  { %v4186_v4 = vmax.f32 %v4170_v43, %v4178_v44  ;;  %6712 = vmatpush1.bf16.msra.mxu0 %v28253_v11  ;;  %6478 = vmatprep.mubr.bf16.mxu0 %v26229_v1  ;;  %v21614_v15 = vcombine.low %v27888_v27, %v6980_v63  ;;  %v28421_v43 = vld [vmem:[%s32988_s0 + $0xc0] sm:$0xff]  }
 0x2d8   :  { %v4189_v34 = vpack.c.bf16 %v4185_v57, %v4183_v61  ;;  %21550 = vmatprep.subr.msk.bf16.mxu0 %vm136_vm0, %v21547_v12  ;;  %v6706_v28 = vsel %vm136_vm0, %v21548_v47, 0  ;;  %v21615_v12 = vcombine.high %v27888_v27, %v6980_v63  ;;  %v21583_v27 = vld [vmem:[%s32987_s1 + $0x78] sm:$0x33] }
 0x2d9   :  { %v4190_v14 = vpack.c.bf16 %v4186_v4, %v4184_v19  ;;  %v7293_v61 = vsel %vm136_vm0, %v21614_v15, 0  ;;  %v21594_v62 = vcombine.low %v27929_v60, %v21583_v27  ;;  %v21642_v4 = vld [vmem:[%s32987_s1 + $0xb0] sm:$0x33] }
 0x2da   :  { %4194 = vst [vmem:[#allocation2 + $0x50] sm:$0xff] %v4189_v34  ;;  %21445 = vmatmul.mubr.msk.bf16.gmra.mrb[88].mxu1 %vm123_vm1, %v28092_v3  ;;  %v21499_v3 = vld [vmem:[%s32987_s1 + $0xf8] sm:$0x33] }
 0x2db   :  { %4195 = vst.msk [vmem:[#allocation2 + $0x58] sm:$0xff] %vm1422_vm2, %v4190_v14  ;;  %6266 = vmatprep.mubr.bf16.mxu1 %v26229_v1  ;;  %6714 = vmatpush1.bf16.msra.mxu0 %v6700_v6  ;;  %v21511_v36 = vcombine.high %v28280_v40, %v21499_v3  ;;  %v21510_v37 = vcombine.low %v28280_v40, %v21499_v3  ;;  %v28460_v6 = vld [vmem:[%s32988_s0 + $0xa0] sm:$0xff]  }
 0x2dc   :  { %7078 = vmatprep.subr.bf16.mxu0 %v28267_v26  ;;  %v21653_v3 = vcombine.high %v27987_v45, %v21642_v4 }
 0x2dd   :  { %v6431_v53 = vsel %vm136_vm0, %v21510_v37, 0 }
 0x2de   :  { %21514 = vmatmul.mubr.msk.bf16.gmra.mrb[68].mxu0 %vm123_vm1, %v25670_v32 }
 0x2df   :  { %6488 = vmatprep.mubr.bf16.mxu0 %v26229_v1 }
 0x2e2   :  { %21480 = vmatmul.mubr.msk.bf16.vlgmr.msra.gmra.mrb[76].mxu1 %vm123_vm1, %v28111_v55  ;;  %v25675_v55 = vld [vmem:[%s32988_s0 + $0xc8] sm:$0xff]  }
 0x2e3   :  { %6276 = vmatprep.mubr.bf16.mxu1 %v26229_v1  ;;  %6510 = vmatpush1.bf16.msra.mxu1 %v28290_v49 }
 0x2e4   :  { %21517 = vmatprep.subr.msk.bf16.mxu1 %vm136_vm0, %v21511_v36  ;;  %v21652_v36 = vcombine.low %v27987_v45, %v21642_v4  ;;  %v28483_v45 = vld [vmem:[%s32988_s0 + $0xa8] sm:$0xff]  }
 0x2e6   :  { %21515 = vmatmul.mubr.msk.bf16.gmra.mrb[72].mxu0 %vm123_vm1, %v25672_v51  ;;  %v7535_v37 = vsel %vm136_vm0, %v21652_v36, 0 }
 0x2e7   :  { %6498 = vmatprep.mubr.bf16.mxu0 %v26229_v1  ;;  %6512 = vmatpush1.bf16.msra.mxu1 %v6431_v53 }
 0x2e8   :  { %6784 = vmatprep.subr.bf16.mxu1 %v28306_v29 }
 0x2ea   :  { %21481 = vmatmul.mubr.msk.bf16.gmra.mrb[80].mxu1 %vm123_vm1, %v28141_v24  ;;  %v25679_v24 = vld [vmem:[%s32988_s0 + $0xc0] sm:$0xff]  }
 0x2eb   :  { %6286 = vmatprep.mubr.bf16.mxu1 %v26229_v1 }
 0x2ee   :  { %21516 = vmatmul.mubr.msk.bf16.gmra.mrb[76].mxu0 %vm123_vm1, %v25675_v55 }
 0x2ef   :  { %6743 = vmatprep.mubr.bf16.mxu0 %v26229_v1 }
 0x2f2   :  { %21482 = vmatmul.mubr.msk.bf16.gmra.mrb[84].mxu1 %vm123_vm1, %v28181_v25  ;;  %v7067_v25 = vsel %vm136_vm0, %v21592_v16, 0 }
 0x2f3   :  { %6296 = vmatprep.mubr.bf16.mxu1 %v26229_v1 }
 0x2f6   :  { %21551 = vmatmul.mubr.msk.bf16.vlgmr.msra.gmra.mrb[64].mxu0 %vm123_vm1, %v25679_v24 }
 0x2f7   :  { %7079 = vmatpush1.bf16.msra.mxu0 %v28330_v7  ;;  %6753 = vmatprep.mubr.bf16.mxu0 %v26229_v1 }
 0x2f8   :  { %21596 = vmatprep.subr.msk.bf16.mxu0 %vm136_vm0, %v21593_v52  ;;  %v21616_v52 = vcombine.low %v28044_v59, %v6981_v21 }
 0x2fa   :  { %21483 = vmatmul.mubr.msk.bf16.gmra.mrb[88].mxu1 %vm123_vm1, %v28215_v56  ;;  %v28360_v56 = vld [vmem:[%s32987_s1 + $0x108] ss:$16 sps:$4 sm:$0xff]  }
 0x2fb   :  { %6541 = vmatprep.mubr.bf16.mxu1 %v26229_v1  ;;  %7081 = vmatpush1.bf16.msra.mxu0 %v7067_v25 }
 0x2fc   :  { %7304 = vmatprep.subr.bf16.mxu0 %v27836_v50  ;;  %v21549_v50 = vcombine.high %v28350_v23, %v21537_v18 }
 0x2fe   :  { %21552 = vmatmul.mubr.msk.bf16.gmra.mrb[68].mxu0 %vm123_vm1, %v25684_v20 }
 0x2ff   :  { %6763 = vmatprep.mubr.bf16.mxu0 %v26229_v1 }
 0x302   :  { %21518 = vmatmul.mubr.msk.bf16.vlgmr.msra.gmra.mrb[76].mxu1 %vm123_vm1, %v28246_v39  ;;  %v25687_v39 = vld [vmem:[%s32988_s0 + $0xd8] sm:$0xff]  }
 0x303   :  { %6551 = vmatprep.mubr.bf16.mxu1 %v26229_v1  ;;  %6785 = vmatpush1.bf16.msra.mxu1 %v28360_v56 }
 0x304   :  { %21555 = vmatprep.subr.msk.bf16.mxu1 %vm136_vm0, %v21549_v50  ;;  %v21680_v50 = vld [vmem:[%s32987_s1 + $0xf0] sm:$0x33] }
 0x305   :  { %v21691_v47 = vcombine.high %v28101_v8, %v21680_v50 }
 0x306   :  { %21553 = vmatmul.mubr.msk.bf16.gmra.mrb[72].mxu0 %vm123_vm1, %v25686_v10 }
 0x307   :  { %6773 = vmatprep.mubr.bf16.mxu0 %v26229_v1  ;;  %6787 = vmatpush1.bf16.msra.mxu1 %v6706_v28 }
 0x308   :  { %7151 = vmatprep.subr.bf16.mxu1 %v27869_v54  ;;  %v28390_v54 = vld [vmem:[%s32988_s0 + $0xb0] sm:$0xff]  }
 0x30a   :  { %21519 = vmatmul.mubr.msk.bf16.gmra.mrb[80].mxu1 %vm123_vm1, %v25670_v32 }
 0x30b   :  { %6561 = vmatprep.mubr.bf16.mxu1 %v26229_v1 }
 0x30e   :  { %21554 = vmatmul.mubr.msk.bf16.gmra.mrb[76].mxu0 %vm123_vm1, %v25687_v39 }
 0x30f   :  { %7110 = vmatprep.mubr.bf16.mxu0 %v26229_v1 }
 0x312   :  { %21520 = vmatmul.mubr.msk.bf16.gmra.mrb[84].mxu1 %vm123_vm1, %v25672_v51 }
 0x313   :  { %6571 = vmatprep.mubr.bf16.mxu1 %v26229_v1 }
 0x316   :  { %21597 = vmatmul.mubr.msk.bf16.vlgmr.msra.gmra.mrb[80].mxu0 %vm123_vm1, %v28390_v54 }
 0x317   :  { %7305 = vmatpush1.bf16.msra.mxu0 %v27902_v46  ;;  %7120 = vmatprep.mubr.bf16.mxu0 %v26229_v1  ;;  %v21595_v46 = vcombine.high %v27929_v60, %v21583_v27  ;;  %v28561_v27 = vld [vmem:[%s32988_s0 + $0xc8] sm:$0xff]  }
 0x318   :  { %21618 = vmatprep.subr.msk.bf16.mxu0 %vm136_vm0, %v21615_v12 }
 0x31a   :  { %21521 = vmatmul.mubr.msk.bf16.gmra.mrb[88].mxu1 %vm123_vm1, %v25675_v55 }
 0x31b   :  { %6816 = vmatprep.mubr.bf16.mxu1 %v26229_v1  ;;  %7307 = vmatpush1.bf16.msra.mxu0 %v7293_v61 }
 0x31c   :  { %7546 = vmatprep.subr.bf16.mxu0 %v27916_v58  ;;  %v7073_v58 = vsel %vm136_vm0, %v21594_v62, 0 }
 0x31e   :  { %21598 = vmatmul.mubr.msk.bf16.gmra.mrb[84].mxu0 %vm123_vm1, %v28405_v42 }
 0x31f   :  { %7130 = vmatprep.mubr.bf16.mxu0 %v26229_v1 }
 0x322   :  { %21556 = vmatmul.mubr.msk.bf16.vlgmr.msra.gmra.mrb[76].mxu1 %vm123_vm1, %v25679_v24  ;;  %v21617_v24 = vcombine.high %v28044_v59, %v6981_v21  ;;  %v7299_v59 = vsel %vm136_vm0, %v21616_v52, 0 }
 0x323   :  { %6826 = vmatprep.mubr.bf16.mxu1 %v26229_v1  ;;  %7152 = vmatpush1.bf16.msra.mxu1 %v27940_v9  ;;  %v28439_v9 = vld [vmem:[%s32988_s0 + $0xc8] sm:$0xff]  }
 0x324   :  { %21601 = vmatprep.subr.msk.bf16.mxu1 %vm136_vm0, %v21595_v46  ;;  %v21643_v46 = vld [vmem:[%s32987_s1 + $0xb8] sm:$0x33] }
 0x326   :  { %21599 = vmatmul.mubr.msk.bf16.gmra.mrb[88].mxu0 %vm123_vm1, %v28421_v43 }
 0x327   :  { %7140 = vmatprep.mubr.bf16.mxu0 %v26229_v1  ;;  %7154 = vmatpush1.bf16.msra.mxu1 %v7073_v58  ;;  %v5520_v58 = vld [vmem:[%s32989_s2] sm:$0x3] }
 0x328   :  { %7377 = vmatprep.subr.bf16.mxu1 %v27957_v31  ;;  %v28584_v4 = vrot.slane %v5520_v58, %v27264_v41 }
 0x329   :  { %v28431_v60 = vpop.f32.mrb[48].mxu0 }
 0x32a   :  { %v28433_v19 = vpop.f32.mrb[49].mxu0  ;;  %21557 = vmatmul.mubr.msk.bf16.gmra.mrb[80].mxu1 %vm123_vm1, %v25684_v20 }
 0x32b   :  { %v28441_v44 = vpop.f32.mrb[50].mxu0  ;;  %6836 = vmatprep.mubr.bf16.mxu1 %v26229_v1 }
 0x32c   :  { %v28444_v57 = vpop.f32.mrb[51].mxu0 }
 0x32e   :  { %21600 = vmatmul.mubr.msk.bf16.gmra.mrb[92].mxu0 %vm123_vm1, %v28439_v9 }
 0x32f   :  { %7336 = vmatprep.mubr.bf16.mxu0 %v26229_v1 }
 0x331   :  { %v28449_v31 = vpop.f32.mrb[52].mxu0 }
 0x332   :  { %v28454_v34 = vpop.f32.mrb[53].mxu0  ;;  %21558 = vmatmul.mubr.msk.bf16.gmra.mrb[84].mxu1 %vm123_vm1, %v25686_v10  ;;  %v21690_v10 = vcombine.low %v28101_v8, %v21680_v50 }
 0x333   :  { %v28462_v14 = vpop.f32.mrb[54].mxu0  ;;  %6846 = vmatprep.mubr.bf16.mxu1 %v26229_v1 }
 0x334   :  { %v28465_v32 = vpop.f32.mrb[55].mxu0  ;;  %v7810_v8 = vsel %vm136_vm0, %v21690_v10, 0 }
 0x336   :  { %21619 = vmatmul.mubr.msk.bf16.vlgmr.msra.gmra.mrb[80].mxu0 %vm123_vm1, %v28460_v6 }
 0x337   :  { %7547 = vmatpush1.bf16.msra.mxu0 %v28006_v0  ;;  %7346 = vmatprep.mubr.bf16.mxu0 %v26229_v1 }
 0x338   :  { %21656 = vmatprep.subr.msk.bf16.mxu0 %vm136_vm0, %v21653_v3 }
 0x339   :  { %v28475_v51 = vpop.f32.mrb[56].mxu0 }
 0x33a   :  { %v28477_v53 = vpop.f32.mrb[57].mxu0  ;;  %21559 = vmatmul.mubr.msk.bf16.gmra.mrb[88].mxu1 %vm123_vm1, %v25687_v39 }
 0x33b   :  { %v28485_v55 = vpop.f32.mrb[58].mxu0  ;;  %7183 = vmatprep.mubr.bf16.mxu1 %v26229_v1  ;;  %7549 = vmatpush1.bf16.msra.mxu0 %v7535_v37 }
 0x33c   :  { %v28488_v0 = vpop.f32.mrb[59].mxu0  ;;  %7821 = vmatprep.subr.bf16.mxu0 %v28022_v22  ;;  %v28508_v22 = vld [vmem:[%s32988_s0 + $0xb0] sm:$0xff]  }
 0x33e   :  { %21620 = vmatmul.mubr.msk.bf16.gmra.mrb[84].mxu0 %vm123_vm1, %v28483_v45 }
 0x33f   :  { %7356 = vmatprep.mubr.bf16.mxu0 %v26229_v1 }
 0x341   :  { %v28499_v16 = vpop.f32.mrb[60].mxu0 }
 0x342   :  { %v28501_v25 = vpop.f32.mrb[61].mxu0  ;;  %21602 = vmatmul.mubr.msk.bf16.vlgmr.msra.gmra.mrb[92].mxu1 %vm123_vm1, %v28390_v54 }
 0x343   :  { %v28510_v20 = vpop.f32.mrb[62].mxu0  ;;  %7193 = vmatprep.mubr.bf16.mxu1 %v26229_v1  ;;  %7378 = vmatpush1.bf16.msra.mxu1 %v28055_v30  ;;  %v28527_v30 = vld [vmem:[%s32988_s0 + $0xb8] sm:$0xff]  }
 0x344   :  { %v28514_v18 = vpop.f32.mrb[63].mxu0  ;;  %21623 = vmatprep.subr.msk.bf16.mxu1 %vm136_vm0, %v21617_v24 }
 0x346   :  { %21621 = vmatmul.mubr.msk.bf16.gmra.mrb[88].mxu0 %vm123_vm1, %v28508_v22 }
 0x347   :  { %7366 = vmatprep.mubr.bf16.mxu0 %v26229_v1  ;;  %7380 = vmatpush1.bf16.msra.mxu1 %v7299_v59 }
 0x348   :  { %7619 = vmatprep.subr.bf16.mxu1 %v28081_v38  ;;  %v28541_v38 = vld [vmem:[%s32988_s0 + $0xc0] sm:$0xff]  }
 0x34a   :  { %21603 = vmatmul.mubr.msk.bf16.gmra.mrb[96].mxu1 %vm123_vm1, %v28405_v42 }
 0x34b   :  { %7203 = vmatprep.mubr.bf16.mxu1 %v26229_v1 }
 0x34e   :  { %21622 = vmatmul.mubr.msk.bf16.gmra.mrb[92].mxu0 %vm123_vm1, %v28527_v30 }
 0x34f   :  { %7578 = vmatprep.mubr.bf16.mxu0 %v26229_v1 }
 0x352   :  { %21604 = vmatmul.mubr.msk.bf16.gmra.mrb[100].mxu1 %vm123_vm1, %v28421_v43 }
 0x353   :  { %7213 = vmatprep.mubr.bf16.mxu1 %v26229_v1 }
 0x355   :  { %v5433_v28 = vpop.f32.mrb[60].mxu1 }
 0x356   :  { %v5504_v39 = vmax.f32 %v28431_v60, %v5433_v28  ;;  %v5435_v63 = vpop.f32.mrb[61].mxu1  ;;  %21657 = vmatmul.mubr.msk.bf16.vlgmr.msra.gmra.mrb[80].mxu0 %vm123_vm1, %v28541_v38 }
 0x357   :  { %v5505_v54 = vmax.f32 %v28433_v19, %v5435_v63  ;;  %v5437_v12 = vpop.f32.mrb[62].mxu1  ;;  %7822 = vmatpush1.bf16.msra.mxu0 %v28116_v35  ;;  %7588 = vmatprep.mubr.bf16.mxu0 %v26229_v1 }
 0x358   :  { %v5506_v15 = vmax.f32 %v28441_v44, %v5437_v12  ;;  %v5439_v61 = vpop.f32.mrb[63].mxu1  ;;  %21694 = vmatprep.subr.msk.bf16.mxu0 %vm136_vm0, %v21691_v47  ;;  %v21655_v44 = vcombine.high %v28148_v2, %v21643_v46  ;;  %v5532_v3 = vadd.f32 %v28584_v4, %v5504_v39 }
 0x359   :  { %v5507_v42 = vmax.f32 %v28444_v57, %v5439_v61  ;;  %v21654_v57 = vcombine.low %v28148_v2, %v21643_v46 }
 0x35a   :  { %21605 = vmatmul.mubr.msk.bf16.gmra.mrb[104].mxu1 %vm123_vm1, %v28439_v9 }
 0x35b   :  { %7409 = vmatprep.mubr.bf16.mxu1 %v26229_v1  ;;  %7824 = vmatpush1.bf16.msra.mxu0 %v7810_v8  ;;  %v7541_v2 = vsel %vm136_vm0, %v21654_v57, 0 }
 0x35c   :  { %8096 = vmatprep.subr.bf16.mxu0 %v28133_v17 }
 0x35d   :  { %v5443_v35 = vpop.f32.mrb[64].mxu1 }
 0x35e   :  { %v5508_v62 = vmax.f32 %v28449_v31, %v5443_v35  ;;  %v5445_v43 = vpop.f32.mrb[65].mxu1  ;;  %21658 = vmatmul.mubr.msk.bf16.gmra.mrb[84].mxu0 %vm123_vm1, %v28561_v27 }
 0x35f   :  { %v5509_v60 = vmax.f32 %v28454_v34, %v5445_v43  ;;  %v5447_v19 = vpop.f32.mrb[66].mxu1  ;;  %7598 = vmatprep.mubr.bf16.mxu0 %v26229_v1  ;;  %v28591_v34 = vld [vmem:[%s32988_s0 + $0xd0] sm:$0xff]  }
 0x360   :  { %v5510_v17 = vmax.f32 %v28462_v14, %v5447_v19  ;;  %v28577_v9 = vpop.f32.mrb[67].mxu1  ;;  %v28594_v14 = vrot.slane %v5520_v58, %v27272_v5 }
 0x361   :  { %v5511_v31 = vmax.f32 %v28465_v32, %v28577_v9 }
 0x362   :  { %21624 = vmatmul.mubr.msk.bf16.vlgmr.msra.gmra.mrb[92].mxu1 %vm123_vm1, %v28460_v6  ;;  %v5533_v37 = vadd.f32 %v28594_v14, %v5505_v54  ;;  %v5537_v19 = vadd.f32 %v28594_v14, %v5509_v60 }
 0x363   :  { %7419 = vmatprep.mubr.bf16.mxu1 %v26229_v1  ;;  %7620 = vmatpush1.bf16.msra.mxu1 %v28164_v13  ;;  %v5534_v13 = vadd.f32 %v28584_v4, %v5506_v15  ;;  %v5539_v60 = vadd.f32 %v28594_v14, %v5511_v31 }
 0x364   :  { %21661 = vmatprep.subr.msk.bf16.mxu1 %vm136_vm0, %v21655_v44  ;;  %v5549_v63 = vmax.f32 %v5533_v37, 0.0 }
 0x365   :  { %v5453_v32 = vpop.f32.mrb[68].mxu1  ;;  %v5550_v12 = vmax.f32 %v5534_v13, 0.0  ;;  %v5553_v13 = vmax.f32 %v5537_v19, 0.0 }
 0x366   :  { %v5512_v6 = vmax.f32 %v28475_v51, %v5453_v32  ;;  %v5455_v36 = vpop.f32.mrb[69].mxu1  ;;  %21659 = vmatmul.mubr.msk.bf16.gmra.mrb[88].mxu0 %vm123_vm1, %v28591_v34  ;;  %v5535_v51 = vadd.f32 %v28594_v14, %v5507_v42 }
 0x367   :  { %v5513_v21 = vmax.f32 %v28477_v53, %v5455_v36  ;;  %v5457_v24 = vpop.f32.mrb[70].mxu1  ;;  %7608 = vmatprep.mubr.bf16.mxu0 %v26229_v1  ;;  %7622 = vmatpush1.bf16.msra.mxu1 %v7541_v2  ;;  %v5548_v53 = vmax.f32 %v5532_v3, 0.0  ;;  %v5538_v2 = vadd.f32 %v28584_v4, %v5510_v17 }
 0x368   :  { %v5540_v52 = vadd.f32 %v28584_v4, %v5512_v6  ;;  %v5514_v59 = vmax.f32 %v28485_v55, %v5457_v24  ;;  %v5459_v50 = vpop.f32.mrb[71].mxu1  ;;  %7894 = vmatprep.subr.bf16.mxu1 %v28193_v33  ;;  %v28620_v55 = vld [vmem:[%s32988_s0 + $0xd8] sm:$0xff]   ;;  %v5551_v61 = vmax.f32 %v5535_v51, 0.0  ;;  %v21718_v6 = vld [vmem:[%s32987_s1 + $0x130] sm:$0x33]  ;;  %v5555_v51 = vmax.f32 %v5539_v60, 0.0 }
 0x369   :  { %v5541_v47 = vadd.f32 %v28594_v14, %v5513_v21  ;;  %v5515_v10 = vmax.f32 %v28488_v0, %v5459_v50 }
 0x36a   :  { %v5556_v28 = vmax.f32 %v5540_v52, 0.0  ;;  %v5542_v39 = vadd.f32 %v28584_v4, %v5514_v59  ;;  %21625 = vmatmul.mubr.msk.bf16.gmra.mrb[96].mxu1 %vm123_vm1, %v28483_v45  ;;  %v5536_v45 = vadd.f32 %v28584_v4, %v5508_v62  ;;  %v5554_v59 = vmax.f32 %v5538_v2, 0.0  ;;  %v28811_v2 = vld [vmem:[%s32987_s1 + $0x68] sm:$0xff] }
 0x36b   :  { %v5557_v33 = vmax.f32 %v5541_v47, 0.0  ;;  %v5543_v54 = vadd.f32 %v28594_v14, %v5515_v10  ;;  %7429 = vmatprep.mubr.bf16.mxu1 %v26229_v1 }
 0x36c   :  { %v5564_v0 = vmax.f32 %v5548_v53, %v5556_v28  ;;  %v5558_v15 = vmax.f32 %v5542_v39, 0.0  ;;  %v5552_v21 = vmax.f32 %v5536_v45, 0.0  ;;  %v8365_v45 = vld [vmem:[%s32987_s1 + $0x30] sm:$0x33] }
 0x36d   :  { %v5565_v8 = vmax.f32 %v5549_v63, %v5557_v33  ;;  %v5559_v42 = vmax.f32 %v5543_v54, 0.0  ;;  %v5463_v35 = vpop.f32.mrb[72].mxu1  ;;  %v25707_v54 = vld [vmem:[%s32988_s0 + $0xe0] sm:$0xff]  }
 0x36e   :  { %v5566_v46 = vmax.f32 %v5550_v12, %v5558_v15  ;;  %v5516_v43 = vmax.f32 %v28499_v16, %v5463_v35  ;;  %v5465_v58 = vpop.f32.mrb[73].mxu1  ;;  %21660 = vmatmul.mubr.msk.bf16.gmra.mrb[92].mxu0 %vm123_vm1, %v28620_v55  ;;  %v28725_v15 = vld [vmem:[%s32988_s0 + $0xe8] sm:$0xff]   ;;  %v28770_v35 = vld [vmem:[%s32987_s1 + $0x20] sm:$0xff] }
 0x36f   :  { %v5567_v9 = vmax.f32 %v5551_v61, %v5559_v42  ;;  %v5517_v44 = vmax.f32 %v28501_v25, %v5465_v58  ;;  %v5467_v57 = vpop.f32.mrb[74].mxu1  ;;  %7853 = vmatprep.mubr.bf16.mxu0 %v26229_v1  ;;  %v21797_v58 = vcombine.high %v28770_v35, %v8365_v45  ;;  %v21796_v19 = vcombine.low %v28770_v35, %v8365_v45 }
 0x370   :  { %v5572_v32 = vpack.c.bf16 %v5566_v46, %v5564_v0  ;;  %v5544_v62 = vadd.f32 %v28584_v4, %v5516_v43  ;;  %v5518_v3 = vmax.f32 %v28510_v20, %v5467_v57  ;;  %v5469_v16 = vpop.f32.mrb[75].mxu1  ;;  %v28646_v20 = vld [vmem:[%s32988_s0 + $0xd0] sm:$0xff]   ;;  %v28804_v57 = vld [vmem:[%s32988_s0 + $0xd8] sm:$0xff]  }
 0x371   :  { %v5573_v36 = vpack.c.bf16 %v5567_v9, %v5565_v8  ;;  %v5545_v25 = vadd.f32 %v28594_v14, %v5517_v44  ;;  %v5519_v37 = vmax.f32 %v28514_v18, %v5469_v16  ;;  %v21729_v18 = vcombine.high %v28232_v48, %v21718_v6  ;;  %v28718_v0 = vld [vmem:[%s32987_s1 + $0x4] ss:$16 sps:$4 sm:$0xff]   ;;  %v28784_v43 = vld [vmem:[%s32987_s1] ss:$16 sps:$4 sm:$0xff]  }
 0x372   :  { %5577 = vst [vmem:[#allocation2 + $0x60] sm:$0xff] %v5572_v32  ;;  %v5560_v17 = vmax.f32 %v5544_v62, 0.0  ;;  %v5546_v24 = vadd.f32 %v28584_v4, %v5518_v3  ;;  %21626 = vmatmul.mubr.msk.bf16.gmra.mrb[100].mxu1 %vm123_vm1, %v28508_v22  ;;  %v21728_v22 = vcombine.low %v28232_v48, %v21718_v6  ;;  %v25706_v48 = vld [vmem:[%s32988_s0 + $0xd8] sm:$0xff]   ;;  %v28742_v8 = vld [vmem:[%s32988_s0 + $0xf0] sm:$0xff]   ;;  %v8678_v9 = vsel %vm136_vm0, %v21796_v19, 0  ;;  %v28830_v6 = vld [vmem:[%s32988_s0 + $0xe0] sm:$0xff]  }
 0x373   :  { %5578 = vst.msk [vmem:[#allocation2 + $0x68] sm:$0xff] %vm1422_vm2, %v5573_v36  ;;  %v5561_v31 = vmax.f32 %v5545_v25, 0.0  ;;  %v5547_v52 = vadd.f32 %v28594_v14, %v5519_v37  ;;  %7439 = vmatprep.mubr.bf16.mxu1 %v26229_v1  ;;  %v28779_v46 = vld [vmem:[%s32988_s0 + $0xd0] sm:$0xff]   ;;  %v21765_v32 = vld [vmem:[%s32987_s1 + $0x78] sm:$0x33] }
 0x374   :  { %v5568_v4 = vmax.f32 %v5552_v21, %v5560_v17  ;;  %v5562_v50 = vmax.f32 %v5546_v24, 0.0  ;;  %v8085_v39 = vsel %vm136_vm0, %v21728_v22, 0  ;;  %v28798_v44 = vld [vmem:[%s32987_s1 + $0x84] ss:$16 sps:$4 sm:$0xff]   ;;  %v28822_v62 = vld [vmem:[%s32987_s1 + $0x48] ss:$16 sps:$4 sm:$0xff]   ;;  %v21777_v3 = vcombine.high %v28811_v2, %v21765_v32 }
 0x375   :  { %v5569_v47 = vmax.f32 %v5553_v13, %v5561_v31  ;;  %v5563_v10 = vmax.f32 %v5547_v52, 0.0  ;;  %v21776_v16 = vcombine.low %v28811_v2, %v21765_v32  ;;  %v28839_v36 = vld [vmem:[%s32987_s1 + $0xc] ss:$16 sps:$4 sm:$0xff]   ;;  %v28869_v13 = vld [vmem:[%s32987_s1 + $0xa0] sm:$0xff]  ;;  %v21824_v31 = vld [vmem:[%s32987_s1 + $0xb0] sm:$0x33] }
 0x376   :  { %v5570_v53 = vmax.f32 %v5554_v59, %v5562_v50  ;;  %21695 = vmatmul.mubr.msk.bf16.vlgmr.msra.gmra.mrb[80].mxu0 %vm123_vm1, %v28646_v20  ;;  %v28854_v21 = vld [vmem:[%s32988_s0 + $0xe8] sm:$0xff]   ;;  %v21835_v22 = vcombine.high %v28869_v13, %v21824_v31 }
 0x377   :  { %v5571_v28 = vmax.f32 %v5555_v51, %v5563_v10  ;;  %8097 = vmatpush1.bf16.msra.mxu0 %v28253_v11  ;;  %7863 = vmatprep.mubr.bf16.mxu0 %v26229_v1  ;;  %v21681_v11 = vld [vmem:[%s32987_s1 + $0xf8] sm:$0x33]  ;;  %v8458_v60 = vsel %vm136_vm0, %v21776_v16, 0  ;;  %v21834_v51 = vcombine.low %v28869_v13, %v21824_v31  ;;  %v28904_v10 = vld [vmem:[%s32987_s1 + $0xc4] ss:$16 sps:$4 sm:$0xff]  }
 0x378   :  { %v5574_v14 = vpack.c.bf16 %v5570_v53, %v5568_v4  ;;  %21732 = vmatprep.subr.msk.bf16.mxu0 %vm136_vm0, %v21729_v18  ;;  %v21692_v33 = vcombine.low %v28280_v40, %v21681_v11  ;;  %v28881_v18 = vld [vmem:[%s32988_s0 + $0xc0] sm:$0xff]  }
 0x379   :  { %v5575_v63 = vpack.c.bf16 %v5571_v28, %v5569_v47  ;;  %v28888_v4 = vld [vmem:[%s32987_s1 + $0x80] ss:$16 sps:$4 sm:$0xff]   ;;  %v8920_v47 = vsel %vm136_vm0, %v21834_v51, 0  ;;  %v29015_v16 = vld [vmem:[%s32987_s1 + $0x104] ss:$16 sps:$4 sm:$0xff]  }
 0x37a   :  { %5579 = vst [vmem:[#allocation2 + $0x70] sm:$0xff] %v5574_v14  ;;  %21627 = vmatmul.mubr.msk.bf16.gmra.mrb[104].mxu1 %vm123_vm1, %v28527_v30  ;;  %v21693_v30 = vcombine.high %v28280_v40, %v21681_v11  ;;  %v25708_v40 = vld [vmem:[%s32988_s0 + $0xe8] sm:$0xff]   ;;  %v8366_v11 = vld [vmem:[%s32987_s1 + $0x38] sm:$0x33]  ;;  %v6905_v31 = vld [vmem:[%s32989_s2] sm:$0x3] }
 0x37b   :  { %5580 = vst.msk [vmem:[#allocation2 + $0x78] sm:$0xff] %vm1422_vm2, %v5575_v63  ;;  %7651 = vmatprep.mubr.bf16.mxu1 %v26229_v1  ;;  %8099 = vmatpush1.bf16.msra.mxu0 %v8085_v39  ;;  %v28915_v14 = vld [vmem:[%s32988_s0 + $0xc8] sm:$0xff]  }
 0x37c   :  { %8463 = vmatprep.subr.bf16.mxu0 %v28267_v26  ;;  %v7816_v26 = vsel %vm136_vm0, %v21692_v33, 0 }
 0x37e   :  { %21696 = vmatmul.mubr.msk.bf16.gmra.mrb[84].mxu0 %vm123_vm1, %v25706_v48 }
 0x37f   :  { %7873 = vmatprep.mubr.bf16.mxu0 %v26229_v1 }
 0x382   :  { %21662 = vmatmul.mubr.msk.bf16.vlgmr.msra.gmra.mrb[92].mxu1 %vm123_vm1, %v28541_v38  ;;  %v25709_v38 = vld [vmem:[%s32988_s0 + $0xe0] sm:$0xff]  }
 0x383   :  { %7661 = vmatprep.mubr.bf16.mxu1 %v26229_v1  ;;  %7895 = vmatpush1.bf16.msra.mxu1 %v28290_v49  ;;  %v28697_v49 = vld [vmem:[%s32987_s1 + $0x60] sm:$0xff] }
 0x384   :  { %21699 = vmatprep.subr.msk.bf16.mxu1 %vm136_vm0, %v21693_v30  ;;  %v28937_v30 = vld [vmem:[%s32987_s1 + $0x8] ss:$16 sps:$4 sm:$0xff]  }
 0x386   :  { %21697 = vmatmul.mubr.msk.bf16.gmra.mrb[88].mxu0 %vm123_vm1, %v25707_v54 }
 0x387   :  { %7883 = vmatprep.mubr.bf16.mxu0 %v26229_v1  ;;  %7897 = vmatpush1.bf16.msra.mxu1 %v7816_v26 }
 0x388   :  { %8169 = vmatprep.subr.bf16.mxu1 %v28306_v29  ;;  %v21764_v29 = vld [vmem:[%s32987_s1 + $0x70] sm:$0x33] }
 0x389   :  { %v21774_v12 = vcombine.low %v28697_v49, %v21764_v29 }
 0x38a   :  { %21663 = vmatmul.mubr.msk.bf16.gmra.mrb[96].mxu1 %vm123_vm1, %v28561_v27  ;;  %v21775_v27 = vcombine.high %v28697_v49, %v21764_v29  ;;  %v28950_v29 = vld [vmem:[%s32988_s0 + $0xd0] sm:$0xff]  }
 0x38b   :  { %7671 = vmatprep.mubr.bf16.mxu1 %v26229_v1 }
 0x38e   :  { %21698 = vmatmul.mubr.msk.bf16.gmra.mrb[92].mxu0 %vm123_vm1, %v25708_v40 }
 0x38f   :  { %8128 = vmatprep.mubr.bf16.mxu0 %v26229_v1 }
 0x392   :  { %21664 = vmatmul.mubr.msk.bf16.gmra.mrb[100].mxu1 %vm123_vm1, %v28591_v34  ;;  %v8452_v34 = vsel %vm136_vm0, %v21774_v12, 0 }
 0x393   :  { %7681 = vmatprep.mubr.bf16.mxu1 %v26229_v1 }
 0x396   :  { %21733 = vmatmul.mubr.msk.bf16.vlgmr.msra.gmra.mrb[80].mxu0 %vm123_vm1, %v25709_v38 }
 0x397   :  { %8464 = vmatpush1.bf16.msra.mxu0 %v28330_v7  ;;  %8138 = vmatprep.mubr.bf16.mxu0 %v26229_v1  ;;  %v21719_v7 = vld [vmem:[%s32987_s1 + $0x138] sm:$0x33] }
 0x398   :  { %21778 = vmatprep.subr.msk.bf16.mxu0 %vm136_vm0, %v21775_v27  ;;  %v21730_v61 = vcombine.low %v28350_v23, %v21719_v7 }
 0x39a   :  { %21665 = vmatmul.mubr.msk.bf16.gmra.mrb[104].mxu1 %vm123_vm1, %v28620_v55  ;;  %v21731_v55 = vcombine.high %v28350_v23, %v21719_v7  ;;  %v8091_v42 = vsel %vm136_vm0, %v21730_v61, 0  ;;  %v28751_v23 = vld [vmem:[%s32987_s1 + $0x4c] ss:$16 sps:$4 sm:$0xff]   ;;  %v28983_v7 = vld [vmem:[%s32987_s1 + $0xe0] sm:$0xff] }
 0x39b   :  { %7926 = vmatprep.mubr.bf16.mxu1 %v26229_v1  ;;  %8466 = vmatpush1.bf16.msra.mxu0 %v8452_v34  ;;  %v28963_v34 = vld [vmem:[%s32987_s1 + $0x8c] ss:$16 sps:$4 sm:$0xff]   ;;  %v28993_v61 = vld [vmem:[%s32988_s0 + $0xe0] sm:$0xff]  }
 0x39c   :  { %8689 = vmatprep.subr.bf16.mxu0 %v28718_v0 }
 0x39e   :  { %21734 = vmatmul.mubr.msk.bf16.gmra.mrb[84].mxu0 %vm123_vm1, %v28725_v15 }
 0x39f   :  { %8148 = vmatprep.mubr.bf16.mxu0 %v26229_v1 }
 0x3a2   :  { %21700 = vmatmul.mubr.msk.bf16.vlgmr.msra.gmra.mrb[92].mxu1 %vm123_vm1, %v28646_v20 }
 0x3a3   :  { %7936 = vmatprep.mubr.bf16.mxu1 %v26229_v1  ;;  %8170 = vmatpush1.bf16.msra.mxu1 %v28360_v56  ;;  %v28761_v56 = vld [vmem:[%s32988_s0 + $0xf8] sm:$0xff]  }
 0x3a4   :  { %21737 = vmatprep.subr.msk.bf16.mxu1 %vm136_vm0, %v21731_v55  ;;  %v21862_v55 = vld [vmem:[%s32987_s1 + $0xf0] sm:$0x33] }
 0x3a6   :  { %21735 = vmatmul.mubr.msk.bf16.gmra.mrb[88].mxu0 %vm123_vm1, %v28742_v8 }
 0x3a7   :  { %8158 = vmatprep.mubr.bf16.mxu0 %v26229_v1  ;;  %8172 = vmatpush1.bf16.msra.mxu1 %v8091_v42  ;;  %v21873_v42 = vcombine.high %v28983_v7, %v21862_v55 }
 0x3a8   :  { %8536 = vmatprep.subr.bf16.mxu1 %v28751_v23 }
 0x3aa   :  { %21701 = vmatmul.mubr.msk.bf16.gmra.mrb[96].mxu1 %vm123_vm1, %v25706_v48  ;;  %v28926_v48 = vld [vmem:[%s32987_s1 + $0x28] sm:$0xff] }
 0x3ab   :  { %7946 = vmatprep.mubr.bf16.mxu1 %v26229_v1  ;;  %v21799_v33 = vcombine.high %v28926_v48, %v8366_v11 }
 0x3ae   :  { %21736 = vmatmul.mubr.msk.bf16.gmra.mrb[92].mxu0 %vm123_vm1, %v28761_v56 }
 0x3af   :  { %8495 = vmatprep.mubr.bf16.mxu0 %v26229_v1 }
 0x3b2   :  { %21702 = vmatmul.mubr.msk.bf16.gmra.mrb[100].mxu1 %vm123_vm1, %v25707_v54  ;;  %v21798_v54 = vcombine.low %v28926_v48, %v8366_v11 }
 0x3b3   :  { %7956 = vmatprep.mubr.bf16.mxu1 %v26229_v1 }
 0x3b4   :  { %v8684_v12 = vsel %vm136_vm0, %v21798_v54, 0 }
 0x3b6   :  { %21779 = vmatmul.mubr.msk.bf16.vlgmr.msra.gmra.mrb[96].mxu0 %vm123_vm1, %v28779_v46 }
 0x3b7   :  { %8690 = vmatpush1.bf16.msra.mxu0 %v28784_v43  ;;  %8505 = vmatprep.mubr.bf16.mxu0 %v26229_v1 }
 0x3b8   :  { %21800 = vmatprep.subr.msk.bf16.mxu0 %vm136_vm0, %v21797_v58 }
 0x3ba   :  { %21703 = vmatmul.mubr.msk.bf16.gmra.mrb[104].mxu1 %vm123_vm1, %v25708_v40 }
 0x3bb   :  { %8201 = vmatprep.mubr.bf16.mxu1 %v26229_v1  ;;  %8692 = vmatpush1.bf16.msra.mxu0 %v8678_v9 }
 0x3bc   :  { %8931 = vmatprep.subr.bf16.mxu0 %v28798_v44 }
 0x3be   :  { %21780 = vmatmul.mubr.msk.bf16.gmra.mrb[100].mxu0 %vm123_vm1, %v28804_v57 }
 0x3bf   :  { %8515 = vmatprep.mubr.bf16.mxu0 %v26229_v1 }
 0x3c2   :  { %21738 = vmatmul.mubr.msk.bf16.vlgmr.msra.gmra.mrb[92].mxu1 %vm123_vm1, %v25709_v38 }
 0x3c3   :  { %8211 = vmatprep.mubr.bf16.mxu1 %v26229_v1  ;;  %8537 = vmatpush1.bf16.msra.mxu1 %v28822_v62 }
 0x3c4   :  { %21783 = vmatprep.subr.msk.bf16.mxu1 %vm136_vm0, %v21777_v3 }
 0x3c6   :  { %21781 = vmatmul.mubr.msk.bf16.gmra.mrb[104].mxu0 %vm123_vm1, %v28830_v6 }
 0x3c7   :  { %8525 = vmatprep.mubr.bf16.mxu0 %v26229_v1  ;;  %8539 = vmatpush1.bf16.msra.mxu1 %v8458_v60  ;;  %v29023_v60 = vld [vmem:[%s32988_s0 + $0xe8] sm:$0xff]  }
 0x3c8   :  { %8762 = vmatprep.subr.bf16.mxu1 %v28839_v36 }
 0x3c9   :  { %v28845_v25 = vpop.f32.mrb[64].mxu0 }
 0x3ca   :  { %v28847_v37 = vpop.f32.mrb[65].mxu0  ;;  %21739 = vmatmul.mubr.msk.bf16.gmra.mrb[96].mxu1 %vm123_vm1, %v28725_v15  ;;  %v28974_v15 = vld [vmem:[%s32988_s0 + $0xd8] sm:$0xff]  }
 0x3cb   :  { %v28856_v17 = vpop.f32.mrb[66].mxu0  ;;  %8221 = vmatprep.mubr.bf16.mxu1 %v26229_v1 }
 0x3cc   :  { %v28859_v24 = vpop.f32.mrb[67].mxu0 }
 0x3ce   :  { %21782 = vmatmul.mubr.msk.bf16.gmra.mrb[108].mxu0 %vm123_vm1, %v28854_v21 }
 0x3cf   :  { %8721 = vmatprep.mubr.bf16.mxu0 %v26229_v1 }
 0x3d1   :  { %v28864_v20 = vpop.f32.mrb[68].mxu0 }
 0x3d2   :  { %v28874_v52 = vpop.f32.mrb[69].mxu0  ;;  %21740 = vmatmul.mubr.msk.bf16.gmra.mrb[100].mxu1 %vm123_vm1, %v28742_v8  ;;  %v28998_v8 = vld [vmem:[%s32987_s1 + $0xc0] ss:$16 sps:$4 sm:$0xff]  }
 0x3d3   :  { %v28883_v59 = vpop.f32.mrb[70].mxu0  ;;  %8231 = vmatprep.mubr.bf16.mxu1 %v26229_v1 }
 0x3d4   :  { %v28891_v50 = vpop.f32.mrb[71].mxu0 }
 0x3d6   :  { %21801 = vmatmul.mubr.msk.bf16.vlgmr.msra.gmra.mrb[96].mxu0 %vm123_vm1, %v28881_v18 }
 0x3d7   :  { %8932 = vmatpush1.bf16.msra.mxu0 %v28888_v4  ;;  %8731 = vmatprep.mubr.bf16.mxu0 %v26229_v1 }
 0x3d8   :  { %21838 = vmatprep.subr.msk.bf16.mxu0 %vm136_vm0, %v21835_v22 }
 0x3d9   :  { %v28906_v53 = vpop.f32.mrb[72].mxu0 }
 0x3da   :  { %v28908_v28 = vpop.f32.mrb[73].mxu0  ;;  %21741 = vmatmul.mubr.msk.bf16.gmra.mrb[104].mxu1 %vm123_vm1, %v28761_v56  ;;  %v21872_v56 = vcombine.low %v28983_v7, %v21862_v55  ;;  %v29063_v55 = vld [vmem:[%s32988_s0 + $0xf0] sm:$0xff]  }
 0x3db   :  { %v28917_v39 = vpop.f32.mrb[74].mxu0  ;;  %8568 = vmatprep.mubr.bf16.mxu1 %v26229_v1  ;;  %8934 = vmatpush1.bf16.msra.mxu0 %v8920_v47  ;;  %v29046_v47 = vld [vmem:[%s32987_s1 + $0x88] ss:$16 sps:$4 sm:$0xff]  }
 0x3dc   :  { %v28920_v63 = vpop.f32.mrb[75].mxu0  ;;  %9206 = vmatprep.subr.bf16.mxu0 %v28904_v10  ;;  %v9195_v3 = vsel %vm136_vm0, %v21872_v56, 0 }
 0x3de   :  { %21802 = vmatmul.mubr.msk.bf16.gmra.mrb[100].mxu0 %vm123_vm1, %v28915_v14 }
 0x3df   :  { %8741 = vmatprep.mubr.bf16.mxu0 %v26229_v1 }
 0x3e1   :  { %v28941_v26 = vpop.f32.mrb[76].mxu0 }
 0x3e2   :  { %v28943_v40 = vpop.f32.mrb[77].mxu0  ;;  %21784 = vmatmul.mubr.msk.bf16.vlgmr.msra.gmra.mrb[108].mxu1 %vm123_vm1, %v28779_v46 }
 0x3e3   :  { %v28952_v38 = vpop.f32.mrb[78].mxu0  ;;  %8578 = vmatprep.mubr.bf16.mxu1 %v26229_v1  ;;  %8763 = vmatpush1.bf16.msra.mxu1 %v28937_v30 }
 0x3e4   :  { %v28956_v27 = vpop.f32.mrb[79].mxu0  ;;  %21805 = vmatprep.subr.msk.bf16.mxu1 %vm136_vm0, %v21799_v33 }
 0x3e6   :  { %21803 = vmatmul.mubr.msk.bf16.gmra.mrb[104].mxu0 %vm123_vm1, %v28950_v29 }
 0x3e7   :  { %8751 = vmatprep.mubr.bf16.mxu0 %v26229_v1  ;;  %8765 = vmatpush1.bf16.msra.mxu1 %v8684_v12 }
 0x3e8   :  { %9004 = vmatprep.subr.bf16.mxu1 %v28963_v34 }
 0x3ea   :  { %21785 = vmatmul.mubr.msk.bf16.gmra.mrb[112].mxu1 %vm123_vm1, %v28804_v57 }
 0x3eb   :  { %8588 = vmatprep.mubr.bf16.mxu1 %v26229_v1 }
 0x3ee   :  { %21804 = vmatmul.mubr.msk.bf16.gmra.mrb[108].mxu0 %vm123_vm1, %v28974_v15 }
 0x3ef   :  { %8963 = vmatprep.mubr.bf16.mxu0 %v26229_v1 }
 0x3f2   :  { %21786 = vmatmul.mubr.msk.bf16.gmra.mrb[116].mxu1 %vm123_vm1, %v28830_v6 }
 0x3f3   :  { %8598 = vmatprep.mubr.bf16.mxu1 %v26229_v1 }
 0x3f5   :  { %v6818_v45 = vpop.f32.mrb[76].mxu1 }
 0x3f6   :  { %v6889_v46 = vmax.f32 %v28845_v25, %v6818_v45  ;;  %v6820_v58 = vpop.f32.mrb[77].mxu1  ;;  %21839 = vmatmul.mubr.msk.bf16.vlgmr.msra.gmra.mrb[96].mxu0 %vm123_vm1, %v28993_v61 }
 0x3f7   :  { %v6890_v19 = vmax.f32 %v28847_v37, %v6820_v58  ;;  %v6822_v9 = vpop.f32.mrb[78].mxu1  ;;  %9207 = vmatpush1.bf16.msra.mxu0 %v28998_v8  ;;  %8973 = vmatprep.mubr.bf16.mxu0 %v26229_v1  ;;  %v29030_v37 = vld [vmem:[%s32987_s1 + $0xa8] sm:$0xff] }
 0x3f8   :  { %v6891_v57 = vmax.f32 %v28856_v17, %v6822_v9  ;;  %v6824_v32 = vpop.f32.mrb[79].mxu1  ;;  %21876 = vmatprep.subr.msk.bf16.mxu0 %vm136_vm0, %v21873_v42 }
 0x3f9   :  { %v6892_v6 = vmax.f32 %v28859_v24, %v6824_v32 }
 0x3fa   :  { %21787 = vmatmul.mubr.msk.bf16.gmra.mrb[120].mxu1 %vm123_vm1, %v28854_v21  ;;  %v21825_v21 = vld [vmem:[%s32987_s1 + $0xb8] sm:$0x33] }
 0x3fb   :  { %8794 = vmatprep.mubr.bf16.mxu1 %v26229_v1  ;;  %9209 = vmatpush1.bf16.msra.mxu0 %v9195_v3  ;;  %v21837_v33 = vcombine.high %v29030_v37, %v21825_v21  ;;  %v21836_v54 = vcombine.low %v29030_v37, %v21825_v21 }
 0x3fc   :  { %9481 = vmatprep.subr.bf16.mxu0 %v29015_v16 }
 0x3fd   :  { %v6828_v25 = vpop.f32.mrb[80].mxu1 }
 0x3fe   :  { %v6893_v17 = vmax.f32 %v28864_v20, %v6828_v25  ;;  %v6830_v24 = vpop.f32.mrb[81].mxu1  ;;  %21840 = vmatmul.mubr.msk.bf16.gmra.mrb[100].mxu0 %vm123_vm1, %v29023_v60 }
 0x3ff   :  { %v6894_v22 = vmax.f32 %v28874_v52, %v6830_v24  ;;  %v6832_v51 = vpop.f32.mrb[82].mxu1  ;;  %8983 = vmatprep.mubr.bf16.mxu0 %v26229_v1  ;;  %v29056_v52 = vrot.slane %v6905_v31, %v27264_v41 }
 0x400   :  { %v6895_v20 = vmax.f32 %v28883_v59, %v6832_v51  ;;  %v29049_v11 = vpop.f32.mrb[83].mxu1  ;;  %v29066_v59 = vrot.slane %v6905_v31, %v27272_v5 }
 0x401   :  { %v6896_v12 = vmax.f32 %v28891_v50, %v29049_v11  ;;  %v8926_v50 = vsel %vm136_vm0, %v21836_v54, 0  ;;  %v6917_v56 = vadd.f32 %v29056_v52, %v6889_v46  ;;  %v6919_v25 = vadd.f32 %v29056_v52, %v6891_v57 }
 0x402   :  { %21806 = vmatmul.mubr.msk.bf16.vlgmr.msra.gmra.mrb[108].mxu1 %vm123_vm1, %v28881_v18  ;;  %v29075_v18 = vld [vmem:[%s32987_s1 + $0xcc] ss:$16 sps:$4 sm:$0xff]   ;;  %v6918_v9 = vadd.f32 %v29066_v59, %v6890_v19 }
 0x403   :  { %8804 = vmatprep.mubr.bf16.mxu1 %v26229_v1  ;;  %9005 = vmatpush1.bf16.msra.mxu1 %v29046_v47  ;;  %v6935_v54 = vmax.f32 %v6919_v25, 0.0 }
 0x404   :  { %21843 = vmatprep.subr.msk.bf16.mxu1 %vm136_vm0, %v21837_v33  ;;  %v6934_v57 = vmax.f32 %v6918_v9, 0.0  ;;  %v6922_v9 = vadd.f32 %v29066_v59, %v6894_v22  ;;  %v6924_v22 = vadd.f32 %v29066_v59, %v6896_v12 }
 0x405   :  { %v6838_v42 = vpop.f32.mrb[84].mxu1 }
 0x406   :  { %v6897_v45 = vmax.f32 %v28906_v53, %v6838_v42  ;;  %v6840_v58 = vpop.f32.mrb[85].mxu1  ;;  %21841 = vmatmul.mubr.msk.bf16.gmra.mrb[104].mxu0 %vm123_vm1, %v29063_v55  ;;  %v6920_v53 = vadd.f32 %v29066_v59, %v6892_v6 }
 0x407   :  { %v6898_v32 = vmax.f32 %v28908_v28, %v6840_v58  ;;  %v6842_v3 = vpop.f32.mrb[86].mxu1  ;;  %8993 = vmatprep.mubr.bf16.mxu0 %v26229_v1  ;;  %9007 = vmatpush1.bf16.msra.mxu1 %v8926_v50  ;;  %v6933_v28 = vmax.f32 %v6917_v56, 0.0 }
 0x408   :  { %v6925_v21 = vadd.f32 %v29056_v52, %v6897_v45  ;;  %v6899_v46 = vmax.f32 %v28917_v39, %v6842_v3  ;;  %v6844_v24 = vpop.f32.mrb[87].mxu1  ;;  %9279 = vmatprep.subr.bf16.mxu1 %v29075_v18  ;;  %v29097_v39 = vld [vmem:[%s32988_s0 + $0xf8] sm:$0xff]   ;;  %v6936_v42 = vmax.f32 %v6920_v53, 0.0  ;;  %v6923_v53 = vadd.f32 %v29056_v52, %v6895_v20 }
 0x409   :  { %v6926_v31 = vadd.f32 %v29066_v59, %v6898_v32  ;;  %v6900_v19 = vmax.f32 %v28920_v63, %v6844_v24 }
 0x40a   :  { %v6941_v51 = vmax.f32 %v6925_v21, 0.0  ;;  %v6927_v11 = vadd.f32 %v29056_v52, %v6899_v46  ;;  %21807 = vmatmul.mubr.msk.bf16.gmra.mrb[112].mxu1 %vm123_vm1, %v28915_v14  ;;  %v6921_v14 = vadd.f32 %v29056_v52, %v6893_v17 }
 0x40b   :  { %v6942_v33 = vmax.f32 %v6926_v31, 0.0  ;;  %v6928_v6 = vadd.f32 %v29066_v59, %v6900_v19  ;;  %8814 = vmatprep.mubr.bf16.mxu1 %v26229_v1 }
 0x40c   :  { %v6949_v63 = vmax.f32 %v6933_v28, %v6941_v51  ;;  %v6943_v50 = vmax.f32 %v6927_v11, 0.0  ;;  %v29114_v28 = vld [vmem:[%s32987_s1 + $0x120] sm:$0xff] }
 0x40d   :  { %v6950_v56 = vmax.f32 %v6934_v57, %v6942_v33  ;;  %v6944_v45 = vmax.f32 %v6928_v6, 0.0  ;;  %v6848_v58 = vpop.f32.mrb[88].mxu1  ;;  %v6937_v57 = vmax.f32 %v6921_v14, 0.0  ;;  %v29128_v6 = vld [vmem:[%s32988_s0 + $0xf0] sm:$0xff]  }
 0x40e   :  { %v6951_v32 = vmax.f32 %v6935_v54, %v6943_v50  ;;  %v6901_v3 = vmax.f32 %v28941_v26, %v6848_v58  ;;  %v6850_v21 = vpop.f32.mrb[89].mxu1  ;;  %21842 = vmatmul.mubr.msk.bf16.gmra.mrb[108].mxu0 %vm123_vm1, %v29097_v39  ;;  %v6938_v54 = vmax.f32 %v6922_v9, 0.0  ;;  %v29149_v9 = vld [vmem:[%s32987_s1 + $0x44] ss:$16 sps:$4 sm:$0xff]  }
 0x40f   :  { %v6952_v46 = vmax.f32 %v6936_v42, %v6944_v45  ;;  %v6902_v25 = vmax.f32 %v28943_v40, %v6850_v21  ;;  %v6852_v24 = vpop.f32.mrb[90].mxu1  ;;  %9238 = vmatprep.mubr.bf16.mxu0 %v26229_v1  ;;  %v21900_v40 = vld [vmem:[%s32987_s1 + $0x130] sm:$0x33]  ;;  %v6940_v45 = vmax.f32 %v6924_v22, 0.0 }
 0x410   :  { %v6957_v31 = vpack.c.bf16 %v6951_v32, %v6949_v63  ;;  %v6929_v17 = vadd.f32 %v29056_v52, %v6901_v3  ;;  %v6903_v19 = vmax.f32 %v28952_v38, %v6852_v24  ;;  %v6854_v26 = vpop.f32.mrb[91].mxu1  ;;  %v29162_v24 = vld [vmem:[%s32987_s1 + $0xe8] sm:$0xff]  ;;  %v21946_v22 = vld [vmem:[%s32987_s1 + $0x70] sm:$0x33] }
 0x411   :  { %v6958_v51 = vpack.c.bf16 %v6952_v46, %v6950_v56  ;;  %v6930_v20 = vadd.f32 %v29066_v59, %v6902_v25  ;;  %v6904_v11 = vmax.f32 %v28956_v27, %v6854_v26  ;;  %v29135_v27 = vld [vmem:[%s32987_s1 + $0x100] ss:$16 sps:$4 sm:$0xff]   ;;  %v21910_v56 = vcombine.low %v29114_v28, %v21900_v40  ;;  %v25760_v25 = vld [vmem:[%s32988_s0 + $0xf8] sm:$0xff]  }
 0x412   :  { %6962 = vst [vmem:[#allocation2 + $0x80] sm:$0xff] %v6957_v31  ;;  %v6945_v38 = vmax.f32 %v6929_v17, 0.0  ;;  %v6931_v33 = vadd.f32 %v29056_v52, %v6903_v19  ;;  %21808 = vmatmul.mubr.msk.bf16.gmra.mrb[116].mxu1 %vm123_vm1, %v28950_v29  ;;  %v21911_v29 = vcombine.high %v29114_v28, %v21900_v40  ;;  %v6939_v52 = vmax.f32 %v6923_v53, 0.0  ;;  %v29172_v53 = vld [vmem:[%s32987_s1 + $0xc8] ss:$16 sps:$4 sm:$0xff]   ;;  %v25762_v19 = vld [vmem:[%s32988_s0 + $0x100] sm:$0xff]  }
 0x413   :  { %6963 = vst.msk [vmem:[#allocation2 + $0x88] sm:$0xff] %vm1422_vm2, %v6958_v51  ;;  %v6946_v12 = vmax.f32 %v6930_v20, 0.0  ;;  %v6932_v63 = vadd.f32 %v29066_v59, %v6904_v11  ;;  %8824 = vmatprep.mubr.bf16.mxu1 %v26229_v1  ;;  %v9470_v21 = vsel %vm136_vm0, %v21910_v56, 0  ;;  %v29188_v40 = vld [vmem:[%s32987_s1 + $0x10c] ss:$16 sps:$4 sm:$0xff]   ;;  %v21957_v20 = vcombine.high %v28697_v49, %v21946_v22 }
 0x414   :  { %v6953_v50 = vmax.f32 %v6937_v57, %v6945_v38  ;;  %v6947_v42 = vmax.f32 %v6931_v33, 0.0  ;;  %v29212_v51 = vld [vmem:[%s32987_s1 + $0x40] ss:$16 sps:$4 sm:$0xff]   ;;  %v21956_v11 = vcombine.low %v28697_v49, %v21946_v22  ;;  %v25774_v57 = vld [vmem:[%s32988_s0 + $0x108] sm:$0xff]   ;;  %v21901_v38 = vld [vmem:[%s32987_s1 + $0x138] sm:$0x33] }
 0x415   :  { %v6954_v58 = vmax.f32 %v6938_v54, %v6946_v12  ;;  %v6948_v14 = vmax.f32 %v6932_v63, 0.0  ;;  %v29232_v49 = vld [vmem:[%s32987_s1 + $0x128] sm:$0xff]  ;;  %v25776_v54 = vld [vmem:[%s32988_s0 + $0x110] sm:$0xff]   ;;  %v9751_v22 = vld [vmem:[%s32987_s1 + $0x38] sm:$0x33] }
 0x416   :  { %v6955_v32 = vmax.f32 %v6939_v52, %v6947_v42  ;;  %21877 = vmatmul.mubr.msk.bf16.vlgmr.msra.gmra.mrb[96].mxu0 %vm123_vm1, %v29128_v6  ;;  %v21912_v33 = vcombine.low %v29232_v49, %v21901_v38  ;;  %v9750_v63 = vld [vmem:[%s32987_s1 + $0x30] sm:$0x33]  ;;  %v29287_v42 = vld [vmem:[%s32988_s0 + $0xf8] sm:$0xff]  }
 0x417   :  { %v6956_v59 = vmax.f32 %v6940_v45, %v6948_v14  ;;  %9482 = vmatpush1.bf16.msra.mxu0 %v29135_v27  ;;  %9248 = vmatprep.mubr.bf16.mxu0 %v26229_v1  ;;  %v21978_v52 = vcombine.low %v28770_v35, %v9750_v63  ;;  %v29303_v45 = vld [vmem:[%s32988_s0 + $0x100] sm:$0xff]  }
 0x418   :  { %v6959_v3 = vpack.c.bf16 %v6955_v32, %v6953_v50  ;;  %21914 = vmatprep.subr.msk.bf16.mxu0 %vm136_vm0, %v21911_v29  ;;  %v9476_v12 = vsel %vm136_vm0, %v21912_v33, 0  ;;  %v21979_v29 = vcombine.high %v28770_v35, %v9750_v63  ;;  %v21947_v35 = vld [vmem:[%s32987_s1 + $0x78] sm:$0x33] }
 0x419   :  { %v6960_v46 = vpack.c.bf16 %v6956_v59, %v6954_v58  ;;  %v10063_v50 = vsel %vm136_vm0, %v21978_v52, 0  ;;  %v21958_v56 = vcombine.low %v28811_v2, %v21947_v35  ;;  %v22006_v59 = vld [vmem:[%s32987_s1 + $0xb0] sm:$0x33] }
 0x41a   :  { %6964 = vst [vmem:[#allocation2 + $0x90] sm:$0xff] %v6959_v3  ;;  %21809 = vmatmul.mubr.msk.bf16.gmra.mrb[120].mxu1 %vm123_vm1, %v28974_v15  ;;  %v21863_v15 = vld [vmem:[%s32987_s1 + $0xf8] sm:$0x33] }
 0x41b   :  { %6965 = vst.msk [vmem:[#allocation2 + $0x98] sm:$0xff] %vm1422_vm2, %v6960_v46  ;;  %9036 = vmatprep.mubr.bf16.mxu1 %v26229_v1  ;;  %9484 = vmatpush1.bf16.msra.mxu0 %v9470_v21  ;;  %v21875_v31 = vcombine.high %v29162_v24, %v21863_v15  ;;  %v21874_v17 = vcombine.low %v29162_v24, %v21863_v15  ;;  %v29342_v21 = vld [vmem:[%s32988_s0 + $0xe0] sm:$0xff]  }
 0x41c   :  { %9848 = vmatprep.subr.bf16.mxu0 %v29149_v9  ;;  %v22017_v15 = vcombine.high %v28869_v13, %v22006_v59 }
 0x41d   :  { %v9201_v26 = vsel %vm136_vm0, %v21874_v17, 0 }
 0x41e   :  { %21878 = vmatmul.mubr.msk.bf16.gmra.mrb[100].mxu0 %vm123_vm1, %v25760_v25 }
 0x41f   :  { %9258 = vmatprep.mubr.bf16.mxu0 %v26229_v1 }
 0x422   :  { %21844 = vmatmul.mubr.msk.bf16.vlgmr.msra.gmra.mrb[108].mxu1 %vm123_vm1, %v28993_v61  ;;  %v25765_v61 = vld [vmem:[%s32988_s0 + $0x108] sm:$0xff]  }
 0x423   :  { %9046 = vmatprep.mubr.bf16.mxu1 %v26229_v1  ;;  %9280 = vmatpush1.bf16.msra.mxu1 %v29172_v53 }
 0x424   :  { %21881 = vmatprep.subr.msk.bf16.mxu1 %vm136_vm0, %v21875_v31  ;;  %v22016_v31 = vcombine.low %v28869_v13, %v22006_v59  ;;  %v29365_v13 = vld [vmem:[%s32988_s0 + $0xe8] sm:$0xff]  }
 0x426   :  { %21879 = vmatmul.mubr.msk.bf16.gmra.mrb[104].mxu0 %vm123_vm1, %v25762_v19  ;;  %v10305_v17 = vsel %vm136_vm0, %v22016_v31, 0 }
 0x427   :  { %9268 = vmatprep.mubr.bf16.mxu0 %v26229_v1  ;;  %9282 = vmatpush1.bf16.msra.mxu1 %v9201_v26 }
 0x428   :  { %9554 = vmatprep.subr.bf16.mxu1 %v29188_v40 }
 0x42a   :  { %21845 = vmatmul.mubr.msk.bf16.gmra.mrb[112].mxu1 %vm123_vm1, %v29023_v60  ;;  %v25769_v60 = vld [vmem:[%s32988_s0 + $0x100] sm:$0xff]  }
 0x42b   :  { %9056 = vmatprep.mubr.bf16.mxu1 %v26229_v1 }
 0x42e   :  { %21880 = vmatmul.mubr.msk.bf16.gmra.mrb[108].mxu0 %vm123_vm1, %v25765_v61 }
 0x42f   :  { %9513 = vmatprep.mubr.bf16.mxu0 %v26229_v1 }
 0x432   :  { %21846 = vmatmul.mubr.msk.bf16.gmra.mrb[116].mxu1 %vm123_vm1, %v29063_v55  ;;  %v9837_v55 = vsel %vm136_vm0, %v21956_v11, 0 }
 0x433   :  { %9066 = vmatprep.mubr.bf16.mxu1 %v26229_v1 }
 0x436   :  { %21915 = vmatmul.mubr.msk.bf16.vlgmr.msra.gmra.mrb[96].mxu0 %vm123_vm1, %v25769_v60 }
 0x437   :  { %9849 = vmatpush1.bf16.msra.mxu0 %v29212_v51  ;;  %9523 = vmatprep.mubr.bf16.mxu0 %v26229_v1 }
 0x438   :  { %21960 = vmatprep.subr.msk.bf16.mxu0 %vm136_vm0, %v21957_v20  ;;  %v21980_v20 = vcombine.low %v28926_v48, %v9751_v22 }
 0x43a   :  { %21847 = vmatmul.mubr.msk.bf16.gmra.mrb[120].mxu1 %vm123_vm1, %v29097_v39  ;;  %v29242_v39 = vld [vmem:[%s32987_s1 + $0x108] ss:$16 sps:$4 sm:$0xff]  }
 0x43b   :  { %9311 = vmatprep.mubr.bf16.mxu1 %v26229_v1  ;;  %9851 = vmatpush1.bf16.msra.mxu0 %v9837_v55 }
 0x43c   :  { %10074 = vmatprep.subr.bf16.mxu0 %v28718_v0  ;;  %v21913_v0 = vcombine.high %v29232_v49, %v21901_v38 }
 0x43e   :  { %21916 = vmatmul.mubr.msk.bf16.gmra.mrb[100].mxu0 %vm123_vm1, %v25774_v57 }
 0x43f   :  { %9533 = vmatprep.mubr.bf16.mxu0 %v26229_v1 }
 0x442   :  { %21882 = vmatmul.mubr.msk.bf16.vlgmr.msra.gmra.mrb[108].mxu1 %vm123_vm1, %v29128_v6  ;;  %v25777_v6 = vld [vmem:[%s32988_s0 + $0x118] sm:$0xff]  }
 0x443   :  { %9321 = vmatprep.mubr.bf16.mxu1 %v26229_v1  ;;  %9555 = vmatpush1.bf16.msra.mxu1 %v29242_v39 }
 0x444   :  { %21919 = vmatprep.subr.msk.bf16.mxu1 %vm136_vm0, %v21913_v0  ;;  %v22044_v0 = vld [vmem:[%s32987_s1 + $0xf0] sm:$0x33] }
 0x445   :  { %v22055_v33 = vcombine.high %v28983_v7, %v22044_v0 }
 0x446   :  { %21917 = vmatmul.mubr.msk.bf16.gmra.mrb[104].mxu0 %vm123_vm1, %v25776_v54 }
 0x447   :  { %9543 = vmatprep.mubr.bf16.mxu0 %v26229_v1  ;;  %9557 = vmatpush1.bf16.msra.mxu1 %v9476_v12 }
 0x448   :  { %9921 = vmatprep.subr.bf16.mxu1 %v28751_v23  ;;  %v29272_v23 = vld [vmem:[%s32988_s0 + $0xf0] sm:$0xff]  }
 0x44a   :  { %21883 = vmatmul.mubr.msk.bf16.gmra.mrb[112].mxu1 %vm123_vm1, %v25760_v25 }
 0x44b   :  { %9331 = vmatprep.mubr.bf16.mxu1 %v26229_v1 }
 0x44e   :  { %21918 = vmatmul.mubr.msk.bf16.gmra.mrb[108].mxu0 %vm123_vm1, %v25777_v6 }
 0x44f   :  { %9880 = vmatprep.mubr.bf16.mxu0 %v26229_v1 }
 0x452   :  { %21884 = vmatmul.mubr.msk.bf16.gmra.mrb[116].mxu1 %vm123_vm1, %v25762_v19 }
 0x453   :  { %9341 = vmatprep.mubr.bf16.mxu1 %v26229_v1 }
 0x456   :  { %21961 = vmatmul.mubr.msk.bf16.vlgmr.msra.gmra.mrb[112].mxu0 %vm123_vm1, %v29272_v23 }
 0x457   :  { %10075 = vmatpush1.bf16.msra.mxu0 %v28784_v43  ;;  %9890 = vmatprep.mubr.bf16.mxu0 %v26229_v1  ;;  %v21959_v43 = vcombine.high %v28811_v2, %v21947_v35  ;;  %v29443_v35 = vld [vmem:[%s32988_s0 + $0x108] sm:$0xff]  }
 0x458   :  { %21982 = vmatprep.subr.msk.bf16.mxu0 %vm136_vm0, %v21979_v29 }
 0x45a   :  { %21885 = vmatmul.mubr.msk.bf16.gmra.mrb[120].mxu1 %vm123_vm1, %v25765_v61 }
 0x45b   :  { %9586 = vmatprep.mubr.bf16.mxu1 %v26229_v1  ;;  %10077 = vmatpush1.bf16.msra.mxu0 %v10063_v50 }
 0x45c   :  { %10316 = vmatprep.subr.bf16.mxu0 %v28798_v44  ;;  %v9843_v44 = vsel %vm136_vm0, %v21958_v56, 0 }
 0x45e   :  { %21962 = vmatmul.mubr.msk.bf16.gmra.mrb[116].mxu0 %vm123_vm1, %v29287_v42 }
 0x45f   :  { %9900 = vmatprep.mubr.bf16.mxu0 %v26229_v1 }
 0x462   :  { %21920 = vmatmul.mubr.msk.bf16.vlgmr.msra.gmra.mrb[108].mxu1 %vm123_vm1, %v25769_v60  ;;  %v21981_v60 = vcombine.high %v28926_v48, %v9751_v22  ;;  %v10069_v48 = vsel %vm136_vm0, %v21980_v20, 0 }
 0x463   :  { %9596 = vmatprep.mubr.bf16.mxu1 %v26229_v1  ;;  %9922 = vmatpush1.bf16.msra.mxu1 %v28822_v62  ;;  %v29321_v62 = vld [vmem:[%s32988_s0 + $0x108] sm:$0xff]  }
 0x464   :  { %21965 = vmatprep.subr.msk.bf16.mxu1 %vm136_vm0, %v21959_v43  ;;  %v22007_v43 = vld [vmem:[%s32987_s1 + $0xb8] sm:$0x33] }
 0x466   :  { %21963 = vmatmul.mubr.msk.bf16.gmra.mrb[120].mxu0 %vm123_vm1, %v29303_v45 }
 0x467   :  { %9910 = vmatprep.mubr.bf16.mxu0 %v26229_v1  ;;  %9924 = vmatpush1.bf16.msra.mxu1 %v9843_v44  ;;  %v8290_v44 = vld [vmem:[%s32989_s2] sm:$0x3] }
 0x468   :  { %10147 = vmatprep.subr.bf16.mxu1 %v28839_v36  ;;  %v29466_v59 = vrot.slane %v8290_v44, %v27264_v41 }
 0x469   :  { %v29313_v2 = vpop.f32.mrb[80].mxu0 }
 0x46a   :  { %v29315_v58 = vpop.f32.mrb[81].mxu0  ;;  %21921 = vmatmul.mubr.msk.bf16.gmra.mrb[112].mxu1 %vm123_vm1, %v25774_v57 }
 0x46b   :  { %v29323_v14 = vpop.f32.mrb[82].mxu0  ;;  %9606 = vmatprep.mubr.bf16.mxu1 %v26229_v1 }
 0x46c   :  { %v29326_v32 = vpop.f32.mrb[83].mxu0 }
 0x46e   :  { %21964 = vmatmul.mubr.msk.bf16.gmra.mrb[124].mxu0 %vm123_vm1, %v29321_v62 }
 0x46f   :  { %10106 = vmatprep.mubr.bf16.mxu0 %v26229_v1 }
 0x471   :  { %v29331_v36 = vpop.f32.mrb[84].mxu0 }
 0x472   :  { %v29336_v3 = vpop.f32.mrb[85].mxu0  ;;  %21922 = vmatmul.mubr.msk.bf16.gmra.mrb[116].mxu1 %vm123_vm1, %v25776_v54  ;;  %v22054_v54 = vcombine.low %v28983_v7, %v22044_v0 }
 0x473   :  { %v29344_v46 = vpop.f32.mrb[86].mxu0  ;;  %9616 = vmatprep.mubr.bf16.mxu1 %v26229_v1 }
 0x474   :  { %v29347_v25 = vpop.f32.mrb[87].mxu0  ;;  %v10580_v7 = vsel %vm136_vm0, %v22054_v54, 0 }
 0x476   :  { %21983 = vmatmul.mubr.msk.bf16.vlgmr.msra.gmra.mrb[112].mxu0 %vm123_vm1, %v29342_v21 }
 0x477   :  { %10317 = vmatpush1.bf16.msra.mxu0 %v28888_v4  ;;  %10116 = vmatprep.mubr.bf16.mxu0 %v26229_v1 }
 0x478   :  { %22020 = vmatprep.subr.msk.bf16.mxu0 %vm136_vm0, %v22017_v15 }
 0x479   :  { %v29357_v19 = vpop.f32.mrb[88].mxu0 }
 0x47a   :  { %v29359_v26 = vpop.f32.mrb[89].mxu0  ;;  %21923 = vmatmul.mubr.msk.bf16.gmra.mrb[120].mxu1 %vm123_vm1, %v25777_v6 }
 0x47b   :  { %v29367_v61 = vpop.f32.mrb[90].mxu0  ;;  %9953 = vmatprep.mubr.bf16.mxu1 %v26229_v1  ;;  %10319 = vmatpush1.bf16.msra.mxu0 %v10305_v17 }
 0x47c   :  { %v29370_v4 = vpop.f32.mrb[91].mxu0  ;;  %10591 = vmatprep.subr.bf16.mxu0 %v28904_v10  ;;  %v29390_v10 = vld [vmem:[%s32988_s0 + $0xf0] sm:$0xff]  }
 0x47e   :  { %21984 = vmatmul.mubr.msk.bf16.gmra.mrb[116].mxu0 %vm123_vm1, %v29365_v13 }
 0x47f   :  { %10126 = vmatprep.mubr.bf16.mxu0 %v26229_v1 }
 0x481   :  { %v29381_v11 = vpop.f32.mrb[92].mxu0 }
 0x482   :  { %v29383_v55 = vpop.f32.mrb[93].mxu0  ;;  %21966 = vmatmul.mubr.msk.bf16.vlgmr.msra.gmra.mrb[124].mxu1 %vm123_vm1, %v29272_v23 }
 0x483   :  { %v29392_v57 = vpop.f32.mrb[94].mxu0  ;;  %9963 = vmatprep.mubr.bf16.mxu1 %v26229_v1  ;;  %10148 = vmatpush1.bf16.msra.mxu1 %v28937_v30  ;;  %v29409_v30 = vld [vmem:[%s32988_s0 + $0xf8] sm:$0xff]  }
 0x484   :  { %v29396_v38 = vpop.f32.mrb[95].mxu0  ;;  %21987 = vmatprep.subr.msk.bf16.mxu1 %vm136_vm0, %v21981_v60 }
 0x486   :  { %21985 = vmatmul.mubr.msk.bf16.gmra.mrb[120].mxu0 %vm123_vm1, %v29390_v10 }
 0x487   :  { %10136 = vmatprep.mubr.bf16.mxu0 %v26229_v1  ;;  %10150 = vmatpush1.bf16.msra.mxu1 %v10069_v48 }
 0x488   :  { %10389 = vmatprep.subr.bf16.mxu1 %v28963_v34  ;;  %v29423_v34 = vld [vmem:[%s32988_s0 + $0x100] sm:$0xff]  }
 0x48a   :  { %21967 = vmatmul.mubr.msk.bf16.gmra.mrb[128].mxu1 %vm123_vm1, %v29287_v42 }
 0x48b   :  { %9973 = vmatprep.mubr.bf16.mxu1 %v26229_v1 }
 0x48e   :  { %21986 = vmatmul.mubr.msk.bf16.gmra.mrb[124].mxu0 %vm123_vm1, %v29409_v30 }
 0x48f   :  { %10348 = vmatprep.mubr.bf16.mxu0 %v26229_v1 }
 0x492   :  { %21968 = vmatmul.mubr.msk.bf16.gmra.mrb[132].mxu1 %vm123_vm1, %v29303_v45 }
 0x493   :  { %9983 = vmatprep.mubr.bf16.mxu1 %v26229_v1 }
 0x495   :  { %v8203_v12 = vpop.f32.mrb[92].mxu1 }
 0x496   :  { %v8274_v6 = vmax.f32 %v29313_v2, %v8203_v12  ;;  %v8205_v63 = vpop.f32.mrb[93].mxu1  ;;  %22021 = vmatmul.mubr.msk.bf16.vlgmr.msra.gmra.mrb[112].mxu0 %vm123_vm1, %v29423_v34 }
 0x497   :  { %v8275_v23 = vmax.f32 %v29315_v58, %v8205_v63  ;;  %v8207_v29 = vpop.f32.mrb[94].mxu1  ;;  %10592 = vmatpush1.bf16.msra.mxu0 %v28998_v8  ;;  %10358 = vmatprep.mubr.bf16.mxu0 %v26229_v1 }
 0x498   :  { %v8276_v52 = vmax.f32 %v29323_v14, %v8207_v29  ;;  %v8209_v50 = vpop.f32.mrb[95].mxu1  ;;  %22058 = vmatprep.subr.msk.bf16.mxu0 %vm136_vm0, %v22055_v33  ;;  %v22019_v14 = vcombine.high %v29030_v37, %v22007_v43  ;;  %v8302_v15 = vadd.f32 %v29466_v59, %v8274_v6 }
 0x499   :  { %v8277_v42 = vmax.f32 %v29326_v32, %v8209_v50  ;;  %v22018_v32 = vcombine.low %v29030_v37, %v22007_v43 }
 0x49a   :  { %21969 = vmatmul.mubr.msk.bf16.gmra.mrb[136].mxu1 %vm123_vm1, %v29321_v62 }
 0x49b   :  { %10179 = vmatprep.mubr.bf16.mxu1 %v26229_v1  ;;  %10594 = vmatpush1.bf16.msra.mxu0 %v10580_v7  ;;  %v10311_v37 = vsel %vm136_vm0, %v22018_v32, 0 }
 0x49c   :  { %10866 = vmatprep.subr.bf16.mxu0 %v29015_v16 }
 0x49d   :  { %v8213_v8 = vpop.f32.mrb[96].mxu1 }
 0x49e   :  { %v8278_v56 = vmax.f32 %v29331_v36, %v8213_v8  ;;  %v8215_v45 = vpop.f32.mrb[97].mxu1  ;;  %22022 = vmatmul.mubr.msk.bf16.gmra.mrb[116].mxu0 %vm123_vm1, %v29443_v35 }
 0x49f   :  { %v8279_v2 = vmax.f32 %v29336_v3, %v8215_v45  ;;  %v8217_v58 = vpop.f32.mrb[98].mxu1  ;;  %10368 = vmatprep.mubr.bf16.mxu0 %v26229_v1  ;;  %v29473_v3 = vld [vmem:[%s32988_s0 + $0x110] sm:$0xff]  }
 0x4a0   :  { %v8280_v16 = vmax.f32 %v29344_v46, %v8217_v58  ;;  %v29459_v62 = vpop.f32.mrb[99].mxu1  ;;  %v29476_v46 = vrot.slane %v8290_v44, %v27272_v5 }
 0x4a1   :  { %v8281_v36 = vmax.f32 %v29347_v25, %v29459_v62 }
 0x4a2   :  { %21988 = vmatmul.mubr.msk.bf16.vlgmr.msra.gmra.mrb[124].mxu1 %vm123_vm1, %v29342_v21  ;;  %v8303_v17 = vadd.f32 %v29476_v46, %v8275_v23  ;;  %v8307_v58 = vadd.f32 %v29476_v46, %v8279_v2 }
 0x4a3   :  { %10189 = vmatprep.mubr.bf16.mxu1 %v26229_v1  ;;  %10390 = vmatpush1.bf16.msra.mxu1 %v29046_v47  ;;  %v8304_v47 = vadd.f32 %v29466_v59, %v8276_v52  ;;  %v8309_v2 = vadd.f32 %v29476_v46, %v8281_v36 }
 0x4a4   :  { %22025 = vmatprep.subr.msk.bf16.mxu1 %vm136_vm0, %v22019_v14  ;;  %v8319_v63 = vmax.f32 %v8303_v17, 0.0 }
 0x4a5   :  { %v8223_v25 = vpop.f32.mrb[100].mxu1  ;;  %v8320_v29 = vmax.f32 %v8304_v47, 0.0  ;;  %v8323_v47 = vmax.f32 %v8307_v58, 0.0 }
 0x4a6   :  { %v8282_v21 = vmax.f32 %v29357_v19, %v8223_v25  ;;  %v8225_v31 = vpop.f32.mrb[101].mxu1  ;;  %22023 = vmatmul.mubr.msk.bf16.gmra.mrb[120].mxu0 %vm123_vm1, %v29473_v3  ;;  %v8305_v19 = vadd.f32 %v29476_v46, %v8277_v42 }
 0x4a7   :  { %v8283_v22 = vmax.f32 %v29359_v26, %v8225_v31  ;;  %v8227_v60 = vpop.f32.mrb[102].mxu1  ;;  %10378 = vmatprep.mubr.bf16.mxu0 %v26229_v1  ;;  %10392 = vmatpush1.bf16.msra.mxu1 %v10311_v37  ;;  %v8318_v26 = vmax.f32 %v8302_v15, 0.0  ;;  %v8308_v37 = vadd.f32 %v29466_v59, %v8280_v16 }
 0x4a8   :  { %v8310_v20 = vadd.f32 %v29466_v59, %v8282_v21  ;;  %v8284_v48 = vmax.f32 %v29367_v61, %v8227_v60  ;;  %v8229_v0 = vpop.f32.mrb[103].mxu1  ;;  %10664 = vmatprep.subr.bf16.mxu1 %v29075_v18  ;;  %v29502_v61 = vld [vmem:[%s32988_s0 + $0x118] sm:$0xff]   ;;  %v8321_v50 = vmax.f32 %v8305_v19, 0.0  ;;  %v22082_v21 = vld [vmem:[%s32987_s1 + $0x130] sm:$0x33]  ;;  %v8325_v19 = vmax.f32 %v8309_v2, 0.0 }
 0x4a9   :  { %v8311_v33 = vadd.f32 %v29476_v46, %v8283_v22  ;;  %v8285_v54 = vmax.f32 %v29370_v4, %v8229_v0 }
 0x4aa   :  { %v8326_v12 = vmax.f32 %v8310_v20, 0.0  ;;  %v8312_v6 = vadd.f32 %v29466_v59, %v8284_v48  ;;  %21989 = vmatmul.mubr.msk.bf16.gmra.mrb[128].mxu1 %vm123_vm1, %v29365_v13  ;;  %v8306_v13 = vadd.f32 %v29466_v59, %v8278_v56  ;;  %v8324_v48 = vmax.f32 %v8308_v37, 0.0  ;;  %v29693_v37 = vld [vmem:[%s32987_s1 + $0x68] sm:$0xff] }
 0x4ab   :  { %v8327_v18 = vmax.f32 %v8311_v33, 0.0  ;;  %v8313_v23 = vadd.f32 %v29476_v46, %v8285_v54  ;;  %10199 = vmatprep.mubr.bf16.mxu1 %v26229_v1 }
 0x4ac   :  { %v8334_v4 = vmax.f32 %v8318_v26, %v8326_v12  ;;  %v8328_v52 = vmax.f32 %v8312_v6, 0.0  ;;  %v8322_v22 = vmax.f32 %v8306_v13, 0.0  ;;  %v11135_v13 = vld [vmem:[%s32987_s1 + $0x30] sm:$0x33] }
 0x4ad   :  { %v8335_v7 = vmax.f32 %v8319_v63, %v8327_v18  ;;  %v8329_v42 = vmax.f32 %v8313_v23, 0.0  ;;  %v8233_v8 = vpop.f32.mrb[104].mxu1  ;;  %v25797_v23 = vld [vmem:[%s32988_s0 + $0x120] sm:$0xff]  }
 0x4ae   :  { %v8336_v43 = vmax.f32 %v8320_v29, %v8328_v52  ;;  %v8286_v45 = vmax.f32 %v29381_v11, %v8233_v8  ;;  %v8235_v44 = vpop.f32.mrb[105].mxu1  ;;  %22024 = vmatmul.mubr.msk.bf16.gmra.mrb[124].mxu0 %vm123_vm1, %v29502_v61  ;;  %v29607_v52 = vld [vmem:[%s32988_s0 + $0x128] sm:$0xff]   ;;  %v29652_v8 = vld [vmem:[%s32987_s1 + $0x20] sm:$0xff] }
 0x4af   :  { %v8337_v62 = vmax.f32 %v8321_v50, %v8329_v42  ;;  %v8287_v14 = vmax.f32 %v29383_v55, %v8235_v44  ;;  %v8237_v32 = vpop.f32.mrb[106].mxu1  ;;  %10623 = vmatprep.mubr.bf16.mxu0 %v26229_v1  ;;  %v22161_v44 = vcombine.high %v29652_v8, %v11135_v13  ;;  %v22160_v58 = vcombine.low %v29652_v8, %v11135_v13 }
 0x4b0   :  { %v8342_v25 = vpack.c.bf16 %v8336_v43, %v8334_v4  ;;  %v8314_v56 = vadd.f32 %v29466_v59, %v8286_v45  ;;  %v8288_v15 = vmax.f32 %v29392_v57, %v8237_v32  ;;  %v8239_v11 = vpop.f32.mrb[107].mxu1  ;;  %v29528_v57 = vld [vmem:[%s32988_s0 + $0x110] sm:$0xff]   ;;  %v29686_v32 = vld [vmem:[%s32988_s0 + $0x118] sm:$0xff]  }
 0x4b1   :  { %v8343_v31 = vpack.c.bf16 %v8337_v62, %v8335_v7  ;;  %v8315_v55 = vadd.f32 %v29476_v46, %v8287_v14  ;;  %v8289_v17 = vmax.f32 %v29396_v38, %v8239_v11  ;;  %v22093_v38 = vcombine.high %v29114_v28, %v22082_v21  ;;  %v29600_v4 = vld [vmem:[%s32987_s1 + $0x4] ss:$16 sps:$4 sm:$0xff]   ;;  %v29666_v45 = vld [vmem:[%s32987_s1] ss:$16 sps:$4 sm:$0xff]  }
 0x4b2   :  { %8347 = vst [vmem:[#allocation2 + $0xa0] sm:$0xff] %v8342_v25  ;;  %v8330_v16 = vmax.f32 %v8314_v56, 0.0  ;;  %v8316_v60 = vadd.f32 %v29466_v59, %v8288_v15  ;;  %21990 = vmatmul.mubr.msk.bf16.gmra.mrb[132].mxu1 %vm123_vm1, %v29390_v10  ;;  %v22092_v10 = vcombine.low %v29114_v28, %v22082_v21  ;;  %v25796_v28 = vld [vmem:[%s32988_s0 + $0x118] sm:$0xff]   ;;  %v29624_v7 = vld [vmem:[%s32988_s0 + $0x130] sm:$0xff]   ;;  %v11448_v62 = vsel %vm136_vm0, %v22160_v58, 0  ;;  %v29712_v21 = vld [vmem:[%s32988_s0 + $0x120] sm:$0xff]  }
 0x4b3   :  { %8348 = vst.msk [vmem:[#allocation2 + $0xa8] sm:$0xff] %vm1422_vm2, %v8343_v31  ;;  %v8331_v36 = vmax.f32 %v8315_v55, 0.0  ;;  %v8317_v20 = vadd.f32 %v29476_v46, %v8289_v17  ;;  %10209 = vmatprep.mubr.bf16.mxu1 %v26229_v1  ;;  %v29661_v43 = vld [vmem:[%s32988_s0 + $0x110] sm:$0xff]   ;;  %v22129_v25 = vld [vmem:[%s32987_s1 + $0x78] sm:$0x33] }
 0x4b4   :  { %v8338_v59 = vmax.f32 %v8322_v22, %v8330_v16  ;;  %v8332_v0 = vmax.f32 %v8316_v60, 0.0  ;;  %v10855_v6 = vsel %vm136_vm0, %v22092_v10, 0  ;;  %v29680_v14 = vld [vmem:[%s32987_s1 + $0x84] ss:$16 sps:$4 sm:$0xff]   ;;  %v29704_v56 = vld [vmem:[%s32987_s1 + $0x48] ss:$16 sps:$4 sm:$0xff]   ;;  %v22141_v15 = vcombine.high %v29693_v37, %v22129_v25 }
 0x4b5   :  { %v8339_v33 = vmax.f32 %v8323_v47, %v8331_v36  ;;  %v8333_v54 = vmax.f32 %v8317_v20, 0.0  ;;  %v22140_v11 = vcombine.low %v29693_v37, %v22129_v25  ;;  %v29721_v31 = vld [vmem:[%s32987_s1 + $0xc] ss:$16 sps:$4 sm:$0xff]   ;;  %v29751_v47 = vld [vmem:[%s32987_s1 + $0xa0] sm:$0xff]  ;;  %v22188_v36 = vld [vmem:[%s32987_s1 + $0xb0] sm:$0x33] }
 0x4b6   :  { %v8340_v26 = vmax.f32 %v8324_v48, %v8332_v0  ;;  %22059 = vmatmul.mubr.msk.bf16.vlgmr.msra.gmra.mrb[112].mxu0 %vm123_vm1, %v29528_v57  ;;  %v29736_v22 = vld [vmem:[%s32988_s0 + $0x128] sm:$0xff]   ;;  %v22199_v10 = vcombine.high %v29751_v47, %v22188_v36 }
 0x4b7   :  { %v8341_v12 = vmax.f32 %v8325_v19, %v8333_v54  ;;  %10867 = vmatpush1.bf16.msra.mxu0 %v29135_v27  ;;  %10633 = vmatprep.mubr.bf16.mxu0 %v26229_v1  ;;  %v22045_v27 = vld [vmem:[%s32987_s1 + $0xf8] sm:$0x33]  ;;  %v11228_v2 = vsel %vm136_vm0, %v22140_v11, 0  ;;  %v22198_v19 = vcombine.low %v29751_v47, %v22188_v36  ;;  %v29786_v54 = vld [vmem:[%s32987_s1 + $0xc4] ss:$16 sps:$4 sm:$0xff]  }
 0x4b8   :  { %v8344_v46 = vpack.c.bf16 %v8340_v26, %v8338_v59  ;;  %22096 = vmatprep.subr.msk.bf16.mxu0 %vm136_vm0, %v22093_v38  ;;  %v22056_v18 = vcombine.low %v29162_v24, %v22045_v27  ;;  %v29763_v38 = vld [vmem:[%s32988_s0 + $0x100] sm:$0xff]  }
 0x4b9   :  { %v8345_v63 = vpack.c.bf16 %v8341_v12, %v8339_v33  ;;  %v29770_v59 = vld [vmem:[%s32987_s1 + $0x80] ss:$16 sps:$4 sm:$0xff]   ;;  %v11690_v33 = vsel %vm136_vm0, %v22198_v19, 0  ;;  %v29897_v11 = vld [vmem:[%s32987_s1 + $0x104] ss:$16 sps:$4 sm:$0xff]  }
 0x4ba   :  { %8349 = vst [vmem:[#allocation2 + $0xb0] sm:$0xff] %v8344_v46  ;;  %21991 = vmatmul.mubr.msk.bf16.gmra.mrb[136].mxu1 %vm123_vm1, %v29409_v30  ;;  %v22057_v30 = vcombine.high %v29162_v24, %v22045_v27  ;;  %v25798_v24 = vld [vmem:[%s32988_s0 + $0x128] sm:$0xff]   ;;  %v11136_v27 = vld [vmem:[%s32987_s1 + $0x38] sm:$0x33]  ;;  %v9675_v36 = vld [vmem:[%s32989_s2] sm:$0x3] }
 0x4bb   :  { %8350 = vst.msk [vmem:[#allocation2 + $0xb8] sm:$0xff] %vm1422_vm2, %v8345_v63  ;;  %10421 = vmatprep.mubr.bf16.mxu1 %v26229_v1  ;;  %10869 = vmatpush1.bf16.msra.mxu0 %v10855_v6  ;;  %v29797_v46 = vld [vmem:[%s32988_s0 + $0x108] sm:$0xff]  }
 0x4bc   :  { %11233 = vmatprep.subr.bf16.mxu0 %v29149_v9  ;;  %v10586_v9 = vsel %vm136_vm0, %v22056_v18, 0 }
 0x4be   :  { %22060 = vmatmul.mubr.msk.bf16.gmra.mrb[116].mxu0 %vm123_vm1, %v25796_v28 }
 0x4bf   :  { %10643 = vmatprep.mubr.bf16.mxu0 %v26229_v1 }
 0x4c2   :  { %22026 = vmatmul.mubr.msk.bf16.vlgmr.msra.gmra.mrb[124].mxu1 %vm123_vm1, %v29423_v34  ;;  %v25799_v34 = vld [vmem:[%s32988_s0 + $0x120] sm:$0xff]  }
 0x4c3   :  { %10431 = vmatprep.mubr.bf16.mxu1 %v26229_v1  ;;  %10665 = vmatpush1.bf16.msra.mxu1 %v29172_v53  ;;  %v29579_v53 = vld [vmem:[%s32987_s1 + $0x60] sm:$0xff] }
 0x4c4   :  { %22063 = vmatprep.subr.msk.bf16.mxu1 %vm136_vm0, %v22057_v30  ;;  %v29819_v30 = vld [vmem:[%s32987_s1 + $0x8] ss:$16 sps:$4 sm:$0xff]  }
 0x4c6   :  { %22061 = vmatmul.mubr.msk.bf16.gmra.mrb[120].mxu0 %vm123_vm1, %v25797_v23 }
 0x4c7   :  { %10653 = vmatprep.mubr.bf16.mxu0 %v26229_v1  ;;  %10667 = vmatpush1.bf16.msra.mxu1 %v10586_v9 }
 0x4c8   :  { %10939 = vmatprep.subr.bf16.mxu1 %v29188_v40  ;;  %v22128_v40 = vld [vmem:[%s32987_s1 + $0x70] sm:$0x33] }
 0x4c9   :  { %v22138_v29 = vcombine.low %v29579_v53, %v22128_v40 }
 0x4ca   :  { %22027 = vmatmul.mubr.msk.bf16.gmra.mrb[128].mxu1 %vm123_vm1, %v29443_v35  ;;  %v22139_v35 = vcombine.high %v29579_v53, %v22128_v40  ;;  %v29832_v40 = vld [vmem:[%s32988_s0 + $0x110] sm:$0xff]  }
 0x4cb   :  { %10441 = vmatprep.mubr.bf16.mxu1 %v26229_v1 }
 0x4ce   :  { %22062 = vmatmul.mubr.msk.bf16.gmra.mrb[124].mxu0 %vm123_vm1, %v25798_v24 }
 0x4cf   :  { %10898 = vmatprep.mubr.bf16.mxu0 %v26229_v1 }
 0x4d2   :  { %22028 = vmatmul.mubr.msk.bf16.gmra.mrb[132].mxu1 %vm123_vm1, %v29473_v3  ;;  %v11222_v3 = vsel %vm136_vm0, %v22138_v29, 0 }
 0x4d3   :  { %10451 = vmatprep.mubr.bf16.mxu1 %v26229_v1 }
 0x4d6   :  { %22097 = vmatmul.mubr.msk.bf16.vlgmr.msra.gmra.mrb[112].mxu0 %vm123_vm1, %v25799_v34 }
 0x4d7   :  { %11234 = vmatpush1.bf16.msra.mxu0 %v29212_v51  ;;  %10908 = vmatprep.mubr.bf16.mxu0 %v26229_v1  ;;  %v22083_v51 = vld [vmem:[%s32987_s1 + $0x138] sm:$0x33] }
 0x4d8   :  { %22142 = vmatprep.subr.msk.bf16.mxu0 %vm136_vm0, %v22139_v35  ;;  %v22094_v50 = vcombine.low %v29232_v49, %v22083_v51 }
 0x4da   :  { %22029 = vmatmul.mubr.msk.bf16.gmra.mrb[136].mxu1 %vm123_vm1, %v29502_v61  ;;  %v22095_v61 = vcombine.high %v29232_v49, %v22083_v51  ;;  %v10861_v42 = vsel %vm136_vm0, %v22094_v50, 0  ;;  %v29633_v49 = vld [vmem:[%s32987_s1 + $0x4c] ss:$16 sps:$4 sm:$0xff]   ;;  %v29865_v51 = vld [vmem:[%s32987_s1 + $0xe0] sm:$0xff] }
 0x4db   :  { %10696 = vmatprep.mubr.bf16.mxu1 %v26229_v1  ;;  %11236 = vmatpush1.bf16.msra.mxu0 %v11222_v3  ;;  %v29845_v3 = vld [vmem:[%s32987_s1 + $0x8c] ss:$16 sps:$4 sm:$0xff]   ;;  %v29875_v50 = vld [vmem:[%s32988_s0 + $0x120] sm:$0xff]  }
 0x4dc   :  { %11459 = vmatprep.subr.bf16.mxu0 %v29600_v4 }
 0x4de   :  { %22098 = vmatmul.mubr.msk.bf16.gmra.mrb[116].mxu0 %vm123_vm1, %v29607_v52 }
 0x4df   :  { %10918 = vmatprep.mubr.bf16.mxu0 %v26229_v1 }
 0x4e2   :  { %22064 = vmatmul.mubr.msk.bf16.vlgmr.msra.gmra.mrb[124].mxu1 %vm123_vm1, %v29528_v57 }
 0x4e3   :  { %10706 = vmatprep.mubr.bf16.mxu1 %v26229_v1  ;;  %10940 = vmatpush1.bf16.msra.mxu1 %v29242_v39  ;;  %v29643_v39 = vld [vmem:[%s32988_s0 + $0x138] sm:$0xff]  }
 0x4e4   :  { %22101 = vmatprep.subr.msk.bf16.mxu1 %vm136_vm0, %v22095_v61  ;;  %v22226_v61 = vld [vmem:[%s32987_s1 + $0xf0] sm:$0x33] }
 0x4e6   :  { %22099 = vmatmul.mubr.msk.bf16.gmra.mrb[120].mxu0 %vm123_vm1, %v29624_v7 }
 0x4e7   :  { %10928 = vmatprep.mubr.bf16.mxu0 %v26229_v1  ;;  %10942 = vmatpush1.bf16.msra.mxu1 %v10861_v42  ;;  %v22237_v42 = vcombine.high %v29865_v51, %v22226_v61 }
 0x4e8   :  { %11306 = vmatprep.subr.bf16.mxu1 %v29633_v49 }
 0x4ea   :  { %22065 = vmatmul.mubr.msk.bf16.gmra.mrb[128].mxu1 %vm123_vm1, %v25796_v28  ;;  %v29808_v28 = vld [vmem:[%s32987_s1 + $0x28] sm:$0xff] }
 0x4eb   :  { %10716 = vmatprep.mubr.bf16.mxu1 %v26229_v1  ;;  %v22163_v18 = vcombine.high %v29808_v28, %v11136_v27 }
 0x4ee   :  { %22100 = vmatmul.mubr.msk.bf16.gmra.mrb[124].mxu0 %vm123_vm1, %v29643_v39 }
 0x4ef   :  { %11265 = vmatprep.mubr.bf16.mxu0 %v26229_v1 }
 0x4f2   :  { %22066 = vmatmul.mubr.msk.bf16.gmra.mrb[132].mxu1 %vm123_vm1, %v25797_v23  ;;  %v22162_v23 = vcombine.low %v29808_v28, %v11136_v27 }
 0x4f3   :  { %10726 = vmatprep.mubr.bf16.mxu1 %v26229_v1 }
 0x4f4   :  { %v11454_v29 = vsel %vm136_vm0, %v22162_v23, 0 }
 0x4f6   :  { %22143 = vmatmul.mubr.msk.bf16.vlgmr.msra.gmra.mrb[128].mxu0 %vm123_vm1, %v29661_v43 }
 0x4f7   :  { %11460 = vmatpush1.bf16.msra.mxu0 %v29666_v45  ;;  %11275 = vmatprep.mubr.bf16.mxu0 %v26229_v1 }
 0x4f8   :  { %22164 = vmatprep.subr.msk.bf16.mxu0 %vm136_vm0, %v22161_v44 }
 0x4fa   :  { %22067 = vmatmul.mubr.msk.bf16.gmra.mrb[136].mxu1 %vm123_vm1, %v25798_v24 }
 0x4fb   :  { %10971 = vmatprep.mubr.bf16.mxu1 %v26229_v1  ;;  %11462 = vmatpush1.bf16.msra.mxu0 %v11448_v62 }
 0x4fc   :  { %11701 = vmatprep.subr.bf16.mxu0 %v29680_v14 }
 0x4fe   :  { %22144 = vmatmul.mubr.msk.bf16.gmra.mrb[132].mxu0 %vm123_vm1, %v29686_v32 }
 0x4ff   :  { %11285 = vmatprep.mubr.bf16.mxu0 %v26229_v1 }
 0x502   :  { %22102 = vmatmul.mubr.msk.bf16.vlgmr.msra.gmra.mrb[124].mxu1 %vm123_vm1, %v25799_v34 }
 0x503   :  { %10981 = vmatprep.mubr.bf16.mxu1 %v26229_v1  ;;  %11307 = vmatpush1.bf16.msra.mxu1 %v29704_v56 }
 0x504   :  { %22147 = vmatprep.subr.msk.bf16.mxu1 %vm136_vm0, %v22141_v15 }
 0x506   :  { %22145 = vmatmul.mubr.msk.bf16.gmra.mrb[136].mxu0 %vm123_vm1, %v29712_v21 }
 0x507   :  { %11295 = vmatprep.mubr.bf16.mxu0 %v26229_v1  ;;  %11309 = vmatpush1.bf16.msra.mxu1 %v11228_v2  ;;  %v29905_v2 = vld [vmem:[%s32988_s0 + $0x128] sm:$0xff]  }
 0x508   :  { %11532 = vmatprep.subr.bf16.mxu1 %v29721_v31 }
 0x509   :  { %v29727_v55 = vpop.f32.mrb[96].mxu0 }
 0x50a   :  { %v29729_v17 = vpop.f32.mrb[97].mxu0  ;;  %22103 = vmatmul.mubr.msk.bf16.gmra.mrb[128].mxu1 %vm123_vm1, %v29607_v52  ;;  %v29856_v52 = vld [vmem:[%s32988_s0 + $0x118] sm:$0xff]  }
 0x50b   :  { %v29738_v16 = vpop.f32.mrb[98].mxu0  ;;  %10991 = vmatprep.mubr.bf16.mxu1 %v26229_v1 }
 0x50c   :  { %v29741_v60 = vpop.f32.mrb[99].mxu0 }
 0x50e   :  { %22146 = vmatmul.mubr.msk.bf16.gmra.mrb[140].mxu0 %vm123_vm1, %v29736_v22 }
 0x50f   :  { %11491 = vmatprep.mubr.bf16.mxu0 %v26229_v1 }
 0x511   :  { %v29746_v57 = vpop.f32.mrb[100].mxu0 }
 0x512   :  { %v29756_v20 = vpop.f32.mrb[101].mxu0  ;;  %22104 = vmatmul.mubr.msk.bf16.gmra.mrb[132].mxu1 %vm123_vm1, %v29624_v7  ;;  %v29880_v7 = vld [vmem:[%s32987_s1 + $0xc0] ss:$16 sps:$4 sm:$0xff]  }
 0x513   :  { %v29765_v48 = vpop.f32.mrb[102].mxu0  ;;  %11001 = vmatprep.mubr.bf16.mxu1 %v26229_v1 }
 0x514   :  { %v29773_v0 = vpop.f32.mrb[103].mxu0 }
 0x516   :  { %22165 = vmatmul.mubr.msk.bf16.vlgmr.msra.gmra.mrb[128].mxu0 %vm123_vm1, %v29763_v38 }
 0x517   :  { %11702 = vmatpush1.bf16.msra.mxu0 %v29770_v59  ;;  %11501 = vmatprep.mubr.bf16.mxu0 %v26229_v1 }
 0x518   :  { %22202 = vmatprep.subr.msk.bf16.mxu0 %vm136_vm0, %v22199_v10 }
 0x519   :  { %v29788_v26 = vpop.f32.mrb[104].mxu0 }
 0x51a   :  { %v29790_v12 = vpop.f32.mrb[105].mxu0  ;;  %22105 = vmatmul.mubr.msk.bf16.gmra.mrb[136].mxu1 %vm123_vm1, %v29643_v39  ;;  %v22236_v39 = vcombine.low %v29865_v51, %v22226_v61  ;;  %v29945_v61 = vld [vmem:[%s32988_s0 + $0x130] sm:$0xff]  }
 0x51b   :  { %v29799_v6 = vpop.f32.mrb[106].mxu0  ;;  %11338 = vmatprep.mubr.bf16.mxu1 %v26229_v1  ;;  %11704 = vmatpush1.bf16.msra.mxu0 %v11690_v33  ;;  %v29928_v33 = vld [vmem:[%s32987_s1 + $0x88] ss:$16 sps:$4 sm:$0xff]  }
 0x51c   :  { %v29802_v63 = vpop.f32.mrb[107].mxu0  ;;  %11976 = vmatprep.subr.bf16.mxu0 %v29786_v54  ;;  %v11965_v15 = vsel %vm136_vm0, %v22236_v39, 0 }
 0x51e   :  { %22166 = vmatmul.mubr.msk.bf16.gmra.mrb[132].mxu0 %vm123_vm1, %v29797_v46 }
 0x51f   :  { %11511 = vmatprep.mubr.bf16.mxu0 %v26229_v1 }
 0x521   :  { %v29823_v9 = vpop.f32.mrb[108].mxu0 }
 0x522   :  { %v29825_v24 = vpop.f32.mrb[109].mxu0  ;;  %22148 = vmatmul.mubr.msk.bf16.vlgmr.msra.gmra.mrb[140].mxu1 %vm123_vm1, %v29661_v43 }
 0x523   :  { %v29834_v34 = vpop.f32.mrb[110].mxu0  ;;  %11348 = vmatprep.mubr.bf16.mxu1 %v26229_v1  ;;  %11533 = vmatpush1.bf16.msra.mxu1 %v29819_v30 }
 0x524   :  { %v29838_v35 = vpop.f32.mrb[111].mxu0  ;;  %22169 = vmatprep.subr.msk.bf16.mxu1 %vm136_vm0, %v22163_v18 }
 0x526   :  { %22167 = vmatmul.mubr.msk.bf16.gmra.mrb[136].mxu0 %vm123_vm1, %v29832_v40 }
 0x527   :  { %11521 = vmatprep.mubr.bf16.mxu0 %v26229_v1  ;;  %11535 = vmatpush1.bf16.msra.mxu1 %v11454_v29 }
 0x528   :  { %11774 = vmatprep.subr.bf16.mxu1 %v29845_v3 }
 0x52a   :  { %22149 = vmatmul.mubr.msk.bf16.gmra.mrb[144].mxu1 %vm123_vm1, %v29686_v32 }
 0x52b   :  { %11358 = vmatprep.mubr.bf16.mxu1 %v26229_v1 }
 0x52e   :  { %22168 = vmatmul.mubr.msk.bf16.gmra.mrb[140].mxu0 %vm123_vm1, %v29856_v52 }
 0x52f   :  { %11733 = vmatprep.mubr.bf16.mxu0 %v26229_v1 }
 0x532   :  { %22150 = vmatmul.mubr.msk.bf16.gmra.mrb[148].mxu1 %vm123_vm1, %v29712_v21 }
 0x533   :  { %11368 = vmatprep.mubr.bf16.mxu1 %v26229_v1 }
 0x535   :  { %v9588_v13 = vpop.f32.mrb[108].mxu1 }
 0x536   :  { %v9659_v43 = vmax.f32 %v29727_v55, %v9588_v13  ;;  %v9590_v44 = vpop.f32.mrb[109].mxu1  ;;  %22203 = vmatmul.mubr.msk.bf16.vlgmr.msra.gmra.mrb[128].mxu0 %vm123_vm1, %v29875_v50 }
 0x537   :  { %v9660_v58 = vmax.f32 %v29729_v17, %v9590_v44  ;;  %v9592_v62 = vpop.f32.mrb[110].mxu1  ;;  %11977 = vmatpush1.bf16.msra.mxu0 %v29880_v7  ;;  %11743 = vmatprep.mubr.bf16.mxu0 %v26229_v1  ;;  %v29912_v17 = vld [vmem:[%s32987_s1 + $0xa8] sm:$0xff] }
 0x538   :  { %v9661_v32 = vmax.f32 %v29738_v16, %v9592_v62  ;;  %v9594_v25 = vpop.f32.mrb[111].mxu1  ;;  %22240 = vmatprep.subr.msk.bf16.mxu0 %vm136_vm0, %v22237_v42 }
 0x539   :  { %v9662_v21 = vmax.f32 %v29741_v60, %v9594_v25 }
 0x53a   :  { %22151 = vmatmul.mubr.msk.bf16.gmra.mrb[152].mxu1 %vm123_vm1, %v29736_v22  ;;  %v22189_v22 = vld [vmem:[%s32987_s1 + $0xb8] sm:$0x33] }
 0x53b   :  { %11564 = vmatprep.mubr.bf16.mxu1 %v26229_v1  ;;  %11979 = vmatpush1.bf16.msra.mxu0 %v11965_v15  ;;  %v22201_v18 = vcombine.high %v29912_v17, %v22189_v22  ;;  %v22200_v23 = vcombine.low %v29912_v17, %v22189_v22 }
 0x53c   :  { %12251 = vmatprep.subr.bf16.mxu0 %v29897_v11 }
 0x53d   :  { %v9598_v55 = vpop.f32.mrb[112].mxu1 }
 0x53e   :  { %v9663_v16 = vmax.f32 %v29746_v57, %v9598_v55  ;;  %v9600_v60 = vpop.f32.mrb[113].mxu1  ;;  %22204 = vmatmul.mubr.msk.bf16.gmra.mrb[132].mxu0 %vm123_vm1, %v29905_v2 }
 0x53f   :  { %v9664_v10 = vmax.f32 %v29756_v20, %v9600_v60  ;;  %v9602_v19 = vpop.f32.mrb[114].mxu1  ;;  %11753 = vmatprep.mubr.bf16.mxu0 %v26229_v1  ;;  %v29938_v20 = vrot.slane %v9675_v36, %v27264_v41 }
 0x540   :  { %v9665_v57 = vmax.f32 %v29765_v48, %v9602_v19  ;;  %v29931_v27 = vpop.f32.mrb[115].mxu1  ;;  %v29948_v48 = vrot.slane %v9675_v36, %v27272_v5 }
 0x541   :  { %v9666_v29 = vmax.f32 %v29773_v0, %v29931_v27  ;;  %v11696_v0 = vsel %vm136_vm0, %v22200_v23, 0  ;;  %v9687_v39 = vadd.f32 %v29938_v20, %v9659_v43  ;;  %v9689_v55 = vadd.f32 %v29938_v20, %v9661_v32 }
 0x542   :  { %22170 = vmatmul.mubr.msk.bf16.vlgmr.msra.gmra.mrb[140].mxu1 %vm123_vm1, %v29763_v38  ;;  %v29957_v38 = vld [vmem:[%s32987_s1 + $0xcc] ss:$16 sps:$4 sm:$0xff]   ;;  %v9688_v62 = vadd.f32 %v29948_v48, %v9660_v58 }
 0x543   :  { %11574 = vmatprep.mubr.bf16.mxu1 %v26229_v1  ;;  %11775 = vmatpush1.bf16.msra.mxu1 %v29928_v33  ;;  %v9705_v23 = vmax.f32 %v9689_v55, 0.0 }
 0x544   :  { %22207 = vmatprep.subr.msk.bf16.mxu1 %vm136_vm0, %v22201_v18  ;;  %v9704_v32 = vmax.f32 %v9688_v62, 0.0  ;;  %v9692_v62 = vadd.f32 %v29948_v48, %v9664_v10  ;;  %v9694_v10 = vadd.f32 %v29948_v48, %v9666_v29 }
 0x545   :  { %v9608_v42 = vpop.f32.mrb[116].mxu1 }
 0x546   :  { %v9667_v13 = vmax.f32 %v29788_v26, %v9608_v42  ;;  %v9610_v44 = vpop.f32.mrb[117].mxu1  ;;  %22205 = vmatmul.mubr.msk.bf16.gmra.mrb[136].mxu0 %vm123_vm1, %v29945_v61  ;;  %v9690_v26 = vadd.f32 %v29948_v48, %v9662_v21 }
 0x547   :  { %v9668_v25 = vmax.f32 %v29790_v12, %v9610_v44  ;;  %v9612_v15 = vpop.f32.mrb[118].mxu1  ;;  %11763 = vmatprep.mubr.bf16.mxu0 %v26229_v1  ;;  %11777 = vmatpush1.bf16.msra.mxu1 %v11696_v0  ;;  %v9703_v12 = vmax.f32 %v9687_v39, 0.0 }
 0x548   :  { %v9695_v22 = vadd.f32 %v29938_v20, %v9667_v13  ;;  %v9669_v43 = vmax.f32 %v29799_v6, %v9612_v15  ;;  %v9614_v60 = vpop.f32.mrb[119].mxu1  ;;  %12049 = vmatprep.subr.bf16.mxu1 %v29957_v38  ;;  %v29979_v6 = vld [vmem:[%s32988_s0 + $0x138] sm:$0xff]   ;;  %v9706_v42 = vmax.f32 %v9690_v26, 0.0  ;;  %v9693_v26 = vadd.f32 %v29938_v20, %v9665_v57 }
 0x549   :  { %v9696_v36 = vadd.f32 %v29948_v48, %v9668_v25  ;;  %v9670_v58 = vmax.f32 %v29802_v63, %v9614_v60 }
 0x54a   :  { %v9711_v19 = vmax.f32 %v9695_v22, 0.0  ;;  %v9697_v27 = vadd.f32 %v29938_v20, %v9669_v43  ;;  %22171 = vmatmul.mubr.msk.bf16.gmra.mrb[144].mxu1 %vm123_vm1, %v29797_v46  ;;  %v9691_v46 = vadd.f32 %v29938_v20, %v9663_v16 }
 0x54b   :  { %v9712_v18 = vmax.f32 %v9696_v36, 0.0  ;;  %v9698_v21 = vadd.f32 %v29948_v48, %v9670_v58  ;;  %11584 = vmatprep.mubr.bf16.mxu1 %v26229_v1 }
 0x54c   :  { %v9719_v63 = vmax.f32 %v9703_v12, %v9711_v19  ;;  %v9713_v0 = vmax.f32 %v9697_v27, 0.0  ;;  %v29996_v12 = vld [vmem:[%s32987_s1 + $0x120] sm:$0xff] }
 0x54d   :  { %v9720_v39 = vmax.f32 %v9704_v32, %v9712_v18  ;;  %v9714_v13 = vmax.f32 %v9698_v21, 0.0  ;;  %v9618_v44 = vpop.f32.mrb[120].mxu1  ;;  %v9707_v32 = vmax.f32 %v9691_v46, 0.0  ;;  %v30010_v21 = vld [vmem:[%s32988_s0 + $0x130] sm:$0xff]  }
 0x54e   :  { %v9721_v25 = vmax.f32 %v9705_v23, %v9713_v0  ;;  %v9671_v15 = vmax.f32 %v29823_v9, %v9618_v44  ;;  %v9620_v22 = vpop.f32.mrb[121].mxu1  ;;  %22206 = vmatmul.mubr.msk.bf16.gmra.mrb[140].mxu0 %vm123_vm1, %v29979_v6  ;;  %v9708_v23 = vmax.f32 %v9692_v62, 0.0  ;;  %v30031_v62 = vld [vmem:[%s32987_s1 + $0x44] ss:$16 sps:$4 sm:$0xff]  }
 0x54f   :  { %v9722_v43 = vmax.f32 %v9706_v42, %v9714_v13  ;;  %v9672_v55 = vmax.f32 %v29825_v24, %v9620_v22  ;;  %v9622_v60 = vpop.f32.mrb[122].mxu1  ;;  %12008 = vmatprep.mubr.bf16.mxu0 %v26229_v1  ;;  %v22264_v24 = vld [vmem:[%s32987_s1 + $0x130] sm:$0x33]  ;;  %v9710_v13 = vmax.f32 %v9694_v10, 0.0 }
 0x550   :  { %v9727_v36 = vpack.c.bf16 %v9721_v25, %v9719_v63  ;;  %v9699_v16 = vadd.f32 %v29938_v20, %v9671_v15  ;;  %v9673_v58 = vmax.f32 %v29834_v34, %v9622_v60  ;;  %v9624_v9 = vpop.f32.mrb[123].mxu1  ;;  %v30044_v60 = vld [vmem:[%s32987_s1 + $0xe8] sm:$0xff]  ;;  %v22310_v10 = vld [vmem:[%s32987_s1 + $0x70] sm:$0x33] }
 0x551   :  { %v9728_v19 = vpack.c.bf16 %v9722_v43, %v9720_v39  ;;  %v9700_v57 = vadd.f32 %v29948_v48, %v9672_v55  ;;  %v9674_v27 = vmax.f32 %v29838_v35, %v9624_v9  ;;  %v30017_v35 = vld [vmem:[%s32987_s1 + $0x100] ss:$16 sps:$4 sm:$0xff]   ;;  %v22274_v39 = vcombine.low %v29996_v12, %v22264_v24  ;;  %v25850_v55 = vld [vmem:[%s32988_s0 + $0x138] sm:$0xff]  }
 0x552   :  { %9732 = vst [vmem:[#allocation2 + $0xc0] sm:$0xff] %v9727_v36  ;;  %v9715_v34 = vmax.f32 %v9699_v16, 0.0  ;;  %v9701_v18 = vadd.f32 %v29938_v20, %v9673_v58  ;;  %22172 = vmatmul.mubr.msk.bf16.gmra.mrb[148].mxu1 %vm123_vm1, %v29832_v40  ;;  %v22275_v40 = vcombine.high %v29996_v12, %v22264_v24  ;;  %v9709_v20 = vmax.f32 %v9693_v26, 0.0  ;;  %v30054_v26 = vld [vmem:[%s32987_s1 + $0xc8] ss:$16 sps:$4 sm:$0xff]   ;;  %v25852_v58 = vld [vmem:[%s32988_s0 + $0x140] sm:$0xff]  }
 0x553   :  { %9733 = vst.msk [vmem:[#allocation2 + $0xc8] sm:$0xff] %vm1422_vm2, %v9728_v19  ;;  %v9716_v29 = vmax.f32 %v9700_v57, 0.0  ;;  %v9702_v63 = vadd.f32 %v29948_v48, %v9674_v27  ;;  %11594 = vmatprep.mubr.bf16.mxu1 %v26229_v1  ;;  %v12240_v22 = vsel %vm136_vm0, %v22274_v39, 0  ;;  %v30070_v24 = vld [vmem:[%s32987_s1 + $0x10c] ss:$16 sps:$4 sm:$0xff]   ;;  %v22321_v57 = vcombine.high %v29579_v53, %v22310_v10 }
 0x554   :  { %v9723_v0 = vmax.f32 %v9707_v32, %v9715_v34  ;;  %v9717_v42 = vmax.f32 %v9701_v18, 0.0  ;;  %v30094_v19 = vld [vmem:[%s32987_s1 + $0x40] ss:$16 sps:$4 sm:$0xff]   ;;  %v22320_v27 = vcombine.low %v29579_v53, %v22310_v10  ;;  %v25864_v32 = vld [vmem:[%s32988_s0 + $0x148] sm:$0xff]   ;;  %v22265_v34 = vld [vmem:[%s32987_s1 + $0x138] sm:$0x33] }
 0x555   :  { %v9724_v44 = vmax.f32 %v9708_v23, %v9716_v29  ;;  %v9718_v46 = vmax.f32 %v9702_v63, 0.0  ;;  %v30114_v53 = vld [vmem:[%s32987_s1 + $0x128] sm:$0xff]  ;;  %v25866_v23 = vld [vmem:[%s32988_s0 + $0x150] sm:$0xff]   ;;  %v12521_v10 = vld [vmem:[%s32987_s1 + $0x38] sm:$0x33] }
 0x556   :  { %v9725_v25 = vmax.f32 %v9709_v20, %v9717_v42  ;;  %22241 = vmatmul.mubr.msk.bf16.vlgmr.msra.gmra.mrb[128].mxu0 %vm123_vm1, %v30010_v21  ;;  %v22276_v18 = vcombine.low %v30114_v53, %v22265_v34  ;;  %v12520_v63 = vld [vmem:[%s32987_s1 + $0x30] sm:$0x33]  ;;  %v30169_v42 = vld [vmem:[%s32988_s0 + $0x138] sm:$0xff]  }
 0x557   :  { %v9726_v48 = vmax.f32 %v9710_v13, %v9718_v46  ;;  %12252 = vmatpush1.bf16.msra.mxu0 %v30017_v35  ;;  %12018 = vmatprep.mubr.bf16.mxu0 %v26229_v1  ;;  %v22342_v20 = vcombine.low %v29652_v8, %v12520_v63  ;;  %v30185_v13 = vld [vmem:[%s32988_s0 + $0x140] sm:$0xff]  }
 0x558   :  { %v9729_v15 = vpack.c.bf16 %v9725_v25, %v9723_v0  ;;  %22278 = vmatprep.subr.msk.bf16.mxu0 %vm136_vm0, %v22275_v40  ;;  %v12246_v29 = vsel %vm136_vm0, %v22276_v18, 0  ;;  %v22343_v40 = vcombine.high %v29652_v8, %v12520_v63  ;;  %v22311_v8 = vld [vmem:[%s32987_s1 + $0x78] sm:$0x33] }
 0x559   :  { %v9730_v43 = vpack.c.bf16 %v9726_v48, %v9724_v44  ;;  %v12833_v0 = vsel %vm136_vm0, %v22342_v20, 0  ;;  %v22322_v39 = vcombine.low %v29693_v37, %v22311_v8  ;;  %v22370_v48 = vld [vmem:[%s32987_s1 + $0xb0] sm:$0x33] }
 0x55a   :  { %9734 = vst [vmem:[#allocation2 + $0xd0] sm:$0xff] %v9729_v15  ;;  %22173 = vmatmul.mubr.msk.bf16.gmra.mrb[152].mxu1 %vm123_vm1, %v29856_v52  ;;  %v22227_v52 = vld [vmem:[%s32987_s1 + $0xf8] sm:$0x33] }
 0x55b   :  { %9735 = vst.msk [vmem:[#allocation2 + $0xd8] sm:$0xff] %vm1422_vm2, %v9730_v43  ;;  %11806 = vmatprep.mubr.bf16.mxu1 %v26229_v1  ;;  %12254 = vmatpush1.bf16.msra.mxu0 %v12240_v22  ;;  %v22239_v36 = vcombine.high %v30044_v60, %v22227_v52  ;;  %v22238_v16 = vcombine.low %v30044_v60, %v22227_v52  ;;  %v30224_v22 = vld [vmem:[%s32988_s0 + $0x120] sm:$0xff]  }
 0x55c   :  { %12618 = vmatprep.subr.bf16.mxu0 %v30031_v62  ;;  %v22381_v52 = vcombine.high %v29751_v47, %v22370_v48 }
 0x55d   :  { %v11971_v9 = vsel %vm136_vm0, %v22238_v16, 0 }
 0x55e   :  { %22242 = vmatmul.mubr.msk.bf16.gmra.mrb[132].mxu0 %vm123_vm1, %v25850_v55 }
 0x55f   :  { %12028 = vmatprep.mubr.bf16.mxu0 %v26229_v1 }
 0x562   :  { %22208 = vmatmul.mubr.msk.bf16.vlgmr.msra.gmra.mrb[140].mxu1 %vm123_vm1, %v29875_v50  ;;  %v25855_v50 = vld [vmem:[%s32988_s0 + $0x148] sm:$0xff]  }
 0x563   :  { %11816 = vmatprep.mubr.bf16.mxu1 %v26229_v1  ;;  %12050 = vmatpush1.bf16.msra.mxu1 %v30054_v26 }
 0x564   :  { %22245 = vmatprep.subr.msk.bf16.mxu1 %vm136_vm0, %v22239_v36  ;;  %v22380_v36 = vcombine.low %v29751_v47, %v22370_v48  ;;  %v30247_v47 = vld [vmem:[%s32988_s0 + $0x128] sm:$0xff]  }
 0x566   :  { %22243 = vmatmul.mubr.msk.bf16.gmra.mrb[136].mxu0 %vm123_vm1, %v25852_v58  ;;  %v13075_v16 = vsel %vm136_vm0, %v22380_v36, 0 }
 0x567   :  { %12038 = vmatprep.mubr.bf16.mxu0 %v26229_v1  ;;  %12052 = vmatpush1.bf16.msra.mxu1 %v11971_v9 }
 0x568   :  { %12324 = vmatprep.subr.bf16.mxu1 %v30070_v24 }
 0x56a   :  { %22209 = vmatmul.mubr.msk.bf16.gmra.mrb[144].mxu1 %vm123_vm1, %v29905_v2  ;;  %v25859_v2 = vld [vmem:[%s32988_s0 + $0x140] sm:$0xff]  }
 0x56b   :  { %11826 = vmatprep.mubr.bf16.mxu1 %v26229_v1 }
 0x56e   :  { %22244 = vmatmul.mubr.msk.bf16.gmra.mrb[140].mxu0 %vm123_vm1, %v25855_v50 }
 0x56f   :  { %12283 = vmatprep.mubr.bf16.mxu0 %v26229_v1 }
 0x572   :  { %22210 = vmatmul.mubr.msk.bf16.gmra.mrb[148].mxu1 %vm123_vm1, %v29945_v61  ;;  %v12607_v61 = vsel %vm136_vm0, %v22320_v27, 0 }
 0x573   :  { %11836 = vmatprep.mubr.bf16.mxu1 %v26229_v1 }
 0x576   :  { %22279 = vmatmul.mubr.msk.bf16.vlgmr.msra.gmra.mrb[128].mxu0 %vm123_vm1, %v25859_v2 }
 0x577   :  { %12619 = vmatpush1.bf16.msra.mxu0 %v30094_v19  ;;  %12293 = vmatprep.mubr.bf16.mxu0 %v26229_v1 }
 0x578   :  { %22324 = vmatprep.subr.msk.bf16.mxu0 %vm136_vm0, %v22321_v57  ;;  %v22344_v57 = vcombine.low %v29808_v28, %v12521_v10 }
 0x57a   :  { %22211 = vmatmul.mubr.msk.bf16.gmra.mrb[152].mxu1 %vm123_vm1, %v29979_v6  ;;  %v30124_v6 = vld [vmem:[%s32987_s1 + $0x108] ss:$16 sps:$4 sm:$0xff]  }
 0x57b   :  { %12081 = vmatprep.mubr.bf16.mxu1 %v26229_v1  ;;  %12621 = vmatpush1.bf16.msra.mxu0 %v12607_v61 }
 0x57c   :  { %12844 = vmatprep.subr.bf16.mxu0 %v29600_v4  ;;  %v22277_v4 = vcombine.high %v30114_v53, %v22265_v34 }
 0x57e   :  { %22280 = vmatmul.mubr.msk.bf16.gmra.mrb[132].mxu0 %vm123_vm1, %v25864_v32 }
 0x57f   :  { %12303 = vmatprep.mubr.bf16.mxu0 %v26229_v1 }
 0x582   :  { %22246 = vmatmul.mubr.msk.bf16.vlgmr.msra.gmra.mrb[140].mxu1 %vm123_vm1, %v30010_v21  ;;  %v25867_v21 = vld [vmem:[%s32988_s0 + $0x158] sm:$0xff]  }
 0x583   :  { %12091 = vmatprep.mubr.bf16.mxu1 %v26229_v1  ;;  %12325 = vmatpush1.bf16.msra.mxu1 %v30124_v6 }
 0x584   :  { %22283 = vmatprep.subr.msk.bf16.mxu1 %vm136_vm0, %v22277_v4  ;;  %v22408_v4 = vld [vmem:[%s32987_s1 + $0xf0] sm:$0x33] }
 0x585   :  { %v22419_v18 = vcombine.high %v29865_v51, %v22408_v4 }
 0x586   :  { %22281 = vmatmul.mubr.msk.bf16.gmra.mrb[136].mxu0 %vm123_vm1, %v25866_v23 }
 0x587   :  { %12313 = vmatprep.mubr.bf16.mxu0 %v26229_v1  ;;  %12327 = vmatpush1.bf16.msra.mxu1 %v12246_v29 }
 0x588   :  { %12691 = vmatprep.subr.bf16.mxu1 %v29633_v49  ;;  %v30154_v49 = vld [vmem:[%s32988_s0 + $0x130] sm:$0xff]  }
 0x58a   :  { %22247 = vmatmul.mubr.msk.bf16.gmra.mrb[144].mxu1 %vm123_vm1, %v25850_v55 }
 0x58b   :  { %12101 = vmatprep.mubr.bf16.mxu1 %v26229_v1 }
 0x58e   :  { %22282 = vmatmul.mubr.msk.bf16.gmra.mrb[140].mxu0 %vm123_vm1, %v25867_v21 }
 0x58f   :  { %12650 = vmatprep.mubr.bf16.mxu0 %v26229_v1 }
 0x592   :  { %22248 = vmatmul.mubr.msk.bf16.gmra.mrb[148].mxu1 %vm123_vm1, %v25852_v58 }
 0x593   :  { %12111 = vmatprep.mubr.bf16.mxu1 %v26229_v1 }
 0x596   :  { %22325 = vmatmul.mubr.msk.bf16.vlgmr.msra.gmra.mrb[144].mxu0 %vm123_vm1, %v30154_v49 }
 0x597   :  { %12845 = vmatpush1.bf16.msra.mxu0 %v29666_v45  ;;  %12660 = vmatprep.mubr.bf16.mxu0 %v26229_v1  ;;  %v22323_v45 = vcombine.high %v29693_v37, %v22311_v8  ;;  %v30325_v8 = vld [vmem:[%s32988_s0 + $0x148] sm:$0xff]  }
 0x598   :  { %22346 = vmatprep.subr.msk.bf16.mxu0 %vm136_vm0, %v22343_v40 }
 0x59a   :  { %22249 = vmatmul.mubr.msk.bf16.gmra.mrb[152].mxu1 %vm123_vm1, %v25855_v50 }
 0x59b   :  { %12356 = vmatprep.mubr.bf16.mxu1 %v26229_v1  ;;  %12847 = vmatpush1.bf16.msra.mxu0 %v12833_v0 }
 0x59c   :  { %13086 = vmatprep.subr.bf16.mxu0 %v29680_v14  ;;  %v12613_v14 = vsel %vm136_vm0, %v22322_v39, 0 }
 0x59e   :  { %22326 = vmatmul.mubr.msk.bf16.gmra.mrb[148].mxu0 %vm123_vm1, %v30169_v42 }
 0x59f   :  { %12670 = vmatprep.mubr.bf16.mxu0 %v26229_v1 }
 0x5a2   :  { %22284 = vmatmul.mubr.msk.bf16.vlgmr.msra.gmra.mrb[140].mxu1 %vm123_vm1, %v25859_v2  ;;  %v22345_v2 = vcombine.high %v29808_v28, %v12521_v10  ;;  %v12839_v28 = vsel %vm136_vm0, %v22344_v57, 0 }
 0x5a3   :  { %12366 = vmatprep.mubr.bf16.mxu1 %v26229_v1  ;;  %12692 = vmatpush1.bf16.msra.mxu1 %v29704_v56  ;;  %v30203_v56 = vld [vmem:[%s32988_s0 + $0x148] sm:$0xff]  }
 0x5a4   :  { %22329 = vmatprep.subr.msk.bf16.mxu1 %vm136_vm0, %v22323_v45  ;;  %v22371_v45 = vld [vmem:[%s32987_s1 + $0xb8] sm:$0x33] }
 0x5a6   :  { %22327 = vmatmul.mubr.msk.bf16.gmra.mrb[152].mxu0 %vm123_vm1, %v30185_v13 }
 0x5a7   :  { %12680 = vmatprep.mubr.bf16.mxu0 %v26229_v1  ;;  %12694 = vmatpush1.bf16.msra.mxu1 %v12613_v14  ;;  %v11060_v14 = vld [vmem:[%s32989_s2] sm:$0x3] }
 0x5a8   :  { %12917 = vmatprep.subr.bf16.mxu1 %v29721_v31  ;;  %v30348_v48 = vrot.slane %v11060_v14, %v27264_v41 }
 0x5a9   :  { %v30195_v37 = vpop.f32.mrb[112].mxu0 }
 0x5aa   :  { %v30197_v44 = vpop.f32.mrb[113].mxu0  ;;  %22285 = vmatmul.mubr.msk.bf16.gmra.mrb[144].mxu1 %vm123_vm1, %v25864_v32 }
 0x5ab   :  { %v30205_v46 = vpop.f32.mrb[114].mxu0  ;;  %12376 = vmatprep.mubr.bf16.mxu1 %v26229_v1 }
 0x5ac   :  { %v30208_v25 = vpop.f32.mrb[115].mxu0 }
 0x5ae   :  { %22328 = vmatmul.mubr.msk.bf16.gmra.mrb[156].mxu0 %vm123_vm1, %v30203_v56 }
 0x5af   :  { %12876 = vmatprep.mubr.bf16.mxu0 %v26229_v1 }
 0x5b1   :  { %v30213_v31 = vpop.f32.mrb[116].mxu0 }
 0x5b2   :  { %v30218_v15 = vpop.f32.mrb[117].mxu0  ;;  %22286 = vmatmul.mubr.msk.bf16.gmra.mrb[148].mxu1 %vm123_vm1, %v25866_v23  ;;  %v22418_v23 = vcombine.low %v29865_v51, %v22408_v4 }
 0x5b3   :  { %v30226_v43 = vpop.f32.mrb[118].mxu0  ;;  %12386 = vmatprep.mubr.bf16.mxu1 %v26229_v1 }
 0x5b4   :  { %v30229_v55 = vpop.f32.mrb[119].mxu0  ;;  %v13350_v51 = vsel %vm136_vm0, %v22418_v23, 0 }
 0x5b6   :  { %22347 = vmatmul.mubr.msk.bf16.vlgmr.msra.gmra.mrb[144].mxu0 %vm123_vm1, %v30224_v22 }
 0x5b7   :  { %13087 = vmatpush1.bf16.msra.mxu0 %v29770_v59  ;;  %12886 = vmatprep.mubr.bf16.mxu0 %v26229_v1 }
 0x5b8   :  { %22384 = vmatprep.subr.msk.bf16.mxu0 %vm136_vm0, %v22381_v52 }
 0x5b9   :  { %v30239_v58 = vpop.f32.mrb[120].mxu0 }
 0x5ba   :  { %v30241_v9 = vpop.f32.mrb[121].mxu0  ;;  %22287 = vmatmul.mubr.msk.bf16.gmra.mrb[152].mxu1 %vm123_vm1, %v25867_v21 }
 0x5bb   :  { %v30249_v50 = vpop.f32.mrb[122].mxu0  ;;  %12723 = vmatprep.mubr.bf16.mxu1 %v26229_v1  ;;  %13089 = vmatpush1.bf16.msra.mxu0 %v13075_v16 }
 0x5bc   :  { %v30252_v59 = vpop.f32.mrb[123].mxu0  ;;  %13361 = vmatprep.subr.bf16.mxu0 %v29786_v54  ;;  %v30272_v54 = vld [vmem:[%s32988_s0 + $0x130] sm:$0xff]  }
 0x5be   :  { %22348 = vmatmul.mubr.msk.bf16.gmra.mrb[148].mxu0 %vm123_vm1, %v30247_v47 }
 0x5bf   :  { %12896 = vmatprep.mubr.bf16.mxu0 %v26229_v1 }
 0x5c1   :  { %v30263_v27 = vpop.f32.mrb[124].mxu0 }
 0x5c2   :  { %v30265_v61 = vpop.f32.mrb[125].mxu0  ;;  %22330 = vmatmul.mubr.msk.bf16.vlgmr.msra.gmra.mrb[156].mxu1 %vm123_vm1, %v30154_v49 }
 0x5c3   :  { %v30274_v32 = vpop.f32.mrb[126].mxu0  ;;  %12733 = vmatprep.mubr.bf16.mxu1 %v26229_v1  ;;  %12918 = vmatpush1.bf16.msra.mxu1 %v29819_v30  ;;  %v30291_v30 = vld [vmem:[%s32988_s0 + $0x138] sm:$0xff]  }
 0x5c4   :  { %v30278_v34 = vpop.f32.mrb[127].mxu0  ;;  %22351 = vmatprep.subr.msk.bf16.mxu1 %vm136_vm0, %v22345_v2 }
 0x5c6   :  { %22349 = vmatmul.mubr.msk.bf16.gmra.mrb[152].mxu0 %vm123_vm1, %v30272_v54 }
 0x5c7   :  { %12906 = vmatprep.mubr.bf16.mxu0 %v26229_v1  ;;  %12920 = vmatpush1.bf16.msra.mxu1 %v12839_v28 }
 0x5c8   :  { %13159 = vmatprep.subr.bf16.mxu1 %v29845_v3  ;;  %v30305_v3 = vld [vmem:[%s32988_s0 + $0x140] sm:$0xff]  }
 0x5ca   :  { %22331 = vmatmul.mubr.msk.bf16.gmra.mrb[160].mxu1 %vm123_vm1, %v30169_v42 }
 0x5cb   :  { %12743 = vmatprep.mubr.bf16.mxu1 %v26229_v1 }
 0x5ce   :  { %22350 = vmatmul.mubr.msk.bf16.gmra.mrb[156].mxu0 %vm123_vm1, %v30291_v30 }
 0x5cf   :  { %13118 = vmatprep.mubr.bf16.mxu0 %v26229_v1 }
 0x5d2   :  { %22332 = vmatmul.mubr.msk.bf16.gmra.mrb[164].mxu1 %vm123_vm1, %v30185_v13 }
 0x5d3   :  { %12753 = vmatprep.mubr.bf16.mxu1 %v26229_v1 }
 0x5d5   :  { %v10973_v29 = vpop.f32.mrb[124].mxu1 }
 0x5d6   :  { %v11044_v21 = vmax.f32 %v30195_v37, %v10973_v29  ;;  %v10975_v63 = vpop.f32.mrb[125].mxu1  ;;  %22385 = vmatmul.mubr.msk.bf16.vlgmr.msra.gmra.mrb[144].mxu0 %vm123_vm1, %v30305_v3 }
 0x5d7   :  { %v11045_v49 = vmax.f32 %v30197_v44, %v10975_v63  ;;  %v10977_v40 = vpop.f32.mrb[126].mxu1  ;;  %13362 = vmatpush1.bf16.msra.mxu0 %v29880_v7  ;;  %13128 = vmatprep.mubr.bf16.mxu0 %v26229_v1 }
 0x5d8   :  { %v11046_v20 = vmax.f32 %v30205_v46, %v10977_v40  ;;  %v10979_v0 = vpop.f32.mrb[127].mxu1  ;;  %22422 = vmatprep.subr.msk.bf16.mxu0 %vm136_vm0, %v22419_v18  ;;  %v22383_v46 = vcombine.high %v29912_v17, %v22371_v45  ;;  %v11072_v52 = vadd.f32 %v30348_v48, %v11044_v21 }
 0x5d9   :  { %v11047_v42 = vmax.f32 %v30208_v25, %v10979_v0  ;;  %v22382_v25 = vcombine.low %v29912_v17, %v22371_v45 }
 0x5da   :  { %22333 = vmatmul.mubr.msk.bf16.gmra.mrb[168].mxu1 %vm123_vm1, %v30203_v56 }
 0x5db   :  { %12949 = vmatprep.mubr.bf16.mxu1 %v26229_v1  ;;  %13364 = vmatpush1.bf16.msra.mxu0 %v13350_v51  ;;  %v13081_v17 = vsel %vm136_vm0, %v22382_v25, 0 }
 0x5dc   :  { %13636 = vmatprep.subr.bf16.mxu0 %v29897_v11 }
 0x5dd   :  { %v10983_v7 = vpop.f32.mrb[128].mxu1 }
 0x5de   :  { %v11048_v39 = vmax.f32 %v30213_v31, %v10983_v7  ;;  %v10985_v13 = vpop.f32.mrb[129].mxu1  ;;  %22386 = vmatmul.mubr.msk.bf16.gmra.mrb[148].mxu0 %vm123_vm1, %v30325_v8 }
 0x5df   :  { %v11049_v37 = vmax.f32 %v30218_v15, %v10985_v13  ;;  %v10987_v44 = vpop.f32.mrb[130].mxu1  ;;  %13138 = vmatprep.mubr.bf16.mxu0 %v26229_v1  ;;  %v30355_v15 = vld [vmem:[%s32988_s0 + $0x150] sm:$0xff]  }
 0x5e0   :  { %v11050_v11 = vmax.f32 %v30226_v43, %v10987_v44  ;;  %v30341_v56 = vpop.f32.mrb[131].mxu1  ;;  %v30358_v43 = vrot.slane %v11060_v14, %v27272_v5 }
 0x5e1   :  { %v11051_v31 = vmax.f32 %v30229_v55, %v30341_v56 }
 0x5e2   :  { %22352 = vmatmul.mubr.msk.bf16.vlgmr.msra.gmra.mrb[156].mxu1 %vm123_vm1, %v30224_v22  ;;  %v11073_v16 = vadd.f32 %v30358_v43, %v11045_v49  ;;  %v11077_v44 = vadd.f32 %v30358_v43, %v11049_v37 }
 0x5e3   :  { %12959 = vmatprep.mubr.bf16.mxu1 %v26229_v1  ;;  %13160 = vmatpush1.bf16.msra.mxu1 %v29928_v33  ;;  %v11074_v33 = vadd.f32 %v30348_v48, %v11046_v20  ;;  %v11079_v37 = vadd.f32 %v30358_v43, %v11051_v31 }
 0x5e4   :  { %22389 = vmatprep.subr.msk.bf16.mxu1 %vm136_vm0, %v22383_v46  ;;  %v11089_v63 = vmax.f32 %v11073_v16, 0.0 }
 0x5e5   :  { %v10993_v55 = vpop.f32.mrb[132].mxu1  ;;  %v11090_v40 = vmax.f32 %v11074_v33, 0.0  ;;  %v11093_v33 = vmax.f32 %v11077_v44, 0.0 }
 0x5e6   :  { %v11052_v22 = vmax.f32 %v30239_v58, %v10993_v55  ;;  %v10995_v36 = vpop.f32.mrb[133].mxu1  ;;  %22387 = vmatmul.mubr.msk.bf16.gmra.mrb[152].mxu0 %vm123_vm1, %v30355_v15  ;;  %v11075_v58 = vadd.f32 %v30358_v43, %v11047_v42 }
 0x5e7   :  { %v11053_v10 = vmax.f32 %v30241_v9, %v10995_v36  ;;  %v10997_v2 = vpop.f32.mrb[134].mxu1  ;;  %13148 = vmatprep.mubr.bf16.mxu0 %v26229_v1  ;;  %13162 = vmatpush1.bf16.msra.mxu1 %v13081_v17  ;;  %v11088_v9 = vmax.f32 %v11072_v52, 0.0  ;;  %v11078_v17 = vadd.f32 %v30348_v48, %v11050_v11 }
 0x5e8   :  { %v11080_v57 = vadd.f32 %v30348_v48, %v11052_v22  ;;  %v11054_v28 = vmax.f32 %v30249_v50, %v10997_v2  ;;  %v10999_v4 = vpop.f32.mrb[135].mxu1  ;;  %13434 = vmatprep.subr.bf16.mxu1 %v29957_v38  ;;  %v30384_v50 = vld [vmem:[%s32988_s0 + $0x158] sm:$0xff]   ;;  %v11091_v0 = vmax.f32 %v11075_v58, 0.0  ;;  %v22446_v22 = vld [vmem:[%s32987_s1 + $0x130] sm:$0x33]  ;;  %v11095_v58 = vmax.f32 %v11079_v37, 0.0 }
 0x5e9   :  { %v11081_v18 = vadd.f32 %v30358_v43, %v11053_v10  ;;  %v11055_v23 = vmax.f32 %v30252_v59, %v10999_v4 }
 0x5ea   :  { %v11096_v29 = vmax.f32 %v11080_v57, 0.0  ;;  %v11082_v21 = vadd.f32 %v30348_v48, %v11054_v28  ;;  %22353 = vmatmul.mubr.msk.bf16.gmra.mrb[160].mxu1 %vm123_vm1, %v30247_v47  ;;  %v11076_v47 = vadd.f32 %v30348_v48, %v11048_v39  ;;  %v11094_v28 = vmax.f32 %v11078_v17, 0.0  ;;  %v30575_v17 = vld [vmem:[%s32987_s1 + $0x68] sm:$0xff] }
 0x5eb   :  { %v11097_v38 = vmax.f32 %v11081_v18, 0.0  ;;  %v11083_v49 = vadd.f32 %v30358_v43, %v11055_v23  ;;  %12969 = vmatprep.mubr.bf16.mxu1 %v26229_v1 }
 0x5ec   :  { %v11104_v59 = vmax.f32 %v11088_v9, %v11096_v29  ;;  %v11098_v20 = vmax.f32 %v11082_v21, 0.0  ;;  %v11092_v10 = vmax.f32 %v11076_v47, 0.0  ;;  %v13905_v47 = vld [vmem:[%s32987_s1 + $0x30] sm:$0x33] }
 0x5ed   :  { %v11105_v51 = vmax.f32 %v11089_v63, %v11097_v38  ;;  %v11099_v42 = vmax.f32 %v11083_v49, 0.0  ;;  %v11003_v7 = vpop.f32.mrb[136].mxu1  ;;  %v25887_v49 = vld [vmem:[%s32988_s0 + $0x160] sm:$0xff]  }
 0x5ee   :  { %v11106_v45 = vmax.f32 %v11090_v40, %v11098_v20  ;;  %v11056_v13 = vmax.f32 %v30263_v27, %v11003_v7  ;;  %v11005_v14 = vpop.f32.mrb[137].mxu1  ;;  %22388 = vmatmul.mubr.msk.bf16.gmra.mrb[156].mxu0 %vm123_vm1, %v30384_v50  ;;  %v30489_v20 = vld [vmem:[%s32988_s0 + $0x168] sm:$0xff]   ;;  %v30534_v7 = vld [vmem:[%s32987_s1 + $0x20] sm:$0xff] }
 0x5ef   :  { %v11107_v56 = vmax.f32 %v11091_v0, %v11099_v42  ;;  %v11057_v46 = vmax.f32 %v30265_v61, %v11005_v14  ;;  %v11007_v25 = vpop.f32.mrb[138].mxu1  ;;  %13393 = vmatprep.mubr.bf16.mxu0 %v26229_v1  ;;  %v22525_v14 = vcombine.high %v30534_v7, %v13905_v47  ;;  %v22524_v44 = vcombine.low %v30534_v7, %v13905_v47 }
 0x5f0   :  { %v11112_v55 = vpack.c.bf16 %v11106_v45, %v11104_v59  ;;  %v11084_v39 = vadd.f32 %v30348_v48, %v11056_v13  ;;  %v11058_v52 = vmax.f32 %v30274_v32, %v11007_v25  ;;  %v11009_v27 = vpop.f32.mrb[139].mxu1  ;;  %v30410_v32 = vld [vmem:[%s32988_s0 + $0x150] sm:$0xff]   ;;  %v30568_v25 = vld [vmem:[%s32988_s0 + $0x158] sm:$0xff]  }
 0x5f1   :  { %v11113_v36 = vpack.c.bf16 %v11107_v56, %v11105_v51  ;;  %v11085_v61 = vadd.f32 %v30358_v43, %v11057_v46  ;;  %v11059_v16 = vmax.f32 %v30278_v34, %v11009_v27  ;;  %v22457_v34 = vcombine.high %v29996_v12, %v22446_v22  ;;  %v30482_v59 = vld [vmem:[%s32987_s1 + $0x4] ss:$16 sps:$4 sm:$0xff]   ;;  %v30548_v13 = vld [vmem:[%s32987_s1] ss:$16 sps:$4 sm:$0xff]  }
 0x5f2   :  { %11117 = vst [vmem:[#allocation2 + $0xe0] sm:$0xff] %v11112_v55  ;;  %v11100_v11 = vmax.f32 %v11084_v39, 0.0  ;;  %v11086_v2 = vadd.f32 %v30348_v48, %v11058_v52  ;;  %22354 = vmatmul.mubr.msk.bf16.gmra.mrb[164].mxu1 %vm123_vm1, %v30272_v54  ;;  %v22456_v54 = vcombine.low %v29996_v12, %v22446_v22  ;;  %v25886_v12 = vld [vmem:[%s32988_s0 + $0x158] sm:$0xff]   ;;  %v30506_v51 = vld [vmem:[%s32988_s0 + $0x170] sm:$0xff]   ;;  %v14218_v56 = vsel %vm136_vm0, %v22524_v44, 0  ;;  %v30594_v22 = vld [vmem:[%s32988_s0 + $0x160] sm:$0xff]  }
 0x5f3   :  { %11118 = vst.msk [vmem:[#allocation2 + $0xe8] sm:$0xff] %vm1422_vm2, %v11113_v36  ;;  %v11101_v31 = vmax.f32 %v11085_v61, 0.0  ;;  %v11087_v57 = vadd.f32 %v30358_v43, %v11059_v16  ;;  %12979 = vmatprep.mubr.bf16.mxu1 %v26229_v1  ;;  %v30543_v45 = vld [vmem:[%s32988_s0 + $0x150] sm:$0xff]   ;;  %v22493_v55 = vld [vmem:[%s32987_s1 + $0x78] sm:$0x33] }
 0x5f4   :  { %v11108_v48 = vmax.f32 %v11092_v10, %v11100_v11  ;;  %v11102_v4 = vmax.f32 %v11086_v2, 0.0  ;;  %v13625_v21 = vsel %vm136_vm0, %v22456_v54, 0  ;;  %v30562_v46 = vld [vmem:[%s32987_s1 + $0x84] ss:$16 sps:$4 sm:$0xff]   ;;  %v30586_v39 = vld [vmem:[%s32987_s1 + $0x48] ss:$16 sps:$4 sm:$0xff]   ;;  %v22505_v52 = vcombine.high %v30575_v17, %v22493_v55 }
 0x5f5   :  { %v11109_v18 = vmax.f32 %v11093_v33, %v11101_v31  ;;  %v11103_v23 = vmax.f32 %v11087_v57, 0.0  ;;  %v22504_v27 = vcombine.low %v30575_v17, %v22493_v55  ;;  %v30603_v36 = vld [vmem:[%s32987_s1 + $0xc] ss:$16 sps:$4 sm:$0xff]   ;;  %v30633_v33 = vld [vmem:[%s32987_s1 + $0xa0] sm:$0xff]  ;;  %v22552_v31 = vld [vmem:[%s32987_s1 + $0xb0] sm:$0x33] }
 0x5f6   :  { %v11110_v9 = vmax.f32 %v11094_v28, %v11102_v4  ;;  %22423 = vmatmul.mubr.msk.bf16.vlgmr.msra.gmra.mrb[144].mxu0 %vm123_vm1, %v30410_v32  ;;  %v30618_v10 = vld [vmem:[%s32988_s0 + $0x168] sm:$0xff]   ;;  %v22563_v54 = vcombine.high %v30633_v33, %v22552_v31 }
 0x5f7   :  { %v11111_v29 = vmax.f32 %v11095_v58, %v11103_v23  ;;  %13637 = vmatpush1.bf16.msra.mxu0 %v30017_v35  ;;  %13403 = vmatprep.mubr.bf16.mxu0 %v26229_v1  ;;  %v22409_v35 = vld [vmem:[%s32987_s1 + $0xf8] sm:$0x33]  ;;  %v13998_v37 = vsel %vm136_vm0, %v22504_v27, 0  ;;  %v22562_v58 = vcombine.low %v30633_v33, %v22552_v31  ;;  %v30668_v23 = vld [vmem:[%s32987_s1 + $0xc4] ss:$16 sps:$4 sm:$0xff]  }
 0x5f8   :  { %v11114_v43 = vpack.c.bf16 %v11110_v9, %v11108_v48  ;;  %22460 = vmatprep.subr.msk.bf16.mxu0 %vm136_vm0, %v22457_v34  ;;  %v22420_v38 = vcombine.low %v30044_v60, %v22409_v35  ;;  %v30645_v34 = vld [vmem:[%s32988_s0 + $0x140] sm:$0xff]  }
 0x5f9   :  { %v11115_v63 = vpack.c.bf16 %v11111_v29, %v11109_v18  ;;  %v30652_v48 = vld [vmem:[%s32987_s1 + $0x80] ss:$16 sps:$4 sm:$0xff]   ;;  %v14460_v18 = vsel %vm136_vm0, %v22562_v58, 0  ;;  %v30779_v27 = vld [vmem:[%s32987_s1 + $0x104] ss:$16 sps:$4 sm:$0xff]  }
 0x5fa   :  { %11119 = vst [vmem:[#allocation2 + $0xf0] sm:$0xff] %v11114_v43  ;;  %22355 = vmatmul.mubr.msk.bf16.gmra.mrb[168].mxu1 %vm123_vm1, %v30291_v30  ;;  %v22421_v30 = vcombine.high %v30044_v60, %v22409_v35  ;;  %v25888_v60 = vld [vmem:[%s32988_s0 + $0x168] sm:$0xff]   ;;  %v13906_v35 = vld [vmem:[%s32987_s1 + $0x38] sm:$0x33]  ;;  %v12445_v31 = vld [vmem:[%s32989_s2] sm:$0x3] }
 0x5fb   :  { %11120 = vst.msk [vmem:[#allocation2 + $0xf8] sm:$0xff] %vm1422_vm2, %v11115_v63  ;;  %13191 = vmatprep.mubr.bf16.mxu1 %v26229_v1  ;;  %13639 = vmatpush1.bf16.msra.mxu0 %v13625_v21  ;;  %v30679_v43 = vld [vmem:[%s32988_s0 + $0x148] sm:$0xff]  }
 0x5fc   :  { %14003 = vmatprep.subr.bf16.mxu0 %v30031_v62  ;;  %v13356_v62 = vsel %vm136_vm0, %v22420_v38, 0 }
 0x5fe   :  { %22424 = vmatmul.mubr.msk.bf16.gmra.mrb[148].mxu0 %vm123_vm1, %v25886_v12 }
 0x5ff   :  { %13413 = vmatprep.mubr.bf16.mxu0 %v26229_v1 }
 0x602   :  { %22390 = vmatmul.mubr.msk.bf16.vlgmr.msra.gmra.mrb[156].mxu1 %vm123_vm1, %v30305_v3  ;;  %v25889_v3 = vld [vmem:[%s32988_s0 + $0x160] sm:$0xff]  }
 0x603   :  { %13201 = vmatprep.mubr.bf16.mxu1 %v26229_v1  ;;  %13435 = vmatpush1.bf16.msra.mxu1 %v30054_v26  ;;  %v30461_v26 = vld [vmem:[%s32987_s1 + $0x60] sm:$0xff] }
 0x604   :  { %22427 = vmatprep.subr.msk.bf16.mxu1 %vm136_vm0, %v22421_v30  ;;  %v30701_v30 = vld [vmem:[%s32987_s1 + $0x8] ss:$16 sps:$4 sm:$0xff]  }
 0x606   :  { %22425 = vmatmul.mubr.msk.bf16.gmra.mrb[152].mxu0 %vm123_vm1, %v25887_v49 }
 0x607   :  { %13423 = vmatprep.mubr.bf16.mxu0 %v26229_v1  ;;  %13437 = vmatpush1.bf16.msra.mxu1 %v13356_v62 }
 0x608   :  { %13709 = vmatprep.subr.bf16.mxu1 %v30070_v24  ;;  %v22492_v24 = vld [vmem:[%s32987_s1 + $0x70] sm:$0x33] }
 0x609   :  { %v22502_v40 = vcombine.low %v30461_v26, %v22492_v24 }
 0x60a   :  { %22391 = vmatmul.mubr.msk.bf16.gmra.mrb[160].mxu1 %vm123_vm1, %v30325_v8  ;;  %v22503_v8 = vcombine.high %v30461_v26, %v22492_v24  ;;  %v30714_v24 = vld [vmem:[%s32988_s0 + $0x150] sm:$0xff]  }
 0x60b   :  { %13211 = vmatprep.mubr.bf16.mxu1 %v26229_v1 }
 0x60e   :  { %22426 = vmatmul.mubr.msk.bf16.gmra.mrb[156].mxu0 %vm123_vm1, %v25888_v60 }
 0x60f   :  { %13668 = vmatprep.mubr.bf16.mxu0 %v26229_v1 }
 0x612   :  { %22392 = vmatmul.mubr.msk.bf16.gmra.mrb[164].mxu1 %vm123_vm1, %v30355_v15  ;;  %v13992_v15 = vsel %vm136_vm0, %v22502_v40, 0 }
 0x613   :  { %13221 = vmatprep.mubr.bf16.mxu1 %v26229_v1 }
 0x616   :  { %22461 = vmatmul.mubr.msk.bf16.vlgmr.msra.gmra.mrb[144].mxu0 %vm123_vm1, %v25889_v3 }
 0x617   :  { %14004 = vmatpush1.bf16.msra.mxu0 %v30094_v19  ;;  %13678 = vmatprep.mubr.bf16.mxu0 %v26229_v1  ;;  %v22447_v19 = vld [vmem:[%s32987_s1 + $0x138] sm:$0x33] }
 0x618   :  { %22506 = vmatprep.subr.msk.bf16.mxu0 %vm136_vm0, %v22503_v8  ;;  %v22458_v0 = vcombine.low %v30114_v53, %v22447_v19 }
 0x61a   :  { %22393 = vmatmul.mubr.msk.bf16.gmra.mrb[168].mxu1 %vm123_vm1, %v30384_v50  ;;  %v22459_v50 = vcombine.high %v30114_v53, %v22447_v19  ;;  %v13631_v42 = vsel %vm136_vm0, %v22458_v0, 0  ;;  %v30515_v53 = vld [vmem:[%s32987_s1 + $0x4c] ss:$16 sps:$4 sm:$0xff]   ;;  %v30747_v19 = vld [vmem:[%s32987_s1 + $0xe0] sm:$0xff] }
 0x61b   :  { %13466 = vmatprep.mubr.bf16.mxu1 %v26229_v1  ;;  %14006 = vmatpush1.bf16.msra.mxu0 %v13992_v15  ;;  %v30727_v15 = vld [vmem:[%s32987_s1 + $0x8c] ss:$16 sps:$4 sm:$0xff]   ;;  %v30757_v0 = vld [vmem:[%s32988_s0 + $0x160] sm:$0xff]  }
 0x61c   :  { %14229 = vmatprep.subr.bf16.mxu0 %v30482_v59 }
 0x61e   :  { %22462 = vmatmul.mubr.msk.bf16.gmra.mrb[148].mxu0 %vm123_vm1, %v30489_v20 }
 0x61f   :  { %13688 = vmatprep.mubr.bf16.mxu0 %v26229_v1 }
 0x622   :  { %22428 = vmatmul.mubr.msk.bf16.vlgmr.msra.gmra.mrb[156].mxu1 %vm123_vm1, %v30410_v32 }
 0x623   :  { %13476 = vmatprep.mubr.bf16.mxu1 %v26229_v1  ;;  %13710 = vmatpush1.bf16.msra.mxu1 %v30124_v6  ;;  %v30525_v6 = vld [vmem:[%s32988_s0 + $0x178] sm:$0xff]  }
 0x624   :  { %22465 = vmatprep.subr.msk.bf16.mxu1 %vm136_vm0, %v22459_v50  ;;  %v22590_v50 = vld [vmem:[%s32987_s1 + $0xf0] sm:$0x33] }
 0x626   :  { %22463 = vmatmul.mubr.msk.bf16.gmra.mrb[152].mxu0 %vm123_vm1, %v30506_v51 }
 0x627   :  { %13698 = vmatprep.mubr.bf16.mxu0 %v26229_v1  ;;  %13712 = vmatpush1.bf16.msra.mxu1 %v13631_v42  ;;  %v22601_v42 = vcombine.high %v30747_v19, %v22590_v50 }
 0x628   :  { %14076 = vmatprep.subr.bf16.mxu1 %v30515_v53 }
 0x62a   :  { %22429 = vmatmul.mubr.msk.bf16.gmra.mrb[160].mxu1 %vm123_vm1, %v25886_v12  ;;  %v30690_v12 = vld [vmem:[%s32987_s1 + $0x28] sm:$0xff] }
 0x62b   :  { %13486 = vmatprep.mubr.bf16.mxu1 %v26229_v1  ;;  %v22527_v38 = vcombine.high %v30690_v12, %v13906_v35 }
 0x62e   :  { %22464 = vmatmul.mubr.msk.bf16.gmra.mrb[156].mxu0 %vm123_vm1, %v30525_v6 }
 0x62f   :  { %14035 = vmatprep.mubr.bf16.mxu0 %v26229_v1 }
 0x632   :  { %22430 = vmatmul.mubr.msk.bf16.gmra.mrb[164].mxu1 %vm123_vm1, %v25887_v49  ;;  %v22526_v49 = vcombine.low %v30690_v12, %v13906_v35 }
 0x633   :  { %13496 = vmatprep.mubr.bf16.mxu1 %v26229_v1 }
 0x634   :  { %v14224_v40 = vsel %vm136_vm0, %v22526_v49, 0 }
 0x636   :  { %22507 = vmatmul.mubr.msk.bf16.vlgmr.msra.gmra.mrb[160].mxu0 %vm123_vm1, %v30543_v45 }
 0x637   :  { %14230 = vmatpush1.bf16.msra.mxu0 %v30548_v13  ;;  %14045 = vmatprep.mubr.bf16.mxu0 %v26229_v1 }
 0x638   :  { %22528 = vmatprep.subr.msk.bf16.mxu0 %vm136_vm0, %v22525_v14 }
 0x63a   :  { %22431 = vmatmul.mubr.msk.bf16.gmra.mrb[168].mxu1 %vm123_vm1, %v25888_v60 }
 0x63b   :  { %13741 = vmatprep.mubr.bf16.mxu1 %v26229_v1  ;;  %14232 = vmatpush1.bf16.msra.mxu0 %v14218_v56 }
 0x63c   :  { %14471 = vmatprep.subr.bf16.mxu0 %v30562_v46 }
 0x63e   :  { %22508 = vmatmul.mubr.msk.bf16.gmra.mrb[164].mxu0 %vm123_vm1, %v30568_v25 }
 0x63f   :  { %14055 = vmatprep.mubr.bf16.mxu0 %v26229_v1 }
 0x642   :  { %22466 = vmatmul.mubr.msk.bf16.vlgmr.msra.gmra.mrb[156].mxu1 %vm123_vm1, %v25889_v3 }
 0x643   :  { %13751 = vmatprep.mubr.bf16.mxu1 %v26229_v1  ;;  %14077 = vmatpush1.bf16.msra.mxu1 %v30586_v39 }
 0x644   :  { %22511 = vmatprep.subr.msk.bf16.mxu1 %vm136_vm0, %v22505_v52 }
 0x646   :  { %22509 = vmatmul.mubr.msk.bf16.gmra.mrb[168].mxu0 %vm123_vm1, %v30594_v22 }
 0x647   :  { %14065 = vmatprep.mubr.bf16.mxu0 %v26229_v1  ;;  %14079 = vmatpush1.bf16.msra.mxu1 %v13998_v37  ;;  %v30787_v37 = vld [vmem:[%s32988_s0 + $0x168] sm:$0xff]  }
 0x648   :  { %14302 = vmatprep.subr.bf16.mxu1 %v30603_v36 }
 0x649   :  { %v30609_v61 = vpop.f32.mrb[128].mxu0 }
 0x64a   :  { %v30611_v16 = vpop.f32.mrb[129].mxu0  ;;  %22467 = vmatmul.mubr.msk.bf16.gmra.mrb[160].mxu1 %vm123_vm1, %v30489_v20  ;;  %v30738_v20 = vld [vmem:[%s32988_s0 + $0x158] sm:$0xff]  }
 0x64b   :  { %v30620_v11 = vpop.f32.mrb[130].mxu0  ;;  %13761 = vmatprep.mubr.bf16.mxu1 %v26229_v1 }
 0x64c   :  { %v30623_v2 = vpop.f32.mrb[131].mxu0 }
 0x64e   :  { %22510 = vmatmul.mubr.msk.bf16.gmra.mrb[172].mxu0 %vm123_vm1, %v30618_v10 }
 0x64f   :  { %14261 = vmatprep.mubr.bf16.mxu0 %v26229_v1 }
 0x651   :  { %v30628_v32 = vpop.f32.mrb[132].mxu0 }
 0x652   :  { %v30638_v57 = vpop.f32.mrb[133].mxu0  ;;  %22468 = vmatmul.mubr.msk.bf16.gmra.mrb[164].mxu1 %vm123_vm1, %v30506_v51  ;;  %v30762_v51 = vld [vmem:[%s32987_s1 + $0xc0] ss:$16 sps:$4 sm:$0xff]  }
 0x653   :  { %v30647_v28 = vpop.f32.mrb[134].mxu0  ;;  %13771 = vmatprep.mubr.bf16.mxu1 %v26229_v1 }
 0x654   :  { %v30655_v4 = vpop.f32.mrb[135].mxu0 }
 0x656   :  { %22529 = vmatmul.mubr.msk.bf16.vlgmr.msra.gmra.mrb[160].mxu0 %vm123_vm1, %v30645_v34 }
 0x657   :  { %14472 = vmatpush1.bf16.msra.mxu0 %v30652_v48  ;;  %14271 = vmatprep.mubr.bf16.mxu0 %v26229_v1 }
 0x658   :  { %22566 = vmatprep.subr.msk.bf16.mxu0 %vm136_vm0, %v22563_v54 }
 0x659   :  { %v30670_v9 = vpop.f32.mrb[136].mxu0 }
 0x65a   :  { %v30672_v29 = vpop.f32.mrb[137].mxu0  ;;  %22469 = vmatmul.mubr.msk.bf16.gmra.mrb[168].mxu1 %vm123_vm1, %v30525_v6  ;;  %v22600_v6 = vcombine.low %v30747_v19, %v22590_v50  ;;  %v30827_v50 = vld [vmem:[%s32988_s0 + $0x170] sm:$0xff]  }
 0x65b   :  { %v30681_v21 = vpop.f32.mrb[138].mxu0  ;;  %14108 = vmatprep.mubr.bf16.mxu1 %v26229_v1  ;;  %14474 = vmatpush1.bf16.msra.mxu0 %v14460_v18  ;;  %v30810_v18 = vld [vmem:[%s32987_s1 + $0x88] ss:$16 sps:$4 sm:$0xff]  }
 0x65c   :  { %v30684_v63 = vpop.f32.mrb[139].mxu0  ;;  %14746 = vmatprep.subr.bf16.mxu0 %v30668_v23  ;;  %v14735_v52 = vsel %vm136_vm0, %v22600_v6, 0 }
 0x65e   :  { %22530 = vmatmul.mubr.msk.bf16.gmra.mrb[164].mxu0 %vm123_vm1, %v30679_v43 }
 0x65f   :  { %14281 = vmatprep.mubr.bf16.mxu0 %v26229_v1 }
 0x661   :  { %v30705_v62 = vpop.f32.mrb[140].mxu0 }
 0x662   :  { %v30707_v60 = vpop.f32.mrb[141].mxu0  ;;  %22512 = vmatmul.mubr.msk.bf16.vlgmr.msra.gmra.mrb[172].mxu1 %vm123_vm1, %v30543_v45 }
 0x663   :  { %v30716_v3 = vpop.f32.mrb[142].mxu0  ;;  %14118 = vmatprep.mubr.bf16.mxu1 %v26229_v1  ;;  %14303 = vmatpush1.bf16.msra.mxu1 %v30701_v30 }
 0x664   :  { %v30720_v8 = vpop.f32.mrb[143].mxu0  ;;  %22533 = vmatprep.subr.msk.bf16.mxu1 %vm136_vm0, %v22527_v38 }
 0x666   :  { %22531 = vmatmul.mubr.msk.bf16.gmra.mrb[168].mxu0 %vm123_vm1, %v30714_v24 }
 0x667   :  { %14291 = vmatprep.mubr.bf16.mxu0 %v26229_v1  ;;  %14305 = vmatpush1.bf16.msra.mxu1 %v14224_v40 }
 0x668   :  { %14544 = vmatprep.subr.bf16.mxu1 %v30727_v15 }
 0x66a   :  { %22513 = vmatmul.mubr.msk.bf16.gmra.mrb[176].mxu1 %vm123_vm1, %v30568_v25 }
 0x66b   :  { %14128 = vmatprep.mubr.bf16.mxu1 %v26229_v1 }
 0x66e   :  { %22532 = vmatmul.mubr.msk.bf16.gmra.mrb[172].mxu0 %vm123_vm1, %v30738_v20 }
 0x66f   :  { %14503 = vmatprep.mubr.bf16.mxu0 %v26229_v1 }
 0x672   :  { %22514 = vmatmul.mubr.msk.bf16.gmra.mrb[180].mxu1 %vm123_vm1, %v30594_v22 }
 0x673   :  { %14138 = vmatprep.mubr.bf16.mxu1 %v26229_v1 }
 0x675   :  { %v12358_v47 = vpop.f32.mrb[140].mxu1 }
 0x676   :  { %v12429_v45 = vmax.f32 %v30609_v61, %v12358_v47  ;;  %v12360_v14 = vpop.f32.mrb[141].mxu1  ;;  %22567 = vmatmul.mubr.msk.bf16.vlgmr.msra.gmra.mrb[160].mxu0 %vm123_vm1, %v30757_v0 }
 0x677   :  { %v12430_v44 = vmax.f32 %v30611_v16, %v12360_v14  ;;  %v12362_v56 = vpop.f32.mrb[142].mxu1  ;;  %14747 = vmatpush1.bf16.msra.mxu0 %v30762_v51  ;;  %14513 = vmatprep.mubr.bf16.mxu0 %v26229_v1  ;;  %v30794_v16 = vld [vmem:[%s32987_s1 + $0xa8] sm:$0xff] }
 0x678   :  { %v12431_v25 = vmax.f32 %v30620_v11, %v12362_v56  ;;  %v12364_v55 = vpop.f32.mrb[143].mxu1  ;;  %22604 = vmatprep.subr.msk.bf16.mxu0 %vm136_vm0, %v22601_v42 }
 0x679   :  { %v12432_v22 = vmax.f32 %v30623_v2, %v12364_v55 }
 0x67a   :  { %22515 = vmatmul.mubr.msk.bf16.gmra.mrb[184].mxu1 %vm123_vm1, %v30618_v10  ;;  %v22553_v10 = vld [vmem:[%s32987_s1 + $0xb8] sm:$0x33] }
 0x67b   :  { %14334 = vmatprep.mubr.bf16.mxu1 %v26229_v1  ;;  %14749 = vmatpush1.bf16.msra.mxu0 %v14735_v52  ;;  %v22565_v38 = vcombine.high %v30794_v16, %v22553_v10  ;;  %v22564_v49 = vcombine.low %v30794_v16, %v22553_v10 }
 0x67c   :  { %15021 = vmatprep.subr.bf16.mxu0 %v30779_v27 }
 0x67d   :  { %v12368_v61 = vpop.f32.mrb[144].mxu1 }
 0x67e   :  { %v12433_v11 = vmax.f32 %v30628_v32, %v12368_v61  ;;  %v12370_v2 = vpop.f32.mrb[145].mxu1  ;;  %22568 = vmatmul.mubr.msk.bf16.gmra.mrb[164].mxu0 %vm123_vm1, %v30787_v37 }
 0x67f   :  { %v12434_v54 = vmax.f32 %v30638_v57, %v12370_v2  ;;  %v12372_v58 = vpop.f32.mrb[146].mxu1  ;;  %14523 = vmatprep.mubr.bf16.mxu0 %v26229_v1  ;;  %v30820_v57 = vrot.slane %v12445_v31, %v27264_v41 }
 0x680   :  { %v12435_v32 = vmax.f32 %v30647_v28, %v12372_v58  ;;  %v30813_v35 = vpop.f32.mrb[147].mxu1  ;;  %v30830_v28 = vrot.slane %v12445_v31, %v27272_v5 }
 0x681   :  { %v12436_v40 = vmax.f32 %v30655_v4, %v30813_v35  ;;  %v14466_v4 = vsel %vm136_vm0, %v22564_v49, 0  ;;  %v12457_v6 = vadd.f32 %v30820_v57, %v12429_v45  ;;  %v12459_v61 = vadd.f32 %v30820_v57, %v12431_v25 }
 0x682   :  { %22534 = vmatmul.mubr.msk.bf16.vlgmr.msra.gmra.mrb[172].mxu1 %vm123_vm1, %v30645_v34  ;;  %v30839_v34 = vld [vmem:[%s32987_s1 + $0xcc] ss:$16 sps:$4 sm:$0xff]   ;;  %v12458_v56 = vadd.f32 %v30830_v28, %v12430_v44 }
 0x683   :  { %14344 = vmatprep.mubr.bf16.mxu1 %v26229_v1  ;;  %14545 = vmatpush1.bf16.msra.mxu1 %v30810_v18  ;;  %v12475_v49 = vmax.f32 %v12459_v61, 0.0 }
 0x684   :  { %22571 = vmatprep.subr.msk.bf16.mxu1 %vm136_vm0, %v22565_v38  ;;  %v12474_v25 = vmax.f32 %v12458_v56, 0.0  ;;  %v12462_v56 = vadd.f32 %v30830_v28, %v12434_v54  ;;  %v12464_v54 = vadd.f32 %v30830_v28, %v12436_v40 }
 0x685   :  { %v12378_v42 = vpop.f32.mrb[148].mxu1 }
 0x686   :  { %v12437_v47 = vmax.f32 %v30670_v9, %v12378_v42  ;;  %v12380_v14 = vpop.f32.mrb[149].mxu1  ;;  %22569 = vmatmul.mubr.msk.bf16.gmra.mrb[168].mxu0 %vm123_vm1, %v30827_v50  ;;  %v12460_v9 = vadd.f32 %v30830_v28, %v12432_v22 }
 0x687   :  { %v12438_v55 = vmax.f32 %v30672_v29, %v12380_v14  ;;  %v12382_v52 = vpop.f32.mrb[150].mxu1  ;;  %14533 = vmatprep.mubr.bf16.mxu0 %v26229_v1  ;;  %14547 = vmatpush1.bf16.msra.mxu1 %v14466_v4  ;;  %v12473_v29 = vmax.f32 %v12457_v6, 0.0 }
 0x688   :  { %v12465_v10 = vadd.f32 %v30820_v57, %v12437_v47  ;;  %v12439_v45 = vmax.f32 %v30681_v21, %v12382_v52  ;;  %v12384_v2 = vpop.f32.mrb[151].mxu1  ;;  %14819 = vmatprep.subr.bf16.mxu1 %v30839_v34  ;;  %v30861_v21 = vld [vmem:[%s32988_s0 + $0x178] sm:$0xff]   ;;  %v12476_v42 = vmax.f32 %v12460_v9, 0.0  ;;  %v12463_v9 = vadd.f32 %v30820_v57, %v12435_v32 }
 0x689   :  { %v12466_v31 = vadd.f32 %v30830_v28, %v12438_v55  ;;  %v12440_v44 = vmax.f32 %v30684_v63, %v12384_v2 }
 0x68a   :  { %v12481_v58 = vmax.f32 %v12465_v10, 0.0  ;;  %v12467_v35 = vadd.f32 %v30820_v57, %v12439_v45  ;;  %22535 = vmatmul.mubr.msk.bf16.gmra.mrb[176].mxu1 %vm123_vm1, %v30679_v43  ;;  %v12461_v43 = vadd.f32 %v30820_v57, %v12433_v11 }
 0x68b   :  { %v12482_v38 = vmax.f32 %v12466_v31, 0.0  ;;  %v12468_v22 = vadd.f32 %v30830_v28, %v12440_v44  ;;  %14354 = vmatprep.mubr.bf16.mxu1 %v26229_v1 }
 0x68c   :  { %v12489_v63 = vmax.f32 %v12473_v29, %v12481_v58  ;;  %v12483_v4 = vmax.f32 %v12467_v35, 0.0  ;;  %v30878_v29 = vld [vmem:[%s32987_s1 + $0x120] sm:$0xff] }
 0x68d   :  { %v12490_v6 = vmax.f32 %v12474_v25, %v12482_v38  ;;  %v12484_v47 = vmax.f32 %v12468_v22, 0.0  ;;  %v12388_v14 = vpop.f32.mrb[152].mxu1  ;;  %v12477_v25 = vmax.f32 %v12461_v43, 0.0  ;;  %v30892_v22 = vld [vmem:[%s32988_s0 + $0x170] sm:$0xff]  }
 0x68e   :  { %v12491_v55 = vmax.f32 %v12475_v49, %v12483_v4  ;;  %v12441_v52 = vmax.f32 %v30705_v62, %v12388_v14  ;;  %v12390_v10 = vpop.f32.mrb[153].mxu1  ;;  %22570 = vmatmul.mubr.msk.bf16.gmra.mrb[172].mxu0 %vm123_vm1, %v30861_v21  ;;  %v12478_v49 = vmax.f32 %v12462_v56, 0.0  ;;  %v25952_v56 = vld [vmem:[%s32987_s1 + $0x44] ss:$16 sps:$4 sm:$0xff]  }
 0x68f   :  { %v12492_v45 = vmax.f32 %v12476_v42, %v12484_v47  ;;  %v12442_v61 = vmax.f32 %v30707_v60, %v12390_v10  ;;  %v12392_v2 = vpop.f32.mrb[154].mxu1  ;;  %14778 = vmatprep.mubr.bf16.mxu0 %v26229_v1  ;;  %v22628_v60 = vld [vmem:[%s32987_s1 + $0x130] sm:$0x33]  ;;  %v12480_v47 = vmax.f32 %v12464_v54, 0.0 }
 0x690   :  { %v12497_v31 = vpack.c.bf16 %v12491_v55, %v12489_v63  ;;  %v12469_v11 = vadd.f32 %v30820_v57, %v12441_v52  ;;  %v12443_v44 = vmax.f32 %v30716_v3, %v12392_v2  ;;  %v12394_v62 = vpop.f32.mrb[155].mxu1  ;;  %v30923_v2 = vld [vmem:[%s32987_s1 + $0xe8] sm:$0xff]  ;;  %v22674_v54 = vld [vmem:[%s32987_s1 + $0x70] sm:$0x33] }
 0x691   :  { %v12498_v58 = vpack.c.bf16 %v12492_v45, %v12490_v6  ;;  %v12470_v32 = vadd.f32 %v30830_v28, %v12442_v61  ;;  %v12444_v35 = vmax.f32 %v30720_v8, %v12394_v62  ;;  %v30899_v8 = vld [vmem:[%s32987_s1 + $0x100] ss:$16 sps:$4 sm:$0xff]   ;;  %v22638_v6 = vcombine.low %v30878_v29, %v22628_v60  ;;  %v25940_v61 = vld [vmem:[%s32988_s0 + $0x178] sm:$0xff]  }
 0x692   :  { %12502 = vst [vmem:[#allocation2 + $0x100] sm:$0xff] %v12497_v31  ;;  %v12485_v3 = vmax.f32 %v12469_v11, 0.0  ;;  %v12471_v38 = vadd.f32 %v30820_v57, %v12443_v44  ;;  %22536 = vmatmul.mubr.msk.bf16.gmra.mrb[180].mxu1 %vm123_vm1, %v30714_v24  ;;  %v22639_v24 = vcombine.high %v30878_v29, %v22628_v60  ;;  %v12479_v57 = vmax.f32 %v12463_v9, 0.0  ;;  %v22591_v9 = vld [vmem:[%s32987_s1 + $0xf8] sm:$0x33]  ;;  %v25942_v44 = vld [vmem:[%s32988_s0 + $0x180] sm:$0xff]  }
 0x693   :  { %12503 = vst.msk [vmem:[#allocation2 + $0x108] sm:$0xff] %vm1422_vm2, %v12498_v58  ;;  %v12486_v40 = vmax.f32 %v12470_v32, 0.0  ;;  %v12472_v63 = vadd.f32 %v30830_v28, %v12444_v35  ;;  %14364 = vmatprep.mubr.bf16.mxu1 %v26229_v1  ;;  %v15010_v10 = vsel %vm136_vm0, %v22638_v6, 0  ;;  %v22603_v31 = vcombine.high %v30923_v2, %v22591_v9  ;;  %v30949_v60 = vld [vmem:[%s32987_s1 + $0x10c] ss:$16 sps:$4 sm:$0xff]  }
 0x694   :  { %v12493_v4 = vmax.f32 %v12477_v25, %v12485_v3  ;;  %v12487_v42 = vmax.f32 %v12471_v38, 0.0  ;;  %v22602_v11 = vcombine.low %v30923_v2, %v22591_v9  ;;  %v25950_v58 = vld [vmem:[%s32987_s1 + $0x40] ss:$16 sps:$4 sm:$0xff]   ;;  %v22685_v32 = vcombine.high %v30461_v26, %v22674_v54  ;;  %v25954_v25 = vld [vmem:[%s32988_s0 + $0x188] sm:$0xff]   ;;  %v22629_v3 = vld [vmem:[%s32987_s1 + $0x138] sm:$0x33] }
 0x695   :  { %v12494_v14 = vmax.f32 %v12478_v49, %v12486_v40  ;;  %v12488_v43 = vmax.f32 %v12472_v63, 0.0  ;;  %v22684_v35 = vcombine.low %v30461_v26, %v22674_v54  ;;  %v30990_v26 = vld [vmem:[%s32987_s1 + $0x128] sm:$0xff]  ;;  %v25956_v49 = vld [vmem:[%s32988_s0 + $0x190] sm:$0xff]  }
 0x696   :  { %v12495_v55 = vmax.f32 %v12479_v57, %v12487_v42  ;;  %22605 = vmatmul.mubr.msk.bf16.vlgmr.msra.gmra.mrb[160].mxu0 %vm123_vm1, %v30892_v22  ;;  %v14741_v62 = vsel %vm136_vm0, %v22602_v11, 0  ;;  %v22640_v38 = vcombine.low %v30990_v26, %v22629_v3  ;;  %v15290_v63 = vld [vmem:[%s32987_s1 + $0x30] sm:$0x33] }
 0x697   :  { %v12496_v28 = vmax.f32 %v12480_v47, %v12488_v43  ;;  %15022 = vmatpush1.bf16.msra.mxu0 %v30899_v8  ;;  %14788 = vmatprep.mubr.bf16.mxu0 %v26229_v1  ;;  %v22706_v57 = vcombine.low %v30534_v7, %v15290_v63  ;;  %v31144_v54 = vld [vmem:[%s32988_s0 + $0x170] sm:$0xff]  }
 0x698   :  { %v12499_v52 = vpack.c.bf16 %v12495_v55, %v12493_v4  ;;  %22642 = vmatprep.subr.msk.bf16.mxu0 %vm136_vm0, %v22639_v24  ;;  %v15016_v40 = vsel %vm136_vm0, %v22640_v38, 0  ;;  %v22707_v24 = vcombine.high %v30534_v7, %v15290_v63  ;;  %v31045_v4 = vld [vmem:[%s32988_s0 + $0x178] sm:$0xff]  }
 0x699   :  { %v12500_v45 = vpack.c.bf16 %v12496_v28, %v12494_v14  ;;  %v15603_v42 = vsel %vm136_vm0, %v22706_v57, 0  ;;  %v22675_v7 = vld [vmem:[%s32987_s1 + $0x78] sm:$0x33]  ;;  %v31098_v28 = vld [vmem:[%s32988_s0 + $0x160] sm:$0xff]  }
 0x69a   :  { %12504 = vst [vmem:[#allocation2 + $0x110] sm:$0xff] %v12499_v52  ;;  %22537 = vmatmul.mubr.msk.bf16.gmra.mrb[184].mxu1 %vm123_vm1, %v30738_v20  ;;  %v30933_v20 = vld [vmem:[%s32987_s1 + $0xc8] ss:$16 sps:$4 sm:$0xff]   ;;  %v22687_v6 = vcombine.high %v30575_v17, %v22675_v7  ;;  %v22686_v47 = vcombine.low %v30575_v17, %v22675_v7 }
 0x69b   :  { %12505 = vst.msk [vmem:[#allocation2 + $0x118] sm:$0xff] %vm1422_vm2, %v12500_v45  ;;  %14576 = vmatprep.mubr.bf16.mxu1 %v26229_v1  ;;  %15024 = vmatpush1.bf16.msra.mxu0 %v15010_v10  ;;  %v31076_v17 = vld [vmem:[%s32988_s0 + $0x188] sm:$0xff]  }
 0x69c   :  { %15388 = vmatprep.subr.bf16.mxu0 %v25952_v56 }
 0x69e   :  { %22606 = vmatmul.mubr.msk.bf16.gmra.mrb[164].mxu0 %vm123_vm1, %v25940_v61 }
 0x69f   :  { %14798 = vmatprep.mubr.bf16.mxu0 %v26229_v1 }
 0x6a2   :  { %22572 = vmatmul.mubr.msk.bf16.vlgmr.msra.gmra.mrb[172].mxu1 %vm123_vm1, %v30757_v0  ;;  %v25945_v0 = vld [vmem:[%s32988_s0 + $0x188] sm:$0xff]  }
 0x6a3   :  { %14586 = vmatprep.mubr.bf16.mxu1 %v26229_v1  ;;  %14820 = vmatpush1.bf16.msra.mxu1 %v30933_v20 }
 0x6a4   :  { %22609 = vmatprep.subr.msk.bf16.mxu1 %vm136_vm0, %v22603_v31  ;;  %v31119_v31 = vld [vmem:[%s32988_s0 + $0x168] sm:$0xff]  }
 0x6a6   :  { %22607 = vmatmul.mubr.msk.bf16.gmra.mrb[168].mxu0 %vm123_vm1, %v25942_v44 }
 0x6a7   :  { %14808 = vmatprep.mubr.bf16.mxu0 %v26229_v1  ;;  %14822 = vmatpush1.bf16.msra.mxu1 %v14741_v62 }
 0x6a8   :  { %15094 = vmatprep.subr.bf16.mxu1 %v30949_v60 }
 0x6aa   :  { %22573 = vmatmul.mubr.msk.bf16.gmra.mrb[176].mxu1 %vm123_vm1, %v30787_v37  ;;  %v25949_v37 = vld [vmem:[%s32988_s0 + $0x180] sm:$0xff]  }
 0x6ab   :  { %14596 = vmatprep.mubr.bf16.mxu1 %v26229_v1 }
 0x6ae   :  { %22608 = vmatmul.mubr.msk.bf16.gmra.mrb[172].mxu0 %vm123_vm1, %v25945_v0 }
 0x6af   :  { %15053 = vmatprep.mubr.bf16.mxu0 %v26229_v1 }
 0x6b2   :  { %22574 = vmatmul.mubr.msk.bf16.gmra.mrb[180].mxu1 %vm123_vm1, %v30827_v50  ;;  %v15377_v50 = vsel %vm136_vm0, %v22684_v35, 0 }
 0x6b3   :  { %14606 = vmatprep.mubr.bf16.mxu1 %v26229_v1 }
 0x6b6   :  { %22643 = vmatmul.mubr.msk.bf16.vlgmr.msra.gmra.mrb[160].mxu0 %vm123_vm1, %v25949_v37 }
 0x6b7   :  { %15389 = vmatpush1.bf16.msra.mxu0 %v25950_v58  ;;  %15063 = vmatprep.mubr.bf16.mxu0 %v26229_v1 }
 0x6b8   :  { %22688 = vmatprep.subr.msk.bf16.mxu0 %vm136_vm0, %v22685_v32 }
 0x6ba   :  { %22575 = vmatmul.mubr.msk.bf16.gmra.mrb[184].mxu1 %vm123_vm1, %v30861_v21  ;;  %v31000_v21 = vld [vmem:[%s32987_s1 + $0x108] ss:$16 sps:$4 sm:$0xff]  }
 0x6bb   :  { %14851 = vmatprep.mubr.bf16.mxu1 %v26229_v1  ;;  %15391 = vmatpush1.bf16.msra.mxu0 %v15377_v50 }
 0x6bc   :  { %15614 = vmatprep.subr.bf16.mxu0 %v30482_v59  ;;  %v22641_v59 = vcombine.high %v30990_v26, %v22629_v3 }
 0x6be   :  { %22644 = vmatmul.mubr.msk.bf16.gmra.mrb[164].mxu0 %vm123_vm1, %v25954_v25 }
 0x6bf   :  { %15073 = vmatprep.mubr.bf16.mxu0 %v26229_v1 }
 0x6c2   :  { %22610 = vmatmul.mubr.msk.bf16.vlgmr.msra.gmra.mrb[172].mxu1 %vm123_vm1, %v30892_v22  ;;  %v31020_v22 = vld [vmem:[%s32988_s0 + $0x198] sm:$0xff]  }
 0x6c3   :  { %14861 = vmatprep.mubr.bf16.mxu1 %v26229_v1  ;;  %15095 = vmatpush1.bf16.msra.mxu1 %v31000_v21 }
 0x6c4   :  { %22647 = vmatprep.subr.msk.bf16.mxu1 %vm136_vm0, %v22641_v59 }
 0x6c6   :  { %22645 = vmatmul.mubr.msk.bf16.gmra.mrb[168].mxu0 %vm123_vm1, %v25956_v49 }
 0x6c7   :  { %15083 = vmatprep.mubr.bf16.mxu0 %v26229_v1  ;;  %15097 = vmatpush1.bf16.msra.mxu1 %v15016_v40 }
 0x6c8   :  { %15461 = vmatprep.subr.bf16.mxu1 %v30515_v53  ;;  %v31033_v53 = vld [vmem:[%s32988_s0 + $0x170] sm:$0xff]  }
 0x6ca   :  { %22611 = vmatmul.mubr.msk.bf16.gmra.mrb[176].mxu1 %vm123_vm1, %v25940_v61 }
 0x6cb   :  { %14871 = vmatprep.mubr.bf16.mxu1 %v26229_v1 }
 0x6ce   :  { %22646 = vmatmul.mubr.msk.bf16.gmra.mrb[172].mxu0 %vm123_vm1, %v31020_v22 }
 0x6cf   :  { %15420 = vmatprep.mubr.bf16.mxu0 %v26229_v1 }
 0x6d2   :  { %22612 = vmatmul.mubr.msk.bf16.gmra.mrb[180].mxu1 %vm123_vm1, %v25942_v44 }
 0x6d3   :  { %14881 = vmatprep.mubr.bf16.mxu1 %v26229_v1 }
 0x6d6   :  { %22689 = vmatmul.mubr.msk.bf16.vlgmr.msra.gmra.mrb[176].mxu0 %vm123_vm1, %v31033_v53 }
 0x6d7   :  { %15615 = vmatpush1.bf16.msra.mxu0 %v30548_v13  ;;  %15430 = vmatprep.mubr.bf16.mxu0 %v26229_v1  ;;  %v31061_v13 = vld [vmem:[%s32988_s0 + $0x180] sm:$0xff]  }
 0x6d8   :  { %22710 = vmatprep.subr.msk.bf16.mxu0 %vm136_vm0, %v22707_v24 }
 0x6da   :  { %22613 = vmatmul.mubr.msk.bf16.gmra.mrb[184].mxu1 %vm123_vm1, %v25945_v0  ;;  %v15291_v0 = vld [vmem:[%s32987_s1 + $0x38] sm:$0x33] }
 0x6db   :  { %15126 = vmatprep.mubr.bf16.mxu1 %v26229_v1  ;;  %15617 = vmatpush1.bf16.msra.mxu0 %v15603_v42  ;;  %v22708_v58 = vcombine.low %v30690_v12, %v15291_v0  ;;  %v22735_v42 = vld [vmem:[%s32987_s1 + $0xb8] sm:$0x33] }
 0x6dc   :  { %15856 = vmatprep.subr.bf16.mxu0 %v30562_v46  ;;  %v15383_v46 = vsel %vm136_vm0, %v22686_v47, 0 }
 0x6de   :  { %22690 = vmatmul.mubr.msk.bf16.gmra.mrb[180].mxu0 %vm123_vm1, %v31045_v4 }
 0x6df   :  { %15440 = vmatprep.mubr.bf16.mxu0 %v26229_v1 }
 0x6e2   :  { %22648 = vmatmul.mubr.msk.bf16.vlgmr.msra.gmra.mrb[172].mxu1 %vm123_vm1, %v25949_v37  ;;  %v22709_v37 = vcombine.high %v30690_v12, %v15291_v0  ;;  %v31171_v12 = vld [vmem:[%s32988_s0 + $0x178] sm:$0xff]  }
 0x6e3   :  { %15136 = vmatprep.mubr.bf16.mxu1 %v26229_v1  ;;  %15462 = vmatpush1.bf16.msra.mxu1 %v30586_v39 }
 0x6e4   :  { %22693 = vmatprep.subr.msk.bf16.mxu1 %vm136_vm0, %v22687_v6  ;;  %v13830_v6 = vld [vmem:[%s32989_s2] sm:$0x3] }
 0x6e6   :  { %22691 = vmatmul.mubr.msk.bf16.gmra.mrb[184].mxu0 %vm123_vm1, %v31061_v13 }
 0x6e7   :  { %15450 = vmatprep.mubr.bf16.mxu0 %v26229_v1  ;;  %15464 = vmatpush1.bf16.msra.mxu1 %v15383_v46 }
 0x6e8   :  { %15687 = vmatprep.subr.bf16.mxu1 %v30603_v36  ;;  %v22734_v36 = vld [vmem:[%s32987_s1 + $0xb0] sm:$0x33] }
 0x6e9   :  { %v31079_v14 = vpop.f32.mrb[144].mxu0  ;;  %v22745_v61 = vcombine.high %v30633_v33, %v22734_v36  ;;  %v22744_v9 = vcombine.low %v30633_v33, %v22734_v36  ;;  %v31235_v36 = vld [vmem:[%s32988_s0 + $0x190] sm:$0xff]  }
 0x6ea   :  { %v31081_v39 = vpop.f32.mrb[145].mxu0  ;;  %22649 = vmatmul.mubr.msk.bf16.gmra.mrb[176].mxu1 %vm123_vm1, %v25954_v25  ;;  %v15609_v25 = vsel %vm136_vm0, %v22708_v58, 0 }
 0x6eb   :  { %v31084_v43 = vpop.f32.mrb[146].mxu0  ;;  %15146 = vmatprep.mubr.bf16.mxu1 %v26229_v1  ;;  %v15845_v11 = vsel %vm136_vm0, %v22744_v9, 0 }
 0x6ec   :  { %v31087_v55 = vpop.f32.mrb[147].mxu0 }
 0x6ee   :  { %22692 = vmatmul.mubr.msk.bf16.gmra.mrb[188].mxu0 %vm123_vm1, %v31076_v17 }
 0x6ef   :  { %15646 = vmatprep.mubr.bf16.mxu0 %v26229_v1 }
 0x6f1   :  { %v31100_v52 = vpop.f32.mrb[148].mxu0 }
 0x6f2   :  { %v31102_v10 = vpop.f32.mrb[149].mxu0  ;;  %22650 = vmatmul.mubr.msk.bf16.gmra.mrb[180].mxu1 %vm123_vm1, %v25956_v49 }
 0x6f3   :  { %v31105_v56 = vpop.f32.mrb[150].mxu0  ;;  %15156 = vmatprep.mubr.bf16.mxu1 %v26229_v1 }
 0x6f4   :  { %v31108_v45 = vpop.f32.mrb[151].mxu0 }
 0x6f6   :  { %22711 = vmatmul.mubr.msk.bf16.vlgmr.msra.gmra.mrb[176].mxu0 %vm123_vm1, %v31098_v28 }
 0x6f7   :  { %15857 = vmatpush1.bf16.msra.mxu0 %v30652_v48  ;;  %15656 = vmatprep.mubr.bf16.mxu0 %v26229_v1 }
 0x6f8   :  { %22748 = vmatprep.subr.msk.bf16.mxu0 %vm136_vm0, %v22745_v61 }
 0x6f9   :  { %v31123_v44 = vpop.f32.mrb[152].mxu0 }
 0x6fa   :  { %v31125_v62 = vpop.f32.mrb[153].mxu0  ;;  %22651 = vmatmul.mubr.msk.bf16.gmra.mrb[184].mxu1 %vm123_vm1, %v31020_v22 }
 0x6fb   :  { %v31129_v33 = vpop.f32.mrb[154].mxu0  ;;  %15493 = vmatprep.mubr.bf16.mxu1 %v26229_v1  ;;  %15859 = vmatpush1.bf16.msra.mxu0 %v15845_v11 }
 0x6fc   :  { %v31132_v48 = vpop.f32.mrb[155].mxu0  ;;  %16131 = vmatprep.subr.bf16.mxu0 %v30668_v23 }
 0x6fe   :  { %22712 = vmatmul.mubr.msk.bf16.gmra.mrb[180].mxu0 %vm123_vm1, %v31119_v31 }
 0x6ff   :  { %15666 = vmatprep.mubr.bf16.mxu0 %v26229_v1 }
 0x701   :  { %v31148_v32 = vpop.f32.mrb[156].mxu0 }
 0x702   :  { %v31150_v23 = vpop.f32.mrb[157].mxu0  ;;  %22694 = vmatmul.mubr.msk.bf16.vlgmr.msra.gmra.mrb[188].mxu1 %vm123_vm1, %v31033_v53 }
 0x703   :  { %v31154_v35 = vpop.f32.mrb[158].mxu0  ;;  %15503 = vmatprep.mubr.bf16.mxu1 %v26229_v1  ;;  %15688 = vmatpush1.bf16.msra.mxu1 %v30701_v30  ;;  %v22772_v30 = vld [vmem:[%s32987_s1 + $0xf0] sm:$0x33] }
 0x704   :  { %v31158_v50 = vpop.f32.mrb[159].mxu0  ;;  %22715 = vmatprep.subr.msk.bf16.mxu1 %vm136_vm0, %v22709_v37  ;;  %v22783_v3 = vcombine.high %v30747_v19, %v22772_v30  ;;  %v22782_v59 = vcombine.low %v30747_v19, %v22772_v30 }
 0x706   :  { %22713 = vmatmul.mubr.msk.bf16.gmra.mrb[184].mxu0 %vm123_vm1, %v31144_v54  ;;  %v16120_v19 = vsel %vm136_vm0, %v22782_v59, 0 }
 0x707   :  { %15676 = vmatprep.mubr.bf16.mxu0 %v26229_v1  ;;  %15690 = vmatpush1.bf16.msra.mxu1 %v15609_v25 }
 0x708   :  { %15929 = vmatprep.subr.bf16.mxu1 %v30727_v15  ;;  %v31185_v15 = vld [vmem:[%s32988_s0 + $0x180] sm:$0xff]  }
 0x70a   :  { %22695 = vmatmul.mubr.msk.bf16.gmra.mrb[192].mxu1 %vm123_vm1, %v31045_v4  ;;  %v31205_v4 = vld [vmem:[%s32988_s0 + $0x188] sm:$0xff]  }
 0x70b   :  { %15513 = vmatprep.mubr.bf16.mxu1 %v26229_v1 }
 0x70e   :  { %22714 = vmatmul.mubr.msk.bf16.gmra.mrb[188].mxu0 %vm123_vm1, %v31171_v12 }
 0x70f   :  { %15888 = vmatprep.mubr.bf16.mxu0 %v26229_v1 }
 0x712   :  { %22696 = vmatmul.mubr.msk.bf16.gmra.mrb[196].mxu1 %vm123_vm1, %v31061_v13 }
 0x713   :  { %15523 = vmatprep.mubr.bf16.mxu1 %v26229_v1 }
 0x715   :  { %v13743_v38 = vpop.f32.mrb[156].mxu1 }
 0x716   :  { %v13814_v49 = vmax.f32 %v31079_v14, %v13743_v38  ;;  %v13745_v40 = vpop.f32.mrb[157].mxu1  ;;  %22749 = vmatmul.mubr.msk.bf16.vlgmr.msra.gmra.mrb[176].mxu0 %vm123_vm1, %v31185_v15  ;;  %v22747_v14 = vcombine.high %v30794_v16, %v22735_v42 }
 0x717   :  { %v13815_v22 = vmax.f32 %v31081_v39, %v13745_v40  ;;  %v13747_v63 = vpop.f32.mrb[158].mxu1  ;;  %16132 = vmatpush1.bf16.msra.mxu0 %v30762_v51  ;;  %15898 = vmatprep.mubr.bf16.mxu0 %v26229_v1  ;;  %v22746_v39 = vcombine.low %v30794_v16, %v22735_v42 }
 0x718   :  { %v13816_v53 = vmax.f32 %v31084_v43, %v13747_v63  ;;  %v13749_v24 = vpop.f32.mrb[159].mxu1  ;;  %22786 = vmatprep.subr.msk.bf16.mxu0 %vm136_vm0, %v22783_v3 }
 0x719   :  { %v13817_v57 = vmax.f32 %v31087_v55, %v13749_v24  ;;  %v31228_v55 = vrot.slane %v13830_v6, %v27264_v41  ;;  %v15851_v16 = vsel %vm136_vm0, %v22746_v39, 0 }
 0x71a   :  { %22697 = vmatmul.mubr.msk.bf16.gmra.mrb[200].mxu1 %vm123_vm1, %v31076_v17 }
 0x71b   :  { %15719 = vmatprep.mubr.bf16.mxu1 %v26229_v1  ;;  %16134 = vmatpush1.bf16.msra.mxu0 %v16120_v19 }
 0x71c   :  { %16406 = vmatprep.subr.bf16.mxu0 %v30779_v27 }
 0x71d   :  { %v13753_v51 = vpop.f32.mrb[160].mxu1 }
 0x71e   :  { %v13818_v7 = vmax.f32 %v31100_v52, %v13753_v51  ;;  %v13755_v13 = vpop.f32.mrb[161].mxu1  ;;  %22750 = vmatmul.mubr.msk.bf16.gmra.mrb[180].mxu0 %vm123_vm1, %v31205_v4  ;;  %v31238_v52 = vrot.slane %v13830_v6, %v27272_v5 }
 0x71f   :  { %v13819_v47 = vmax.f32 %v31102_v10, %v13755_v13  ;;  %v13757_v46 = vpop.f32.mrb[162].mxu1  ;;  %15908 = vmatprep.mubr.bf16.mxu0 %v26229_v1 }
 0x720   :  { %v13820_v27 = vmax.f32 %v31105_v56, %v13757_v46  ;;  %v31221_v17 = vpop.f32.mrb[163].mxu1  ;;  %v13842_v56 = vadd.f32 %v31228_v55, %v13814_v49  ;;  %v13843_v61 = vadd.f32 %v31238_v52, %v13815_v22 }
 0x721   :  { %v13821_v43 = vmax.f32 %v31108_v45, %v31221_v17  ;;  %v13847_v13 = vadd.f32 %v31238_v52, %v13819_v47 }
 0x722   :  { %22716 = vmatmul.mubr.msk.bf16.vlgmr.msra.gmra.mrb[188].mxu1 %vm123_vm1, %v31098_v28  ;;  %v13859_v38 = vmax.f32 %v13843_v61, 0.0 }
 0x723   :  { %15729 = vmatprep.mubr.bf16.mxu1 %v26229_v1  ;;  %15930 = vmatpush1.bf16.msra.mxu1 %v30810_v18  ;;  %v13844_v18 = vadd.f32 %v31228_v55, %v13816_v53  ;;  %v13849_v47 = vadd.f32 %v31238_v52, %v13821_v43 }
 0x724   :  { %22753 = vmatprep.subr.msk.bf16.mxu1 %vm136_vm0, %v22747_v14  ;;  %v13848_v14 = vadd.f32 %v31228_v55, %v13820_v27 }
 0x725   :  { %v13763_v10 = vpop.f32.mrb[164].mxu1  ;;  %v13860_v40 = vmax.f32 %v13844_v18, 0.0 }
 0x726   :  { %v13822_v28 = vmax.f32 %v31123_v44, %v13763_v10  ;;  %v13765_v45 = vpop.f32.mrb[165].mxu1  ;;  %22751 = vmatmul.mubr.msk.bf16.gmra.mrb[184].mxu0 %vm123_vm1, %v31235_v36  ;;  %v13845_v44 = vadd.f32 %v31238_v52, %v13817_v57  ;;  %v22810_v10 = vld [vmem:[%s32987_s1 + $0x130] sm:$0x33]  ;;  %v13864_v18 = vmax.f32 %v13848_v14, 0.0 }
 0x727   :  { %v13823_v9 = vmax.f32 %v31125_v62, %v13765_v45  ;;  %v13767_v11 = vpop.f32.mrb[166].mxu1  ;;  %15918 = vmatprep.mubr.bf16.mxu0 %v26229_v1  ;;  %15932 = vmatpush1.bf16.msra.mxu1 %v15851_v16  ;;  %v13858_v62 = vmax.f32 %v13842_v56, 0.0  ;;  %v31494_v14 = vld [vmem:[%s32990_s3 + $0x130] ss:$8 sps:$4 sm:$0xff]  }
 0x728   :  { %v13850_v0 = vadd.f32 %v31228_v55, %v13822_v28  ;;  %v13824_v37 = vmax.f32 %v31129_v33, %v13767_v11  ;;  %v13769_v58 = vpop.f32.mrb[167].mxu1  ;;  %16204 = vmatprep.subr.bf16.mxu1 %v30839_v34  ;;  %v31264_v33 = vld [vmem:[%s32988_s0 + $0x198] sm:$0xff]   ;;  %v13861_v63 = vmax.f32 %v13845_v44, 0.0 }
 0x729   :  { %v13851_v25 = vadd.f32 %v31238_v52, %v13823_v9  ;;  %v13825_v30 = vmax.f32 %v31132_v48, %v13769_v58  ;;  %v13863_v9 = vmax.f32 %v13847_v13, 0.0  ;;  %v31469_v13 = vld [vmem:[%s32988_s0 + $0x1b8] sm:$0xff]  }
 0x72a   :  { %v13866_v3 = vmax.f32 %v13850_v0, 0.0  ;;  %v13852_v59 = vadd.f32 %v31228_v55, %v13824_v37  ;;  %22717 = vmatmul.mubr.msk.bf16.gmra.mrb[192].mxu1 %vm123_vm1, %v31119_v31  ;;  %v13846_v31 = vadd.f32 %v31228_v55, %v13818_v7  ;;  %v13865_v37 = vmax.f32 %v13849_v47, 0.0  ;;  %v31535_v47 = vld [vmem:[%s32990_s3 + $0x160] ss:$8 sps:$4 sm:$0xff]  }
 0x72b   :  { %v13867_v34 = vmax.f32 %v13851_v25, 0.0  ;;  %v13853_v49 = vadd.f32 %v31238_v52, %v13825_v30  ;;  %15739 = vmatprep.mubr.bf16.mxu1 %v26229_v1 }
 0x72c   :  { %v13874_v48 = vmax.f32 %v13858_v62, %v13866_v3  ;;  %v13868_v22 = vmax.f32 %v13852_v59, 0.0  ;;  %v13862_v45 = vmax.f32 %v13846_v31, 0.0  ;;  %v22773_v59 = vld [vmem:[%s32987_s1 + $0xf8] sm:$0x33]  ;;  %v31430_v31 = vld [vmem:[%s32988_s0 + $0x1b0] sm:$0xff]  }
 0x72d   :  { %v13875_v53 = vmax.f32 %v13859_v38, %v13867_v34  ;;  %v13869_v24 = vmax.f32 %v13853_v49, 0.0  ;;  %v13773_v19 = vpop.f32.mrb[168].mxu1  ;;  %v22784_v38 = vcombine.low %v30923_v2, %v22773_v59  ;;  %v31331_v34 = vld [vmem:[%s32988_s0 + $0x1a0] sm:$0xff]  }
 0x72e   :  { %v13876_v57 = vmax.f32 %v13860_v40, %v13868_v22  ;;  %v13826_v51 = vmax.f32 %v31148_v32, %v13773_v19  ;;  %v13775_v42 = vpop.f32.mrb[169].mxu1  ;;  %22752 = vmatmul.mubr.msk.bf16.gmra.mrb[188].mxu0 %vm123_vm1, %v31264_v33  ;;  %v31390_v40 = vld [vmem:[%s32988_s0 + $0x1a8] sm:$0xff]   ;;  %v22811_v22 = vld [vmem:[%s32987_s1 + $0x138] sm:$0x33] }
 0x72f   :  { %v13877_v6 = vmax.f32 %v13861_v63, %v13869_v24  ;;  %v13827_v46 = vmax.f32 %v31150_v23, %v13775_v42  ;;  %v13777_v17 = vpop.f32.mrb[170].mxu1  ;;  %16163 = vmatprep.mubr.bf16.mxu0 %v26229_v1  ;;  %v16126_v49 = vsel %vm136_vm0, %v22784_v38, 0  ;;  %v31414_v63 = vld [vmem:[%s32990_s3 + $0xf0] ss:$8 sps:$4 sm:$0xff]   ;;  %v22823_v24 = vcombine.high %v30990_v26, %v22811_v22  ;;  %v31683_v38 = vld [vmem:[%s32990_s3 + $0x64] ss:$8 sps:$4 sm:$0xff]  }
 0x730   :  { %v13882_v39 = vpack.c.bf16 %v13876_v57, %v13874_v48  ;;  %v13854_v7 = vadd.f32 %v31228_v55, %v13826_v51  ;;  %v13828_v16 = vmax.f32 %v31154_v35, %v13777_v17  ;;  %v13779_v32 = vpop.f32.mrb[171].mxu1  ;;  %v31290_v35 = vld [vmem:[%s32988_s0 + $0x190] sm:$0xff]   ;;  %v31396_v48 = vld [vmem:[%s32990_s3 + $0xe0] ss:$8 sps:$4 sm:$0xff]   ;;  %v22822_v19 = vcombine.low %v30990_v26, %v22811_v22 }
 0x731   :  { %v13883_v56 = vpack.c.bf16 %v13877_v6, %v13875_v53  ;;  %v13855_v23 = vadd.f32 %v31238_v52, %v13827_v46  ;;  %v13829_v28 = vmax.f32 %v31158_v50, %v13779_v32  ;;  %v22821_v50 = vcombine.high %v30878_v29, %v22810_v10  ;;  %v31421_v53 = vld [vmem:[%s32990_s3 + $0x104] ss:$8 sps:$4 sm:$0xff]   ;;  %v31436_v57 = vld [vmem:[%s32990_s3 + $0x100] ss:$8 sps:$4 sm:$0xff]   ;;  %v31443_v26 = vld [vmem:[%s32990_s3 + $0x114] ss:$8 sps:$4 sm:$0xff]  }
 0x732   :  { %13887 = vst [vmem:[#allocation2 + $0x120] sm:$0xff] %v13882_v39  ;;  %v13870_v27 = vmax.f32 %v13854_v7, 0.0  ;;  %v13856_v61 = vadd.f32 %v31228_v55, %v13828_v16  ;;  %22718 = vmatmul.mubr.msk.bf16.gmra.mrb[196].mxu1 %vm123_vm1, %v31144_v54  ;;  %v22820_v54 = vcombine.low %v30878_v29, %v22810_v10  ;;  %v31306_v29 = vld [vmem:[%s32990_s3 + $0xc4] ss:$8 sps:$4 sm:$0xff]   ;;  %v16401_v51 = vsel %vm136_vm0, %v22822_v19, 0 }
 0x733   :  { %13888 = vst.msk [vmem:[#allocation2 + $0x128] sm:$0xff] %vm1422_vm2, %v13883_v56  ;;  %v13871_v43 = vmax.f32 %v13855_v23, 0.0  ;;  %v13857_v11 = vadd.f32 %v31238_v52, %v13829_v28  ;;  %15749 = vmatprep.mubr.bf16.mxu1 %v26229_v1  ;;  %v31454_v42 = vld [vmem:[%s32990_s3 + $0x110] ss:$8 sps:$4 sm:$0xff]   ;;  %v31475_v6 = vld [vmem:[%s32990_s3 + $0x120] ss:$8 sps:$4 sm:$0xff]  }
 0x734   :  { %v13878_v55 = vmax.f32 %v13862_v45, %v13870_v27  ;;  %v13872_v0 = vmax.f32 %v13856_v61, 0.0  ;;  %v16395_v62 = vsel %vm136_vm0, %v22820_v54, 0  ;;  %v31482_v46 = vld [vmem:[%s32990_s3 + $0x134] ss:$8 sps:$4 sm:$0xff]   ;;  %v31486_v17 = vld [vmem:[#allocation2 + $0x28] sm:$0xff]  ;;  %v31572_v61 = vld [vmem:[#allocation2 + $0x20] sm:$0xff] }
 0x735   :  { %v13879_v58 = vmax.f32 %v13863_v9, %v13871_v43  ;;  %v13873_v44 = vmax.f32 %v13857_v11, 0.0  ;;  %v31500_v39 = vld [vmem:[%s32990_s3 + $0x144] ss:$8 sps:$4 sm:$0xff]   ;;  %v31508_v7 = vld [vmem:[%s32990_s3 + $0x140] ss:$8 sps:$4 sm:$0xff]  }
 0x736   :  { %v13880_v25 = vmax.f32 %v13864_v18, %v13872_v0  ;;  %22787 = vmatmul.mubr.msk.bf16.vlgmr.msra.gmra.mrb[176].mxu0 %vm123_vm1, %v31290_v35  ;;  %v31515_v16 = vld [vmem:[%s32990_s3 + $0x154] ss:$8 sps:$4 sm:$0xff]   ;;  %v31521_v32 = vld [vmem:[%s32990_s3 + $0x150] ss:$8 sps:$4 sm:$0xff]   ;;  %v31527_v10 = vld [vmem:[%s32990_s3 + $0x164] ss:$8 sps:$4 sm:$0xff]  }
 0x737   :  { %v13881_v30 = vmax.f32 %v13865_v37, %v13873_v44  ;;  %16407 = vmatpush1.bf16.msra.mxu0 %v30899_v8  ;;  %16173 = vmatprep.mubr.bf16.mxu0 %v26229_v1  ;;  %v31313_v8 = vld [vmem:[%s32988_s0 + $0x198] sm:$0xff]   ;;  %v31554_v28 = vld [vmem:[%s32990_s3 + $0x4] ss:$8 sps:$4 sm:$0xff]   ;;  %v31563_v45 = vld [vmem:[%s32990_s3] ss:$8 sps:$4 sm:$0xff]  }
 0x738   :  { %v13884_v52 = vpack.c.bf16 %v13880_v25, %v13878_v55  ;;  %22824 = vmatprep.subr.msk.bf16.mxu0 %vm136_vm0, %v22821_v50  ;;  %v31542_v56 = vld [vmem:[%s32990_s3 + $0x174] ss:$8 sps:$4 sm:$0xff]   ;;  %v31548_v23 = vld [vmem:[%s32990_s3 + $0x170] ss:$8 sps:$4 sm:$0xff]   ;;  %v31591_v43 = vld [vmem:[%s32990_s3 + $0x24] ss:$8 sps:$4 sm:$0xff]  }
 0x739   :  { %v13885_v3 = vpack.c.bf16 %v13881_v30, %v13879_v58  ;;  %v31570_v27 = vld [vmem:[%s32990_s3 + $0x14] ss:$8 sps:$4 sm:$0xff]   ;;  %v31584_v9 = vld [vmem:[%s32990_s3 + $0x10] ss:$8 sps:$4 sm:$0xff]   ;;  %v31606_v55 = vld [vmem:[%s32990_s3 + $0x20] ss:$8 sps:$4 sm:$0xff]  }
 0x73a   :  { %13889 = vst [vmem:[#allocation2 + $0x130] sm:$0xff] %v13884_v52  ;;  %22719 = vmatmul.mubr.msk.bf16.gmra.mrb[200].mxu1 %vm123_vm1, %v31171_v12  ;;  %v22785_v12 = vcombine.high %v30923_v2, %v22773_v59  ;;  %v31346_v2 = vld [vmem:[%s32988_s0 + $0x1a8] sm:$0xff]   ;;  %v31616_v54 = vld [vmem:[%s32990_s3 + $0x34] ss:$8 sps:$4 sm:$0xff]   ;;  %v31630_v44 = vld [vmem:[%s32990_s3 + $0x30] ss:$8 sps:$4 sm:$0xff]  }
 0x73b   :  { %13890 = vst.msk [vmem:[#allocation2 + $0x138] sm:$0xff] %vm1422_vm2, %v13885_v3  ;;  %15961 = vmatprep.mubr.bf16.mxu1 %v26229_v1  ;;  %16409 = vmatpush1.bf16.msra.mxu0 %v16395_v62  ;;  %v31618_v37 = vld [vmem:[#allocation2 + $0x30] sm:$0xff]  ;;  %v31622_v58 = vld [vmem:[#allocation2 + $0x48] sm:$0xff]  ;;  %v31664_v59 = vld [vmem:[#allocation2 + $0x40] sm:$0xff] }
 0x73c   :  { %16886 = vmatprep.subr.bf16.mxu0 %v31306_v29  ;;  %v31637_v25 = vld [vmem:[%s32990_s3 + $0x44] ss:$8 sps:$4 sm:$0xff]  }
 0x73e   :  { %22788 = vmatmul.mubr.msk.bf16.gmra.mrb[180].mxu0 %vm123_vm1, %v31313_v8 }
 0x73f   :  { %16183 = vmatprep.mubr.bf16.mxu0 %v26229_v1 }
 0x742   :  { %22754 = vmatmul.mubr.msk.bf16.vlgmr.msra.gmra.mrb[188].mxu1 %vm123_vm1, %v31185_v15  ;;  %v31368_v15 = vld [vmem:[%s32990_s3 + $0xd4] ss:$8 sps:$4 sm:$0xff]  }
 0x743   :  { %15971 = vmatprep.mubr.bf16.mxu1 %v26229_v1  ;;  %16205 = vmatpush1.bf16.msra.mxu1 %v30933_v20  ;;  %v31357_v20 = vld [vmem:[%s32988_s0 + $0x1a0] sm:$0xff]  }
 0x744   :  { %22791 = vmatprep.subr.msk.bf16.mxu1 %vm136_vm0, %v22785_v12  ;;  %v31676_v12 = vld [vmem:[%s32990_s3 + $0x50] ss:$8 sps:$4 sm:$0xff]  }
 0x746   :  { %22789 = vmatmul.mubr.msk.bf16.gmra.mrb[184].mxu0 %vm123_vm1, %v31331_v34 }
 0x747   :  { %16193 = vmatprep.mubr.bf16.mxu0 %v26229_v1  ;;  %16207 = vmatpush1.bf16.msra.mxu1 %v16126_v49 }
 0x748   :  { %16479 = vmatprep.subr.bf16.mxu1 %v30949_v60  ;;  %v31362_v60 = vld [vmem:[%s32990_s3 + $0xc0] ss:$8 sps:$4 sm:$0xff]  }
 0x74a   :  { %22755 = vmatmul.mubr.msk.bf16.gmra.mrb[192].mxu1 %vm123_vm1, %v31205_v4  ;;  %v31376_v4 = vld [vmem:[%s32990_s3 + $0xd0] ss:$8 sps:$4 sm:$0xff]  }
 0x74b   :  { %15981 = vmatprep.mubr.bf16.mxu1 %v26229_v1 }
 0x74e   :  { %22790 = vmatmul.mubr.msk.bf16.gmra.mrb[188].mxu0 %vm123_vm1, %v31346_v2 }
 0x74f   :  { %16438 = vmatprep.mubr.bf16.mxu0 %v26229_v1 }
 0x752   :  { %22756 = vmatmul.mubr.msk.bf16.gmra.mrb[196].mxu1 %vm123_vm1, %v31235_v36  ;;  %v31383_v36 = vld [vmem:[%s32990_s3 + $0xe4] ss:$8 sps:$4 sm:$0xff]  }
 0x753   :  { %15991 = vmatprep.mubr.bf16.mxu1 %v26229_v1 }
 0x756   :  { %22825 = vmatmul.mubr.msk.bf16.vlgmr.msra.gmra.mrb[176].mxu0 %vm123_vm1, %v31357_v20 }
 0x757   :  { %16887 = vmatpush1.bf16.msra.mxu0 %v31362_v60  ;;  %16448 = vmatprep.mubr.bf16.mxu0 %v26229_v1 }
 0x758   :  { %16888 = vmatprep.subr.bf16.mxu0 %v31368_v15 }
 0x75a   :  { %22757 = vmatmul.mubr.msk.bf16.gmra.mrb[200].mxu1 %vm123_vm1, %v31264_v33  ;;  %v31403_v33 = vld [vmem:[%s32990_s3 + $0xf4] ss:$8 sps:$4 sm:$0xff]  }
 0x75b   :  { %16889 = vmatpush1.bf16.msra.mxu0 %v31376_v4  ;;  %16236 = vmatprep.mubr.bf16.mxu1 %v26229_v1 }
 0x75c   :  { %16890 = vmatprep.subr.bf16.mxu0 %v31383_v36 }
 0x75e   :  { %22826 = vmatmul.mubr.msk.bf16.gmra.mrb[180].mxu0 %vm123_vm1, %v31390_v40 }
 0x75f   :  { %16891 = vmatpush1.bf16.msra.mxu0 %v31396_v48  ;;  %16458 = vmatprep.mubr.bf16.mxu0 %v26229_v1 }
 0x760   :  { %16892 = vmatprep.subr.bf16.mxu0 %v31403_v33 }
 0x762   :  { %22792 = vmatmul.mubr.msk.bf16.vlgmr.msra.gmra.mrb[188].mxu1 %vm123_vm1, %v31290_v35  ;;  %v31576_v35 = vld [vmem:[#allocation2 + $0x38] sm:$0xff] }
 0x763   :  { %16893 = vmatpush1.bf16.msra.mxu0 %v31414_v63  ;;  %16246 = vmatprep.mubr.bf16.mxu1 %v26229_v1 }
 0x764   :  { %16894 = vmatprep.subr.bf16.mxu0 %v31421_v53  ;;  %16480 = vmatpush1.bf16.msra.mxu1 %v31000_v21  ;;  %v31461_v21 = vld [vmem:[%s32990_s3 + $0x124] ss:$8 sps:$4 sm:$0xff]  }
 0x765   :  { %22829 = vmatprep.subr.msk.bf16.mxu1 %vm136_vm0, %v22823_v24  ;;  %v31745_v24 = vld [vmem:[%s32990_s3 + $0x80] ss:$8 sps:$4 sm:$0xff]  }
 0x766   :  { %22827 = vmatmul.mubr.msk.bf16.gmra.mrb[184].mxu0 %vm123_vm1, %v31430_v31 }
 0x767   :  { %16895 = vmatpush1.bf16.msra.mxu0 %v31436_v57  ;;  %16468 = vmatprep.mubr.bf16.mxu0 %v26229_v1 }
 0x768   :  { %16896 = vmatprep.subr.bf16.mxu0 %v31443_v26  ;;  %16482 = vmatpush1.bf16.msra.mxu1 %v16401_v51  ;;  %v31768_v51 = vld [vmem:[%s32990_s3 + $0x90] ss:$8 sps:$4 sm:$0xff]  }
 0x769   :  { %18541 = vmatprep.subr.bf16.mxu1 %v31306_v29  ;;  %v31653_v29 = vld [vmem:[%s32990_s3 + $0x40] ss:$8 sps:$4 sm:$0xff]  }
 0x76a   :  { %22793 = vmatmul.mubr.msk.bf16.gmra.mrb[192].mxu1 %vm123_vm1, %v31313_v8  ;;  %v31662_v8 = vld [vmem:[%s32990_s3 + $0x54] ss:$8 sps:$4 sm:$0xff]  }
 0x76b   :  { %16897 = vmatpush1.bf16.msra.mxu0 %v31454_v42  ;;  %16256 = vmatprep.mubr.bf16.mxu1 %v26229_v1 }
 0x76c   :  { %16898 = vmatprep.subr.bf16.mxu0 %v31461_v21 }
 0x76e   :  { %22828 = vmatmul.mubr.msk.bf16.gmra.mrb[188].mxu0 %vm123_vm1, %v31469_v13 }
 0x76f   :  { %16899 = vmatpush1.bf16.msra.mxu0 %v31475_v6  ;;  %22882 = vmatprep.mubr.msk.bf16.mxu0 %vm1422_vm2, %v31486_v17 }
 0x770   :  { %16900 = vmatprep.subr.bf16.mxu0 %v31482_v46 }
 0x772   :  { %22794 = vmatmul.mubr.msk.bf16.gmra.mrb[196].mxu1 %vm123_vm1, %v31331_v34 }
 0x773   :  { %16901 = vmatpush1.bf16.msra.mxu0 %v31494_v14  ;;  %16266 = vmatprep.mubr.bf16.mxu1 %v26229_v1 }
 0x774   :  { %16902 = vmatprep.subr.bf16.mxu0 %v31500_v39 }
 0x777   :  { %16903 = vmatpush1.bf16.msra.mxu0 %v31508_v7 }
 0x778   :  { %16904 = vmatprep.subr.bf16.mxu0 %v31515_v16 }
 0x77a   :  { %22795 = vmatmul.mubr.msk.bf16.gmra.mrb[200].mxu1 %vm123_vm1, %v31346_v2  ;;  %v31692_v2 = vld [vmem:[#allocation2 + $0xa8] sm:$0xff] }
 0x77b   :  { %16905 = vmatpush1.bf16.msra.mxu0 %v31521_v32  ;;  %16511 = vmatprep.mubr.bf16.mxu1 %v26229_v1  ;;  %33022 = vst [vmem:[#allocation6_spill] sm:$0xff] %v31692_v2 }
 0x77c   :  { %16906 = vmatprep.subr.bf16.mxu0 %v31527_v10 }
 0x77f   :  { %16907 = vmatpush1.bf16.msra.mxu0 %v31535_v47 }
 0x780   :  { %16908 = vmatprep.subr.bf16.mxu0 %v31542_v56 }
 0x782   :  { %22830 = vmatmul.mubr.msk.bf16.vlgmr.msra.gmra.mrb[188].mxu1 %vm123_vm1, %v31357_v20 }
 0x783   :  { %16909 = vmatpush1.bf16.msra.mxu0 %v31548_v23  ;;  %18542 = vmatpush1.bf16.msra.mxu1 %v31362_v60  ;;  %v31702_v60 = vld [vmem:[%s32990_s3 + $0x60] ss:$8 sps:$4 sm:$0xff]  }
 0x784   :  { %17143 = vmatprep.subr.bf16.mxu0 %v31554_v28  ;;  %18543 = vmatprep.subr.bf16.mxu1 %v31368_v15 }
 0x785   :  { %16521 = vmatprep.mubr.bf16.mxu1 %v26229_v1 }
 0x786   :  { %16919 = vmatmul.mubr.bf16.vlgmr.msra.gmra.mrb[192].mxu0 %v31572_v61 }
 0x787   :  { %22883 = vmatprep.mubr.msk.bf16.mxu0 %vm1422_vm2, %v31576_v35  ;;  %17144 = vmatpush1.bf16.msra.mxu0 %v31563_v45 }
 0x788   :  { %18544 = vmatpush1.bf16.msra.mxu1 %v31376_v4  ;;  %17145 = vmatprep.subr.bf16.mxu0 %v31570_v27  ;;  %v31711_v4 = vld [vmem:[%s32990_s3 + $0x74] ss:$8 sps:$4 sm:$0xff]  }
 0x789   :  { %v31593_v11 = vpop.f32.mrb[160].mxu0  ;;  %18545 = vmatprep.subr.bf16.mxu1 %v31383_v36  ;;  %v31713_v36 = vld [vmem:[#allocation2 + $0x50] sm:$0xff] }
 0x78a   :  { %v31596_v50 = vpop.f32.mrb[161].mxu0  ;;  %22831 = vmatmul.mubr.msk.bf16.gmra.mrb[192].mxu1 %vm123_vm1, %v31390_v40  ;;  %v31717_v40 = vld [vmem:[#allocation2 + $0x68] sm:$0xff] }
 0x78b   :  { %v31600_v18 = vpop.f32.mrb[162].mxu0  ;;  %17146 = vmatpush1.bf16.msra.mxu0 %v31584_v9  ;;  %16531 = vmatprep.mubr.bf16.mxu1 %v26229_v1 }
 0x78c   :  { %18546 = vmatpush1.bf16.msra.mxu1 %v31396_v48  ;;  %v31610_v0 = vpop.f32.mrb[163].mxu0  ;;  %17147 = vmatprep.subr.bf16.mxu0 %v31591_v43  ;;  %v31725_v48 = vld [vmem:[%s32990_s3 + $0x70] ss:$8 sps:$4 sm:$0xff]  }
 0x78d   :  { %18547 = vmatprep.subr.bf16.mxu1 %v31403_v33  ;;  %v31732_v33 = vld [vmem:[%s32990_s3 + $0x84] ss:$8 sps:$4 sm:$0xff]  }
 0x78e   :  { %16929 = vmatmul.mubr.bf16.gmra.mrb[196].mxu0 %v31618_v37 }
 0x78f   :  { %22884 = vmatprep.mubr.msk.bf16.mxu0 %vm1422_vm2, %v31622_v58  ;;  %17148 = vmatpush1.bf16.msra.mxu0 %v31606_v55 }
 0x790   :  { %18548 = vmatpush1.bf16.msra.mxu1 %v31414_v63  ;;  %17149 = vmatprep.subr.bf16.mxu0 %v31616_v54 }
 0x791   :  { %v31639_v30 = vpop.f32.mrb[164].mxu0  ;;  %18549 = vmatprep.subr.bf16.mxu1 %v31421_v53 }
 0x792   :  { %v31642_v52 = vpop.f32.mrb[165].mxu0  ;;  %22832 = vmatmul.mubr.msk.bf16.gmra.mrb[196].mxu1 %vm123_vm1, %v31430_v31  ;;  %v31754_v31 = vld [vmem:[%s32990_s3 + $0x94] ss:$8 sps:$4 sm:$0xff]  }
 0x793   :  { %v31646_v62 = vpop.f32.mrb[166].mxu0  ;;  %17150 = vmatpush1.bf16.msra.mxu0 %v31630_v44  ;;  %16541 = vmatprep.mubr.bf16.mxu1 %v26229_v1  ;;  %v31668_v1 = vld [vmem:[#allocation2 + $0x58] sm:$0xff] }
 0x794   :  { %18550 = vmatpush1.bf16.msra.mxu1 %v31436_v57  ;;  %v31656_v3 = vpop.f32.mrb[167].mxu0  ;;  %17151 = vmatprep.subr.bf16.mxu0 %v31637_v25  ;;  %v31756_v57 = vld [vmem:[#allocation2 + $0x60] sm:$0xff] }
 0x795   :  { %18551 = vmatprep.subr.bf16.mxu1 %v31443_v26  ;;  %v31760_v26 = vld [vmem:[#allocation2 + $0x78] sm:$0xff] }
 0x796   :  { %16939 = vmatmul.mubr.bf16.gmra.mrb[200].mxu0 %v31664_v59  ;;  %33023 = vst [vmem:[#allocation7_spill] sm:$0xff] %v31760_v26 }
 0x797   :  { %22885 = vmatprep.mubr.msk.bf16.mxu0 %vm1422_vm2, %v31668_v1  ;;  %17152 = vmatpush1.bf16.msra.mxu0 %v31653_v29 }
 0x798   :  { %18552 = vmatpush1.bf16.msra.mxu1 %v31454_v42  ;;  %17153 = vmatprep.subr.bf16.mxu0 %v31662_v8  ;;  %v31775_v42 = vld [vmem:[%s32990_s3 + $0xa4] ss:$8 sps:$4 sm:$0xff]  }
 0x799   :  { %v31685_v34 = vpop.f32.mrb[168].mxu0  ;;  %18553 = vmatprep.subr.bf16.mxu1 %v31461_v21  ;;  %v31782_v21 = vld [vmem:[%s32990_s3 + $0xa0] ss:$8 sps:$4 sm:$0xff]  }
 0x79a   :  { %v31688_v49 = vpop.f32.mrb[169].mxu0  ;;  %22833 = vmatmul.mubr.msk.bf16.gmra.mrb[200].mxu1 %vm123_vm1, %v31469_v13  ;;  %v31789_v13 = vld [vmem:[%s32990_s3 + $0xb4] ss:$8 sps:$4 sm:$0xff]  }
 0x79b   :  { %v31694_v20 = vpop.f32.mrb[170].mxu0  ;;  %23139 = vmatprep.mubr.msk.bf16.mxu1 %vm1422_vm2, %v31692_v2  ;;  %17154 = vmatpush1.bf16.msra.mxu0 %v31676_v12 }
 0x79c   :  { %18554 = vmatpush1.bf16.msra.mxu1 %v31475_v6  ;;  %v31705_v15 = vpop.f32.mrb[171].mxu0  ;;  %17155 = vmatprep.subr.bf16.mxu0 %v31683_v38  ;;  %v31791_v6 = vld [vmem:[#allocation2 + $0x70] sm:$0xff] }
 0x79d   :  { %18555 = vmatprep.subr.bf16.mxu1 %v31482_v46  ;;  %33024 = vst [vmem:[#allocation8_spill] sm:$0xff] %v31791_v6  ;;  %v31795_v46 = vld [vmem:[#allocation2 + $0x88] sm:$0xff] }
 0x79e   :  { %16949 = vmatmul.mubr.bf16.gmra.mrb[204].mxu0 %v31713_v36 }
 0x79f   :  { %22886 = vmatprep.mubr.msk.bf16.mxu0 %vm1422_vm2, %v31717_v40  ;;  %17156 = vmatpush1.bf16.msra.mxu0 %v31702_v60 }
 0x7a0   :  { %18556 = vmatpush1.bf16.msra.mxu1 %v31494_v14  ;;  %17157 = vmatprep.subr.bf16.mxu0 %v31711_v4  ;;  %v31803_v14 = vld [vmem:[%s32990_s3 + $0xb0] ss:$8 sps:$4 sm:$0xff]  }
 0x7a1   :  { %v31734_v22 = vpop.f32.mrb[172].mxu0  ;;  %18557 = vmatprep.subr.bf16.mxu1 %v31500_v39  ;;  %v31811_v39 = vld [vmem:[%s32990_s3 + $0x184] ss:$8 sps:$4 sm:$0xff]  }
 0x7a2   :  { %v31737_v63 = vpop.f32.mrb[173].mxu0 }
 0x7a3   :  { %v31739_v53 = vpop.f32.mrb[174].mxu0  ;;  %17158 = vmatpush1.bf16.msra.mxu0 %v31725_v48 }
 0x7a4   :  { %18558 = vmatpush1.bf16.msra.mxu1 %v31508_v7  ;;  %v31748_v19 = vpop.f32.mrb[175].mxu0  ;;  %17159 = vmatprep.subr.bf16.mxu0 %v31732_v33  ;;  %v31813_v7 = vld [vmem:[#allocation2 + $0xa0] sm:$0xff] }
 0x7a5   :  { %18559 = vmatprep.subr.bf16.mxu1 %v31515_v16  ;;  %33025 = vst [vmem:[#allocation9_spill] sm:$0xff] %v31813_v7  ;;  %v31816_v16 = vld [vmem:[#allocation2 + $0xb8] sm:$0xff] }
 0x7a6   :  { %16959 = vmatmul.mubr.bf16.gmra.mrb[208].mxu0 %v31756_v57  ;;  %33026 = vst [vmem:[#allocation10_spill] sm:$0xff] %v31816_v16 }
 0x7a7   :  { %22887 = vmatprep.mubr.msk.bf16.mxu0 %vm1422_vm2, %v31760_v26  ;;  %17160 = vmatpush1.bf16.msra.mxu0 %v31745_v24 }
 0x7a8   :  { %18560 = vmatpush1.bf16.msra.mxu1 %v31521_v32  ;;  %17161 = vmatprep.subr.bf16.mxu0 %v31754_v31 }
 0x7a9   :  { %18561 = vmatprep.subr.bf16.mxu1 %v31527_v10  ;;  %v31822_v10 = vld [vmem:[#allocation2 + $0x80] sm:$0xff] }
 0x7ab   :  { %17162 = vmatpush1.bf16.msra.mxu0 %v31768_v51 }
 0x7ac   :  { %18562 = vmatpush1.bf16.msra.mxu1 %v31535_v47  ;;  %17163 = vmatprep.subr.bf16.mxu0 %v31775_v42 }
 0x7ad   :  { %18563 = vmatprep.subr.bf16.mxu1 %v31542_v56 }
 0x7ae   :  { %16969 = vmatmul.mubr.bf16.gmra.mrb[212].mxu0 %v31791_v6 }
 0x7af   :  { %22888 = vmatprep.mubr.msk.bf16.mxu0 %vm1422_vm2, %v31795_v46  ;;  %17164 = vmatpush1.bf16.msra.mxu0 %v31782_v21 }
 0x7b0   :  { %18564 = vmatpush1.bf16.msra.mxu1 %v31548_v23  ;;  %17165 = vmatprep.subr.bf16.mxu0 %v31789_v13  ;;  %v31828_v23 = vld [vmem:[#allocation2 + $0x98] sm:$0xff] }
 0x7b1   :  { %18798 = vmatprep.subr.bf16.mxu1 %v31554_v28 }
 0x7b3   :  { %18574 = vmatmul.mubr.bf16.vlgmr.msra.gmra.mrb[204].mxu1 %v31813_v7  ;;  %17166 = vmatpush1.bf16.msra.mxu0 %v31803_v14 }
 0x7b4   :  { %23140 = vmatprep.mubr.msk.bf16.mxu1 %vm1422_vm2, %v31816_v16  ;;  %18799 = vmatpush1.bf16.msra.mxu1 %v31563_v45 }
 0x7b5   :  { %v15128_v32 = vpop.f32.mrb[172].mxu1  ;;  %18800 = vmatprep.subr.bf16.mxu1 %v31570_v27  ;;  %17441 = vmatprep.subr.bf16.mxu0 %v31811_v39 }
 0x7b6   :  { %v15199_v47 = vmax.f32 %v31593_v11, %v15128_v32  ;;  %16979 = vmatmul.mubr.bf16.gmra.mrb[216].mxu0 %v31822_v10  ;;  %v15130_v56 = vpop.f32.mrb[173].mxu1  ;;  %v31837_v11 = vld [vmem:[#allocation2 + $0xb0] sm:$0xff]  ;;  %v31840_v32 = vld [vmem:[#allocation2 + $0xc8] sm:$0xff] }
 0x7b7   :  { %v15200_v28 = vmax.f32 %v31596_v50, %v15130_v56  ;;  %22889 = vmatprep.mubr.msk.bf16.mxu0 %vm1422_vm2, %v31828_v23  ;;  %v15132_v45 = vpop.f32.mrb[174].mxu1  ;;  %33027 = vst [vmem:[#allocation11_spill] sm:$0xff] %v31837_v11  ;;  %33028 = vst [vmem:[#allocation12_spill] sm:$0xff] %v31840_v32 }
 0x7b8   :  { %v15201_v16 = vmax.f32 %v31600_v18, %v15132_v45  ;;  %v15134_v7 = vpop.f32.mrb[175].mxu1  ;;  %18801 = vmatpush1.bf16.msra.mxu1 %v31584_v9  ;;  %v31847_v18 = vld [vmem:[#allocation2 + $0x90] sm:$0xff]  ;;  %v16661_v9 = vld [vmem:[#allocation2] sm:$0xff] }
 0x7b9   :  { %v15202_v27 = vmax.f32 %v31610_v0, %v15134_v7  ;;  %18802 = vmatprep.subr.bf16.mxu1 %v31591_v43  ;;  %33029 = vst [vmem:[#allocation13_spill] sm:$0xff] %v31847_v18  ;;  %v16662_v0 = vld [vmem:[#allocation2 + $0x8] sm:$0xff]  ;;  %v15215_v7 = vld [vmem:[%s32989_s2] sm:$0x3] }
 0x7bb   :  { %18584 = vmatmul.mubr.bf16.gmra.mrb[208].mxu1 %v31837_v11  ;;  %v16664_v11 = vld [vmem:[#allocation2 + $0x18] sm:$0xff] }
 0x7bc   :  { %23141 = vmatprep.mubr.msk.bf16.mxu1 %vm1422_vm2, %v31840_v32  ;;  %18803 = vmatpush1.bf16.msra.mxu1 %v31606_v55  ;;  %v31872_v32 = vrot.slane %v15215_v7, %v27264_v41  ;;  %v31874_v55 = vld [vmem:[#allocation2 + $0xc0] sm:$0xff] }
 0x7bd   :  { %v31845_v50 = vpop.f32.mrb[176].mxu1  ;;  %18804 = vmatprep.subr.bf16.mxu1 %v31616_v54  ;;  %33030 = vst [vmem:[#allocation14_spill] sm:$0xff] %v31874_v55  ;;  %v31880_v54 = vld [vmem:[#allocation2 + $0xd8] sm:$0xff] }
 0x7be   :  { %16989 = vmatmul.mubr.bf16.gmra.mrb[220].mxu0 %v31847_v18  ;;  %v31853_v43 = vpop.f32.mrb[177].mxu1  ;;  %33031 = vst [vmem:[#allocation15_spill] sm:$0xff] %v31880_v54 }
 0x7bf   :  { %22914 = vmatprep.mubr.msk.bf16.mxu0 %vm1422_vm2, %v16662_v0  ;;  %v31861_v56 = vpop.f32.mrb[178].mxu1  ;;  %v31877_v0 = vrot.slane %v15215_v7, %v27272_v5  ;;  %v15227_v5 = vadd.f32 %v31872_v32, %v15199_v47  ;;  %v15229_v47 = vadd.f32 %v31872_v32, %v15201_v16 }
 0x7c0   :  { %v31865_v45 = vpop.f32.mrb[179].mxu1  ;;  %18805 = vmatpush1.bf16.msra.mxu1 %v31630_v44  ;;  %v31885_v44 = vld [vmem:[%s32990_s3 + $0x180] ss:$8 sps:$4 sm:$0xff]  }
 0x7c1   :  { %18806 = vmatprep.subr.bf16.mxu1 %v31637_v25  ;;  %v31892_v25 = vld [vmem:[%s32990_s3 + $0x194] ss:$8 sps:$4 sm:$0xff]  }
 0x7c3   :  { %18594 = vmatmul.mubr.bf16.gmra.mrb[212].mxu1 %v31874_v55 }
 0x7c4   :  { %23142 = vmatprep.mubr.msk.bf16.mxu1 %vm1422_vm2, %v31880_v54  ;;  %18807 = vmatpush1.bf16.msra.mxu1 %v31653_v29  ;;  %v15228_v54 = vadd.f32 %v31877_v0, %v15200_v28  ;;  %v15230_v28 = vadd.f32 %v31877_v0, %v15202_v27  ;;  %v31940_v27 = vld [vmem:[%s32990_s3 + $0x1b4] ss:$8 sps:$4 sm:$0xff]  }
 0x7c5   :  { %v15148_v7 = vpop.f32.mrb[180].mxu1  ;;  %18808 = vmatprep.subr.bf16.mxu1 %v31662_v8  ;;  %v31905_v8 = vld [vmem:[%s32990_s3 + $0x190] ss:$8 sps:$4 sm:$0xff]  }
 0x7c6   :  { %v15207_v41 = vmax.f32 %v31685_v34, %v15148_v7  ;;  %17176 = vmatmul.mubr.bf16.vlgmr.msra.gmra.mrb[192].mxu0 %v16661_v9  ;;  %v15150_v55 = vpop.f32.mrb[181].mxu1  ;;  %v15244_v2 = vmax.f32 %v15228_v54, 0.0  ;;  %v15246_v54 = vmax.f32 %v15230_v28, 0.0 }
 0x7c7   :  { %v15208_v6 = vmax.f32 %v31688_v49, %v15150_v55  ;;  %22915 = vmatprep.mubr.msk.bf16.mxu0 %vm1422_vm2, %v16664_v11  ;;  %17442 = vmatpush1.bf16.msra.mxu0 %v31885_v44  ;;  %v15152_v29 = vpop.f32.mrb[182].mxu1  ;;  %v31914_v49 = vld [vmem:[%s32990_s3 + $0x1a4] ss:$8 sps:$4 sm:$0xff]  }
 0x7c8   :  { %v15235_v34 = vadd.f32 %v31872_v32, %v15207_v41  ;;  %v15209_v9 = vmax.f32 %v31694_v20, %v15152_v29  ;;  %v15154_v7 = vpop.f32.mrb[183].mxu1  ;;  %17443 = vmatprep.subr.bf16.mxu0 %v31892_v25  ;;  %18809 = vmatpush1.bf16.msra.mxu1 %v31676_v12  ;;  %v15243_v41 = vmax.f32 %v15227_v5, 0.0  ;;  %v31922_v29 = vld [vmem:[#allocation2 + $0xd0] sm:$0xff]  ;;  %v31926_v12 = vld [vmem:[#allocation2 + $0xe8] sm:$0xff]  ;;  %v15245_v5 = vmax.f32 %v15229_v47, 0.0 }
 0x7c9   :  { %v15236_v11 = vadd.f32 %v31877_v0, %v15208_v6  ;;  %v15210_v16 = vmax.f32 %v31705_v15, %v15154_v7  ;;  %18810 = vmatprep.subr.bf16.mxu1 %v31683_v38  ;;  %v31932_v38 = vld [vmem:[%s32990_s3 + $0x1a0] ss:$8 sps:$4 sm:$0xff]   ;;  %v33032_v47 = vmax.f32 %v31639_v30, %v31845_v50 }
 0x7ca   :  { %v15251_v20 = vmax.f32 %v15235_v34, 0.0  ;;  %v15237_v55 = vadd.f32 %v31872_v32, %v15209_v9 }
 0x7cb   :  { %v15252_v18 = vmax.f32 %v15236_v11, 0.0  ;;  %v15238_v26 = vadd.f32 %v31877_v0, %v15210_v16  ;;  %18604 = vmatmul.mubr.bf16.gmra.mrb[216].mxu1 %v31922_v29  ;;  %17444 = vmatpush1.bf16.msra.mxu0 %v31905_v8  ;;  %v16663_v11 = vld [vmem:[#allocation2 + $0x10] sm:$0xff]  ;;  %v15231_v16 = vadd.f32 %v31872_v32, %v33032_v47 }
 0x7cc   :  { %v15259_v15 = vmax.f32 %v15243_v41, %v15251_v20  ;;  %v15253_v6 = vmax.f32 %v15237_v55, 0.0  ;;  %23143 = vmatprep.mubr.msk.bf16.mxu1 %vm1422_vm2, %v31926_v12  ;;  %17445 = vmatprep.subr.bf16.mxu0 %v31914_v49 }
 0x7cd   :  { %v15260_v34 = vmax.f32 %v15244_v2, %v15252_v18  ;;  %v15254_v9 = vmax.f32 %v15238_v26, 0.0  ;;  %v15158_v7 = vpop.f32.mrb[184].mxu1  ;;  %18811 = vmatpush1.bf16.msra.mxu1 %v31702_v60  ;;  %v33033_v2 = vmax.f32 %v31642_v52, %v31853_v43 }
 0x7ce   :  { %v15261_v41 = vmax.f32 %v15245_v5, %v15253_v6  ;;  %v15211_v20 = vmax.f32 %v31734_v22, %v15158_v7  ;;  %17186 = vmatmul.mubr.bf16.gmra.mrb[196].mxu0 %v16663_v11  ;;  %v15160_v55 = vpop.f32.mrb[185].mxu1  ;;  %18812 = vmatprep.subr.bf16.mxu1 %v31711_v4  ;;  %v31960_v22 = vld [vmem:[%s32990_s3 + $0x1b0] ss:$8 sps:$4 sm:$0xff]   ;;  %v33034_v4 = vmax.f32 %v31646_v62, %v31861_v56  ;;  %v31982_v7 = vld [vmem:[#allocation2 + $0xe0] sm:$0xff] }
 0x7cf   :  { %v15232_v26 = vadd.f32 %v31877_v0, %v33033_v2  ;;  %v15262_v18 = vmax.f32 %v15246_v54, %v15254_v9  ;;  %v15212_v60 = vmax.f32 %v31737_v63, %v15160_v55  ;;  %22916 = vmatprep.mubr.msk.bf16.mxu0 %vm1422_vm2, %v31486_v17  ;;  %v15162_v30 = vpop.f32.mrb[186].mxu1  ;;  %17446 = vmatpush1.bf16.msra.mxu0 %v31932_v38  ;;  %v31972_v17 = vld [vmem:[%s32990_s3 + $0x1c4] ss:$8 sps:$4 sm:$0xff]   ;;  %v32013_v2 = vld [vmem:[%s32990_s3 + $0x1d0] ss:$8 sps:$4 sm:$0xff]  }
 0x7d0   :  { %v15233_v52 = vadd.f32 %v31872_v32, %v33034_v4  ;;  %v15267_v50 = vpack.c.bf16 %v15261_v41, %v15259_v15  ;;  %v15239_v43 = vadd.f32 %v31872_v32, %v15211_v20  ;;  %v15213_v63 = vmax.f32 %v31739_v53, %v15162_v30  ;;  %v15164_v28 = vpop.f32.mrb[187].mxu1  ;;  %17447 = vmatprep.subr.bf16.mxu0 %v31940_v27  ;;  %v32094_v30 = vld [vmem:[%s32990_s3 + $0x224] ss:$8 sps:$4 sm:$0xff]   ;;  %v32096_v4 = vld [vmem:[#allocation2 + $0x110] sm:$0xff] }
 0x7d1   :  { %v33035_v5 = vmax.f32 %v31656_v3, %v31865_v45  ;;  %v15268_v56 = vpack.c.bf16 %v15262_v18, %v15260_v34  ;;  %v15240_v15 = vadd.f32 %v31877_v0, %v15212_v60  ;;  %v15214_v6 = vmax.f32 %v31748_v19, %v15164_v28  ;;  %18813 = vmatpush1.bf16.msra.mxu1 %v31725_v48  ;;  %v31988_v19 = vld [vmem:[#allocation2 + $0xf8] sm:$0xff]  ;;  %v31994_v48 = vld [vmem:[%s32990_s3 + $0x1c0] ss:$8 sps:$4 sm:$0xff]  }
 0x7d2   :  { %v15247_v53 = vmax.f32 %v15231_v16, 0.0  ;;  %15272 = vst [vmem:[#allocation2 + $0x140] sm:$0xff] %v15267_v50  ;;  %v15255_v54 = vmax.f32 %v15239_v43, 0.0  ;;  %v15241_v9 = vadd.f32 %v31872_v32, %v15213_v63  ;;  %18814 = vmatprep.subr.bf16.mxu1 %v31732_v33  ;;  %v15248_v11 = vmax.f32 %v15232_v26, 0.0  ;;  %v32033_v18 = vld [vmem:[%s32990_s3 + $0x1e0] ss:$8 sps:$4 sm:$0xff]  }
 0x7d3   :  { %v15234_v62 = vadd.f32 %v31877_v0, %v33035_v5  ;;  %15273 = vst.msk [vmem:[#allocation2 + $0x148] sm:$0xff] %vm1422_vm2, %v15268_v56  ;;  %v15256_v3 = vmax.f32 %v15240_v15, 0.0  ;;  %v15242_v45 = vadd.f32 %v31877_v0, %v15214_v6  ;;  %18614 = vmatmul.mubr.bf16.gmra.mrb[220].mxu1 %v31982_v7  ;;  %17448 = vmatpush1.bf16.msra.mxu0 %v31960_v22  ;;  %v15249_v32 = vmax.f32 %v15233_v52, 0.0  ;;  %v32002_v0 = vld [vmem:[%s32990_s3 + $0x1d4] ss:$8 sps:$4 sm:$0xff]   ;;  %v33037_v5 = vld [vmem:[#allocation13_spill] sm:$0xff] }
 0x7d4   :  { %v15263_v34 = vmax.f32 %v15247_v53, %v15255_v54  ;;  %v15257_v33 = vmax.f32 %v15241_v9, 0.0  ;;  %23144 = vmatprep.mubr.msk.bf16.mxu1 %vm1422_vm2, %v31988_v19  ;;  %17449 = vmatprep.subr.bf16.mxu0 %v31972_v17  ;;  %v32071_v60 = vld [vmem:[%s32990_s3 + $0x200] ss:$8 sps:$4 sm:$0xff]   ;;  %v32111_v50 = vld [vmem:[%s32990_s3 + $0x234] ss:$8 sps:$4 sm:$0xff]  }
 0x7d5   :  { %v15250_v47 = vmax.f32 %v15234_v62, 0.0  ;;  %v15264_v16 = vmax.f32 %v15248_v11, %v15256_v3  ;;  %v15258_v41 = vmax.f32 %v15242_v45, 0.0  ;;  %18815 = vmatpush1.bf16.msra.mxu1 %v31745_v24  ;;  %v32103_v52 = vld [vmem:[%s32990_s3 + $0x220] ss:$8 sps:$4 sm:$0xff]   ;;  %v32120_v43 = vld [vmem:[%s32990_s3 + $0x230] ss:$8 sps:$4 sm:$0xff]  }
 0x7d6   :  { %v15265_v20 = vmax.f32 %v15249_v32, %v15257_v33  ;;  %17196 = vmatmul.mubr.bf16.gmra.mrb[200].mxu0 %v31572_v61  ;;  %18816 = vmatprep.subr.bf16.mxu1 %v31754_v31  ;;  %v32019_v61 = vld [vmem:[%s32990_s3 + $0x1e4] ss:$8 sps:$4 sm:$0xff]   ;;  %v33036_v28 = vld [vmem:[#allocation7_spill] sm:$0xff]  ;;  %v33038_v62 = vld [vmem:[#allocation6_spill] sm:$0xff] }
 0x7d7   :  { %v15266_v55 = vmax.f32 %v15250_v47, %v15258_v41  ;;  %22917 = vmatprep.mubr.msk.bf16.mxu0 %vm1422_vm2, %v31576_v35  ;;  %17450 = vmatpush1.bf16.msra.mxu0 %v31994_v48  ;;  %v32022_v35 = vld [vmem:[#allocation2 + $0xf0] sm:$0xff]  ;;  %v32027_v31 = vld [vmem:[#allocation2 + $0x108] sm:$0xff]  ;;  %v33045_v6 = vld [vmem:[#allocation15_spill] sm:$0xff] }
 0x7d8   :  { %v15269_v26 = vpack.c.bf16 %v15265_v20, %v15263_v34  ;;  %17451 = vmatprep.subr.bf16.mxu0 %v32002_v0  ;;  %v32126_v63 = vld [vmem:[%s32990_s3 + $0x244] ss:$8 sps:$4 sm:$0xff]   ;;  %v32206_v56 = vld [vmem:[%s32990_s3 + $0x270] ss:$8 sps:$4 sm:$0xff]   ;;  %v32229_v53 = vld [vmem:[%s32990_s3 + $0x294] ss:$8 sps:$4 sm:$0xff]  }
 0x7d9   :  { %v15270_v24 = vpack.c.bf16 %v15266_v55, %v15264_v16  ;;  %18817 = vmatpush1.bf16.msra.mxu1 %v31768_v51  ;;  %v32041_v51 = vld [vmem:[%s32990_s3 + $0x1f4] ss:$8 sps:$4 sm:$0xff]   ;;  %v32212_v15 = vld [vmem:[%s32990_s3 + $0x284] ss:$8 sps:$4 sm:$0xff]   ;;  %v32240_v54 = vld [vmem:[%s32990_s3 + $0x290] ss:$8 sps:$4 sm:$0xff]  }
 0x7da   :  { %15274 = vst [vmem:[#allocation2 + $0x150] sm:$0xff] %v15269_v26  ;;  %18818 = vmatprep.subr.bf16.mxu1 %v31775_v42  ;;  %v32052_v42 = vld [vmem:[%s32990_s3 + $0x1f0] ss:$8 sps:$4 sm:$0xff]   ;;  %v32246_v9 = vld [vmem:[%s32990_s3 + $0x2a4] ss:$8 sps:$4 sm:$0xff]  }
 0x7db   :  { %15275 = vst.msk [vmem:[#allocation2 + $0x158] sm:$0xff] %vm1422_vm2, %v15270_v24  ;;  %18624 = vmatmul.mubr.bf16.gmra.mrb[224].mxu1 %v32022_v35  ;;  %17452 = vmatpush1.bf16.msra.mxu0 %v32013_v2  ;;  %v32263_v11 = vld [vmem:[%s32990_s3 + $0x2b4] ss:$8 sps:$4 sm:$0xff]   ;;  %v32274_v3 = vld [vmem:[%s32990_s3 + $0x2b0] ss:$8 sps:$4 sm:$0xff]   ;;  %v32338_v41 = vld [vmem:[#allocation2 + $0xa8] sm:$0xff] }
 0x7dc   :  { %23145 = vmatprep.mubr.msk.bf16.mxu1 %vm1422_vm2, %v32027_v31  ;;  %17453 = vmatprep.subr.bf16.mxu0 %v32019_v61  ;;  %v32280_v45 = vld [vmem:[%s32990_s3 + $0x2c4] ss:$8 sps:$4 sm:$0xff]   ;;  %v32306_v32 = vld [vmem:[%s32990_s3 + $0x2d0] ss:$8 sps:$4 sm:$0xff]   ;;  %v32335_v16 = vld [vmem:[%s32990_s3 + $0x2f4] ss:$8 sps:$4 sm:$0xff]  }
 0x7dd   :  { %18819 = vmatpush1.bf16.msra.mxu1 %v31782_v21  ;;  %v32058_v21 = vld [vmem:[%s32990_s3 + $0x204] ss:$8 sps:$4 sm:$0xff]   ;;  %v32346_v20 = vld [vmem:[%s32990_s3 + $0x2f0] ss:$8 sps:$4 sm:$0xff]  }
 0x7de   :  { %17206 = vmatmul.mubr.bf16.gmra.mrb[204].mxu0 %v31618_v37  ;;  %18820 = vmatprep.subr.bf16.mxu1 %v31789_v13  ;;  %v32061_v37 = vld [vmem:[#allocation2 + $0x100] sm:$0xff]  ;;  %v32065_v13 = vld [vmem:[#allocation2 + $0x118] sm:$0xff] }
 0x7df   :  { %22918 = vmatprep.mubr.msk.bf16.mxu0 %vm1422_vm2, %v31622_v58  ;;  %17454 = vmatpush1.bf16.msra.mxu0 %v32033_v18  ;;  %v32312_v34 = vld [vmem:[%s32990_s3 + $0x2e4] ss:$8 sps:$4 sm:$0xff]  }
 0x7e0   :  { %17455 = vmatprep.subr.bf16.mxu0 %v32041_v51 }
 0x7e1   :  { %18821 = vmatpush1.bf16.msra.mxu1 %v31803_v14  ;;  %v32079_v14 = vld [vmem:[%s32990_s3 + $0x214] ss:$8 sps:$4 sm:$0xff]  }
 0x7e2   :  { %19095 = vmatprep.subr.bf16.mxu1 %v31811_v39  ;;  %v32088_v39 = vld [vmem:[%s32990_s3 + $0x210] ss:$8 sps:$4 sm:$0xff]  }
 0x7e3   :  { %18634 = vmatmul.mubr.bf16.gmra.mrb[228].mxu1 %v32061_v37  ;;  %17456 = vmatpush1.bf16.msra.mxu0 %v32052_v42 }
 0x7e4   :  { %23146 = vmatprep.mubr.msk.bf16.mxu1 %vm1422_vm2, %v32065_v13  ;;  %17457 = vmatprep.subr.bf16.mxu0 %v32058_v21 }
 0x7e6   :  { %17216 = vmatmul.mubr.bf16.gmra.mrb[208].mxu0 %v31664_v59 }
 0x7e7   :  { %22919 = vmatprep.mubr.msk.bf16.mxu0 %vm1422_vm2, %v31668_v1  ;;  %17458 = vmatpush1.bf16.msra.mxu0 %v32071_v60 }
 0x7e8   :  { %17459 = vmatprep.subr.bf16.mxu0 %v32079_v14 }
 0x7eb   :  { %18644 = vmatmul.mubr.bf16.gmra.mrb[232].mxu1 %v32096_v4  ;;  %17460 = vmatpush1.bf16.msra.mxu0 %v32088_v39 }
 0x7ec   :  { %23171 = vmatprep.mubr.msk.bf16.mxu1 %vm1422_vm2, %v31795_v46  ;;  %17461 = vmatprep.subr.bf16.mxu0 %v32094_v30 }
 0x7ee   :  { %17226 = vmatmul.mubr.bf16.gmra.mrb[212].mxu0 %v31713_v36 }
 0x7ef   :  { %22920 = vmatprep.mubr.msk.bf16.mxu0 %vm1422_vm2, %v31717_v40  ;;  %17462 = vmatpush1.bf16.msra.mxu0 %v32103_v52 }
 0x7f0   :  { %17463 = vmatprep.subr.bf16.mxu0 %v32111_v50 }
 0x7f3   :  { %18831 = vmatmul.mubr.bf16.vlgmr.msra.gmra.mrb[204].mxu1 %v31822_v10  ;;  %17464 = vmatpush1.bf16.msra.mxu0 %v32120_v43 }
 0x7f4   :  { %23172 = vmatprep.mubr.msk.bf16.mxu1 %vm1422_vm2, %v31828_v23  ;;  %19096 = vmatpush1.bf16.msra.mxu1 %v31885_v44  ;;  %v33039_v44 = vld [vmem:[#allocation8_spill] sm:$0xff] }
 0x7f5   :  { %19097 = vmatprep.subr.bf16.mxu1 %v31892_v25  ;;  %17771 = vmatprep.subr.bf16.mxu0 %v32126_v63  ;;  %v33040_v25 = vld [vmem:[#allocation9_spill] sm:$0xff] }
 0x7f6   :  { %17236 = vmatmul.mubr.bf16.gmra.mrb[216].mxu0 %v31756_v57 }
 0x7f7   :  { %22921 = vmatprep.mubr.msk.bf16.mxu0 %vm1422_vm2, %v33036_v28 }
 0x7f8   :  { %19098 = vmatpush1.bf16.msra.mxu1 %v31905_v8  ;;  %v32154_v8 = vld [vmem:[%s32990_s3 + $0x240] ss:$8 sps:$4 sm:$0xff]  }
 0x7f9   :  { %19099 = vmatprep.subr.bf16.mxu1 %v31914_v49  ;;  %v33041_v49 = vld [vmem:[#allocation10_spill] sm:$0xff] }
 0x7fb   :  { %18841 = vmatmul.mubr.bf16.gmra.mrb[208].mxu1 %v33037_v5 }
 0x7fc   :  { %23173 = vmatprep.mubr.msk.bf16.mxu1 %vm1422_vm2, %v33038_v62  ;;  %19100 = vmatpush1.bf16.msra.mxu1 %v31932_v38  ;;  %v32161_v38 = vld [vmem:[%s32990_s3 + $0x254] ss:$8 sps:$4 sm:$0xff]  }
 0x7fd   :  { %19101 = vmatprep.subr.bf16.mxu1 %v31940_v27  ;;  %v32178_v27 = vld [vmem:[%s32990_s3 + $0x264] ss:$8 sps:$4 sm:$0xff]   ;;  %v17588_v62 = vld [vmem:[#allocation2 + $0x70] sm:$0xff] }
 0x7fe   :  { %17246 = vmatmul.mubr.bf16.gmra.mrb[220].mxu0 %v33039_v44 }
 0x7ff   :  { %22970 = vmatprep.mubr.msk.bf16.mxu0 %vm1422_vm2, %v31622_v58  ;;  %v32172_v58 = vld [vmem:[%s32990_s3 + $0x250] ss:$8 sps:$4 sm:$0xff]  }
 0x800   :  { %19102 = vmatpush1.bf16.msra.mxu1 %v31960_v22  ;;  %v33043_v22 = vld [vmem:[#allocation12_spill] sm:$0xff] }
 0x801   :  { %19103 = vmatprep.subr.bf16.mxu1 %v31972_v17  ;;  %v32195_v17 = vld [vmem:[%s32990_s3 + $0x274] ss:$8 sps:$4 sm:$0xff]  }
 0x803   :  { %18851 = vmatmul.mubr.bf16.gmra.mrb[212].mxu1 %v33040_v25 }
 0x804   :  { %23174 = vmatprep.mubr.msk.bf16.mxu1 %vm1422_vm2, %v33041_v49  ;;  %19104 = vmatpush1.bf16.msra.mxu1 %v31994_v48  ;;  %v32297_v48 = vld [vmem:[%s32990_s3 + $0x2d4] ss:$8 sps:$4 sm:$0xff]  }
 0x805   :  { %19105 = vmatprep.subr.bf16.mxu1 %v32002_v0  ;;  %v32325_v0 = vld [vmem:[%s32990_s3 + $0x2e0] ss:$8 sps:$4 sm:$0xff]  }
 0x806   :  { %17474 = vmatmul.mubr.bf16.vlgmr.msra.gmra.mrb[192].mxu0 %v31664_v59  ;;  %v33042_v59 = vld [vmem:[#allocation11_spill] sm:$0xff] }
 0x807   :  { %22971 = vmatprep.mubr.msk.bf16.mxu0 %vm1422_vm2, %v31668_v1  ;;  %17772 = vmatpush1.bf16.msra.mxu0 %v32154_v8  ;;  %v32187_v1 = vld [vmem:[%s32990_s3 + $0x260] ss:$8 sps:$4 sm:$0xff]  }
 0x808   :  { %17773 = vmatprep.subr.bf16.mxu0 %v32161_v38  ;;  %19106 = vmatpush1.bf16.msra.mxu1 %v32013_v2  ;;  %v32354_v2 = vld [vmem:[%s32990_s3 + $0x304] ss:$8 sps:$4 sm:$0xff]  }
 0x809   :  { %19107 = vmatprep.subr.bf16.mxu1 %v32019_v61 }
 0x80b   :  { %18861 = vmatmul.mubr.bf16.gmra.mrb[216].mxu1 %v33042_v59  ;;  %17774 = vmatpush1.bf16.msra.mxu0 %v32172_v58 }
 0x80c   :  { %23175 = vmatprep.mubr.msk.bf16.mxu1 %vm1422_vm2, %v33043_v22  ;;  %17775 = vmatprep.subr.bf16.mxu0 %v32178_v27 }
 0x80d   :  { %19108 = vmatpush1.bf16.msra.mxu1 %v32033_v18  ;;  %v32370_v18 = vld [vmem:[#allocation2 + $0xb8] sm:$0xff] }
 0x80e   :  { %17484 = vmatmul.mubr.bf16.gmra.mrb[196].mxu0 %v31713_v36  ;;  %19109 = vmatprep.subr.bf16.mxu1 %v32041_v51  ;;  %v33044_v36 = vld [vmem:[#allocation14_spill] sm:$0xff] }
 0x80f   :  { %22972 = vmatprep.mubr.msk.bf16.mxu0 %vm1422_vm2, %v31717_v40  ;;  %17776 = vmatpush1.bf16.msra.mxu0 %v32187_v1  ;;  %v32221_v40 = vld [vmem:[%s32990_s3 + $0x280] ss:$8 sps:$4 sm:$0xff]  }
 0x810   :  { %17777 = vmatprep.subr.bf16.mxu0 %v32195_v17 }
 0x811   :  { %19110 = vmatpush1.bf16.msra.mxu1 %v32052_v42 }
 0x812   :  { %19111 = vmatprep.subr.bf16.mxu1 %v32058_v21 }
 0x813   :  { %18871 = vmatmul.mubr.bf16.gmra.mrb[220].mxu1 %v33044_v36  ;;  %17778 = vmatpush1.bf16.msra.mxu0 %v32206_v56 }
 0x814   :  { %23176 = vmatprep.mubr.msk.bf16.mxu1 %vm1422_vm2, %v33045_v6  ;;  %17779 = vmatprep.subr.bf16.mxu0 %v32212_v15 }
 0x815   :  { %19112 = vmatpush1.bf16.msra.mxu1 %v32071_v60 }
 0x816   :  { %17494 = vmatmul.mubr.bf16.gmra.mrb[200].mxu0 %v31756_v57  ;;  %19113 = vmatprep.subr.bf16.mxu1 %v32079_v14  ;;  %v32255_v57 = vld [vmem:[%s32990_s3 + $0x2a0] ss:$8 sps:$4 sm:$0xff]  }
 0x817   :  { %22973 = vmatprep.mubr.msk.bf16.mxu0 %vm1422_vm2, %v33036_v28  ;;  %17780 = vmatpush1.bf16.msra.mxu0 %v32221_v40  ;;  %v17587_v14 = vld [vmem:[#allocation2 + $0x68] sm:$0xff] }
 0x818   :  { %17781 = vmatprep.subr.bf16.mxu0 %v32229_v53  ;;  %v32436_v28 = vld [vmem:[%s32990_s3 + $0x320] ss:$8 sps:$4 sm:$0xff]  }
 0x819   :  { %19114 = vmatpush1.bf16.msra.mxu1 %v32088_v39 }
 0x81a   :  { %19115 = vmatprep.subr.bf16.mxu1 %v32094_v30  ;;  %v32403_v30 = vld [vmem:[%s32990_s3 + $0x300] ss:$8 sps:$4 sm:$0xff]  }
 0x81b   :  { %18881 = vmatmul.mubr.bf16.gmra.mrb[224].mxu1 %v31922_v29  ;;  %17782 = vmatpush1.bf16.msra.mxu0 %v32240_v54 }
 0x81c   :  { %23177 = vmatprep.mubr.msk.bf16.mxu1 %vm1422_vm2, %v31926_v12  ;;  %17783 = vmatprep.subr.bf16.mxu0 %v32246_v9 }
 0x81d   :  { %19116 = vmatpush1.bf16.msra.mxu1 %v32103_v52 }
 0x81e   :  { %17504 = vmatmul.mubr.bf16.gmra.mrb[204].mxu0 %v33039_v44  ;;  %19117 = vmatprep.subr.bf16.mxu1 %v32111_v50  ;;  %v32412_v50 = vld [vmem:[%s32990_s3 + $0x314] ss:$8 sps:$4 sm:$0xff]   ;;  %v32462_v44 = vld [vmem:[%s32990_s3 + $0x344] ss:$8 sps:$4 sm:$0xff]  }
 0x81f   :  { %22974 = vmatprep.mubr.msk.bf16.mxu0 %vm1422_vm2, %v31795_v46  ;;  %17784 = vmatpush1.bf16.msra.mxu0 %v32255_v57  ;;  %v32289_v46 = vld [vmem:[%s32990_s3 + $0x2c0] ss:$8 sps:$4 sm:$0xff]  }
 0x820   :  { %17785 = vmatprep.subr.bf16.mxu0 %v32263_v11 }
 0x821   :  { %19118 = vmatpush1.bf16.msra.mxu1 %v32120_v43  ;;  %v17589_v43 = vld [vmem:[#allocation2 + $0x78] sm:$0xff] }
 0x822   :  { %19424 = vmatprep.subr.bf16.mxu1 %v32126_v63  ;;  %v32427_v63 = vld [vmem:[%s32990_s3 + $0x324] ss:$8 sps:$4 sm:$0xff]  }
 0x823   :  { %18891 = vmatmul.mubr.bf16.gmra.mrb[228].mxu1 %v31982_v7  ;;  %17786 = vmatpush1.bf16.msra.mxu0 %v32274_v3 }
 0x824   :  { %23178 = vmatprep.mubr.msk.bf16.mxu1 %vm1422_vm2, %v31988_v19  ;;  %17787 = vmatprep.subr.bf16.mxu0 %v32280_v45 }
 0x826   :  { %17514 = vmatmul.mubr.bf16.gmra.mrb[208].mxu0 %v31822_v10 }
 0x827   :  { %22975 = vmatprep.mubr.msk.bf16.mxu0 %vm1422_vm2, %v31828_v23  ;;  %17788 = vmatpush1.bf16.msra.mxu0 %v32289_v46 }
 0x828   :  { %17789 = vmatprep.subr.bf16.mxu0 %v32297_v48 }
 0x829   :  { %v32314_v33 = vpop.f32.mrb[176].mxu0 }
 0x82a   :  { %v32316_v10 = vpop.f32.mrb[177].mxu0 }
 0x82b   :  { %18901 = vmatmul.mubr.bf16.gmra.mrb[232].mxu1 %v32022_v35  ;;  %v32319_v23 = vpop.f32.mrb[178].mxu0  ;;  %17790 = vmatpush1.bf16.msra.mxu0 %v32306_v32 }
 0x82c   :  { %23227 = vmatprep.mubr.msk.bf16.mxu1 %vm1422_vm2, %v33043_v22  ;;  %v32329_v47 = vpop.f32.mrb[179].mxu0  ;;  %17791 = vmatprep.subr.bf16.mxu0 %v32312_v34 }
 0x82e   :  { %17524 = vmatmul.mubr.bf16.gmra.mrb[212].mxu0 %v33037_v5  ;;  %v32444_v5 = vld [vmem:[%s32990_s3 + $0x334] ss:$8 sps:$4 sm:$0xff]  }
 0x82f   :  { %22976 = vmatprep.mubr.msk.bf16.mxu0 %vm1422_vm2, %v32338_v41  ;;  %17792 = vmatpush1.bf16.msra.mxu0 %v32325_v0 }
 0x830   :  { %17793 = vmatprep.subr.bf16.mxu0 %v32335_v16 }
 0x831   :  { %v32349_v55 = vpop.f32.mrb[180].mxu0 }
 0x832   :  { %v32356_v26 = vpop.f32.mrb[181].mxu0 }
 0x833   :  { %19128 = vmatmul.mubr.bf16.vlgmr.msra.gmra.mrb[204].mxu1 %v33044_v36  ;;  %v32359_v61 = vpop.f32.mrb[182].mxu0  ;;  %17794 = vmatpush1.bf16.msra.mxu0 %v32346_v20  ;;  %v32509_v36 = vld [vmem:[#allocation2 + $0x128] sm:$0xff] }
 0x834   :  { %23228 = vmatprep.mubr.msk.bf16.mxu1 %vm1422_vm2, %v33045_v6  ;;  %v32364_v24 = vpop.f32.mrb[183].mxu0  ;;  %19425 = vmatpush1.bf16.msra.mxu1 %v32154_v8  ;;  %v32479_v8 = vld [vmem:[%s32990_s3 + $0x354] ss:$8 sps:$4 sm:$0xff]  }
 0x835   :  { %19426 = vmatprep.subr.bf16.mxu1 %v32161_v38  ;;  %18101 = vmatprep.subr.bf16.mxu0 %v32354_v2  ;;  %v32481_v38 = vld [vmem:[#allocation2 + $0x80] sm:$0xff]  ;;  %v32523_v6 = vld [vmem:[%s32990_s3 + $0x374] ss:$8 sps:$4 sm:$0xff]  }
 0x836   :  { %17534 = vmatmul.mubr.bf16.gmra.mrb[216].mxu0 %v33040_v25  ;;  %v32471_v25 = vld [vmem:[%s32990_s3 + $0x340] ss:$8 sps:$4 sm:$0xff]  }
 0x837   :  { %22977 = vmatprep.mubr.msk.bf16.mxu0 %vm1422_vm2, %v32370_v18 }
 0x838   :  { %19427 = vmatpush1.bf16.msra.mxu1 %v32172_v58 }
 0x839   :  { %v32375_v51 = vpop.f32.mrb[184].mxu0  ;;  %19428 = vmatprep.subr.bf16.mxu1 %v32178_v27  ;;  %v32486_v27 = vld [vmem:[#allocation2 + $0x98] sm:$0xff] }
 0x83a   :  { %v32378_v42 = vpop.f32.mrb[185].mxu0 }
 0x83b   :  { %19138 = vmatmul.mubr.bf16.gmra.mrb[208].mxu1 %v31922_v29  ;;  %v32381_v21 = vpop.f32.mrb[186].mxu0 }
 0x83c   :  { %23229 = vmatprep.mubr.msk.bf16.mxu1 %vm1422_vm2, %v31926_v12  ;;  %v32385_v60 = vpop.f32.mrb[187].mxu0  ;;  %19429 = vmatpush1.bf16.msra.mxu1 %v32187_v1  ;;  %v32496_v1 = vld [vmem:[%s32990_s3 + $0x350] ss:$8 sps:$4 sm:$0xff]  }
 0x83d   :  { %19430 = vmatprep.subr.bf16.mxu1 %v32195_v17 }
 0x83e   :  { %17544 = vmatmul.mubr.bf16.gmra.mrb[220].mxu0 %v33042_v59 }
 0x83f   :  { %23026 = vmatprep.mubr.msk.bf16.mxu0 %vm1422_vm2, %v17587_v14 }
 0x840   :  { %19431 = vmatpush1.bf16.msra.mxu1 %v32206_v56  ;;  %v32503_v56 = vld [vmem:[%s32990_s3 + $0x364] ss:$8 sps:$4 sm:$0xff]  }
 0x841   :  { %v32392_v39 = vpop.f32.mrb[188].mxu0  ;;  %19432 = vmatprep.subr.bf16.mxu1 %v32212_v15 }
 0x842   :  { %v32395_v29 = vpop.f32.mrb[189].mxu0 }
 0x843   :  { %19148 = vmatmul.mubr.bf16.gmra.mrb[212].mxu1 %v31982_v7  ;;  %v32398_v12 = vpop.f32.mrb[190].mxu0  ;;  %v17586_v7 = vld [vmem:[#allocation2 + $0x60] sm:$0xff] }
 0x844   :  { %23230 = vmatprep.mubr.msk.bf16.mxu1 %vm1422_vm2, %v31988_v19  ;;  %v32407_v52 = vpop.f32.mrb[191].mxu0  ;;  %19433 = vmatpush1.bf16.msra.mxu1 %v32221_v40  ;;  %v32421_v19 = vld [vmem:[%s32990_s3 + $0x310] ss:$8 sps:$4 sm:$0xff]   ;;  %v32515_v40 = vld [vmem:[%s32990_s3 + $0x360] ss:$8 sps:$4 sm:$0xff]  }
 0x845   :  { %19434 = vmatprep.subr.bf16.mxu1 %v32229_v53  ;;  %v32527_v53 = vld [vmem:[#allocation2 + $0x90] sm:$0xff] }
 0x846   :  { %17804 = vmatmul.mubr.bf16.vlgmr.msra.gmra.mrb[192].mxu0 %v17586_v7  ;;  %v32590_v7 = vld [vmem:[#allocation2 + $0xa0] sm:$0xff] }
 0x847   :  { %23027 = vmatprep.mubr.msk.bf16.mxu0 %vm1422_vm2, %v17589_v43  ;;  %18102 = vmatpush1.bf16.msra.mxu0 %v32403_v30 }
 0x848   :  { %18103 = vmatprep.subr.bf16.mxu0 %v32412_v50  ;;  %19435 = vmatpush1.bf16.msra.mxu1 %v32240_v54  ;;  %v32622_v54 = vld [vmem:[#allocation2 + $0xe8] sm:$0xff] }
 0x849   :  { %19436 = vmatprep.subr.bf16.mxu1 %v32246_v9  ;;  %33049 = vst [vmem:[#allocation13_spill] sm:$0xff] %v32622_v54 }
 0x84b   :  { %19158 = vmatmul.mubr.bf16.gmra.mrb[216].mxu1 %v32022_v35  ;;  %18104 = vmatpush1.bf16.msra.mxu0 %v32421_v19  ;;  %v32447_v35 = vld [vmem:[#allocation2 + $0x88] sm:$0xff] }
 0x84c   :  { %23231 = vmatprep.mubr.msk.bf16.mxu1 %vm1422_vm2, %v32027_v31  ;;  %18105 = vmatprep.subr.bf16.mxu0 %v32427_v63  ;;  %v32456_v31 = vld [vmem:[%s32990_s3 + $0x330] ss:$8 sps:$4 sm:$0xff]  }
 0x84d   :  { %19437 = vmatpush1.bf16.msra.mxu1 %v32255_v57  ;;  %v16600_v57 = vld [vmem:[%s32989_s2] sm:$0x3] }
 0x84e   :  { %17814 = vmatmul.mubr.bf16.gmra.mrb[196].mxu0 %v17588_v62  ;;  %19438 = vmatprep.subr.bf16.mxu1 %v32263_v11 }
 0x84f   :  { %23028 = vmatprep.mubr.msk.bf16.mxu0 %vm1422_vm2, %v32447_v35  ;;  %18106 = vmatpush1.bf16.msra.mxu0 %v32436_v28 }
 0x850   :  { %18107 = vmatprep.subr.bf16.mxu0 %v32444_v5 }
 0x851   :  { %19439 = vmatpush1.bf16.msra.mxu1 %v32274_v3 }
 0x852   :  { %19440 = vmatprep.subr.bf16.mxu1 %v32280_v45  ;;  %v32549_v45 = vld [vmem:[%s32990_s3 + $0x370] ss:$8 sps:$4 sm:$0xff]  }
 0x853   :  { %19168 = vmatmul.mubr.bf16.gmra.mrb[220].mxu1 %v32061_v37  ;;  %18108 = vmatpush1.bf16.msra.mxu0 %v32456_v31 }
 0x854   :  { %23232 = vmatprep.mubr.msk.bf16.mxu1 %vm1422_vm2, %v32065_v13  ;;  %18109 = vmatprep.subr.bf16.mxu0 %v32462_v44 }
 0x855   :  { %v16513_v49 = vpop.f32.mrb[188].mxu1  ;;  %19441 = vmatpush1.bf16.msra.mxu1 %v32289_v46  ;;  %v32618_v46 = vld [vmem:[#allocation2 + $0x130] sm:$0xff] }
 0x856   :  { %v16584_v37 = vmax.f32 %v32314_v33, %v16513_v49  ;;  %17824 = vmatmul.mubr.bf16.gmra.mrb[200].mxu0 %v32481_v38  ;;  %v16515_v58 = vpop.f32.mrb[189].mxu1  ;;  %19442 = vmatprep.subr.bf16.mxu1 %v32297_v48  ;;  %v33046_v33 = vld [vmem:[#allocation4_spill] sm:$0xff]  ;;  %33048 = vst [vmem:[#allocation7_spill] sm:$0xff] %v32618_v46 }
 0x857   :  { %v16585_v13 = vmax.f32 %v32316_v10, %v16515_v58  ;;  %23029 = vmatprep.mubr.msk.bf16.mxu0 %vm1422_vm2, %v32486_v27  ;;  %v16517_v59 = vpop.f32.mrb[190].mxu1  ;;  %18110 = vmatpush1.bf16.msra.mxu0 %v32471_v25  ;;  %v32565_v10 = vrot.slane %v16600_v57, %v33046_v33 }
 0x858   :  { %v16586_v22 = vmax.f32 %v32319_v23, %v16517_v59  ;;  %v16519_v17 = vpop.f32.mrb[191].mxu1  ;;  %18111 = vmatprep.subr.bf16.mxu0 %v32479_v8  ;;  %v32567_v23 = vld [vmem:[#allocation2 + $0x120] sm:$0xff] }
 0x859   :  { %v16587_v15 = vmax.f32 %v32329_v47, %v16519_v17  ;;  %19443 = vmatpush1.bf16.msra.mxu1 %v32306_v32  ;;  %v32559_v32 = vld [vmem:[%s32990_s3 + $0x384] ss:$8 sps:$4 sm:$0xff]   ;;  %v16612_v43 = vadd.f32 %v32565_v10, %v16584_v37 }
 0x85a   :  { %19444 = vmatprep.subr.bf16.mxu1 %v32312_v34 }
 0x85b   :  { %19178 = vmatmul.mubr.bf16.gmra.mrb[224].mxu1 %v32096_v4  ;;  %18112 = vmatpush1.bf16.msra.mxu0 %v32496_v1  ;;  %v16628_v34 = vmax.f32 %v16612_v43, 0.0 }
 0x85c   :  { %23233 = vmatprep.mubr.msk.bf16.mxu1 %vm1422_vm2, %v32509_v36  ;;  %18113 = vmatprep.subr.bf16.mxu0 %v32503_v56 }
 0x85d   :  { %v32525_v4 = vpop.f32.mrb[192].mxu1  ;;  %19445 = vmatpush1.bf16.msra.mxu1 %v32325_v0  ;;  %v33047_v0 = vld [vmem:[#allocation5_spill] sm:$0xff] }
 0x85e   :  { %17834 = vmatmul.mubr.bf16.gmra.mrb[204].mxu0 %v32527_v53  ;;  %v32533_v9 = vpop.f32.mrb[193].mxu1  ;;  %19446 = vmatprep.subr.bf16.mxu1 %v32335_v16  ;;  %v32571_v47 = vrot.slane %v16600_v57, %v33047_v0  ;;  %v32574_v16 = vld [vmem:[#allocation2 + $0x138] sm:$0xff] }
 0x85f   :  { %23030 = vmatprep.mubr.msk.bf16.mxu0 %vm1422_vm2, %v32338_v41  ;;  %v32543_v3 = vpop.f32.mrb[194].mxu1  ;;  %18114 = vmatpush1.bf16.msra.mxu0 %v32515_v40  ;;  %v32603_v57 = vld [vmem:[%s32990_s3 + $0x390] ss:$8 sps:$4 sm:$0xff]  }
 0x860   :  { %v32553_v48 = vpop.f32.mrb[195].mxu1  ;;  %18115 = vmatprep.subr.bf16.mxu0 %v32523_v6  ;;  %v16613_v58 = vadd.f32 %v32571_v47, %v16585_v13  ;;  %v16615_v0 = vadd.f32 %v32571_v47, %v16587_v15 }
 0x861   :  { %19447 = vmatpush1.bf16.msra.mxu1 %v32346_v20  ;;  %v32580_v20 = vld [vmem:[%s32990_s3 + $0x380] ss:$8 sps:$4 sm:$0xff]  }
 0x862   :  { %19753 = vmatprep.subr.bf16.mxu1 %v32354_v2  ;;  %v32588_v2 = vld [vmem:[%s32990_s3 + $0x394] ss:$8 sps:$4 sm:$0xff]  }
 0x863   :  { %19188 = vmatmul.mubr.bf16.gmra.mrb[228].mxu1 %v32567_v23  ;;  %18116 = vmatpush1.bf16.msra.mxu0 %v32549_v45 }
 0x864   :  { %23234 = vmatprep.mubr.msk.bf16.mxu1 %vm1422_vm2, %v32574_v16  ;;  %18117 = vmatprep.subr.bf16.mxu0 %v32559_v32 }
 0x865   :  { %v16533_v14 = vpop.f32.mrb[196].mxu1 }
 0x866   :  { %v16592_v62 = vmax.f32 %v32375_v51, %v16533_v14  ;;  %17844 = vmatmul.mubr.bf16.gmra.mrb[208].mxu0 %v32590_v7  ;;  %v16535_v49 = vpop.f32.mrb[197].mxu1  ;;  %v16614_v51 = vadd.f32 %v32565_v10, %v16586_v22 }
 0x867   :  { %v16593_v59 = vmax.f32 %v32378_v42, %v16535_v49  ;;  %23031 = vmatprep.mubr.msk.bf16.mxu0 %vm1422_vm2, %v32370_v18  ;;  %v16537_v17 = vpop.f32.mrb[198].mxu1  ;;  %18118 = vmatpush1.bf16.msra.mxu0 %v32580_v20  ;;  %v32612_v42 = vld [vmem:[%s32990_s3 + $0x3a4] ss:$8 sps:$4 sm:$0xff]  }
 0x868   :  { %v16620_v37 = vadd.f32 %v32565_v10, %v16592_v62  ;;  %v16594_v33 = vmax.f32 %v32381_v21, %v16537_v17  ;;  %v16539_v13 = vpop.f32.mrb[199].mxu1  ;;  %18119 = vmatprep.subr.bf16.mxu0 %v32588_v2  ;;  %v16629_v21 = vmax.f32 %v16613_v58, 0.0  ;;  %v16630_v15 = vmax.f32 %v16614_v51, 0.0  ;;  %v32638_v58 = vld [vmem:[%s32990_s3 + $0x3b4] ss:$8 sps:$4 sm:$0xff]  }
 0x869   :  { %v16621_v14 = vadd.f32 %v32571_v47, %v16593_v59  ;;  %v16595_v49 = vmax.f32 %v32385_v60, %v16539_v13  ;;  %v32628_v60 = vld [vmem:[%s32990_s3 + $0x3a0] ss:$8 sps:$4 sm:$0xff]  }
 0x86a   :  { %v16636_v22 = vmax.f32 %v16620_v37, 0.0  ;;  %v16622_v62 = vadd.f32 %v32565_v10, %v16594_v33  ;;  %v16631_v37 = vmax.f32 %v16615_v0, 0.0 }
 0x86b   :  { %v16637_v17 = vmax.f32 %v16621_v14, 0.0  ;;  %v16623_v11 = vadd.f32 %v32571_v47, %v16595_v49  ;;  %19198 = vmatmul.mubr.bf16.gmra.mrb[232].mxu1 %v32618_v46  ;;  %18120 = vmatpush1.bf16.msra.mxu0 %v32603_v57  ;;  %v32640_v49 = vld [vmem:[#allocation2 + $0xb0] sm:$0xff]  ;;  %v32650_v46 = vld [vmem:[#allocation2 + $0xc8] sm:$0xff] }
 0x86c   :  { %v32630_v43 = vmax.f32 %v16628_v34, %v16636_v22  ;;  %v16638_v59 = vmax.f32 %v16622_v62, 0.0  ;;  %23283 = vmatprep.mubr.msk.bf16.mxu1 %vm1422_vm2, %v32622_v54  ;;  %18121 = vmatprep.subr.bf16.mxu0 %v32612_v42  ;;  %v33050_v34 = vmax.f32 %v32349_v55, %v32525_v4  ;;  %v33052_v4 = vmax.f32 %v32359_v61, %v32543_v3 }
 0x86d   :  { %v16645_v33 = vmax.f32 %v16629_v21, %v16637_v17  ;;  %v16639_v13 = vmax.f32 %v16623_v11, 0.0  ;;  %v16543_v14 = vpop.f32.mrb[200].mxu1  ;;  %v33051_v11 = vmax.f32 %v32356_v26, %v32533_v9 }
 0x86e   :  { %v16616_v51 = vadd.f32 %v32565_v10, %v33050_v34  ;;  %v32646_v22 = vmax.f32 %v16630_v15, %v16638_v59  ;;  %v16596_v62 = vmax.f32 %v32392_v39, %v16543_v14  ;;  %17854 = vmatmul.mubr.bf16.gmra.mrb[212].mxu0 %v32640_v49  ;;  %v16545_v54 = vpop.f32.mrb[201].mxu1  ;;  %v32663_v39 = vld [vmem:[%s32990_s3 + $0x3b0] ss:$8 sps:$4 sm:$0xff]   ;;  %v16618_v26 = vadd.f32 %v32565_v10, %v33052_v4 }
 0x86f   :  { %v16617_v0 = vadd.f32 %v32571_v47, %v33051_v11  ;;  %v16647_v21 = vmax.f32 %v16631_v37, %v16639_v13  ;;  %v16597_v17 = vmax.f32 %v32395_v29, %v16545_v54  ;;  %23032 = vmatprep.mubr.msk.bf16.mxu0 %vm1422_vm2, %v32650_v46  ;;  %v16547_v55 = vpop.f32.mrb[202].mxu1  ;;  %18122 = vmatpush1.bf16.msra.mxu0 %v32628_v60 }
 0x870   :  { %v16652_v9 = vpack.c.bf16 %v32646_v22, %v32630_v43  ;;  %v16624_v29 = vadd.f32 %v32565_v10, %v16596_v62  ;;  %v16598_v54 = vmax.f32 %v32398_v12, %v16547_v55  ;;  %v16549_v15 = vpop.f32.mrb[203].mxu1  ;;  %18123 = vmatprep.subr.bf16.mxu0 %v32638_v58  ;;  %v33053_v59 = vmax.f32 %v32364_v24, %v32553_v48  ;;  %v32681_v62 = vld [vmem:[#allocation2 + $0xe0] sm:$0xff]  ;;  %v32686_v24 = vld [vmem:[#allocation2 + $0xf8] sm:$0xff] }
 0x871   :  { %v16653_v13 = vpack.c.bf16 %v16647_v21, %v16645_v33  ;;  %v16625_v61 = vadd.f32 %v32571_v47, %v16597_v17  ;;  %v16599_v3 = vmax.f32 %v32407_v52, %v16549_v15  ;;  %v16632_v14 = vmax.f32 %v16616_v51, 0.0  ;;  %v17598_v21 = vld [vmem:[#allocation2 + $0xc0] sm:$0xff]  ;;  %v17601_v17 = vld [vmem:[#allocation2 + $0xd8] sm:$0xff]  ;;  %v17600_v15 = vld [vmem:[#allocation2 + $0xd0] sm:$0xff] }
 0x872   :  { %v16619_v37 = vadd.f32 %v32571_v47, %v33053_v59  ;;  %v16640_v34 = vmax.f32 %v16624_v29, 0.0  ;;  %v16626_v11 = vadd.f32 %v32565_v10, %v16598_v54  ;;  %v16633_v12 = vmax.f32 %v16617_v0, 0.0  ;;  %v26187_v59 = vld [vmem:[%s32993_s7 + $0x40] sm:$0xff]  }
 0x873   :  { %16658 = vst.msk [vmem:[#allocation2 + $0x168] sm:$0xff] %vm1422_vm2, %v16653_v13  ;;  %v16641_v55 = vmax.f32 %v16625_v61, 0.0  ;;  %v16627_v4 = vadd.f32 %v32571_v47, %v16599_v3  ;;  %19457 = vmatmul.mubr.bf16.vlgmr.msra.gmra.mrb[204].mxu1 %v32681_v62  ;;  %18124 = vmatpush1.bf16.msra.mxu0 %v32663_v39  ;;  %v16634_v48 = vmax.f32 %v16618_v26, 0.0  ;;  %v26188_v3 = vld [vmem:[%s32993_s7 + $0x48] sm:$0xff]  }
 0x874   :  { %v32689_v52 = vmax.f32 %v16632_v14, %v16640_v34  ;;  %v16642_v33 = vmax.f32 %v16626_v11, 0.0  ;;  %23284 = vmatprep.mubr.msk.bf16.mxu1 %vm1422_vm2, %v32686_v24  ;;  %19754 = vmatpush1.bf16.msra.mxu1 %v32403_v30  ;;  %v16635_v10 = vmax.f32 %v16619_v37, 0.0  ;;  %v32702_v30 = vld [vmem:[#allocation2 + $0xf0] sm:$0xff] }
 0x875   :  { %v16649_v51 = vmax.f32 %v16633_v12, %v16641_v55  ;;  %v16643_v0 = vmax.f32 %v16627_v4, 0.0  ;;  %19755 = vmatprep.subr.bf16.mxu1 %v32412_v50  ;;  %v19245_v50 = vld [vmem:[#allocation2 + $0x108] sm:$0xff]  ;;  %v26189_v12 = vld [vmem:[%s32993_s7 + $0x50] sm:$0xff]  }
 0x876   :  { %v32695_v47 = vmax.f32 %v16634_v48, %v16642_v33  ;;  %17864 = vmatmul.mubr.bf16.gmra.mrb[216].mxu0 %v17598_v21 }
 0x877   :  { %v16651_v29 = vmax.f32 %v16635_v10, %v16643_v0  ;;  %23033 = vmatprep.mubr.msk.bf16.mxu0 %vm1422_vm2, %v17601_v17 }
 0x878   :  { %v16654_v26 = vpack.c.bf16 %v32695_v47, %v32689_v52  ;;  %19756 = vmatpush1.bf16.msra.mxu1 %v32421_v19  ;;  %v19244_v19 = vld [vmem:[#allocation2 + $0x100] sm:$0xff] }
 0x879   :  { %v16655_v54 = vpack.c.bf16 %v16651_v29, %v16649_v51  ;;  %19757 = vmatprep.subr.bf16.mxu1 %v32427_v63  ;;  %v19247_v63 = vld [vmem:[#allocation2 + $0x118] sm:$0xff] }
 0x87a   :  { %v26190_v51 = vld [vmem:[%s32993_s7 + $0x58] sm:$0xff]  }
 0x87b   :  { %16660 = vst.msk [vmem:[#allocation2 + $0x178] sm:$0xff] %vm1422_vm2, %v16655_v54  ;;  %19467 = vmatmul.mubr.bf16.gmra.mrb[208].mxu1 %v32702_v30 }
 0x87c   :  { %23285 = vmatprep.mubr.msk.bf16.mxu1 %vm1422_vm2, %v19245_v50  ;;  %19758 = vmatpush1.bf16.msra.mxu1 %v32436_v28  ;;  %v19246_v28 = vld [vmem:[#allocation2 + $0x110] sm:$0xff] }
 0x87d   :  { %19759 = vmatprep.subr.bf16.mxu1 %v32444_v5  ;;  %v19253_v5 = vld [vmem:[#allocation2 + $0x148] sm:$0xff] }
 0x87e   :  { %17874 = vmatmul.mubr.bf16.gmra.mrb[220].mxu0 %v17600_v15 }
 0x87f   :  { %23082 = vmatprep.mubr.msk.bf16.mxu0 %vm1422_vm2, %v32447_v35  ;;  %v19255_v35 = vld [vmem:[#allocation2 + $0x158] sm:$0xff] }
 0x880   :  { %19760 = vmatpush1.bf16.msra.mxu1 %v32456_v31  ;;  %v19254_v31 = vld [vmem:[#allocation2 + $0x150] sm:$0xff] }
 0x881   :  { %19761 = vmatprep.subr.bf16.mxu1 %v32462_v44  ;;  %v33055_v44 = vld [vmem:[#allocation13_spill] sm:$0xff] }
 0x883   :  { %19477 = vmatmul.mubr.bf16.gmra.mrb[212].mxu1 %v19244_v19 }
 0x884   :  { %23286 = vmatprep.mubr.msk.bf16.mxu1 %vm1422_vm2, %v19247_v63  ;;  %19762 = vmatpush1.bf16.msra.mxu1 %v32471_v25  ;;  %v19582_v25 = vld [vmem:[#allocation2 + $0x168] sm:$0xff] }
 0x885   :  { %19763 = vmatprep.subr.bf16.mxu1 %v32479_v8  ;;  %v19584_v8 = vld [vmem:[#allocation2 + $0x178] sm:$0xff] }
 0x886   :  { %18134 = vmatmul.mubr.bf16.vlgmr.msra.gmra.mrb[192].mxu0 %v32481_v38  ;;  %v26163_v38 = vld [vmem:[%s32991_s5 + $0x40] sm:$0xff]  }
 0x887   :  { %23083 = vmatprep.mubr.msk.bf16.mxu0 %vm1422_vm2, %v32486_v27  ;;  %23494 = vmatprep.subr.bf16.mxu0 %v26163_v38  ;;  %v26164_v27 = vld [vmem:[%s32991_s5 + $0x48] sm:$0xff]  }
 0x888   :  { %19764 = vmatpush1.bf16.msra.mxu1 %v32496_v1  ;;  %23495 = vmatpush3.bf16.msra.mxu0 %v26163_v38  ;;  %v26165_v1 = vld [vmem:[%s32991_s5 + $0x50] sm:$0xff]  }
 0x889   :  { %19765 = vmatprep.subr.bf16.mxu1 %v32503_v56  ;;  %23496 = vmatprep.subr.bf16.mxu0 %v26164_v27  ;;  %v26166_v56 = vld [vmem:[%s32991_s5 + $0x58] sm:$0xff]  }
 0x88b   :  { %19487 = vmatmul.mubr.bf16.gmra.mrb[216].mxu1 %v19246_v28 }
 0x88c   :  { %23287 = vmatprep.mubr.msk.bf16.mxu1 %vm1422_vm2, %v32509_v36  ;;  %19766 = vmatpush1.bf16.msra.mxu1 %v32515_v40  ;;  %v26168_v40 = vld [vmem:[%s32991_s5 + $0x68] sm:$0xff]  }
 0x88d   :  { %19767 = vmatprep.subr.bf16.mxu1 %v32523_v6  ;;  %23497 = vmatpush3.bf16.msra.mxu0 %v26164_v27  ;;  %v26169_v6 = vld [vmem:[%s32991_s5 + $0x70] sm:$0xff]  }
 0x88e   :  { %18144 = vmatmul.mubr.bf16.gmra.mrb[196].mxu0 %v32527_v53  ;;  %23498 = vmatprep.subr.bf16.mxu0 %v26165_v1  ;;  %v26170_v53 = vld [vmem:[%s32991_s5 + $0x78] sm:$0xff]  }
 0x88f   :  { %23084 = vmatprep.mubr.msk.bf16.mxu0 %vm1422_vm2, %v32338_v41  ;;  %v33054_v41 = vld [vmem:[#allocation7_spill] sm:$0xff] }
 0x890   :  { %19768 = vmatpush1.bf16.msra.mxu1 %v32549_v45  ;;  %v32801_v45 = vld [vmem:[%s32991_s5] sm:$0xff]  }
 0x891   :  { %19769 = vmatprep.subr.bf16.mxu1 %v32559_v32  ;;  %23499 = vmatpush3.bf16.msra.mxu0 %v26165_v1 }
 0x892   :  { %23500 = vmatprep.subr.bf16.mxu0 %v26166_v56 }
 0x893   :  { %19497 = vmatmul.mubr.bf16.gmra.mrb[220].mxu1 %v32567_v23 }
 0x894   :  { %23288 = vmatprep.mubr.msk.bf16.mxu1 %vm1422_vm2, %v32574_v16  ;;  %19770 = vmatpush1.bf16.msra.mxu1 %v32580_v20 }
 0x895   :  { %19771 = vmatprep.subr.bf16.mxu1 %v32588_v2  ;;  %23501 = vmatpush3.bf16.msra.mxu0 %v26166_v56 }
 0x896   :  { %18154 = vmatmul.mubr.bf16.gmra.mrb[200].mxu0 %v32590_v7 }
 0x897   :  { %23085 = vmatprep.mubr.msk.bf16.mxu0 %vm1422_vm2, %v32370_v18  ;;  %v19252_v18 = vld [vmem:[#allocation2 + $0x140] sm:$0xff] }
 0x898   :  { %19772 = vmatpush1.bf16.msra.mxu1 %v32603_v57 }
 0x899   :  { %19773 = vmatprep.subr.bf16.mxu1 %v32612_v42 }
 0x89b   :  { %19507 = vmatmul.mubr.bf16.gmra.mrb[224].mxu1 %v33054_v41 }
 0x89c   :  { %23289 = vmatprep.mubr.msk.bf16.mxu1 %vm1422_vm2, %v19253_v5  ;;  %19774 = vmatpush1.bf16.msra.mxu1 %v32628_v60 }
 0x89d   :  { %19775 = vmatprep.subr.bf16.mxu1 %v32638_v58 }
 0x89e   :  { %18164 = vmatmul.mubr.bf16.gmra.mrb[204].mxu0 %v32640_v49  ;;  %v32807_v49 = vld [vmem:[%s32992_s4] ss:$0 sm:$0xff] }
 0x89f   :  { %23086 = vmatprep.mubr.msk.bf16.mxu0 %vm1422_vm2, %v32650_v46 }
 0x8a0   :  { %19776 = vmatpush1.bf16.msra.mxu1 %v32663_v39 }
 0x8a1   :  { %23566 = vmatprep.subr.bf16.mxu1 %v26187_v59 }
 0x8a3   :  { %19517 = vmatmul.mubr.bf16.gmra.mrb[228].mxu1 %v19252_v18 }
 0x8a4   :  { %23290 = vmatprep.mubr.msk.bf16.mxu1 %vm1422_vm2, %v19255_v35 }
 0x8a6   :  { %18174 = vmatmul.mubr.bf16.gmra.mrb[208].mxu0 %v17598_v21 }
 0x8a7   :  { %23087 = vmatprep.mubr.msk.bf16.mxu0 %vm1422_vm2, %v17601_v17 }
 0x8ab   :  { %19527 = vmatmul.mubr.bf16.gmra.mrb[232].mxu1 %v19254_v31 }
 0x8ac   :  { %23339 = vmatprep.mubr.msk.bf16.mxu1 %vm1422_vm2, %v19245_v50 }
 0x8ae   :  { %18184 = vmatmul.mubr.bf16.gmra.mrb[212].mxu0 %v17600_v15 }
 0x8af   :  { %23088 = vmatprep.mubr.msk.bf16.mxu0 %vm1422_vm2, %v33055_v44  ;;  %v26192_v44 = vld [vmem:[%s32993_s7 + $0x68] sm:$0xff]  }
 0x8b3   :  { %19786 = vmatmul.mubr.bf16.vlgmr.msra.gmra.mrb[204].mxu1 %v19244_v19 }
 0x8b4   :  { %23340 = vmatprep.mubr.msk.bf16.mxu1 %vm1422_vm2, %v19247_v63  ;;  %23567 = vmatpush3.bf16.msra.mxu1 %v26187_v59 }
 0x8b5   :  { %23568 = vmatprep.subr.bf16.mxu1 %v26188_v3 }
 0x8b6   :  { %18194 = vmatmul.mubr.bf16.gmra.mrb[216].mxu0 %v32681_v62 }
 0x8b7   :  { %23089 = vmatprep.mubr.msk.bf16.mxu0 %vm1422_vm2, %v32686_v24 }
 0x8b8   :  { %23569 = vmatpush3.bf16.msra.mxu1 %v26188_v3 }
 0x8b9   :  { %23570 = vmatprep.subr.bf16.mxu1 %v26189_v12 }
 0x8bb   :  { %19796 = vmatmul.mubr.bf16.gmra.mrb[208].mxu1 %v19246_v28 }
 0x8bc   :  { %23341 = vmatprep.mubr.msk.bf16.mxu1 %vm1422_vm2, %v32509_v36  ;;  %v26167_v36 = vld [vmem:[%s32991_s5 + $0x60] sm:$0xff]   ;;  %23571 = vmatpush3.bf16.msra.mxu1 %v26189_v12 }
 0x8bd   :  { %23502 = vmatprep.subr.bf16.mxu0 %v26167_v36  ;;  %23572 = vmatprep.subr.bf16.mxu1 %v26190_v51 }
 0x8be   :  { %18204 = vmatmul.mubr.bf16.gmra.mrb[220].mxu0 %v32702_v30 }
 0x8bf   :  { %23503 = vmatpush3.bf16.msra.mxu0 %v26167_v36 }
 0x8c0   :  { %23504 = vmatprep.subr.bf16.mxu0 %v26168_v40  ;;  %23573 = vmatpush3.bf16.msra.mxu1 %v26190_v51 }
 0x8c3   :  { %19806 = vmatmul.mubr.bf16.gmra.mrb[212].mxu1 %v32567_v23  ;;  %23505 = vmatpush3.bf16.msra.mxu0 %v26168_v40 }
 0x8c4   :  { %23342 = vmatprep.mubr.msk.bf16.mxu1 %vm1422_vm2, %v32574_v16  ;;  %23506 = vmatprep.subr.bf16.mxu0 %v26169_v6 }
 0x8c7   :  { %23507 = vmatpush3.bf16.msra.mxu0 %v26169_v6 }
 0x8c8   :  { %23508 = vmatprep.subr.bf16.mxu0 %v26170_v53 }
 0x8cb   :  { %19816 = vmatmul.mubr.bf16.gmra.mrb[216].mxu1 %v33054_v41  ;;  %23509 = vmatpush3.bf16.msra.mxu0 %v26170_v53 }
 0x8cc   :  { %23343 = vmatprep.mubr.msk.bf16.mxu1 %vm1422_vm2, %v19253_v5  ;;  %23518 = vmatprep.subr.bf16.mxu0 %v32801_v45 }
 0x8d3   :  { %19826 = vmatmul.mubr.bf16.gmra.mrb[220].mxu1 %v19252_v18 }
 0x8d4   :  { %23344 = vmatprep.mubr.msk.bf16.mxu1 %vm1422_vm2, %v19255_v35 }
 0x8db   :  { %19836 = vmatmul.mubr.bf16.gmra.mrb[224].mxu1 %v19254_v31 }
 0x8dc   :  { %23345 = vmatprep.mubr.msk.bf16.mxu1 %vm1422_vm2, %v19582_v25 }
 0x8e3   :  { %19846 = vmatmul.mubr.bf16.gmra.mrb[228].mxu1 %v16652_v9 }
 0x8e4   :  { %23346 = vmatprep.mubr.msk.bf16.mxu1 %vm1422_vm2, %v19584_v8 }
 0x8eb   :  { %19856 = vmatmul.mubr.bf16.gmra.mrb[232].mxu1 %v16654_v26  ;;  %v26191_v26 = vld [vmem:[%s32993_s7 + $0x60] sm:$0xff]  }
 0x8ec   :  { %23574 = vmatprep.subr.bf16.mxu1 %v26191_v26 }
 0x8ed   :  { %23575 = vmatpush3.bf16.msra.mxu1 %v26191_v26 }
 0x8ee   :  { %23576 = vmatprep.subr.bf16.mxu1 %v26192_v44 }
 0x8f1   :  { %23577 = vmatpush3.bf16.msra.mxu1 %v26192_v44 }
 0x959   :  { %v18135_v46 = vpop.f32.mrb[192].mxu0 }
 0x95a   :  { %v18137_v32 = vpop.f32.mrb[193].mxu0 }
 0x95b   :  { %v18246_v23 = vmax.f32 %v18135_v46, %v18137_v32  ;;  %v18139_v16 = vpop.f32.mrb[194].mxu0 }
 0x95c   :  { %v18141_v20 = vpop.f32.mrb[195].mxu0 }
 0x95d   :  { %v18247_v2 = vmax.f32 %v18139_v16, %v18141_v20  ;;  %v18269_v39 = vadd.f32 %v32807_v49, %v18246_v23 }
 0x95f   :  { %v18270_v37 = vadd.f32 %v32807_v49, %v18247_v2  ;;  %v18285_v62 = vmax.f32 %v18269_v39, 0.0 }
 0x961   :  { %v18145_v7 = vpop.f32.mrb[196].mxu0  ;;  %v18286_v55 = vmax.f32 %v18270_v37, 0.0 }
 0x962   :  { %v18147_v57 = vpop.f32.mrb[197].mxu0 }
 0x963   :  { %v18248_v42 = vmax.f32 %v18145_v7, %v18147_v57  ;;  %v18149_v60 = vpop.f32.mrb[198].mxu0 }
 0x964   :  { %v18151_v43 = vpop.f32.mrb[199].mxu0 }
 0x965   :  { %v18249_v58 = vmax.f32 %v18149_v60, %v18151_v43  ;;  %v18271_v0 = vadd.f32 %v32807_v49, %v18248_v42 }
 0x967   :  { %v18272_v54 = vadd.f32 %v32807_v49, %v18249_v58  ;;  %v18287_v19 = vmax.f32 %v18271_v0, 0.0 }
 0x969   :  { %v18155_v22 = vpop.f32.mrb[200].mxu0  ;;  %v18288_v41 = vmax.f32 %v18272_v54, 0.0 }
 0x96a   :  { %v18157_v9 = vpop.f32.mrb[201].mxu0 }
 0x96b   :  { %v18250_v13 = vmax.f32 %v18155_v22, %v18157_v9  ;;  %v18159_v61 = vpop.f32.mrb[202].mxu0 }
 0x96c   :  { %v18161_v14 = vpop.f32.mrb[203].mxu0 }
 0x96d   :  { %v18273_v34 = vadd.f32 %v32807_v49, %v18250_v13  ;;  %v18251_v11 = vmax.f32 %v18159_v61, %v18161_v14 }
 0x96f   :  { %v18289_v4 = vmax.f32 %v18273_v34, 0.0  ;;  %v18274_v24 = vadd.f32 %v32807_v49, %v18251_v11 }
 0x971   :  { %v32822_v48 = vmax.f32 %v18285_v62, %v18289_v4  ;;  %v18290_v52 = vmax.f32 %v18274_v24, 0.0  ;;  %v18165_v33 = vpop.f32.mrb[204].mxu0 }
 0x972   :  { %v18167_v10 = vpop.f32.mrb[205].mxu0 }
 0x973   :  { %v32828_v21 = vmax.f32 %v18286_v55, %v18290_v52  ;;  %v18252_v47 = vmax.f32 %v18165_v33, %v18167_v10  ;;  %v18169_v17 = vpop.f32.mrb[206].mxu0 }
 0x974   :  { %v18171_v29 = vpop.f32.mrb[207].mxu0 }
 0x975   :  { %v18275_v30 = vadd.f32 %v32807_v49, %v18252_v47  ;;  %v18253_v50 = vmax.f32 %v18169_v17, %v18171_v29  ;;  %v18309_v15 = vpack.c.bf16 %v32828_v21, %v32822_v48  ;;  %v26178_v21 = vld [vmem:[%s32991_s5 + $0x38] sm:$0xff]  }
 0x977   :  { %v18291_v63 = vmax.f32 %v18275_v30, 0.0  ;;  %v18276_v28 = vadd.f32 %v32807_v49, %v18253_v50 }
 0x979   :  { %v32838_v5 = vmax.f32 %v18287_v19, %v18291_v63  ;;  %v18292_v18 = vmax.f32 %v18276_v28, 0.0  ;;  %v18175_v35 = vpop.f32.mrb[208].mxu0 }
 0x97a   :  { %v18177_v31 = vpop.f32.mrb[209].mxu0 }
 0x97b   :  { %v32843_v25 = vmax.f32 %v18288_v41, %v18292_v18  ;;  %v18254_v8 = vmax.f32 %v18175_v35, %v18177_v31  ;;  %v18179_v38 = vpop.f32.mrb[210].mxu0 }
 0x97c   :  { %v18181_v27 = vpop.f32.mrb[211].mxu0 }
 0x97d   :  { %v18310_v1 = vpack.c.bf16 %v32843_v25, %v32838_v5  ;;  %v18255_v56 = vmax.f32 %v18179_v38, %v18181_v27  ;;  %v18277_v43 = vadd.f32 %v32807_v49, %v18254_v8 }
 0x97f   :  { %v18278_v9 = vadd.f32 %v32807_v49, %v18255_v56  ;;  %v18293_v61 = vmax.f32 %v18277_v43, 0.0 }
 0x981   :  { %v18185_v36 = vpop.f32.mrb[212].mxu0  ;;  %v18294_v12 = vmax.f32 %v18278_v9, 0.0 }
 0x982   :  { %v18187_v40 = vpop.f32.mrb[213].mxu0 }
 0x983   :  { %v18256_v6 = vmax.f32 %v18185_v36, %v18187_v40  ;;  %v18189_v53 = vpop.f32.mrb[214].mxu0 }
 0x984   :  { %v18191_v46 = vpop.f32.mrb[215].mxu0 }
 0x985   :  { %v18257_v32 = vmax.f32 %v18189_v53, %v18191_v46  ;;  %v18279_v51 = vadd.f32 %v32807_v49, %v18256_v6 }
 0x986   :  { %v19787_v23 = vpop.f32.mrb[204].mxu1 }
 0x987   :  { %v19789_v16 = vpop.f32.mrb[205].mxu1  ;;  %v18280_v26 = vadd.f32 %v32807_v49, %v18257_v32  ;;  %v18295_v63 = vmax.f32 %v18279_v51, 0.0 }
 0x988   :  { %v19898_v20 = vmax.f32 %v19787_v23, %v19789_v16  ;;  %v19791_v2 = vpop.f32.mrb[206].mxu1 }
 0x989   :  { %v19793_v7 = vpop.f32.mrb[207].mxu1  ;;  %v18195_v57 = vpop.f32.mrb[216].mxu0  ;;  %v18296_v8 = vmax.f32 %v18280_v26, 0.0  ;;  %v26176_v26 = vld [vmem:[%s32991_s5 + $0x28] sm:$0xff]  }
 0x98a   :  { %v19899_v42 = vmax.f32 %v19791_v2, %v19793_v7  ;;  %v18197_v60 = vpop.f32.mrb[217].mxu0  ;;  %v19921_v35 = vadd.f32 %v32807_v49, %v19898_v20  ;;  %v26172_v20 = vld [vmem:[%s32991_s5 + $0x8] sm:$0xff]  }
 0x98b   :  { %v18258_v58 = vmax.f32 %v18195_v57, %v18197_v60  ;;  %v18199_v22 = vpop.f32.mrb[218].mxu0 }
 0x98c   :  { %v18201_v39 = vpop.f32.mrb[219].mxu0  ;;  %v19922_v36 = vadd.f32 %v32807_v49, %v19899_v42  ;;  %v19937_v46 = vmax.f32 %v19921_v35, 0.0 }
 0x98d   :  { %v18281_v59 = vadd.f32 %v32807_v49, %v18258_v58  ;;  %v18259_v37 = vmax.f32 %v18199_v22, %v18201_v39 }
 0x98e   :  { %v19797_v13 = vpop.f32.mrb[208].mxu1  ;;  %v19938_v2 = vmax.f32 %v19922_v36, 0.0 }
 0x98f   :  { %v18297_v3 = vmax.f32 %v18281_v59, 0.0  ;;  %v18282_v14 = vadd.f32 %v32807_v49, %v18259_v37  ;;  %v19799_v34 = vpop.f32.mrb[209].mxu1  ;;  %v26173_v59 = vld [vmem:[%s32991_s5 + $0x10] sm:$0xff]  }
 0x990   :  { %v19900_v11 = vmax.f32 %v19797_v13, %v19799_v34  ;;  %v19801_v62 = vpop.f32.mrb[210].mxu1 }
 0x991   :  { %v18305_v55 = vmax.f32 %v18293_v61, %v18297_v3  ;;  %v18298_v4 = vmax.f32 %v18282_v14, 0.0  ;;  %v19803_v24 = vpop.f32.mrb[211].mxu1  ;;  %v18205_v52 = vpop.f32.mrb[220].mxu0 }
 0x992   :  { %v19901_v33 = vmax.f32 %v19801_v62, %v19803_v24  ;;  %v18207_v10 = vpop.f32.mrb[221].mxu0  ;;  %v19923_v42 = vadd.f32 %v32807_v49, %v19900_v11 }
 0x993   :  { %v18306_v0 = vmax.f32 %v18294_v12, %v18298_v4  ;;  %v18260_v47 = vmax.f32 %v18205_v52, %v18207_v10  ;;  %v18209_v17 = vpop.f32.mrb[222].mxu0 }
 0x994   :  { %v18211_v29 = vpop.f32.mrb[223].mxu0  ;;  %v19924_v37 = vadd.f32 %v32807_v49, %v19901_v33  ;;  %v19939_v14 = vmax.f32 %v19923_v42, 0.0 }
 0x995   :  { %v18283_v54 = vadd.f32 %v32807_v49, %v18260_v47  ;;  %v18261_v30 = vmax.f32 %v18209_v17, %v18211_v29  ;;  %v32854_v50 = vpack.c.bf16 %v18306_v0, %v18305_v55  ;;  %v26175_v17 = vld [vmem:[%s32991_s5 + $0x20] sm:$0xff]  }
 0x996   :  { %v19807_v19 = vpop.f32.mrb[212].mxu1  ;;  %v19940_v62 = vmax.f32 %v19924_v37, 0.0 }
 0x997   :  { %v18299_v28 = vmax.f32 %v18283_v54, 0.0  ;;  %v18284_v41 = vadd.f32 %v32807_v49, %v18261_v30  ;;  %v19809_v18 = vpop.f32.mrb[213].mxu1  ;;  %23510 = vmatprep.mubr.bf16.mxu0 %v32854_v50 }
 0x998   :  { %v19902_v31 = vmax.f32 %v19807_v19, %v19809_v18  ;;  %v19811_v44 = vpop.f32.mrb[214].mxu1 }
 0x999   :  { %v18307_v38 = vmax.f32 %v18295_v63, %v18299_v28  ;;  %v18300_v27 = vmax.f32 %v18284_v41, 0.0  ;;  %v19813_v56 = vpop.f32.mrb[215].mxu1  ;;  %v26177_v41 = vld [vmem:[%s32991_s5 + $0x30] sm:$0xff]  }
 0x99a   :  { %v19925_v40 = vadd.f32 %v32807_v49, %v19902_v31  ;;  %v19903_v6 = vmax.f32 %v19811_v44, %v19813_v56  ;;  %v26179_v56 = vld [vmem:[%s32991_s5 + $0x80] sm:$0xff]  }
 0x99b   :  { %v18308_v53 = vmax.f32 %v18296_v8, %v18300_v27 }
 0x99c   :  { %v19941_v32 = vmax.f32 %v19925_v40, 0.0  ;;  %v19926_v23 = vadd.f32 %v32807_v49, %v19903_v6 }
 0x99d   :  { %v32862_v16 = vpack.c.bf16 %v18308_v53, %v18307_v38 }
 0x99e   :  { %v19953_v7 = vmax.f32 %v19937_v46, %v19941_v32  ;;  %v19942_v57 = vmax.f32 %v19926_v23, 0.0  ;;  %v19817_v60 = vpop.f32.mrb[216].mxu1 }
 0x99f   :  { %v19819_v43 = vpop.f32.mrb[217].mxu1  ;;  %23511 = vmatmul.mubr.bf16.vlgmr.msra.gmra.mrb[224].mxu0 %v32862_v16 }
 0x9a0   :  { %v19954_v58 = vmax.f32 %v19938_v2, %v19942_v57  ;;  %v19904_v22 = vmax.f32 %v19817_v60, %v19819_v43  ;;  %v19821_v39 = vpop.f32.mrb[218].mxu1  ;;  %23519 = vmatpush3.bf16.msra.mxu0 %v32801_v45  ;;  %v26174_v45 = vld [vmem:[%s32991_s5 + $0x18] sm:$0xff]  }
 0x9a1   :  { %v19823_v9 = vpop.f32.mrb[219].mxu1  ;;  %23520 = vmatprep.subr.bf16.mxu0 %v26172_v20 }
 0x9a2   :  { %v19927_v13 = vadd.f32 %v32807_v49, %v19904_v22  ;;  %v19905_v61 = vmax.f32 %v19821_v39, %v19823_v9  ;;  %v32875_v3 = vpack.c.bf16 %v19954_v58, %v19953_v7  ;;  %v26181_v9 = vld [vmem:[%s32991_s5 + $0x90] sm:$0xff]  }
 0x9a4   :  { %v19943_v34 = vmax.f32 %v19927_v13, 0.0  ;;  %v19928_v11 = vadd.f32 %v32807_v49, %v19905_v61  ;;  %23514 = vmatprep.mubr.bf16.mxu0 %v32875_v3  ;;  %23521 = vmatpush3.bf16.msra.mxu0 %v26172_v20  ;;  %v26180_v20 = vld [vmem:[%s32991_s5 + $0x88] sm:$0xff]   ;;  %v26182_v61 = vld [vmem:[%s32991_s5 + $0x98] sm:$0xff]  }
 0x9a5   :  { %23522 = vmatprep.subr.bf16.mxu0 %v26173_v59 }
 0x9a6   :  { %v19955_v12 = vmax.f32 %v19939_v14, %v19943_v34  ;;  %v19944_v55 = vmax.f32 %v19928_v11, 0.0  ;;  %v19827_v4 = vpop.f32.mrb[220].mxu1  ;;  %v26184_v11 = vld [vmem:[%s32991_s5 + $0xa8] sm:$0xff]  }
 0x9a7   :  { %v19829_v24 = vpop.f32.mrb[221].mxu1 }
 0x9a8   :  { %v19956_v52 = vmax.f32 %v19940_v62, %v19944_v55  ;;  %v19906_v33 = vmax.f32 %v19827_v4, %v19829_v24  ;;  %v19831_v10 = vpop.f32.mrb[222].mxu1  ;;  %23523 = vmatpush3.bf16.msra.mxu0 %v26173_v59  ;;  %v26194_v62 = vld [vmem:[%s32993_s7 + $0x78] sm:$0xff]   ;;  %v23404_v55 = vld [vmem:[%s32994_s6] ss:$0 sm:$0xff] }
 0x9a9   :  { %v19833_v51 = vpop.f32.mrb[223].mxu1  ;;  %23524 = vmatprep.subr.bf16.mxu0 %v26174_v45 }
 0x9aa   :  { %v19907_v0 = vmax.f32 %v19831_v10, %v19833_v51  ;;  %v32882_v47 = vpack.c.bf16 %v19956_v52, %v19955_v12  ;;  %v19929_v18 = vadd.f32 %v32807_v49, %v19906_v33  ;;  %v26195_v12 = vld [vmem:[%s32993_s7] sm:$0xff]  }
 0x9ac   :  { %23515 = vmatmul.mubr.bf16.gmra.mrb[228].mxu0 %v32882_v47  ;;  %v19930_v8 = vadd.f32 %v32807_v49, %v19907_v0  ;;  %v19945_v36 = vmax.f32 %v19929_v18, 0.0 }
 0x9ad   :  { %23525 = vmatpush3.bf16.msra.mxu0 %v26174_v45  ;;  %23534 = vmatprep.mubr.bf16.mxu0 %v18309_v15  ;;  %v26193_v45 = vld [vmem:[%s32993_s7 + $0x70] sm:$0xff]  }
 0x9ae   :  { %v19837_v29 = vpop.f32.mrb[224].mxu1  ;;  %23526 = vmatprep.subr.bf16.mxu0 %v26175_v17  ;;  %v19946_v53 = vmax.f32 %v19930_v8, 0.0  ;;  %23578 = vmatprep.subr.bf16.mxu1 %v26193_v45 }
 0x9af   :  { %v19839_v54 = vpop.f32.mrb[225].mxu1  ;;  %23579 = vmatpush3.bf16.msra.mxu1 %v26193_v45 }
 0x9b0   :  { %v19908_v30 = vmax.f32 %v19837_v29, %v19839_v54  ;;  %v19841_v19 = vpop.f32.mrb[226].mxu1  ;;  %23580 = vmatprep.subr.bf16.mxu1 %v26194_v62 }
 0x9b1   :  { %23527 = vmatpush3.bf16.msra.mxu0 %v26175_v17  ;;  %v19843_v63 = vpop.f32.mrb[227].mxu1 }
 0x9b2   :  { %v19909_v28 = vmax.f32 %v19841_v19, %v19843_v63  ;;  %23528 = vmatprep.subr.bf16.mxu0 %v26176_v26  ;;  %v19931_v7 = vadd.f32 %v32807_v49, %v19908_v30 }
 0x9b3   :  { %23581 = vmatpush3.bf16.msra.mxu1 %v26194_v62 }
 0x9b4   :  { %v19932_v58 = vadd.f32 %v32807_v49, %v19909_v28  ;;  %v19947_v37 = vmax.f32 %v19931_v7, 0.0  ;;  %23586 = vmatprep.subr.bf16.mxu1 %v26195_v12 }
 0x9b5   :  { %23529 = vmatpush3.bf16.msra.mxu0 %v26176_v26 }
 0x9b6   :  { %v19847_v48 = vpop.f32.mrb[228].mxu1  ;;  %23530 = vmatprep.subr.bf16.mxu0 %v26177_v41  ;;  %v19948_v25 = vmax.f32 %v19932_v58, 0.0 }
 0x9b7   :  { %v19849_v15 = vpop.f32.mrb[229].mxu1 }
 0x9b8   :  { %v19910_v35 = vmax.f32 %v19847_v48, %v19849_v15  ;;  %v19851_v31 = vpop.f32.mrb[230].mxu1 }
 0x9b9   :  { %23531 = vmatpush3.bf16.msra.mxu0 %v26177_v41  ;;  %v19853_v44 = vpop.f32.mrb[231].mxu1 }
 0x9ba   :  { %v19933_v38 = vadd.f32 %v32807_v49, %v19910_v35  ;;  %v19911_v27 = vmax.f32 %v19851_v31, %v19853_v44  ;;  %23532 = vmatprep.subr.bf16.mxu0 %v26178_v21 }
 0x9bc   :  { %v19949_v40 = vmax.f32 %v19933_v38, 0.0  ;;  %v19934_v6 = vadd.f32 %v32807_v49, %v19911_v27 }
 0x9bd   :  { %23533 = vmatpush3.bf16.msra.mxu0 %v26178_v21 }
 0x9be   :  { %v19957_v46 = vmax.f32 %v19945_v36, %v19949_v40  ;;  %v19950_v32 = vmax.f32 %v19934_v6, 0.0  ;;  %v19857_v23 = vpop.f32.mrb[232].mxu1  ;;  %23542 = vmatprep.subr.bf16.mxu0 %v26179_v56  ;;  %v26196_v36 = vld [vmem:[%s32993_s7 + $0x8] sm:$0xff]   ;;  %v26197_v40 = vld [vmem:[%s32993_s7 + $0x10] sm:$0xff]   ;;  %v26198_v6 = vld [vmem:[%s32993_s7 + $0x18] sm:$0xff]  }
 0x9bf   :  { %v19859_v2 = vpop.f32.mrb[233].mxu1 }
 0x9c0   :  { %v19958_v57 = vmax.f32 %v19946_v53, %v19950_v32  ;;  %v19912_v60 = vmax.f32 %v19857_v23, %v19859_v2  ;;  %23535 = vmatmul.mubr.bf16.vlgmr.msra.gmra.mrb[224].mxu0 %v18310_v1  ;;  %v19861_v43 = vpop.f32.mrb[234].mxu1  ;;  %v26199_v53 = vld [vmem:[%s32993_s7 + $0x20] sm:$0xff]   ;;  %v26201_v32 = vld [vmem:[%s32993_s7 + $0x30] sm:$0xff]   ;;  %v26202_v23 = vld [vmem:[%s32993_s7 + $0x38] sm:$0xff]  }
 0x9c1   :  { %23538 = vmatprep.mubr.bf16.mxu0 %v32854_v50  ;;  %23543 = vmatpush3.bf16.msra.mxu0 %v26179_v56  ;;  %v19863_v42 = vpop.f32.mrb[235].mxu1 }
 0x9c2   :  { %v19935_v22 = vadd.f32 %v32807_v49, %v19912_v60  ;;  %v19913_v39 = vmax.f32 %v19861_v43, %v19863_v42  ;;  %23544 = vmatprep.subr.bf16.mxu0 %v26180_v20  ;;  %v19963_v59 = vpack.c.bf16 %v19958_v57, %v19957_v46  ;;  %v26200_v46 = vld [vmem:[%s32993_s7 + $0x28] sm:$0xff]  }
 0x9c4   :  { %v19951_v13 = vmax.f32 %v19935_v22, 0.0  ;;  %v19936_v5 = vadd.f32 %v32807_v49, %v19913_v39  ;;  %v26183_v49 = vld [vmem:[%s32991_s5 + $0xa0] sm:$0xff]  }
 0x9c5   :  { %23545 = vmatpush3.bf16.msra.mxu0 %v26180_v20  ;;  %v23437_v20 = vld [vmem:[%s32995_s8] ss:$0 sm:$0xff] }
 0x9c6   :  { %v19959_v1 = vmax.f32 %v19947_v37, %v19951_v13  ;;  %v19952_v50 = vmax.f32 %v19936_v5, 0.0  ;;  %23546 = vmatprep.subr.bf16.mxu0 %v26181_v9 }
 0x9c8   :  { %v19960_v14 = vmax.f32 %v19948_v25, %v19952_v50  ;;  %23539 = vmatmul.mubr.bf16.gmra.mrb[228].mxu0 %v32862_v16  ;;  %v26185_v16 = vld [vmem:[%s32991_s5 + $0xb0] sm:$0xff]  }
 0x9c9   :  { %23547 = vmatpush3.bf16.msra.mxu0 %v26181_v9  ;;  %23558 = vmatprep.mubr.bf16.mxu0 %v32875_v3  ;;  %v26186_v3 = vld [vmem:[%s32991_s5 + $0xb8] sm:$0xff]  }
 0x9ca   :  { %23548 = vmatprep.subr.bf16.mxu0 %v26182_v61  ;;  %v19964_v34 = vpack.c.bf16 %v19960_v14, %v19959_v1 }
 0x9cd   :  { %23549 = vmatpush3.bf16.msra.mxu0 %v26182_v61 }
 0x9ce   :  { %23550 = vmatprep.subr.bf16.mxu0 %v26183_v49 }
 0x9d1   :  { %23551 = vmatpush3.bf16.msra.mxu0 %v26183_v49 }
 0x9d2   :  { %23552 = vmatprep.subr.bf16.mxu0 %v26184_v11 }
 0x9d5   :  { %23553 = vmatpush3.bf16.msra.mxu0 %v26184_v11 }
 0x9d6   :  { %23554 = vmatprep.subr.bf16.mxu0 %v26185_v16 }
 0x9d9   :  { %23555 = vmatpush3.bf16.msra.mxu0 %v26185_v16 }
 0x9da   :  { %23556 = vmatprep.subr.bf16.mxu0 %v26186_v3 }
 0x9dd   :  { %23557 = vmatpush3.bf16.msra.mxu0 %v26186_v3 }
 0x9e0   :  { %23559 = vmatmul.mubr.bf16.vlgmr.msra.gmra.mrb[224].mxu0 %v32882_v47 }
 0x9e1   :  { %23562 = vmatprep.mubr.bf16.mxu0 %v19963_v59 }
 0x9e8   :  { %23563 = vmatmul.mubr.bf16.gmra.mrb[228].mxu0 %v19964_v34 }
 0xab3   :  { %v23560_v4 = vpop.f32.mrb[224].mxu0 }
 0xab4   :  { %v20389_v24 = vadd.f32 %v23560_v4, %v23404_v55  ;;  %v20341_v52 = vpop.f32.mrb[225].mxu0 }
 0xab5   :  { %v20387_v33 = vadd.f32 %v23404_v55, %v20341_v52  ;;  %v23561_v10 = vpop.f32.mrb[226].mxu0 }
 0xab6   :  { %v20390_v51 = vadd.f32 %v23561_v10, %v23404_v55  ;;  %v20344_v0 = vpop.f32.mrb[227].mxu0  ;;  %v20397_v17 = vmax.f32 %v20389_v24, 0.0 }
 0xab7   :  { %v20388_v47 = vadd.f32 %v23404_v55, %v20344_v0  ;;  %v20395_v26 = vmax.f32 %v20387_v33, 0.0 }
 0xab8   :  { %v20398_v29 = vmax.f32 %v20390_v51, 0.0 }
 0xab9   :  { %v20396_v54 = vmax.f32 %v20388_v47, 0.0 }
 0xaba   :  { %v20404_v30 = vpack.c.bf16 %v20398_v29, %v20397_v17 }
 0xabb   :  { %v20403_v19 = vpack.c.bf16 %v20396_v54, %v20395_v26  ;;  %v23564_v63 = vpop.f32.mrb[228].mxu0 }
 0xabc   :  { %v20393_v28 = vadd.f32 %v23564_v63, %v23404_v55  ;;  %v20357_v41 = vpop.f32.mrb[229].mxu0 }
 0xabd   :  { %v20391_v48 = vadd.f32 %v23404_v55, %v20357_v41  ;;  %v23565_v21 = vpop.f32.mrb[230].mxu0 }
 0xabe   :  { %v20394_v15 = vadd.f32 %v23565_v21, %v23404_v55  ;;  %v20360_v18 = vpop.f32.mrb[231].mxu0  ;;  %v20401_v31 = vmax.f32 %v20393_v28, 0.0 }
 0xabf   :  { %v20392_v35 = vadd.f32 %v23404_v55, %v20360_v18  ;;  %v20399_v8 = vmax.f32 %v20391_v48, 0.0 }
 0xac0   :  { %v20402_v44 = vmax.f32 %v20394_v15, 0.0 }
 0xac1   :  { %v20400_v38 = vmax.f32 %v20392_v35, 0.0 }
 0xac2   :  { %v20406_v27 = vpack.c.bf16 %v20402_v44, %v20401_v31 }
 0xac3   :  { %v20405_v56 = vpack.c.bf16 %v20400_v38, %v20399_v8 }
 0xac5   :  { %23582 = vmatprep.mubr.bf16.mxu1 %v20405_v56 }
 0xac6   :  { %23583 = vmatmul.mubr.bf16.vlgmr.msra.gmra.mrb[236].mxu1 %v20406_v27 }
 0xac7   :  { %23587 = vmatpush3.bf16.msra.mxu1 %v26195_v12  ;;  %23602 = vmatprep.mubr.bf16.mxu1 %v20403_v19 }
 0xac8   :  { %23588 = vmatprep.subr.bf16.mxu1 %v26196_v36 }
 0xacb   :  { %23589 = vmatpush3.bf16.msra.mxu1 %v26196_v36 }
 0xacc   :  { %23590 = vmatprep.subr.bf16.mxu1 %v26197_v40 }
 0xacf   :  { %23591 = vmatpush3.bf16.msra.mxu1 %v26197_v40 }
 0xad0   :  { %23592 = vmatprep.subr.bf16.mxu1 %v26198_v6 }
 0xad3   :  { %23593 = vmatpush3.bf16.msra.mxu1 %v26198_v6 }
 0xad4   :  { %23594 = vmatprep.subr.bf16.mxu1 %v26199_v53 }
 0xad7   :  { %23595 = vmatpush3.bf16.msra.mxu1 %v26199_v53 }
 0xad8   :  { %23596 = vmatprep.subr.bf16.mxu1 %v26200_v46 }
 0xadb   :  { %23597 = vmatpush3.bf16.msra.mxu1 %v26200_v46 }
 0xadc   :  { %23598 = vmatprep.subr.bf16.mxu1 %v26201_v32 }
 0xadf   :  { %23599 = vmatpush3.bf16.msra.mxu1 %v26201_v32 }
 0xae0   :  { %23600 = vmatprep.subr.bf16.mxu1 %v26202_v23 }
 0xae3   :  { %23601 = vmatpush3.bf16.msra.mxu1 %v26202_v23 }
 0xae6   :  { %23603 = vmatmul.mubr.bf16.vlgmr.msra.gmra.mrb[236].mxu1 %v20404_v30 }
 0xbb9   :  { %v23604_v2 = vpop.f32.mrb[236].mxu1 }
 0xbba   :  { %v20643_v7 = vadd.f32 %v23604_v2, %v23437_v20  ;;  %v20619_v57 = vpop.f32.mrb[237].mxu1 }
 0xbbb   :  { %v20641_v60 = vadd.f32 %v23437_v20, %v20619_v57  ;;  %v23605_v43 = vpop.f32.mrb[238].mxu1 }
 0xbbc   :  { %v20647_v42 = vmax.f32 %v20643_v7, 0.0  ;;  %v20644_v58 = vadd.f32 %v23605_v43, %v23437_v20  ;;  %v20622_v22 = vpop.f32.mrb[239].mxu1 }
 0xbbd   :  { %v20645_v39 = vmax.f32 %v20641_v60, 0.0  ;;  %v20642_v9 = vadd.f32 %v23437_v20, %v20622_v22 }
 0xbbe   :  { %20652 = vst.msk [vmem:[%s32996_s9 + $0x10] sm:$0xff] %vm20649_vm3, %v20647_v42  ;;  %v20648_v59 = vmax.f32 %v20644_v58, 0.0 }
 0xbbf   :  { %20650 = vst.msk [vmem:[%s32996_s9] sm:$0xff] %vm20649_vm3, %v20645_v39  ;;  %v20646_v37 = vmax.f32 %v20642_v9, 0.0 }
 0xbc0   :  { %20653 = vst.msk [vmem:[%s32996_s9 + $0x18] sm:$0xff] %vm20649_vm3, %v20648_v59 }
 0xbc1   :  { %20651 = vst.msk [vmem:[%s32996_s9 + $0x8] sm:$0xff] %vm20649_vm3, %v20646_v37 }

</bundles_post_ra>
